<compile_context>
chip_gen: v7x
topology: tpu7x:2x2x1
jax: 0.10.0
libtpu: 0.0.40
codegen_flags: <defaults>
</compile_context>

<pallas_src>
import functools
import math

import jax
import jax.numpy as jnp
from jax.experimental import pallas as pl
from jax.experimental.pallas import tpu as pltpu


# ---------------------------------------------------------------------------
# fused Pallas kernel: whole DECT forward
# ---------------------------------------------------------------------------
def _dect_kernel(
    # activations
    x_ref, tgt_ref,
    # encoder params (stacked over layers on the leading axis)
    e_qkv_w, e_qkv_b, e_out_w, e_out_b,
    e_lin1_w, e_lin1_b, e_lin2_w, e_lin2_b, e_ln_g, e_ln_b,
    # decoder params (stacked over layers)
    d_sqkv_w, d_sqkv_b, d_sout_w, d_sout_b,
    d_cqkv_w, d_cqkv_b, d_cout_w, d_cout_b,
    d_lin1_w, d_lin1_b, d_lin2_w, d_lin2_b, d_ln_g, d_ln_b,
    # heads
    fc_w, fc_b, cluster_ref,
    # outputs
    recon_ref, h_ref, pred_ref, q_ref,
    *, n_head, n_layers, v, eps,
):
    f32 = jnp.float32

    def layernorm(xx, g, b):
        mean = jnp.mean(xx, axis=-1, keepdims=True)
        xc = xx - mean
        var = jnp.mean(xc * xc, axis=-1, keepdims=True)
        return xc * jax.lax.rsqrt(var + eps) * g + b

    def mha(xq, xkv, w_qkv, b_qkv, w_out, b_out, *, self_attn):
        # w_qkv: (D, 3D) pre-transposed; b_qkv: (1, 3D); w_out: (D, D); b_out: (1, D)
        sq, d = xq.shape
        dh = d // n_head
        scale = 1.0 / math.sqrt(dh)
        if self_attn:
            qkv = jnp.dot(xq, w_qkv, preferred_element_type=f32) + b_qkv  # (sq, 3D)
            q = qkv[:, :d]
            k = qkv[:, d:2 * d]
            val = qkv[:, 2 * d:]
        else:
            q = jnp.dot(xq, w_qkv[:, :d], preferred_element_type=f32) + b_qkv[:, :d]
            kv = jnp.dot(xkv, w_qkv[:, d:], preferred_element_type=f32) + b_qkv[:, d:]
            k = kv[:, :d]
            val = kv[:, d:]
        out = None
        for hh in range(n_head):
            lo, hi = hh * dh, (hh + 1) * dh
            qh, kh, vh = q[:, lo:hi], k[:, lo:hi], val[:, lo:hi]
            # scores: contract on the head dim of both (no explicit transpose)
            s = jax.lax.dot_general(qh, kh, (((1,), (1,)), ((), ())),
                                    preferred_element_type=f32) * scale
            m = jnp.max(s, axis=-1, keepdims=True)
            p = jnp.exp(s - m)
            p = p / jnp.sum(p, axis=-1, keepdims=True)
            oh = jnp.dot(p, vh, preferred_element_type=f32)                  # (sq, dh)
            # fold the head-merge into the output projection (no concat)
            contrib = jnp.dot(oh, w_out[lo:hi, :], preferred_element_type=f32)
            out = contrib if out is None else out + contrib
        return out + b_out

    def ffn(xx, w1, b1, w2, b2):
        hdn = jnp.maximum(jnp.dot(xx, w1, preferred_element_type=f32) + b1, 0.0)
        return jnp.dot(hdn, w2, preferred_element_type=f32) + b2

    # ---------------- encoder (post-norm, like nn.TransformerEncoderLayer) ----
    h = x_ref[...]
    for l in range(n_layers):
        g = e_ln_g[l]        # (2, D)
        bb = e_ln_b[l]
        a = mha(h, h, e_qkv_w[l], e_qkv_b[l], e_out_w[l], e_out_b[l], self_attn=True)
        h = layernorm(h + a, g[0:1, :], bb[0:1, :])
        f = ffn(h, e_lin1_w[l], e_lin1_b[l], e_lin2_w[l], e_lin2_b[l])
        h = layernorm(h + f, g[1:2, :], bb[1:2, :])

    # ---------------- decoder (target = uniform random, generated outside) ----
    y = tgt_ref[...]
    for l in range(n_layers):
        g = d_ln_g[l]        # (3, D)
        bb = d_ln_b[l]
        a = mha(y, y, d_sqkv_w[l], d_sqkv_b[l], d_sout_w[l], d_sout_b[l], self_attn=True)
        y = layernorm(y + a, g[0:1, :], bb[0:1, :])
        a2 = mha(y, h, d_cqkv_w[l], d_cqkv_b[l], d_cout_w[l], d_cout_b[l], self_attn=False)
        y = layernorm(y + a2, g[1:2, :], bb[1:2, :])
        f = ffn(y, d_lin1_w[l], d_lin1_b[l], d_lin2_w[l], d_lin2_b[l])
        y = layernorm(y + f, g[2:3, :], bb[2:3, :])

    # ---------------- heads -------------------------------------------------
    recon_ref[...] = y
    h_ref[...] = h
    pred_ref[...] = jnp.dot(h, fc_w[...], preferred_element_type=f32) + fc_b[...]

    # get_Q: Student-t assignment with squared distance via MXU matmuls
    c = cluster_ref[...]                                                    # (C, D)
    hc = jax.lax.dot_general(h, c, (((1,), (1,)), ((), ())),
                             preferred_element_type=f32)                    # (N, C)
    h_sq = jnp.sum(h * h, axis=-1, keepdims=True)                           # (N, 1)
    ones = jnp.ones((1, h.shape[1]), dtype=f32)
    c_sq = jax.lax.dot_general(ones, c * c, (((1,), (1,)), ((), ())),
                               preferred_element_type=f32)                  # (1, C)
    dist = jnp.maximum(h_sq + c_sq - 2.0 * hc, 0.0)
    qv = 1.0 / (1.0 + dist / v)
    expo = (v + 1.0) / 2.0
    if expo != 1.0:                       # resolved at trace time (matches torch pow)
        qv = qv ** expo
    q_ref[...] = qv / jnp.sum(qv, axis=-1, keepdims=True)


# ---------------------------------------------------------------------------
# wrapper
# ---------------------------------------------------------------------------
_PARAM_ORDER = (
    "e_qkv_w", "e_qkv_b", "e_out_w", "e_out_b",
    "e_lin1_w", "e_lin1_b", "e_lin2_w", "e_lin2_b", "e_ln_g", "e_ln_b",
    "d_sqkv_w", "d_sqkv_b", "d_sout_w", "d_sout_b",
    "d_cqkv_w", "d_cqkv_b", "d_cout_w", "d_cout_b",
    "d_lin1_w", "d_lin1_b", "d_lin2_w", "d_lin2_b", "d_ln_g", "d_ln_b",
    "fc_w", "fc_b", "cluster",
)


def _fullspec(shape):
    n = len(shape)
    return pl.BlockSpec(shape, lambda i, _n=n: (0,) * _n)


def dect_forward(packed, x, key, *, n_head, v):
    N, D = x.shape
    C = packed["cluster"].shape[0]
    L = packed["e_qkv_w"].shape[0]
    DFF = packed["e_lin1_w"].shape[-1]

    # decoder target = torch.rand(x.shape) (batch dim of size 1 squeezed away)
    tgt = jax.random.uniform(key, (N, D), dtype=jnp.float32)

    inputs = [x, tgt] + [packed[k] for k in _PARAM_ORDER]
    out_shapes = (
        jax.ShapeDtypeStruct((N, D), jnp.float32),   # reconstruction
        jax.ShapeDtypeStruct((N, D), jnp.float32),   # h (encoder memory, 2-D)
        jax.ShapeDtypeStruct((N, C), jnp.float32),   # predicted_train
        jax.ShapeDtypeStruct((N, C), jnp.float32),   # q
    )

    # advisory cost estimate for the scheduler around the fused custom call
    attn_flops = 2 * N * D * 3 * D + 4 * N * N * D + 2 * N * D * D
    ffn_flops = 4 * N * D * DFF
    flops = (L * (attn_flops + ffn_flops)            # encoder layers
             + L * (2 * attn_flops + ffn_flops)      # decoder layers
             + 4 * N * D * C)                        # fc + get_Q matmuls
    transcendentals = 3 * L * n_head * N * N + 5 * L * N
    bytes_accessed = (sum(int(math.prod(a.shape)) * 4 for a in inputs)
                      + sum(int(math.prod(s.shape)) * 4 for s in out_shapes))

    recon, h2d, pred, q = pl.pallas_call(
        functools.partial(_dect_kernel, n_head=n_head, n_layers=L,
                          v=float(v), eps=1e-5),
        out_shape=out_shapes,
        grid=(1,),
        in_specs=[_fullspec(a.shape) for a in inputs],
        out_specs=tuple(_fullspec(s.shape) for s in out_shapes),
        compiler_params=pltpu.CompilerParams(
            dimension_semantics=("arbitrary",),
            vmem_limit_bytes=32 * 1024 * 1024,   # whole model ~2 MB of weights
        ),
        cost_estimate=pl.CostEstimate(
            flops=int(flops),
            transcendentals=int(transcendentals),
            bytes_accessed=int(bytes_accessed),
        ),
    )(*inputs)

    return recon, h2d[:, None, :], None, pred, q    # h re-expanded to (N, 1, D)


# ---------------------------------------------------------------------------
# parameter init (torch layout) + one-time repack into kernel layout
# ---------------------------------------------------------------------------
def _xavier_uniform(key, shape):
    fan_out, fan_in = shape
    a = math.sqrt(6.0 / (fan_in + fan_out))
    return jax.random.uniform(key, shape, jnp.float32, -a, a)


def _xavier_normal(key, shape):
    fan_out, fan_in = shape
    std = math.sqrt(2.0 / (fan_in + fan_out))
    return std * jax.random.normal(key, shape, dtype=jnp.float32)


def _init_mha(key, d):
    k1, k2 = jax.random.split(key)
    return {
        "in_proj_w": _xavier_uniform(k1, (3 * d, d)),
        "in_proj_b": jnp.zeros((3 * d,), jnp.float32),
        "out_proj_w": _xavier_uniform(k2, (d, d)),
        "out_proj_b": jnp.zeros((d,), jnp.float32),
    }


def _init_enc_layer(key, d, dff):
    ks = jax.random.split(key, 3)
    return {
        "self_attn": _init_mha(ks[0], d),
        "lin1_w": _xavier_uniform(ks[1], (dff, d)),
        "lin1_b": jnp.zeros((dff,), jnp.float32),
        "lin2_w": _xavier_uniform(ks[2], (d, dff)),
        "lin2_b": jnp.zeros((d,), jnp.float32),
        "norm1_g": jnp.ones((d,), jnp.float32), "norm1_b": jnp.zeros((d,), jnp.float32),
        "norm2_g": jnp.ones((d,), jnp.float32), "norm2_b": jnp.zeros((d,), jnp.float32),
    }


def _init_dec_layer(key, d, dff):
    ks = jax.random.split(key, 4)
    return {
        "self_attn": _init_mha(ks[0], d),
        "cross_attn": _init_mha(ks[1], d),
        "lin1_w": _xavier_uniform(ks[2], (dff, d)),
        "lin1_b": jnp.zeros((dff,), jnp.float32),
        "lin2_w": _xavier_uniform(ks[3], (d, dff)),
        "lin2_b": jnp.zeros((d,), jnp.float32),
        "norm1_g": jnp.ones((d,), jnp.float32), "norm1_b": jnp.zeros((d,), jnp.float32),
        "norm2_g": jnp.ones((d,), jnp.float32), "norm2_b": jnp.zeros((d,), jnp.float32),
        "norm3_g": jnp.ones((d,), jnp.float32), "norm3_b": jnp.zeros((d,), jnp.float32),
    }


def init_dect_params(key, input_size, num_classes, embedding_size, dff=1024):
    keys = jax.random.split(key, 9)
    return {
        "encoder": [_init_enc_layer(keys[i], input_size, dff) for i in range(3)],
        "decoder": [_init_dec_layer(keys[3 + i], input_size, dff) for i in range(3)],
        "fc_w": _xavier_uniform(keys[6], (num_classes, input_size)),
        "fc_b": jnp.zeros((num_classes,), jnp.float32),
        "cluster": _xavier_normal(keys[7], (num_classes, embedding_size)),
    }


def pack_dect_params(params):
    """One-time repack: weights transposed to (in, out), biases as (1, out)
    rows, QKV fused, per-layer tensors stacked on a leading layer axis."""
    def t(w):
        return jnp.transpose(w)

    def row(b):
        return b.reshape(1, -1)

    enc, dec = params["encoder"], params["decoder"]
    return {
        "e_qkv_w": jnp.stack([t(l["self_attn"]["in_proj_w"]) for l in enc]),
        "e_qkv_b": jnp.stack([row(l["self_attn"]["in_proj_b"]) for l in enc]),
        "e_out_w": jnp.stack([t(l["self_attn"]["out_proj_w"]) for l in enc]),
        "e_out_b": jnp.stack([row(l["self_attn"]["out_proj_b"]) for l in enc]),
        "e_lin1_w": jnp.stack([t(l["lin1_w"]) for l in enc]),
        "e_lin1_b": jnp.stack([row(l["lin1_b"]) for l in enc]),
        "e_lin2_w": jnp.stack([t(l["lin2_w"]) for l in enc]),
        "e_lin2_b": jnp.stack([row(l["lin2_b"]) for l in enc]),
        "e_ln_g": jnp.stack([jnp.stack([l["norm1_g"], l["norm2_g"]]) for l in enc]),
        "e_ln_b": jnp.stack([jnp.stack([l["norm1_b"], l["norm2_b"]]) for l in enc]),
        "d_sqkv_w": jnp.stack([t(l["self_attn"]["in_proj_w"]) for l in dec]),
        "d_sqkv_b": jnp.stack([row(l["self_attn"]["in_proj_b"]) for l in dec]),
        "d_sout_w": jnp.stack([t(l["self_attn"]["out_proj_w"]) for l in dec]),
        "d_sout_b": jnp.stack([row(l["self_attn"]["out_proj_b"]) for l in dec]),
        "d_cqkv_w": jnp.stack([t(l["cross_attn"]["in_proj_w"]) for l in dec]),
        "d_cqkv_b": jnp.stack([row(l["cross_attn"]["in_proj_b"]) for l in dec]),
        "d_cout_w": jnp.stack([t(l["cross_attn"]["out_proj_w"]) for l in dec]),
        "d_cout_b": jnp.stack([row(l["cross_attn"]["out_proj_b"]) for l in dec]),
        "d_lin1_w": jnp.stack([t(l["lin1_w"]) for l in dec]),
        "d_lin1_b": jnp.stack([row(l["lin1_b"]) for l in dec]),
        "d_lin2_w": jnp.stack([t(l["lin2_w"]) for l in dec]),
        "d_lin2_b": jnp.stack([row(l["lin2_b"]) for l in dec]),
        "d_ln_g": jnp.stack([jnp.stack([l["norm1_g"], l["norm2_g"], l["norm3_g"]])
                             for l in dec]),
        "d_ln_b": jnp.stack([jnp.stack([l["norm1_b"], l["norm2_b"], l["norm3_b"]])
                             for l in dec]),
        "fc_w": t(params["fc_w"]),
        "fc_b": row(params["fc_b"]),
        "cluster": params["cluster"],
    }


# ---------------------------------------------------------------------------
if __name__ == "__main__":
    INPUT_SIZE = 32       # d_model (== embedding_size, required by get_Q broadcast)
    NUM_CLASSES = 4
    EMBEDDING_SIZE = 32
    N_HEAD = 4
    V = 1.0
    N = 8                 # number of samples (becomes the transformer seq length)

    root = jax.random.PRNGKey(0)
    k_params, k_x, k_rand = jax.random.split(root, 3)

    params = init_dect_params(k_params, INPUT_SIZE, NUM_CLASSES, EMBEDDING_SIZE)
    packed = pack_dect_params(params)          # one-time transpose/stack (not per call)
    x = jax.random.normal(k_x, (N, INPUT_SIZE), dtype=jnp.float32)

    fwd = jax.jit(functools.partial(dect_forward, n_head=N_HEAD, v=V))
    reconstruction, h, logvar, predicted_train, q = fwd(packed, x, k_rand)
    jax.block_until_ready((reconstruction, h, predicted_train, q))

    assert reconstruction.shape == (N, INPUT_SIZE)
    assert h.shape == (N, 1, INPUT_SIZE)
    assert logvar is None
    assert predicted_train.shape == (N, NUM_CLASSES)
    assert q.shape == (N, NUM_CLASSES)
    assert bool(jnp.all(jnp.isfinite(reconstruction)))
    assert bool(jnp.all(jnp.isfinite(q)))
    # Q rows are a probability-like normalization (sum to 1)
    assert bool(jnp.allclose(jnp.sum(q, axis=1), 1.0, atol=1e-5))

    print("KERNEL_OK")
</pallas_src>

<mosaic_0001>
module attributes {stable_mosaic.version = 11 : i64} {
  func.func @_dect_kernel(%arg0: i32, %arg1: memref<8x32xf32, #tpu.memory_space<vmem>>, %arg2: memref<8x32xf32, #tpu.memory_space<vmem>>, %arg3: memref<3x32x96xf32, #tpu.memory_space<vmem>>, %arg4: memref<3x1x96xf32, #tpu.memory_space<vmem>>, %arg5: memref<3x32x32xf32, #tpu.memory_space<vmem>>, %arg6: memref<3x1x32xf32, #tpu.memory_space<vmem>>, %arg7: memref<3x32x1024xf32, #tpu.memory_space<vmem>>, %arg8: memref<3x1x1024xf32, #tpu.memory_space<vmem>>, %arg9: memref<3x1024x32xf32, #tpu.memory_space<vmem>>, %arg10: memref<3x1x32xf32, #tpu.memory_space<vmem>>, %arg11: memref<3x2x32xf32, #tpu.memory_space<vmem>>, %arg12: memref<3x2x32xf32, #tpu.memory_space<vmem>>, %arg13: memref<3x32x96xf32, #tpu.memory_space<vmem>>, %arg14: memref<3x1x96xf32, #tpu.memory_space<vmem>>, %arg15: memref<3x32x32xf32, #tpu.memory_space<vmem>>, %arg16: memref<3x1x32xf32, #tpu.memory_space<vmem>>, %arg17: memref<3x32x96xf32, #tpu.memory_space<vmem>>, %arg18: memref<3x1x96xf32, #tpu.memory_space<vmem>>, %arg19: memref<3x32x32xf32, #tpu.memory_space<vmem>>, %arg20: memref<3x1x32xf32, #tpu.memory_space<vmem>>, %arg21: memref<3x32x1024xf32, #tpu.memory_space<vmem>>, %arg22: memref<3x1x1024xf32, #tpu.memory_space<vmem>>, %arg23: memref<3x1024x32xf32, #tpu.memory_space<vmem>>, %arg24: memref<3x1x32xf32, #tpu.memory_space<vmem>>, %arg25: memref<3x3x32xf32, #tpu.memory_space<vmem>>, %arg26: memref<3x3x32xf32, #tpu.memory_space<vmem>>, %arg27: memref<32x4xf32, #tpu.memory_space<vmem>>, %arg28: memref<1x4xf32, #tpu.memory_space<vmem>>, %arg29: memref<4x32xf32, #tpu.memory_space<vmem>>, %arg30: memref<8x32xf32, #tpu.memory_space<vmem>>, %arg31: memref<8x32xf32, #tpu.memory_space<vmem>>, %arg32: memref<8x4xf32, #tpu.memory_space<vmem>>, %arg33: memref<8x4xf32, #tpu.memory_space<vmem>>) attributes {dimension_semantics = [#tpu.dimension_semantics<arbitrary>], iteration_bounds = array<i64: 1>, scalar_prefetch = 0 : i64, scratch_operands = 0 : i64, tpu.core_type = #tpu.core_type<tc>, window_params = [{pipeline_mode = #tpu.pipeline_mode<synchronous>, transform_indices = @transform_0, window_bounds = array<i64: 8, 32>}, {pipeline_mode = #tpu.pipeline_mode<synchronous>, transform_indices = @transform_1, window_bounds = array<i64: 8, 32>}, {pipeline_mode = #tpu.pipeline_mode<synchronous>, transform_indices = @transform_2, window_bounds = array<i64: 3, 32, 96>}, {pipeline_mode = #tpu.pipeline_mode<synchronous>, transform_indices = @transform_3, window_bounds = array<i64: 3, 1, 96>}, {pipeline_mode = #tpu.pipeline_mode<synchronous>, transform_indices = @transform_4, window_bounds = array<i64: 3, 32, 32>}, {pipeline_mode = #tpu.pipeline_mode<synchronous>, transform_indices = @transform_5, window_bounds = array<i64: 3, 1, 32>}, {pipeline_mode = #tpu.pipeline_mode<synchronous>, transform_indices = @transform_6, window_bounds = array<i64: 3, 32, 1024>}, {pipeline_mode = #tpu.pipeline_mode<synchronous>, transform_indices = @transform_7, window_bounds = array<i64: 3, 1, 1024>}, {pipeline_mode = #tpu.pipeline_mode<synchronous>, transform_indices = @transform_8, window_bounds = array<i64: 3, 1024, 32>}, {pipeline_mode = #tpu.pipeline_mode<synchronous>, transform_indices = @transform_9, window_bounds = array<i64: 3, 1, 32>}, {pipeline_mode = #tpu.pipeline_mode<synchronous>, transform_indices = @transform_10, window_bounds = array<i64: 3, 2, 32>}, {pipeline_mode = #tpu.pipeline_mode<synchronous>, transform_indices = @transform_11, window_bounds = array<i64: 3, 2, 32>}, {pipeline_mode = #tpu.pipeline_mode<synchronous>, transform_indices = @transform_12, window_bounds = array<i64: 3, 32, 96>}, {pipeline_mode = #tpu.pipeline_mode<synchronous>, transform_indices = @transform_13, window_bounds = array<i64: 3, 1, 96>}, {pipeline_mode = #tpu.pipeline_mode<synchronous>, transform_indices = @transform_14, window_bounds = array<i64: 3, 32, 32>}, {pipeline_mode = #tpu.pipeline_mode<synchronous>, transform_indices = @transform_15, window_bounds = array<i64: 3, 1, 32>}, {pipeline_mode = #tpu.pipeline_mode<synchronous>, transform_indices = @transform_16, window_bounds = array<i64: 3, 32, 96>}, {pipeline_mode = #tpu.pipeline_mode<synchronous>, transform_indices = @transform_17, window_bounds = array<i64: 3, 1, 96>}, {pipeline_mode = #tpu.pipeline_mode<synchronous>, transform_indices = @transform_18, window_bounds = array<i64: 3, 32, 32>}, {pipeline_mode = #tpu.pipeline_mode<synchronous>, transform_indices = @transform_19, window_bounds = array<i64: 3, 1, 32>}, {pipeline_mode = #tpu.pipeline_mode<synchronous>, transform_indices = @transform_20, window_bounds = array<i64: 3, 32, 1024>}, {pipeline_mode = #tpu.pipeline_mode<synchronous>, transform_indices = @transform_21, window_bounds = array<i64: 3, 1, 1024>}, {pipeline_mode = #tpu.pipeline_mode<synchronous>, transform_indices = @transform_22, window_bounds = array<i64: 3, 1024, 32>}, {pipeline_mode = #tpu.pipeline_mode<synchronous>, transform_indices = @transform_23, window_bounds = array<i64: 3, 1, 32>}, {pipeline_mode = #tpu.pipeline_mode<synchronous>, transform_indices = @transform_24, window_bounds = array<i64: 3, 3, 32>}, {pipeline_mode = #tpu.pipeline_mode<synchronous>, transform_indices = @transform_25, window_bounds = array<i64: 3, 3, 32>}, {pipeline_mode = #tpu.pipeline_mode<synchronous>, transform_indices = @transform_26, window_bounds = array<i64: 32, 4>}, {pipeline_mode = #tpu.pipeline_mode<synchronous>, transform_indices = @transform_27, window_bounds = array<i64: 1, 4>}, {pipeline_mode = #tpu.pipeline_mode<synchronous>, transform_indices = @transform_28, window_bounds = array<i64: 4, 32>}, {pipeline_mode = #tpu.pipeline_mode<synchronous>, transform_indices = @transform_29, window_bounds = array<i64: 8, 32>}, {pipeline_mode = #tpu.pipeline_mode<synchronous>, transform_indices = @transform_30, window_bounds = array<i64: 8, 32>}, {pipeline_mode = #tpu.pipeline_mode<synchronous>, transform_indices = @transform_31, window_bounds = array<i64: 8, 4>}, {pipeline_mode = #tpu.pipeline_mode<synchronous>, transform_indices = @transform_32, window_bounds = array<i64: 8, 4>}]} {
    %c0 = arith.constant 0 : index
    %c0_0 = arith.constant 0 : index
    %0 = vector.load %arg1[%c0, %c0_0] : memref<8x32xf32, #tpu.memory_space<vmem>>, vector<8x32xf32>
    %c0_1 = arith.constant 0 : index
    %c0_2 = arith.constant 0 : index
    %c0_3 = arith.constant 0 : index
    %1 = vector.load %arg11[%c0_1, %c0_2, %c0_3] : memref<3x2x32xf32, #tpu.memory_space<vmem>>, vector<1x2x32xf32>
    %2 = vector.shape_cast %1 : vector<1x2x32xf32> to vector<2x32xf32>
    %c0_4 = arith.constant 0 : index
    %c0_5 = arith.constant 0 : index
    %c0_6 = arith.constant 0 : index
    %3 = vector.load %arg12[%c0_4, %c0_5, %c0_6] : memref<3x2x32xf32, #tpu.memory_space<vmem>>, vector<1x2x32xf32>
    %4 = vector.shape_cast %3 : vector<1x2x32xf32> to vector<2x32xf32>
    %c0_7 = arith.constant 0 : index
    %c0_8 = arith.constant 0 : index
    %c0_9 = arith.constant 0 : index
    %5 = vector.load %arg3[%c0_7, %c0_8, %c0_9] : memref<3x32x96xf32, #tpu.memory_space<vmem>>, vector<1x32x96xf32>
    %6 = vector.shape_cast %5 : vector<1x32x96xf32> to vector<32x96xf32>
    %c0_10 = arith.constant 0 : index
    %c0_11 = arith.constant 0 : index
    %c0_12 = arith.constant 0 : index
    %7 = vector.load %arg4[%c0_10, %c0_11, %c0_12] : memref<3x1x96xf32, #tpu.memory_space<vmem>>, vector<1x1x96xf32>
    %8 = vector.shape_cast %7 : vector<1x1x96xf32> to vector<1x96xf32>
    %c0_13 = arith.constant 0 : index
    %c0_14 = arith.constant 0 : index
    %c0_15 = arith.constant 0 : index
    %9 = vector.load %arg5[%c0_13, %c0_14, %c0_15] : memref<3x32x32xf32, #tpu.memory_space<vmem>>, vector<1x32x32xf32>
    %10 = vector.shape_cast %9 : vector<1x32x32xf32> to vector<32x32xf32>
    %c0_16 = arith.constant 0 : index
    %c0_17 = arith.constant 0 : index
    %c0_18 = arith.constant 0 : index
    %11 = vector.load %arg6[%c0_16, %c0_17, %c0_18] : memref<3x1x32xf32, #tpu.memory_space<vmem>>, vector<1x1x32xf32>
    %12 = vector.shape_cast %11 : vector<1x1x32xf32> to vector<1x32xf32>
    %cst = arith.constant dense<0.000000e+00> : vector<8x96xf32>
    %13 = tpu.matmul %0, %6, %cst {dimension_numbers = #tpu.dot_dimension_numbers<[1], [0], [0], [1], [0, 0, 1, 1], [], []>} : vector<8x32xf32>, vector<32x96xf32>, vector<8x96xf32> -> vector<8x96xf32>
    %14 = vector.broadcast %8 : vector<1x96xf32> to vector<8x96xf32>
    %15 = arith.addf %13, %14 : vector<8x96xf32>
    %16 = vector.extract_strided_slice %15 {offsets = [0, 0], sizes = [8, 32], strides = [1, 1]} : vector<8x96xf32> to vector<8x32xf32>
    %17 = vector.extract_strided_slice %15 {offsets = [0, 32], sizes = [8, 32], strides = [1, 1]} : vector<8x96xf32> to vector<8x32xf32>
    %18 = vector.extract_strided_slice %15 {offsets = [0, 64], sizes = [8, 32], strides = [1, 1]} : vector<8x96xf32> to vector<8x32xf32>
    %19 = vector.extract_strided_slice %16 {offsets = [0, 0], sizes = [8, 8], strides = [1, 1]} : vector<8x32xf32> to vector<8x8xf32>
    %20 = vector.extract_strided_slice %17 {offsets = [0, 0], sizes = [8, 8], strides = [1, 1]} : vector<8x32xf32> to vector<8x8xf32>
    %21 = vector.extract_strided_slice %18 {offsets = [0, 0], sizes = [8, 8], strides = [1, 1]} : vector<8x32xf32> to vector<8x8xf32>
    %cst_19 = arith.constant dense<0.000000e+00> : vector<8x8xf32>
    %22 = tpu.matmul %19, %20, %cst_19 {dimension_numbers = #tpu.dot_dimension_numbers<[1], [1], [0], [0], [0, 0, 1, 0], [], []>} : vector<8x8xf32>, vector<8x8xf32>, vector<8x8xf32> -> vector<8x8xf32>
    %cst_20 = arith.constant 0.353553385 : f32
    %23 = vector.broadcast %cst_20 : f32 to vector<8x8xf32>
    %24 = arith.mulf %22, %23 : vector<8x8xf32>
    %cst_21 = arith.constant dense<0xFF800000> : vector<8xf32>
    %25 = vector.multi_reduction <maximumf>, %24, %cst_21 [1] : vector<8x8xf32> to vector<8xf32>
    %26 = vector.shape_cast %25 : vector<8xf32> to vector<8x1xf32>
    %27 = vector.broadcast %26 : vector<8x1xf32> to vector<8x8xf32>
    %28 = arith.subf %24, %27 : vector<8x8xf32>
    %29 = math.exp %28 : vector<8x8xf32>
    %cst_22 = arith.constant dense<0.000000e+00> : vector<8xf32>
    %30 = vector.multi_reduction <add>, %29, %cst_22 [1] : vector<8x8xf32> to vector<8xf32>
    %31 = vector.shape_cast %30 : vector<8xf32> to vector<8x1xf32>
    %32 = vector.broadcast %31 : vector<8x1xf32> to vector<8x8xf32>
    %33 = arith.divf %29, %32 : vector<8x8xf32>
    %cst_23 = arith.constant dense<0.000000e+00> : vector<8x8xf32>
    %34 = tpu.matmul %33, %21, %cst_23 {dimension_numbers = #tpu.dot_dimension_numbers<[1], [0], [0], [1], [0, 0, 1, 1], [], []>} : vector<8x8xf32>, vector<8x8xf32>, vector<8x8xf32> -> vector<8x8xf32>
    %35 = vector.extract_strided_slice %10 {offsets = [0, 0], sizes = [8, 32], strides = [1, 1]} : vector<32x32xf32> to vector<8x32xf32>
    %cst_24 = arith.constant dense<0.000000e+00> : vector<8x32xf32>
    %36 = tpu.matmul %34, %35, %cst_24 {dimension_numbers = #tpu.dot_dimension_numbers<[1], [0], [0], [1], [0, 0, 1, 1], [], []>} : vector<8x8xf32>, vector<8x32xf32>, vector<8x32xf32> -> vector<8x32xf32>
    %37 = vector.extract_strided_slice %16 {offsets = [0, 8], sizes = [8, 8], strides = [1, 1]} : vector<8x32xf32> to vector<8x8xf32>
    %38 = vector.extract_strided_slice %17 {offsets = [0, 8], sizes = [8, 8], strides = [1, 1]} : vector<8x32xf32> to vector<8x8xf32>
    %39 = vector.extract_strided_slice %18 {offsets = [0, 8], sizes = [8, 8], strides = [1, 1]} : vector<8x32xf32> to vector<8x8xf32>
    %cst_25 = arith.constant dense<0.000000e+00> : vector<8x8xf32>
    %40 = tpu.matmul %37, %38, %cst_25 {dimension_numbers = #tpu.dot_dimension_numbers<[1], [1], [0], [0], [0, 0, 1, 0], [], []>} : vector<8x8xf32>, vector<8x8xf32>, vector<8x8xf32> -> vector<8x8xf32>
    %cst_26 = arith.constant 0.353553385 : f32
    %41 = vector.broadcast %cst_26 : f32 to vector<8x8xf32>
    %42 = arith.mulf %40, %41 : vector<8x8xf32>
    %cst_27 = arith.constant dense<0xFF800000> : vector<8xf32>
    %43 = vector.multi_reduction <maximumf>, %42, %cst_27 [1] : vector<8x8xf32> to vector<8xf32>
    %44 = vector.shape_cast %43 : vector<8xf32> to vector<8x1xf32>
    %45 = vector.broadcast %44 : vector<8x1xf32> to vector<8x8xf32>
    %46 = arith.subf %42, %45 : vector<8x8xf32>
    %47 = math.exp %46 : vector<8x8xf32>
    %cst_28 = arith.constant dense<0.000000e+00> : vector<8xf32>
    %48 = vector.multi_reduction <add>, %47, %cst_28 [1] : vector<8x8xf32> to vector<8xf32>
    %49 = vector.shape_cast %48 : vector<8xf32> to vector<8x1xf32>
    %50 = vector.broadcast %49 : vector<8x1xf32> to vector<8x8xf32>
    %51 = arith.divf %47, %50 : vector<8x8xf32>
    %cst_29 = arith.constant dense<0.000000e+00> : vector<8x8xf32>
    %52 = tpu.matmul %51, %39, %cst_29 {dimension_numbers = #tpu.dot_dimension_numbers<[1], [0], [0], [1], [0, 0, 1, 1], [], []>} : vector<8x8xf32>, vector<8x8xf32>, vector<8x8xf32> -> vector<8x8xf32>
    %53 = vector.extract_strided_slice %10 {offsets = [8, 0], sizes = [8, 32], strides = [1, 1]} : vector<32x32xf32> to vector<8x32xf32>
    %cst_30 = arith.constant dense<0.000000e+00> : vector<8x32xf32>
    %54 = tpu.matmul %52, %53, %cst_30 {dimension_numbers = #tpu.dot_dimension_numbers<[1], [0], [0], [1], [0, 0, 1, 1], [], []>} : vector<8x8xf32>, vector<8x32xf32>, vector<8x32xf32> -> vector<8x32xf32>
    %55 = arith.addf %36, %54 : vector<8x32xf32>
    %56 = vector.extract_strided_slice %16 {offsets = [0, 16], sizes = [8, 8], strides = [1, 1]} : vector<8x32xf32> to vector<8x8xf32>
    %57 = vector.extract_strided_slice %17 {offsets = [0, 16], sizes = [8, 8], strides = [1, 1]} : vector<8x32xf32> to vector<8x8xf32>
    %58 = vector.extract_strided_slice %18 {offsets = [0, 16], sizes = [8, 8], strides = [1, 1]} : vector<8x32xf32> to vector<8x8xf32>
    %cst_31 = arith.constant dense<0.000000e+00> : vector<8x8xf32>
    %59 = tpu.matmul %56, %57, %cst_31 {dimension_numbers = #tpu.dot_dimension_numbers<[1], [1], [0], [0], [0, 0, 1, 0], [], []>} : vector<8x8xf32>, vector<8x8xf32>, vector<8x8xf32> -> vector<8x8xf32>
    %cst_32 = arith.constant 0.353553385 : f32
    %60 = vector.broadcast %cst_32 : f32 to vector<8x8xf32>
    %61 = arith.mulf %59, %60 : vector<8x8xf32>
    %cst_33 = arith.constant dense<0xFF800000> : vector<8xf32>
    %62 = vector.multi_reduction <maximumf>, %61, %cst_33 [1] : vector<8x8xf32> to vector<8xf32>
    %63 = vector.shape_cast %62 : vector<8xf32> to vector<8x1xf32>
    %64 = vector.broadcast %63 : vector<8x1xf32> to vector<8x8xf32>
    %65 = arith.subf %61, %64 : vector<8x8xf32>
    %66 = math.exp %65 : vector<8x8xf32>
    %cst_34 = arith.constant dense<0.000000e+00> : vector<8xf32>
    %67 = vector.multi_reduction <add>, %66, %cst_34 [1] : vector<8x8xf32> to vector<8xf32>
    %68 = vector.shape_cast %67 : vector<8xf32> to vector<8x1xf32>
    %69 = vector.broadcast %68 : vector<8x1xf32> to vector<8x8xf32>
    %70 = arith.divf %66, %69 : vector<8x8xf32>
    %cst_35 = arith.constant dense<0.000000e+00> : vector<8x8xf32>
    %71 = tpu.matmul %70, %58, %cst_35 {dimension_numbers = #tpu.dot_dimension_numbers<[1], [0], [0], [1], [0, 0, 1, 1], [], []>} : vector<8x8xf32>, vector<8x8xf32>, vector<8x8xf32> -> vector<8x8xf32>
    %72 = vector.extract_strided_slice %10 {offsets = [16, 0], sizes = [8, 32], strides = [1, 1]} : vector<32x32xf32> to vector<8x32xf32>
    %cst_36 = arith.constant dense<0.000000e+00> : vector<8x32xf32>
    %73 = tpu.matmul %71, %72, %cst_36 {dimension_numbers = #tpu.dot_dimension_numbers<[1], [0], [0], [1], [0, 0, 1, 1], [], []>} : vector<8x8xf32>, vector<8x32xf32>, vector<8x32xf32> -> vector<8x32xf32>
    %74 = arith.addf %55, %73 : vector<8x32xf32>
    %75 = vector.extract_strided_slice %16 {offsets = [0, 24], sizes = [8, 8], strides = [1, 1]} : vector<8x32xf32> to vector<8x8xf32>
    %76 = vector.extract_strided_slice %17 {offsets = [0, 24], sizes = [8, 8], strides = [1, 1]} : vector<8x32xf32> to vector<8x8xf32>
    %77 = vector.extract_strided_slice %18 {offsets = [0, 24], sizes = [8, 8], strides = [1, 1]} : vector<8x32xf32> to vector<8x8xf32>
    %cst_37 = arith.constant dense<0.000000e+00> : vector<8x8xf32>
    %78 = tpu.matmul %75, %76, %cst_37 {dimension_numbers = #tpu.dot_dimension_numbers<[1], [1], [0], [0], [0, 0, 1, 0], [], []>} : vector<8x8xf32>, vector<8x8xf32>, vector<8x8xf32> -> vector<8x8xf32>
    %cst_38 = arith.constant 0.353553385 : f32
    %79 = vector.broadcast %cst_38 : f32 to vector<8x8xf32>
    %80 = arith.mulf %78, %79 : vector<8x8xf32>
    %cst_39 = arith.constant dense<0xFF800000> : vector<8xf32>
    %81 = vector.multi_reduction <maximumf>, %80, %cst_39 [1] : vector<8x8xf32> to vector<8xf32>
    %82 = vector.shape_cast %81 : vector<8xf32> to vector<8x1xf32>
    %83 = vector.broadcast %82 : vector<8x1xf32> to vector<8x8xf32>
    %84 = arith.subf %80, %83 : vector<8x8xf32>
    %85 = math.exp %84 : vector<8x8xf32>
    %cst_40 = arith.constant dense<0.000000e+00> : vector<8xf32>
    %86 = vector.multi_reduction <add>, %85, %cst_40 [1] : vector<8x8xf32> to vector<8xf32>
    %87 = vector.shape_cast %86 : vector<8xf32> to vector<8x1xf32>
    %88 = vector.broadcast %87 : vector<8x1xf32> to vector<8x8xf32>
    %89 = arith.divf %85, %88 : vector<8x8xf32>
    %cst_41 = arith.constant dense<0.000000e+00> : vector<8x8xf32>
    %90 = tpu.matmul %89, %77, %cst_41 {dimension_numbers = #tpu.dot_dimension_numbers<[1], [0], [0], [1], [0, 0, 1, 1], [], []>} : vector<8x8xf32>, vector<8x8xf32>, vector<8x8xf32> -> vector<8x8xf32>
    %91 = vector.extract_strided_slice %10 {offsets = [24, 0], sizes = [8, 32], strides = [1, 1]} : vector<32x32xf32> to vector<8x32xf32>
    %cst_42 = arith.constant dense<0.000000e+00> : vector<8x32xf32>
    %92 = tpu.matmul %90, %91, %cst_42 {dimension_numbers = #tpu.dot_dimension_numbers<[1], [0], [0], [1], [0, 0, 1, 1], [], []>} : vector<8x8xf32>, vector<8x32xf32>, vector<8x32xf32> -> vector<8x32xf32>
    %93 = arith.addf %74, %92 : vector<8x32xf32>
    %94 = vector.broadcast %12 : vector<1x32xf32> to vector<8x32xf32>
    %95 = arith.addf %93, %94 : vector<8x32xf32>
    %96 = arith.addf %0, %95 : vector<8x32xf32>
    %97 = vector.extract_strided_slice %2 {offsets = [0, 0], sizes = [1, 32], strides = [1, 1]} : vector<2x32xf32> to vector<1x32xf32>
    %98 = vector.extract_strided_slice %4 {offsets = [0, 0], sizes = [1, 32], strides = [1, 1]} : vector<2x32xf32> to vector<1x32xf32>
    %cst_43 = arith.constant dense<0.000000e+00> : vector<8xf32>
    %99 = vector.multi_reduction <add>, %96, %cst_43 [1] : vector<8x32xf32> to vector<8xf32>
    %100 = vector.shape_cast %99 : vector<8xf32> to vector<8x1xf32>
    %cst_44 = arith.constant 3.200000e+01 : f32
    %101 = vector.broadcast %cst_44 : f32 to vector<8x1xf32>
    %102 = arith.divf %100, %101 : vector<8x1xf32>
    %103 = vector.broadcast %102 : vector<8x1xf32> to vector<8x32xf32>
    %104 = arith.subf %96, %103 : vector<8x32xf32>
    %105 = arith.mulf %104, %104 : vector<8x32xf32>
    %cst_45 = arith.constant dense<0.000000e+00> : vector<8xf32>
    %106 = vector.multi_reduction <add>, %105, %cst_45 [1] : vector<8x32xf32> to vector<8xf32>
    %107 = vector.shape_cast %106 : vector<8xf32> to vector<8x1xf32>
    %cst_46 = arith.constant 3.200000e+01 : f32
    %108 = vector.broadcast %cst_46 : f32 to vector<8x1xf32>
    %109 = arith.divf %107, %108 : vector<8x1xf32>
    %cst_47 = arith.constant 9.99999974E-6 : f32
    %110 = vector.broadcast %cst_47 : f32 to vector<8x1xf32>
    %111 = arith.addf %109, %110 : vector<8x1xf32>
    %112 = math.rsqrt %111 : vector<8x1xf32>
    %113 = vector.broadcast %112 : vector<8x1xf32> to vector<8x32xf32>
    %114 = arith.mulf %104, %113 : vector<8x32xf32>
    %115 = vector.broadcast %97 : vector<1x32xf32> to vector<8x32xf32>
    %116 = arith.mulf %114, %115 : vector<8x32xf32>
    %117 = vector.broadcast %98 : vector<1x32xf32> to vector<8x32xf32>
    %118 = arith.addf %116, %117 : vector<8x32xf32>
    %c0_48 = arith.constant 0 : index
    %c0_49 = arith.constant 0 : index
    %c0_50 = arith.constant 0 : index
    %119 = vector.load %arg7[%c0_48, %c0_49, %c0_50] : memref<3x32x1024xf32, #tpu.memory_space<vmem>>, vector<1x32x1024xf32>
    %120 = vector.shape_cast %119 : vector<1x32x1024xf32> to vector<32x1024xf32>
    %c0_51 = arith.constant 0 : index
    %c0_52 = arith.constant 0 : index
    %c0_53 = arith.constant 0 : index
    %121 = vector.load %arg8[%c0_51, %c0_52, %c0_53] : memref<3x1x1024xf32, #tpu.memory_space<vmem>>, vector<1x1x1024xf32>
    %122 = vector.shape_cast %121 : vector<1x1x1024xf32> to vector<1x1024xf32>
    %c0_54 = arith.constant 0 : index
    %c0_55 = arith.constant 0 : index
    %c0_56 = arith.constant 0 : index
    %123 = vector.load %arg9[%c0_54, %c0_55, %c0_56] : memref<3x1024x32xf32, #tpu.memory_space<vmem>>, vector<1x1024x32xf32>
    %124 = vector.shape_cast %123 : vector<1x1024x32xf32> to vector<1024x32xf32>
    %c0_57 = arith.constant 0 : index
    %c0_58 = arith.constant 0 : index
    %c0_59 = arith.constant 0 : index
    %125 = vector.load %arg10[%c0_57, %c0_58, %c0_59] : memref<3x1x32xf32, #tpu.memory_space<vmem>>, vector<1x1x32xf32>
    %126 = vector.shape_cast %125 : vector<1x1x32xf32> to vector<1x32xf32>
    %cst_60 = arith.constant dense<0.000000e+00> : vector<8x1024xf32>
    %127 = tpu.matmul %118, %120, %cst_60 {dimension_numbers = #tpu.dot_dimension_numbers<[1], [0], [0], [1], [0, 0, 1, 1], [], []>} : vector<8x32xf32>, vector<32x1024xf32>, vector<8x1024xf32> -> vector<8x1024xf32>
    %128 = vector.broadcast %122 : vector<1x1024xf32> to vector<8x1024xf32>
    %129 = arith.addf %127, %128 : vector<8x1024xf32>
    %cst_61 = arith.constant 0.000000e+00 : f32
    %130 = vector.broadcast %cst_61 : f32 to vector<8x1024xf32>
    %131 = arith.maximumf %129, %130 : vector<8x1024xf32>
    %cst_62 = arith.constant dense<0.000000e+00> : vector<8x32xf32>
    %132 = tpu.matmul %131, %124, %cst_62 {dimension_numbers = #tpu.dot_dimension_numbers<[1], [0], [0], [1], [0, 0, 1, 1], [], []>} : vector<8x1024xf32>, vector<1024x32xf32>, vector<8x32xf32> -> vector<8x32xf32>
    %133 = vector.broadcast %126 : vector<1x32xf32> to vector<8x32xf32>
    %134 = arith.addf %132, %133 : vector<8x32xf32>
    %135 = arith.addf %118, %134 : vector<8x32xf32>
    %136 = vector.extract_strided_slice %2 {offsets = [1, 0], sizes = [1, 32], strides = [1, 1]} : vector<2x32xf32> to vector<1x32xf32>
    %137 = vector.extract_strided_slice %4 {offsets = [1, 0], sizes = [1, 32], strides = [1, 1]} : vector<2x32xf32> to vector<1x32xf32>
    %cst_63 = arith.constant dense<0.000000e+00> : vector<8xf32>
    %138 = vector.multi_reduction <add>, %135, %cst_63 [1] : vector<8x32xf32> to vector<8xf32>
    %139 = vector.shape_cast %138 : vector<8xf32> to vector<8x1xf32>
    %cst_64 = arith.constant 3.200000e+01 : f32
    %140 = vector.broadcast %cst_64 : f32 to vector<8x1xf32>
    %141 = arith.divf %139, %140 : vector<8x1xf32>
    %142 = vector.broadcast %141 : vector<8x1xf32> to vector<8x32xf32>
    %143 = arith.subf %135, %142 : vector<8x32xf32>
    %144 = arith.mulf %143, %143 : vector<8x32xf32>
    %cst_65 = arith.constant dense<0.000000e+00> : vector<8xf32>
    %145 = vector.multi_reduction <add>, %144, %cst_65 [1] : vector<8x32xf32> to vector<8xf32>
    %146 = vector.shape_cast %145 : vector<8xf32> to vector<8x1xf32>
    %cst_66 = arith.constant 3.200000e+01 : f32
    %147 = vector.broadcast %cst_66 : f32 to vector<8x1xf32>
    %148 = arith.divf %146, %147 : vector<8x1xf32>
    %cst_67 = arith.constant 9.99999974E-6 : f32
    %149 = vector.broadcast %cst_67 : f32 to vector<8x1xf32>
    %150 = arith.addf %148, %149 : vector<8x1xf32>
    %151 = math.rsqrt %150 : vector<8x1xf32>
    %152 = vector.broadcast %151 : vector<8x1xf32> to vector<8x32xf32>
    %153 = arith.mulf %143, %152 : vector<8x32xf32>
    %154 = vector.broadcast %136 : vector<1x32xf32> to vector<8x32xf32>
    %155 = arith.mulf %153, %154 : vector<8x32xf32>
    %156 = vector.broadcast %137 : vector<1x32xf32> to vector<8x32xf32>
    %157 = arith.addf %155, %156 : vector<8x32xf32>
    %c1 = arith.constant 1 : index
    %c0_68 = arith.constant 0 : index
    %c0_69 = arith.constant 0 : index
    %158 = vector.load %arg11[%c1, %c0_68, %c0_69] : memref<3x2x32xf32, #tpu.memory_space<vmem>>, vector<1x2x32xf32>
    %159 = vector.shape_cast %158 : vector<1x2x32xf32> to vector<2x32xf32>
    %c1_70 = arith.constant 1 : index
    %c0_71 = arith.constant 0 : index
    %c0_72 = arith.constant 0 : index
    %160 = vector.load %arg12[%c1_70, %c0_71, %c0_72] : memref<3x2x32xf32, #tpu.memory_space<vmem>>, vector<1x2x32xf32>
    %161 = vector.shape_cast %160 : vector<1x2x32xf32> to vector<2x32xf32>
    %c1_73 = arith.constant 1 : index
    %c0_74 = arith.constant 0 : index
    %c0_75 = arith.constant 0 : index
    %162 = vector.load %arg3[%c1_73, %c0_74, %c0_75] : memref<3x32x96xf32, #tpu.memory_space<vmem>>, vector<1x32x96xf32>
    %163 = vector.shape_cast %162 : vector<1x32x96xf32> to vector<32x96xf32>
    %c1_76 = arith.constant 1 : index
    %c0_77 = arith.constant 0 : index
    %c0_78 = arith.constant 0 : index
    %164 = vector.load %arg4[%c1_76, %c0_77, %c0_78] : memref<3x1x96xf32, #tpu.memory_space<vmem>>, vector<1x1x96xf32>
    %165 = vector.shape_cast %164 : vector<1x1x96xf32> to vector<1x96xf32>
    %c1_79 = arith.constant 1 : index
    %c0_80 = arith.constant 0 : index
    %c0_81 = arith.constant 0 : index
    %166 = vector.load %arg5[%c1_79, %c0_80, %c0_81] : memref<3x32x32xf32, #tpu.memory_space<vmem>>, vector<1x32x32xf32>
    %167 = vector.shape_cast %166 : vector<1x32x32xf32> to vector<32x32xf32>
    %c1_82 = arith.constant 1 : index
    %c0_83 = arith.constant 0 : index
    %c0_84 = arith.constant 0 : index
    %168 = vector.load %arg6[%c1_82, %c0_83, %c0_84] : memref<3x1x32xf32, #tpu.memory_space<vmem>>, vector<1x1x32xf32>
    %169 = vector.shape_cast %168 : vector<1x1x32xf32> to vector<1x32xf32>
    %cst_85 = arith.constant dense<0.000000e+00> : vector<8x96xf32>
    %170 = tpu.matmul %157, %163, %cst_85 {dimension_numbers = #tpu.dot_dimension_numbers<[1], [0], [0], [1], [0, 0, 1, 1], [], []>} : vector<8x32xf32>, vector<32x96xf32>, vector<8x96xf32> -> vector<8x96xf32>
    %171 = vector.broadcast %165 : vector<1x96xf32> to vector<8x96xf32>
    %172 = arith.addf %170, %171 : vector<8x96xf32>
    %173 = vector.extract_strided_slice %172 {offsets = [0, 0], sizes = [8, 32], strides = [1, 1]} : vector<8x96xf32> to vector<8x32xf32>
    %174 = vector.extract_strided_slice %172 {offsets = [0, 32], sizes = [8, 32], strides = [1, 1]} : vector<8x96xf32> to vector<8x32xf32>
    %175 = vector.extract_strided_slice %172 {offsets = [0, 64], sizes = [8, 32], strides = [1, 1]} : vector<8x96xf32> to vector<8x32xf32>
    %176 = vector.extract_strided_slice %173 {offsets = [0, 0], sizes = [8, 8], strides = [1, 1]} : vector<8x32xf32> to vector<8x8xf32>
    %177 = vector.extract_strided_slice %174 {offsets = [0, 0], sizes = [8, 8], strides = [1, 1]} : vector<8x32xf32> to vector<8x8xf32>
    %178 = vector.extract_strided_slice %175 {offsets = [0, 0], sizes = [8, 8], strides = [1, 1]} : vector<8x32xf32> to vector<8x8xf32>
    %cst_86 = arith.constant dense<0.000000e+00> : vector<8x8xf32>
    %179 = tpu.matmul %176, %177, %cst_86 {dimension_numbers = #tpu.dot_dimension_numbers<[1], [1], [0], [0], [0, 0, 1, 0], [], []>} : vector<8x8xf32>, vector<8x8xf32>, vector<8x8xf32> -> vector<8x8xf32>
    %cst_87 = arith.constant 0.353553385 : f32
    %180 = vector.broadcast %cst_87 : f32 to vector<8x8xf32>
    %181 = arith.mulf %179, %180 : vector<8x8xf32>
    %cst_88 = arith.constant dense<0xFF800000> : vector<8xf32>
    %182 = vector.multi_reduction <maximumf>, %181, %cst_88 [1] : vector<8x8xf32> to vector<8xf32>
    %183 = vector.shape_cast %182 : vector<8xf32> to vector<8x1xf32>
    %184 = vector.broadcast %183 : vector<8x1xf32> to vector<8x8xf32>
    %185 = arith.subf %181, %184 : vector<8x8xf32>
    %186 = math.exp %185 : vector<8x8xf32>
    %cst_89 = arith.constant dense<0.000000e+00> : vector<8xf32>
    %187 = vector.multi_reduction <add>, %186, %cst_89 [1] : vector<8x8xf32> to vector<8xf32>
    %188 = vector.shape_cast %187 : vector<8xf32> to vector<8x1xf32>
    %189 = vector.broadcast %188 : vector<8x1xf32> to vector<8x8xf32>
    %190 = arith.divf %186, %189 : vector<8x8xf32>
    %cst_90 = arith.constant dense<0.000000e+00> : vector<8x8xf32>
    %191 = tpu.matmul %190, %178, %cst_90 {dimension_numbers = #tpu.dot_dimension_numbers<[1], [0], [0], [1], [0, 0, 1, 1], [], []>} : vector<8x8xf32>, vector<8x8xf32>, vector<8x8xf32> -> vector<8x8xf32>
    %192 = vector.extract_strided_slice %167 {offsets = [0, 0], sizes = [8, 32], strides = [1, 1]} : vector<32x32xf32> to vector<8x32xf32>
    %cst_91 = arith.constant dense<0.000000e+00> : vector<8x32xf32>
    %193 = tpu.matmul %191, %192, %cst_91 {dimension_numbers = #tpu.dot_dimension_numbers<[1], [0], [0], [1], [0, 0, 1, 1], [], []>} : vector<8x8xf32>, vector<8x32xf32>, vector<8x32xf32> -> vector<8x32xf32>
    %194 = vector.extract_strided_slice %173 {offsets = [0, 8], sizes = [8, 8], strides = [1, 1]} : vector<8x32xf32> to vector<8x8xf32>
    %195 = vector.extract_strided_slice %174 {offsets = [0, 8], sizes = [8, 8], strides = [1, 1]} : vector<8x32xf32> to vector<8x8xf32>
    %196 = vector.extract_strided_slice %175 {offsets = [0, 8], sizes = [8, 8], strides = [1, 1]} : vector<8x32xf32> to vector<8x8xf32>
    %cst_92 = arith.constant dense<0.000000e+00> : vector<8x8xf32>
    %197 = tpu.matmul %194, %195, %cst_92 {dimension_numbers = #tpu.dot_dimension_numbers<[1], [1], [0], [0], [0, 0, 1, 0], [], []>} : vector<8x8xf32>, vector<8x8xf32>, vector<8x8xf32> -> vector<8x8xf32>
    %cst_93 = arith.constant 0.353553385 : f32
    %198 = vector.broadcast %cst_93 : f32 to vector<8x8xf32>
    %199 = arith.mulf %197, %198 : vector<8x8xf32>
    %cst_94 = arith.constant dense<0xFF800000> : vector<8xf32>
    %200 = vector.multi_reduction <maximumf>, %199, %cst_94 [1] : vector<8x8xf32> to vector<8xf32>
    %201 = vector.shape_cast %200 : vector<8xf32> to vector<8x1xf32>
    %202 = vector.broadcast %201 : vector<8x1xf32> to vector<8x8xf32>
    %203 = arith.subf %199, %202 : vector<8x8xf32>
    %204 = math.exp %203 : vector<8x8xf32>
    %cst_95 = arith.constant dense<0.000000e+00> : vector<8xf32>
    %205 = vector.multi_reduction <add>, %204, %cst_95 [1] : vector<8x8xf32> to vector<8xf32>
    %206 = vector.shape_cast %205 : vector<8xf32> to vector<8x1xf32>
    %207 = vector.broadcast %206 : vector<8x1xf32> to vector<8x8xf32>
    %208 = arith.divf %204, %207 : vector<8x8xf32>
    %cst_96 = arith.constant dense<0.000000e+00> : vector<8x8xf32>
    %209 = tpu.matmul %208, %196, %cst_96 {dimension_numbers = #tpu.dot_dimension_numbers<[1], [0], [0], [1], [0, 0, 1, 1], [], []>} : vector<8x8xf32>, vector<8x8xf32>, vector<8x8xf32> -> vector<8x8xf32>
    %210 = vector.extract_strided_slice %167 {offsets = [8, 0], sizes = [8, 32], strides = [1, 1]} : vector<32x32xf32> to vector<8x32xf32>
    %cst_97 = arith.constant dense<0.000000e+00> : vector<8x32xf32>
    %211 = tpu.matmul %209, %210, %cst_97 {dimension_numbers = #tpu.dot_dimension_numbers<[1], [0], [0], [1], [0, 0, 1, 1], [], []>} : vector<8x8xf32>, vector<8x32xf32>, vector<8x32xf32> -> vector<8x32xf32>
    %212 = arith.addf %193, %211 : vector<8x32xf32>
    %213 = vector.extract_strided_slice %173 {offsets = [0, 16], sizes = [8, 8], strides = [1, 1]} : vector<8x32xf32> to vector<8x8xf32>
    %214 = vector.extract_strided_slice %174 {offsets = [0, 16], sizes = [8, 8], strides = [1, 1]} : vector<8x32xf32> to vector<8x8xf32>
    %215 = vector.extract_strided_slice %175 {offsets = [0, 16], sizes = [8, 8], strides = [1, 1]} : vector<8x32xf32> to vector<8x8xf32>
    %cst_98 = arith.constant dense<0.000000e+00> : vector<8x8xf32>
    %216 = tpu.matmul %213, %214, %cst_98 {dimension_numbers = #tpu.dot_dimension_numbers<[1], [1], [0], [0], [0, 0, 1, 0], [], []>} : vector<8x8xf32>, vector<8x8xf32>, vector<8x8xf32> -> vector<8x8xf32>
    %cst_99 = arith.constant 0.353553385 : f32
    %217 = vector.broadcast %cst_99 : f32 to vector<8x8xf32>
    %218 = arith.mulf %216, %217 : vector<8x8xf32>
    %cst_100 = arith.constant dense<0xFF800000> : vector<8xf32>
    %219 = vector.multi_reduction <maximumf>, %218, %cst_100 [1] : vector<8x8xf32> to vector<8xf32>
    %220 = vector.shape_cast %219 : vector<8xf32> to vector<8x1xf32>
    %221 = vector.broadcast %220 : vector<8x1xf32> to vector<8x8xf32>
    %222 = arith.subf %218, %221 : vector<8x8xf32>
    %223 = math.exp %222 : vector<8x8xf32>
    %cst_101 = arith.constant dense<0.000000e+00> : vector<8xf32>
    %224 = vector.multi_reduction <add>, %223, %cst_101 [1] : vector<8x8xf32> to vector<8xf32>
    %225 = vector.shape_cast %224 : vector<8xf32> to vector<8x1xf32>
    %226 = vector.broadcast %225 : vector<8x1xf32> to vector<8x8xf32>
    %227 = arith.divf %223, %226 : vector<8x8xf32>
    %cst_102 = arith.constant dense<0.000000e+00> : vector<8x8xf32>
    %228 = tpu.matmul %227, %215, %cst_102 {dimension_numbers = #tpu.dot_dimension_numbers<[1], [0], [0], [1], [0, 0, 1, 1], [], []>} : vector<8x8xf32>, vector<8x8xf32>, vector<8x8xf32> -> vector<8x8xf32>
    %229 = vector.extract_strided_slice %167 {offsets = [16, 0], sizes = [8, 32], strides = [1, 1]} : vector<32x32xf32> to vector<8x32xf32>
    %cst_103 = arith.constant dense<0.000000e+00> : vector<8x32xf32>
    %230 = tpu.matmul %228, %229, %cst_103 {dimension_numbers = #tpu.dot_dimension_numbers<[1], [0], [0], [1], [0, 0, 1, 1], [], []>} : vector<8x8xf32>, vector<8x32xf32>, vector<8x32xf32> -> vector<8x32xf32>
    %231 = arith.addf %212, %230 : vector<8x32xf32>
    %232 = vector.extract_strided_slice %173 {offsets = [0, 24], sizes = [8, 8], strides = [1, 1]} : vector<8x32xf32> to vector<8x8xf32>
    %233 = vector.extract_strided_slice %174 {offsets = [0, 24], sizes = [8, 8], strides = [1, 1]} : vector<8x32xf32> to vector<8x8xf32>
    %234 = vector.extract_strided_slice %175 {offsets = [0, 24], sizes = [8, 8], strides = [1, 1]} : vector<8x32xf32> to vector<8x8xf32>
    %cst_104 = arith.constant dense<0.000000e+00> : vector<8x8xf32>
    %235 = tpu.matmul %232, %233, %cst_104 {dimension_numbers = #tpu.dot_dimension_numbers<[1], [1], [0], [0], [0, 0, 1, 0], [], []>} : vector<8x8xf32>, vector<8x8xf32>, vector<8x8xf32> -> vector<8x8xf32>
    %cst_105 = arith.constant 0.353553385 : f32
    %236 = vector.broadcast %cst_105 : f32 to vector<8x8xf32>
    %237 = arith.mulf %235, %236 : vector<8x8xf32>
    %cst_106 = arith.constant dense<0xFF800000> : vector<8xf32>
    %238 = vector.multi_reduction <maximumf>, %237, %cst_106 [1] : vector<8x8xf32> to vector<8xf32>
    %239 = vector.shape_cast %238 : vector<8xf32> to vector<8x1xf32>
    %240 = vector.broadcast %239 : vector<8x1xf32> to vector<8x8xf32>
    %241 = arith.subf %237, %240 : vector<8x8xf32>
    %242 = math.exp %241 : vector<8x8xf32>
    %cst_107 = arith.constant dense<0.000000e+00> : vector<8xf32>
    %243 = vector.multi_reduction <add>, %242, %cst_107 [1] : vector<8x8xf32> to vector<8xf32>
    %244 = vector.shape_cast %243 : vector<8xf32> to vector<8x1xf32>
    %245 = vector.broadcast %244 : vector<8x1xf32> to vector<8x8xf32>
    %246 = arith.divf %242, %245 : vector<8x8xf32>
    %cst_108 = arith.constant dense<0.000000e+00> : vector<8x8xf32>
    %247 = tpu.matmul %246, %234, %cst_108 {dimension_numbers = #tpu.dot_dimension_numbers<[1], [0], [0], [1], [0, 0, 1, 1], [], []>} : vector<8x8xf32>, vector<8x8xf32>, vector<8x8xf32> -> vector<8x8xf32>
    %248 = vector.extract_strided_slice %167 {offsets = [24, 0], sizes = [8, 32], strides = [1, 1]} : vector<32x32xf32> to vector<8x32xf32>
    %cst_109 = arith.constant dense<0.000000e+00> : vector<8x32xf32>
    %249 = tpu.matmul %247, %248, %cst_109 {dimension_numbers = #tpu.dot_dimension_numbers<[1], [0], [0], [1], [0, 0, 1, 1], [], []>} : vector<8x8xf32>, vector<8x32xf32>, vector<8x32xf32> -> vector<8x32xf32>
    %250 = arith.addf %231, %249 : vector<8x32xf32>
    %251 = vector.broadcast %169 : vector<1x32xf32> to vector<8x32xf32>
    %252 = arith.addf %250, %251 : vector<8x32xf32>
    %253 = arith.addf %157, %252 : vector<8x32xf32>
    %254 = vector.extract_strided_slice %159 {offsets = [0, 0], sizes = [1, 32], strides = [1, 1]} : vector<2x32xf32> to vector<1x32xf32>
    %255 = vector.extract_strided_slice %161 {offsets = [0, 0], sizes = [1, 32], strides = [1, 1]} : vector<2x32xf32> to vector<1x32xf32>
    %cst_110 = arith.constant dense<0.000000e+00> : vector<8xf32>
    %256 = vector.multi_reduction <add>, %253, %cst_110 [1] : vector<8x32xf32> to vector<8xf32>
    %257 = vector.shape_cast %256 : vector<8xf32> to vector<8x1xf32>
    %cst_111 = arith.constant 3.200000e+01 : f32
    %258 = vector.broadcast %cst_111 : f32 to vector<8x1xf32>
    %259 = arith.divf %257, %258 : vector<8x1xf32>
    %260 = vector.broadcast %259 : vector<8x1xf32> to vector<8x32xf32>
    %261 = arith.subf %253, %260 : vector<8x32xf32>
    %262 = arith.mulf %261, %261 : vector<8x32xf32>
    %cst_112 = arith.constant dense<0.000000e+00> : vector<8xf32>
    %263 = vector.multi_reduction <add>, %262, %cst_112 [1] : vector<8x32xf32> to vector<8xf32>
    %264 = vector.shape_cast %263 : vector<8xf32> to vector<8x1xf32>
    %cst_113 = arith.constant 3.200000e+01 : f32
    %265 = vector.broadcast %cst_113 : f32 to vector<8x1xf32>
    %266 = arith.divf %264, %265 : vector<8x1xf32>
    %cst_114 = arith.constant 9.99999974E-6 : f32
    %267 = vector.broadcast %cst_114 : f32 to vector<8x1xf32>
    %268 = arith.addf %266, %267 : vector<8x1xf32>
    %269 = math.rsqrt %268 : vector<8x1xf32>
    %270 = vector.broadcast %269 : vector<8x1xf32> to vector<8x32xf32>
    %271 = arith.mulf %261, %270 : vector<8x32xf32>
    %272 = vector.broadcast %254 : vector<1x32xf32> to vector<8x32xf32>
    %273 = arith.mulf %271, %272 : vector<8x32xf32>
    %274 = vector.broadcast %255 : vector<1x32xf32> to vector<8x32xf32>
    %275 = arith.addf %273, %274 : vector<8x32xf32>
    %c1_115 = arith.constant 1 : index
    %c0_116 = arith.constant 0 : index
    %c0_117 = arith.constant 0 : index
    %276 = vector.load %arg7[%c1_115, %c0_116, %c0_117] : memref<3x32x1024xf32, #tpu.memory_space<vmem>>, vector<1x32x1024xf32>
    %277 = vector.shape_cast %276 : vector<1x32x1024xf32> to vector<32x1024xf32>
    %c1_118 = arith.constant 1 : index
    %c0_119 = arith.constant 0 : index
    %c0_120 = arith.constant 0 : index
    %278 = vector.load %arg8[%c1_118, %c0_119, %c0_120] : memref<3x1x1024xf32, #tpu.memory_space<vmem>>, vector<1x1x1024xf32>
    %279 = vector.shape_cast %278 : vector<1x1x1024xf32> to vector<1x1024xf32>
    %c1_121 = arith.constant 1 : index
    %c0_122 = arith.constant 0 : index
    %c0_123 = arith.constant 0 : index
    %280 = vector.load %arg9[%c1_121, %c0_122, %c0_123] : memref<3x1024x32xf32, #tpu.memory_space<vmem>>, vector<1x1024x32xf32>
    %281 = vector.shape_cast %280 : vector<1x1024x32xf32> to vector<1024x32xf32>
    %c1_124 = arith.constant 1 : index
    %c0_125 = arith.constant 0 : index
    %c0_126 = arith.constant 0 : index
    %282 = vector.load %arg10[%c1_124, %c0_125, %c0_126] : memref<3x1x32xf32, #tpu.memory_space<vmem>>, vector<1x1x32xf32>
    %283 = vector.shape_cast %282 : vector<1x1x32xf32> to vector<1x32xf32>
    %cst_127 = arith.constant dense<0.000000e+00> : vector<8x1024xf32>
    %284 = tpu.matmul %275, %277, %cst_127 {dimension_numbers = #tpu.dot_dimension_numbers<[1], [0], [0], [1], [0, 0, 1, 1], [], []>} : vector<8x32xf32>, vector<32x1024xf32>, vector<8x1024xf32> -> vector<8x1024xf32>
    %285 = vector.broadcast %279 : vector<1x1024xf32> to vector<8x1024xf32>
    %286 = arith.addf %284, %285 : vector<8x1024xf32>
    %cst_128 = arith.constant 0.000000e+00 : f32
    %287 = vector.broadcast %cst_128 : f32 to vector<8x1024xf32>
    %288 = arith.maximumf %286, %287 : vector<8x1024xf32>
    %cst_129 = arith.constant dense<0.000000e+00> : vector<8x32xf32>
    %289 = tpu.matmul %288, %281, %cst_129 {dimension_numbers = #tpu.dot_dimension_numbers<[1], [0], [0], [1], [0, 0, 1, 1], [], []>} : vector<8x1024xf32>, vector<1024x32xf32>, vector<8x32xf32> -> vector<8x32xf32>
    %290 = vector.broadcast %283 : vector<1x32xf32> to vector<8x32xf32>
    %291 = arith.addf %289, %290 : vector<8x32xf32>
    %292 = arith.addf %275, %291 : vector<8x32xf32>
    %293 = vector.extract_strided_slice %159 {offsets = [1, 0], sizes = [1, 32], strides = [1, 1]} : vector<2x32xf32> to vector<1x32xf32>
    %294 = vector.extract_strided_slice %161 {offsets = [1, 0], sizes = [1, 32], strides = [1, 1]} : vector<2x32xf32> to vector<1x32xf32>
    %cst_130 = arith.constant dense<0.000000e+00> : vector<8xf32>
    %295 = vector.multi_reduction <add>, %292, %cst_130 [1] : vector<8x32xf32> to vector<8xf32>
    %296 = vector.shape_cast %295 : vector<8xf32> to vector<8x1xf32>
    %cst_131 = arith.constant 3.200000e+01 : f32
    %297 = vector.broadcast %cst_131 : f32 to vector<8x1xf32>
    %298 = arith.divf %296, %297 : vector<8x1xf32>
    %299 = vector.broadcast %298 : vector<8x1xf32> to vector<8x32xf32>
    %300 = arith.subf %292, %299 : vector<8x32xf32>
    %301 = arith.mulf %300, %300 : vector<8x32xf32>
    %cst_132 = arith.constant dense<0.000000e+00> : vector<8xf32>
    %302 = vector.multi_reduction <add>, %301, %cst_132 [1] : vector<8x32xf32> to vector<8xf32>
    %303 = vector.shape_cast %302 : vector<8xf32> to vector<8x1xf32>
    %cst_133 = arith.constant 3.200000e+01 : f32
    %304 = vector.broadcast %cst_133 : f32 to vector<8x1xf32>
    %305 = arith.divf %303, %304 : vector<8x1xf32>
    %cst_134 = arith.constant 9.99999974E-6 : f32
    %306 = vector.broadcast %cst_134 : f32 to vector<8x1xf32>
    %307 = arith.addf %305, %306 : vector<8x1xf32>
    %308 = math.rsqrt %307 : vector<8x1xf32>
    %309 = vector.broadcast %308 : vector<8x1xf32> to vector<8x32xf32>
    %310 = arith.mulf %300, %309 : vector<8x32xf32>
    %311 = vector.broadcast %293 : vector<1x32xf32> to vector<8x32xf32>
    %312 = arith.mulf %310, %311 : vector<8x32xf32>
    %313 = vector.broadcast %294 : vector<1x32xf32> to vector<8x32xf32>
    %314 = arith.addf %312, %313 : vector<8x32xf32>
    %c2 = arith.constant 2 : index
    %c0_135 = arith.constant 0 : index
    %c0_136 = arith.constant 0 : index
    %315 = vector.load %arg11[%c2, %c0_135, %c0_136] : memref<3x2x32xf32, #tpu.memory_space<vmem>>, vector<1x2x32xf32>
    %316 = vector.shape_cast %315 : vector<1x2x32xf32> to vector<2x32xf32>
    %c2_137 = arith.constant 2 : index
    %c0_138 = arith.constant 0 : index
    %c0_139 = arith.constant 0 : index
    %317 = vector.load %arg12[%c2_137, %c0_138, %c0_139] : memref<3x2x32xf32, #tpu.memory_space<vmem>>, vector<1x2x32xf32>
    %318 = vector.shape_cast %317 : vector<1x2x32xf32> to vector<2x32xf32>
    %c2_140 = arith.constant 2 : index
    %c0_141 = arith.constant 0 : index
    %c0_142 = arith.constant 0 : index
    %319 = vector.load %arg3[%c2_140, %c0_141, %c0_142] : memref<3x32x96xf32, #tpu.memory_space<vmem>>, vector<1x32x96xf32>
    %320 = vector.shape_cast %319 : vector<1x32x96xf32> to vector<32x96xf32>
    %c2_143 = arith.constant 2 : index
    %c0_144 = arith.constant 0 : index
    %c0_145 = arith.constant 0 : index
    %321 = vector.load %arg4[%c2_143, %c0_144, %c0_145] : memref<3x1x96xf32, #tpu.memory_space<vmem>>, vector<1x1x96xf32>
    %322 = vector.shape_cast %321 : vector<1x1x96xf32> to vector<1x96xf32>
    %c2_146 = arith.constant 2 : index
    %c0_147 = arith.constant 0 : index
    %c0_148 = arith.constant 0 : index
    %323 = vector.load %arg5[%c2_146, %c0_147, %c0_148] : memref<3x32x32xf32, #tpu.memory_space<vmem>>, vector<1x32x32xf32>
    %324 = vector.shape_cast %323 : vector<1x32x32xf32> to vector<32x32xf32>
    %c2_149 = arith.constant 2 : index
    %c0_150 = arith.constant 0 : index
    %c0_151 = arith.constant 0 : index
    %325 = vector.load %arg6[%c2_149, %c0_150, %c0_151] : memref<3x1x32xf32, #tpu.memory_space<vmem>>, vector<1x1x32xf32>
    %326 = vector.shape_cast %325 : vector<1x1x32xf32> to vector<1x32xf32>
    %cst_152 = arith.constant dense<0.000000e+00> : vector<8x96xf32>
    %327 = tpu.matmul %314, %320, %cst_152 {dimension_numbers = #tpu.dot_dimension_numbers<[1], [0], [0], [1], [0, 0, 1, 1], [], []>} : vector<8x32xf32>, vector<32x96xf32>, vector<8x96xf32> -> vector<8x96xf32>
    %328 = vector.broadcast %322 : vector<1x96xf32> to vector<8x96xf32>
    %329 = arith.addf %327, %328 : vector<8x96xf32>
    %330 = vector.extract_strided_slice %329 {offsets = [0, 0], sizes = [8, 32], strides = [1, 1]} : vector<8x96xf32> to vector<8x32xf32>
    %331 = vector.extract_strided_slice %329 {offsets = [0, 32], sizes = [8, 32], strides = [1, 1]} : vector<8x96xf32> to vector<8x32xf32>
    %332 = vector.extract_strided_slice %329 {offsets = [0, 64], sizes = [8, 32], strides = [1, 1]} : vector<8x96xf32> to vector<8x32xf32>
    %333 = vector.extract_strided_slice %330 {offsets = [0, 0], sizes = [8, 8], strides = [1, 1]} : vector<8x32xf32> to vector<8x8xf32>
    %334 = vector.extract_strided_slice %331 {offsets = [0, 0], sizes = [8, 8], strides = [1, 1]} : vector<8x32xf32> to vector<8x8xf32>
    %335 = vector.extract_strided_slice %332 {offsets = [0, 0], sizes = [8, 8], strides = [1, 1]} : vector<8x32xf32> to vector<8x8xf32>
    %cst_153 = arith.constant dense<0.000000e+00> : vector<8x8xf32>
    %336 = tpu.matmul %333, %334, %cst_153 {dimension_numbers = #tpu.dot_dimension_numbers<[1], [1], [0], [0], [0, 0, 1, 0], [], []>} : vector<8x8xf32>, vector<8x8xf32>, vector<8x8xf32> -> vector<8x8xf32>
    %cst_154 = arith.constant 0.353553385 : f32
    %337 = vector.broadcast %cst_154 : f32 to vector<8x8xf32>
    %338 = arith.mulf %336, %337 : vector<8x8xf32>
    %cst_155 = arith.constant dense<0xFF800000> : vector<8xf32>
    %339 = vector.multi_reduction <maximumf>, %338, %cst_155 [1] : vector<8x8xf32> to vector<8xf32>
    %340 = vector.shape_cast %339 : vector<8xf32> to vector<8x1xf32>
    %341 = vector.broadcast %340 : vector<8x1xf32> to vector<8x8xf32>
    %342 = arith.subf %338, %341 : vector<8x8xf32>
    %343 = math.exp %342 : vector<8x8xf32>
    %cst_156 = arith.constant dense<0.000000e+00> : vector<8xf32>
    %344 = vector.multi_reduction <add>, %343, %cst_156 [1] : vector<8x8xf32> to vector<8xf32>
    %345 = vector.shape_cast %344 : vector<8xf32> to vector<8x1xf32>
    %346 = vector.broadcast %345 : vector<8x1xf32> to vector<8x8xf32>
    %347 = arith.divf %343, %346 : vector<8x8xf32>
    %cst_157 = arith.constant dense<0.000000e+00> : vector<8x8xf32>
    %348 = tpu.matmul %347, %335, %cst_157 {dimension_numbers = #tpu.dot_dimension_numbers<[1], [0], [0], [1], [0, 0, 1, 1], [], []>} : vector<8x8xf32>, vector<8x8xf32>, vector<8x8xf32> -> vector<8x8xf32>
    %349 = vector.extract_strided_slice %324 {offsets = [0, 0], sizes = [8, 32], strides = [1, 1]} : vector<32x32xf32> to vector<8x32xf32>
    %cst_158 = arith.constant dense<0.000000e+00> : vector<8x32xf32>
    %350 = tpu.matmul %348, %349, %cst_158 {dimension_numbers = #tpu.dot_dimension_numbers<[1], [0], [0], [1], [0, 0, 1, 1], [], []>} : vector<8x8xf32>, vector<8x32xf32>, vector<8x32xf32> -> vector<8x32xf32>
    %351 = vector.extract_strided_slice %330 {offsets = [0, 8], sizes = [8, 8], strides = [1, 1]} : vector<8x32xf32> to vector<8x8xf32>
    %352 = vector.extract_strided_slice %331 {offsets = [0, 8], sizes = [8, 8], strides = [1, 1]} : vector<8x32xf32> to vector<8x8xf32>
    %353 = vector.extract_strided_slice %332 {offsets = [0, 8], sizes = [8, 8], strides = [1, 1]} : vector<8x32xf32> to vector<8x8xf32>
    %cst_159 = arith.constant dense<0.000000e+00> : vector<8x8xf32>
    %354 = tpu.matmul %351, %352, %cst_159 {dimension_numbers = #tpu.dot_dimension_numbers<[1], [1], [0], [0], [0, 0, 1, 0], [], []>} : vector<8x8xf32>, vector<8x8xf32>, vector<8x8xf32> -> vector<8x8xf32>
    %cst_160 = arith.constant 0.353553385 : f32
    %355 = vector.broadcast %cst_160 : f32 to vector<8x8xf32>
    %356 = arith.mulf %354, %355 : vector<8x8xf32>
    %cst_161 = arith.constant dense<0xFF800000> : vector<8xf32>
    %357 = vector.multi_reduction <maximumf>, %356, %cst_161 [1] : vector<8x8xf32> to vector<8xf32>
    %358 = vector.shape_cast %357 : vector<8xf32> to vector<8x1xf32>
    %359 = vector.broadcast %358 : vector<8x1xf32> to vector<8x8xf32>
    %360 = arith.subf %356, %359 : vector<8x8xf32>
    %361 = math.exp %360 : vector<8x8xf32>
    %cst_162 = arith.constant dense<0.000000e+00> : vector<8xf32>
    %362 = vector.multi_reduction <add>, %361, %cst_162 [1] : vector<8x8xf32> to vector<8xf32>
    %363 = vector.shape_cast %362 : vector<8xf32> to vector<8x1xf32>
    %364 = vector.broadcast %363 : vector<8x1xf32> to vector<8x8xf32>
    %365 = arith.divf %361, %364 : vector<8x8xf32>
    %cst_163 = arith.constant dense<0.000000e+00> : vector<8x8xf32>
    %366 = tpu.matmul %365, %353, %cst_163 {dimension_numbers = #tpu.dot_dimension_numbers<[1], [0], [0], [1], [0, 0, 1, 1], [], []>} : vector<8x8xf32>, vector<8x8xf32>, vector<8x8xf32> -> vector<8x8xf32>
    %367 = vector.extract_strided_slice %324 {offsets = [8, 0], sizes = [8, 32], strides = [1, 1]} : vector<32x32xf32> to vector<8x32xf32>
    %cst_164 = arith.constant dense<0.000000e+00> : vector<8x32xf32>
    %368 = tpu.matmul %366, %367, %cst_164 {dimension_numbers = #tpu.dot_dimension_numbers<[1], [0], [0], [1], [0, 0, 1, 1], [], []>} : vector<8x8xf32>, vector<8x32xf32>, vector<8x32xf32> -> vector<8x32xf32>
    %369 = arith.addf %350, %368 : vector<8x32xf32>
    %370 = vector.extract_strided_slice %330 {offsets = [0, 16], sizes = [8, 8], strides = [1, 1]} : vector<8x32xf32> to vector<8x8xf32>
    %371 = vector.extract_strided_slice %331 {offsets = [0, 16], sizes = [8, 8], strides = [1, 1]} : vector<8x32xf32> to vector<8x8xf32>
    %372 = vector.extract_strided_slice %332 {offsets = [0, 16], sizes = [8, 8], strides = [1, 1]} : vector<8x32xf32> to vector<8x8xf32>
    %cst_165 = arith.constant dense<0.000000e+00> : vector<8x8xf32>
    %373 = tpu.matmul %370, %371, %cst_165 {dimension_numbers = #tpu.dot_dimension_numbers<[1], [1], [0], [0], [0, 0, 1, 0], [], []>} : vector<8x8xf32>, vector<8x8xf32>, vector<8x8xf32> -> vector<8x8xf32>
    %cst_166 = arith.constant 0.353553385 : f32
    %374 = vector.broadcast %cst_166 : f32 to vector<8x8xf32>
    %375 = arith.mulf %373, %374 : vector<8x8xf32>
    %cst_167 = arith.constant dense<0xFF800000> : vector<8xf32>
    %376 = vector.multi_reduction <maximumf>, %375, %cst_167 [1] : vector<8x8xf32> to vector<8xf32>
    %377 = vector.shape_cast %376 : vector<8xf32> to vector<8x1xf32>
    %378 = vector.broadcast %377 : vector<8x1xf32> to vector<8x8xf32>
    %379 = arith.subf %375, %378 : vector<8x8xf32>
    %380 = math.exp %379 : vector<8x8xf32>
    %cst_168 = arith.constant dense<0.000000e+00> : vector<8xf32>
    %381 = vector.multi_reduction <add>, %380, %cst_168 [1] : vector<8x8xf32> to vector<8xf32>
    %382 = vector.shape_cast %381 : vector<8xf32> to vector<8x1xf32>
    %383 = vector.broadcast %382 : vector<8x1xf32> to vector<8x8xf32>
    %384 = arith.divf %380, %383 : vector<8x8xf32>
    %cst_169 = arith.constant dense<0.000000e+00> : vector<8x8xf32>
    %385 = tpu.matmul %384, %372, %cst_169 {dimension_numbers = #tpu.dot_dimension_numbers<[1], [0], [0], [1], [0, 0, 1, 1], [], []>} : vector<8x8xf32>, vector<8x8xf32>, vector<8x8xf32> -> vector<8x8xf32>
    %386 = vector.extract_strided_slice %324 {offsets = [16, 0], sizes = [8, 32], strides = [1, 1]} : vector<32x32xf32> to vector<8x32xf32>
    %cst_170 = arith.constant dense<0.000000e+00> : vector<8x32xf32>
    %387 = tpu.matmul %385, %386, %cst_170 {dimension_numbers = #tpu.dot_dimension_numbers<[1], [0], [0], [1], [0, 0, 1, 1], [], []>} : vector<8x8xf32>, vector<8x32xf32>, vector<8x32xf32> -> vector<8x32xf32>
    %388 = arith.addf %369, %387 : vector<8x32xf32>
    %389 = vector.extract_strided_slice %330 {offsets = [0, 24], sizes = [8, 8], strides = [1, 1]} : vector<8x32xf32> to vector<8x8xf32>
    %390 = vector.extract_strided_slice %331 {offsets = [0, 24], sizes = [8, 8], strides = [1, 1]} : vector<8x32xf32> to vector<8x8xf32>
    %391 = vector.extract_strided_slice %332 {offsets = [0, 24], sizes = [8, 8], strides = [1, 1]} : vector<8x32xf32> to vector<8x8xf32>
    %cst_171 = arith.constant dense<0.000000e+00> : vector<8x8xf32>
    %392 = tpu.matmul %389, %390, %cst_171 {dimension_numbers = #tpu.dot_dimension_numbers<[1], [1], [0], [0], [0, 0, 1, 0], [], []>} : vector<8x8xf32>, vector<8x8xf32>, vector<8x8xf32> -> vector<8x8xf32>
    %cst_172 = arith.constant 0.353553385 : f32
    %393 = vector.broadcast %cst_172 : f32 to vector<8x8xf32>
    %394 = arith.mulf %392, %393 : vector<8x8xf32>
    %cst_173 = arith.constant dense<0xFF800000> : vector<8xf32>
    %395 = vector.multi_reduction <maximumf>, %394, %cst_173 [1] : vector<8x8xf32> to vector<8xf32>
    %396 = vector.shape_cast %395 : vector<8xf32> to vector<8x1xf32>
    %397 = vector.broadcast %396 : vector<8x1xf32> to vector<8x8xf32>
    %398 = arith.subf %394, %397 : vector<8x8xf32>
    %399 = math.exp %398 : vector<8x8xf32>
    %cst_174 = arith.constant dense<0.000000e+00> : vector<8xf32>
    %400 = vector.multi_reduction <add>, %399, %cst_174 [1] : vector<8x8xf32> to vector<8xf32>
    %401 = vector.shape_cast %400 : vector<8xf32> to vector<8x1xf32>
    %402 = vector.broadcast %401 : vector<8x1xf32> to vector<8x8xf32>
    %403 = arith.divf %399, %402 : vector<8x8xf32>
    %cst_175 = arith.constant dense<0.000000e+00> : vector<8x8xf32>
    %404 = tpu.matmul %403, %391, %cst_175 {dimension_numbers = #tpu.dot_dimension_numbers<[1], [0], [0], [1], [0, 0, 1, 1], [], []>} : vector<8x8xf32>, vector<8x8xf32>, vector<8x8xf32> -> vector<8x8xf32>
    %405 = vector.extract_strided_slice %324 {offsets = [24, 0], sizes = [8, 32], strides = [1, 1]} : vector<32x32xf32> to vector<8x32xf32>
    %cst_176 = arith.constant dense<0.000000e+00> : vector<8x32xf32>
    %406 = tpu.matmul %404, %405, %cst_176 {dimension_numbers = #tpu.dot_dimension_numbers<[1], [0], [0], [1], [0, 0, 1, 1], [], []>} : vector<8x8xf32>, vector<8x32xf32>, vector<8x32xf32> -> vector<8x32xf32>
    %407 = arith.addf %388, %406 : vector<8x32xf32>
    %408 = vector.broadcast %326 : vector<1x32xf32> to vector<8x32xf32>
    %409 = arith.addf %407, %408 : vector<8x32xf32>
    %410 = arith.addf %314, %409 : vector<8x32xf32>
    %411 = vector.extract_strided_slice %316 {offsets = [0, 0], sizes = [1, 32], strides = [1, 1]} : vector<2x32xf32> to vector<1x32xf32>
    %412 = vector.extract_strided_slice %318 {offsets = [0, 0], sizes = [1, 32], strides = [1, 1]} : vector<2x32xf32> to vector<1x32xf32>
    %cst_177 = arith.constant dense<0.000000e+00> : vector<8xf32>
    %413 = vector.multi_reduction <add>, %410, %cst_177 [1] : vector<8x32xf32> to vector<8xf32>
    %414 = vector.shape_cast %413 : vector<8xf32> to vector<8x1xf32>
    %cst_178 = arith.constant 3.200000e+01 : f32
    %415 = vector.broadcast %cst_178 : f32 to vector<8x1xf32>
    %416 = arith.divf %414, %415 : vector<8x1xf32>
    %417 = vector.broadcast %416 : vector<8x1xf32> to vector<8x32xf32>
    %418 = arith.subf %410, %417 : vector<8x32xf32>
    %419 = arith.mulf %418, %418 : vector<8x32xf32>
    %cst_179 = arith.constant dense<0.000000e+00> : vector<8xf32>
    %420 = vector.multi_reduction <add>, %419, %cst_179 [1] : vector<8x32xf32> to vector<8xf32>
    %421 = vector.shape_cast %420 : vector<8xf32> to vector<8x1xf32>
    %cst_180 = arith.constant 3.200000e+01 : f32
    %422 = vector.broadcast %cst_180 : f32 to vector<8x1xf32>
    %423 = arith.divf %421, %422 : vector<8x1xf32>
    %cst_181 = arith.constant 9.99999974E-6 : f32
    %424 = vector.broadcast %cst_181 : f32 to vector<8x1xf32>
    %425 = arith.addf %423, %424 : vector<8x1xf32>
    %426 = math.rsqrt %425 : vector<8x1xf32>
    %427 = vector.broadcast %426 : vector<8x1xf32> to vector<8x32xf32>
    %428 = arith.mulf %418, %427 : vector<8x32xf32>
    %429 = vector.broadcast %411 : vector<1x32xf32> to vector<8x32xf32>
    %430 = arith.mulf %428, %429 : vector<8x32xf32>
    %431 = vector.broadcast %412 : vector<1x32xf32> to vector<8x32xf32>
    %432 = arith.addf %430, %431 : vector<8x32xf32>
    %c2_182 = arith.constant 2 : index
    %c0_183 = arith.constant 0 : index
    %c0_184 = arith.constant 0 : index
    %433 = vector.load %arg7[%c2_182, %c0_183, %c0_184] : memref<3x32x1024xf32, #tpu.memory_space<vmem>>, vector<1x32x1024xf32>
    %434 = vector.shape_cast %433 : vector<1x32x1024xf32> to vector<32x1024xf32>
    %c2_185 = arith.constant 2 : index
    %c0_186 = arith.constant 0 : index
    %c0_187 = arith.constant 0 : index
    %435 = vector.load %arg8[%c2_185, %c0_186, %c0_187] : memref<3x1x1024xf32, #tpu.memory_space<vmem>>, vector<1x1x1024xf32>
    %436 = vector.shape_cast %435 : vector<1x1x1024xf32> to vector<1x1024xf32>
    %c2_188 = arith.constant 2 : index
    %c0_189 = arith.constant 0 : index
    %c0_190 = arith.constant 0 : index
    %437 = vector.load %arg9[%c2_188, %c0_189, %c0_190] : memref<3x1024x32xf32, #tpu.memory_space<vmem>>, vector<1x1024x32xf32>
    %438 = vector.shape_cast %437 : vector<1x1024x32xf32> to vector<1024x32xf32>
    %c2_191 = arith.constant 2 : index
    %c0_192 = arith.constant 0 : index
    %c0_193 = arith.constant 0 : index
    %439 = vector.load %arg10[%c2_191, %c0_192, %c0_193] : memref<3x1x32xf32, #tpu.memory_space<vmem>>, vector<1x1x32xf32>
    %440 = vector.shape_cast %439 : vector<1x1x32xf32> to vector<1x32xf32>
    %cst_194 = arith.constant dense<0.000000e+00> : vector<8x1024xf32>
    %441 = tpu.matmul %432, %434, %cst_194 {dimension_numbers = #tpu.dot_dimension_numbers<[1], [0], [0], [1], [0, 0, 1, 1], [], []>} : vector<8x32xf32>, vector<32x1024xf32>, vector<8x1024xf32> -> vector<8x1024xf32>
    %442 = vector.broadcast %436 : vector<1x1024xf32> to vector<8x1024xf32>
    %443 = arith.addf %441, %442 : vector<8x1024xf32>
    %cst_195 = arith.constant 0.000000e+00 : f32
    %444 = vector.broadcast %cst_195 : f32 to vector<8x1024xf32>
    %445 = arith.maximumf %443, %444 : vector<8x1024xf32>
    %cst_196 = arith.constant dense<0.000000e+00> : vector<8x32xf32>
    %446 = tpu.matmul %445, %438, %cst_196 {dimension_numbers = #tpu.dot_dimension_numbers<[1], [0], [0], [1], [0, 0, 1, 1], [], []>} : vector<8x1024xf32>, vector<1024x32xf32>, vector<8x32xf32> -> vector<8x32xf32>
    %447 = vector.broadcast %440 : vector<1x32xf32> to vector<8x32xf32>
    %448 = arith.addf %446, %447 : vector<8x32xf32>
    %449 = arith.addf %432, %448 : vector<8x32xf32>
    %450 = vector.extract_strided_slice %316 {offsets = [1, 0], sizes = [1, 32], strides = [1, 1]} : vector<2x32xf32> to vector<1x32xf32>
    %451 = vector.extract_strided_slice %318 {offsets = [1, 0], sizes = [1, 32], strides = [1, 1]} : vector<2x32xf32> to vector<1x32xf32>
    %cst_197 = arith.constant dense<0.000000e+00> : vector<8xf32>
    %452 = vector.multi_reduction <add>, %449, %cst_197 [1] : vector<8x32xf32> to vector<8xf32>
    %453 = vector.shape_cast %452 : vector<8xf32> to vector<8x1xf32>
    %cst_198 = arith.constant 3.200000e+01 : f32
    %454 = vector.broadcast %cst_198 : f32 to vector<8x1xf32>
    %455 = arith.divf %453, %454 : vector<8x1xf32>
    %456 = vector.broadcast %455 : vector<8x1xf32> to vector<8x32xf32>
    %457 = arith.subf %449, %456 : vector<8x32xf32>
    %458 = arith.mulf %457, %457 : vector<8x32xf32>
    %cst_199 = arith.constant dense<0.000000e+00> : vector<8xf32>
    %459 = vector.multi_reduction <add>, %458, %cst_199 [1] : vector<8x32xf32> to vector<8xf32>
    %460 = vector.shape_cast %459 : vector<8xf32> to vector<8x1xf32>
    %cst_200 = arith.constant 3.200000e+01 : f32
    %461 = vector.broadcast %cst_200 : f32 to vector<8x1xf32>
    %462 = arith.divf %460, %461 : vector<8x1xf32>
    %cst_201 = arith.constant 9.99999974E-6 : f32
    %463 = vector.broadcast %cst_201 : f32 to vector<8x1xf32>
    %464 = arith.addf %462, %463 : vector<8x1xf32>
    %465 = math.rsqrt %464 : vector<8x1xf32>
    %466 = vector.broadcast %465 : vector<8x1xf32> to vector<8x32xf32>
    %467 = arith.mulf %457, %466 : vector<8x32xf32>
    %468 = vector.broadcast %450 : vector<1x32xf32> to vector<8x32xf32>
    %469 = arith.mulf %467, %468 : vector<8x32xf32>
    %470 = vector.broadcast %451 : vector<1x32xf32> to vector<8x32xf32>
    %471 = arith.addf %469, %470 : vector<8x32xf32>
    %c0_202 = arith.constant 0 : index
    %c0_203 = arith.constant 0 : index
    %472 = vector.load %arg2[%c0_202, %c0_203] : memref<8x32xf32, #tpu.memory_space<vmem>>, vector<8x32xf32>
    %c0_204 = arith.constant 0 : index
    %c0_205 = arith.constant 0 : index
    %c0_206 = arith.constant 0 : index
    %473 = vector.load %arg25[%c0_204, %c0_205, %c0_206] : memref<3x3x32xf32, #tpu.memory_space<vmem>>, vector<1x3x32xf32>
    %474 = vector.shape_cast %473 : vector<1x3x32xf32> to vector<3x32xf32>
    %c0_207 = arith.constant 0 : index
    %c0_208 = arith.constant 0 : index
    %c0_209 = arith.constant 0 : index
    %475 = vector.load %arg26[%c0_207, %c0_208, %c0_209] : memref<3x3x32xf32, #tpu.memory_space<vmem>>, vector<1x3x32xf32>
    %476 = vector.shape_cast %475 : vector<1x3x32xf32> to vector<3x32xf32>
    %c0_210 = arith.constant 0 : index
    %c0_211 = arith.constant 0 : index
    %c0_212 = arith.constant 0 : index
    %477 = vector.load %arg13[%c0_210, %c0_211, %c0_212] : memref<3x32x96xf32, #tpu.memory_space<vmem>>, vector<1x32x96xf32>
    %478 = vector.shape_cast %477 : vector<1x32x96xf32> to vector<32x96xf32>
    %c0_213 = arith.constant 0 : index
    %c0_214 = arith.constant 0 : index
    %c0_215 = arith.constant 0 : index
    %479 = vector.load %arg14[%c0_213, %c0_214, %c0_215] : memref<3x1x96xf32, #tpu.memory_space<vmem>>, vector<1x1x96xf32>
    %480 = vector.shape_cast %479 : vector<1x1x96xf32> to vector<1x96xf32>
    %c0_216 = arith.constant 0 : index
    %c0_217 = arith.constant 0 : index
    %c0_218 = arith.constant 0 : index
    %481 = vector.load %arg15[%c0_216, %c0_217, %c0_218] : memref<3x32x32xf32, #tpu.memory_space<vmem>>, vector<1x32x32xf32>
    %482 = vector.shape_cast %481 : vector<1x32x32xf32> to vector<32x32xf32>
    %c0_219 = arith.constant 0 : index
    %c0_220 = arith.constant 0 : index
    %c0_221 = arith.constant 0 : index
    %483 = vector.load %arg16[%c0_219, %c0_220, %c0_221] : memref<3x1x32xf32, #tpu.memory_space<vmem>>, vector<1x1x32xf32>
    %484 = vector.shape_cast %483 : vector<1x1x32xf32> to vector<1x32xf32>
    %cst_222 = arith.constant dense<0.000000e+00> : vector<8x96xf32>
    %485 = tpu.matmul %472, %478, %cst_222 {dimension_numbers = #tpu.dot_dimension_numbers<[1], [0], [0], [1], [0, 0, 1, 1], [], []>} : vector<8x32xf32>, vector<32x96xf32>, vector<8x96xf32> -> vector<8x96xf32>
    %486 = vector.broadcast %480 : vector<1x96xf32> to vector<8x96xf32>
    %487 = arith.addf %485, %486 : vector<8x96xf32>
    %488 = vector.extract_strided_slice %487 {offsets = [0, 0], sizes = [8, 32], strides = [1, 1]} : vector<8x96xf32> to vector<8x32xf32>
    %489 = vector.extract_strided_slice %487 {offsets = [0, 32], sizes = [8, 32], strides = [1, 1]} : vector<8x96xf32> to vector<8x32xf32>
    %490 = vector.extract_strided_slice %487 {offsets = [0, 64], sizes = [8, 32], strides = [1, 1]} : vector<8x96xf32> to vector<8x32xf32>
    %491 = vector.extract_strided_slice %488 {offsets = [0, 0], sizes = [8, 8], strides = [1, 1]} : vector<8x32xf32> to vector<8x8xf32>
    %492 = vector.extract_strided_slice %489 {offsets = [0, 0], sizes = [8, 8], strides = [1, 1]} : vector<8x32xf32> to vector<8x8xf32>
    %493 = vector.extract_strided_slice %490 {offsets = [0, 0], sizes = [8, 8], strides = [1, 1]} : vector<8x32xf32> to vector<8x8xf32>
    %cst_223 = arith.constant dense<0.000000e+00> : vector<8x8xf32>
    %494 = tpu.matmul %491, %492, %cst_223 {dimension_numbers = #tpu.dot_dimension_numbers<[1], [1], [0], [0], [0, 0, 1, 0], [], []>} : vector<8x8xf32>, vector<8x8xf32>, vector<8x8xf32> -> vector<8x8xf32>
    %cst_224 = arith.constant 0.353553385 : f32
    %495 = vector.broadcast %cst_224 : f32 to vector<8x8xf32>
    %496 = arith.mulf %494, %495 : vector<8x8xf32>
    %cst_225 = arith.constant dense<0xFF800000> : vector<8xf32>
    %497 = vector.multi_reduction <maximumf>, %496, %cst_225 [1] : vector<8x8xf32> to vector<8xf32>
    %498 = vector.shape_cast %497 : vector<8xf32> to vector<8x1xf32>
    %499 = vector.broadcast %498 : vector<8x1xf32> to vector<8x8xf32>
    %500 = arith.subf %496, %499 : vector<8x8xf32>
    %501 = math.exp %500 : vector<8x8xf32>
    %cst_226 = arith.constant dense<0.000000e+00> : vector<8xf32>
    %502 = vector.multi_reduction <add>, %501, %cst_226 [1] : vector<8x8xf32> to vector<8xf32>
    %503 = vector.shape_cast %502 : vector<8xf32> to vector<8x1xf32>
    %504 = vector.broadcast %503 : vector<8x1xf32> to vector<8x8xf32>
    %505 = arith.divf %501, %504 : vector<8x8xf32>
    %cst_227 = arith.constant dense<0.000000e+00> : vector<8x8xf32>
    %506 = tpu.matmul %505, %493, %cst_227 {dimension_numbers = #tpu.dot_dimension_numbers<[1], [0], [0], [1], [0, 0, 1, 1], [], []>} : vector<8x8xf32>, vector<8x8xf32>, vector<8x8xf32> -> vector<8x8xf32>
    %507 = vector.extract_strided_slice %482 {offsets = [0, 0], sizes = [8, 32], strides = [1, 1]} : vector<32x32xf32> to vector<8x32xf32>
    %cst_228 = arith.constant dense<0.000000e+00> : vector<8x32xf32>
    %508 = tpu.matmul %506, %507, %cst_228 {dimension_numbers = #tpu.dot_dimension_numbers<[1], [0], [0], [1], [0, 0, 1, 1], [], []>} : vector<8x8xf32>, vector<8x32xf32>, vector<8x32xf32> -> vector<8x32xf32>
    %509 = vector.extract_strided_slice %488 {offsets = [0, 8], sizes = [8, 8], strides = [1, 1]} : vector<8x32xf32> to vector<8x8xf32>
    %510 = vector.extract_strided_slice %489 {offsets = [0, 8], sizes = [8, 8], strides = [1, 1]} : vector<8x32xf32> to vector<8x8xf32>
    %511 = vector.extract_strided_slice %490 {offsets = [0, 8], sizes = [8, 8], strides = [1, 1]} : vector<8x32xf32> to vector<8x8xf32>
    %cst_229 = arith.constant dense<0.000000e+00> : vector<8x8xf32>
    %512 = tpu.matmul %509, %510, %cst_229 {dimension_numbers = #tpu.dot_dimension_numbers<[1], [1], [0], [0], [0, 0, 1, 0], [], []>} : vector<8x8xf32>, vector<8x8xf32>, vector<8x8xf32> -> vector<8x8xf32>
    %cst_230 = arith.constant 0.353553385 : f32
    %513 = vector.broadcast %cst_230 : f32 to vector<8x8xf32>
    %514 = arith.mulf %512, %513 : vector<8x8xf32>
    %cst_231 = arith.constant dense<0xFF800000> : vector<8xf32>
    %515 = vector.multi_reduction <maximumf>, %514, %cst_231 [1] : vector<8x8xf32> to vector<8xf32>
    %516 = vector.shape_cast %515 : vector<8xf32> to vector<8x1xf32>
    %517 = vector.broadcast %516 : vector<8x1xf32> to vector<8x8xf32>
    %518 = arith.subf %514, %517 : vector<8x8xf32>
    %519 = math.exp %518 : vector<8x8xf32>
    %cst_232 = arith.constant dense<0.000000e+00> : vector<8xf32>
    %520 = vector.multi_reduction <add>, %519, %cst_232 [1] : vector<8x8xf32> to vector<8xf32>
    %521 = vector.shape_cast %520 : vector<8xf32> to vector<8x1xf32>
    %522 = vector.broadcast %521 : vector<8x1xf32> to vector<8x8xf32>
    %523 = arith.divf %519, %522 : vector<8x8xf32>
    %cst_233 = arith.constant dense<0.000000e+00> : vector<8x8xf32>
    %524 = tpu.matmul %523, %511, %cst_233 {dimension_numbers = #tpu.dot_dimension_numbers<[1], [0], [0], [1], [0, 0, 1, 1], [], []>} : vector<8x8xf32>, vector<8x8xf32>, vector<8x8xf32> -> vector<8x8xf32>
    %525 = vector.extract_strided_slice %482 {offsets = [8, 0], sizes = [8, 32], strides = [1, 1]} : vector<32x32xf32> to vector<8x32xf32>
    %cst_234 = arith.constant dense<0.000000e+00> : vector<8x32xf32>
    %526 = tpu.matmul %524, %525, %cst_234 {dimension_numbers = #tpu.dot_dimension_numbers<[1], [0], [0], [1], [0, 0, 1, 1], [], []>} : vector<8x8xf32>, vector<8x32xf32>, vector<8x32xf32> -> vector<8x32xf32>
    %527 = arith.addf %508, %526 : vector<8x32xf32>
    %528 = vector.extract_strided_slice %488 {offsets = [0, 16], sizes = [8, 8], strides = [1, 1]} : vector<8x32xf32> to vector<8x8xf32>
    %529 = vector.extract_strided_slice %489 {offsets = [0, 16], sizes = [8, 8], strides = [1, 1]} : vector<8x32xf32> to vector<8x8xf32>
    %530 = vector.extract_strided_slice %490 {offsets = [0, 16], sizes = [8, 8], strides = [1, 1]} : vector<8x32xf32> to vector<8x8xf32>
    %cst_235 = arith.constant dense<0.000000e+00> : vector<8x8xf32>
    %531 = tpu.matmul %528, %529, %cst_235 {dimension_numbers = #tpu.dot_dimension_numbers<[1], [1], [0], [0], [0, 0, 1, 0], [], []>} : vector<8x8xf32>, vector<8x8xf32>, vector<8x8xf32> -> vector<8x8xf32>
    %cst_236 = arith.constant 0.353553385 : f32
    %532 = vector.broadcast %cst_236 : f32 to vector<8x8xf32>
    %533 = arith.mulf %531, %532 : vector<8x8xf32>
    %cst_237 = arith.constant dense<0xFF800000> : vector<8xf32>
    %534 = vector.multi_reduction <maximumf>, %533, %cst_237 [1] : vector<8x8xf32> to vector<8xf32>
    %535 = vector.shape_cast %534 : vector<8xf32> to vector<8x1xf32>
    %536 = vector.broadcast %535 : vector<8x1xf32> to vector<8x8xf32>
    %537 = arith.subf %533, %536 : vector<8x8xf32>
    %538 = math.exp %537 : vector<8x8xf32>
    %cst_238 = arith.constant dense<0.000000e+00> : vector<8xf32>
    %539 = vector.multi_reduction <add>, %538, %cst_238 [1] : vector<8x8xf32> to vector<8xf32>
    %540 = vector.shape_cast %539 : vector<8xf32> to vector<8x1xf32>
    %541 = vector.broadcast %540 : vector<8x1xf32> to vector<8x8xf32>
    %542 = arith.divf %538, %541 : vector<8x8xf32>
    %cst_239 = arith.constant dense<0.000000e+00> : vector<8x8xf32>
    %543 = tpu.matmul %542, %530, %cst_239 {dimension_numbers = #tpu.dot_dimension_numbers<[1], [0], [0], [1], [0, 0, 1, 1], [], []>} : vector<8x8xf32>, vector<8x8xf32>, vector<8x8xf32> -> vector<8x8xf32>
    %544 = vector.extract_strided_slice %482 {offsets = [16, 0], sizes = [8, 32], strides = [1, 1]} : vector<32x32xf32> to vector<8x32xf32>
    %cst_240 = arith.constant dense<0.000000e+00> : vector<8x32xf32>
    %545 = tpu.matmul %543, %544, %cst_240 {dimension_numbers = #tpu.dot_dimension_numbers<[1], [0], [0], [1], [0, 0, 1, 1], [], []>} : vector<8x8xf32>, vector<8x32xf32>, vector<8x32xf32> -> vector<8x32xf32>
    %546 = arith.addf %527, %545 : vector<8x32xf32>
    %547 = vector.extract_strided_slice %488 {offsets = [0, 24], sizes = [8, 8], strides = [1, 1]} : vector<8x32xf32> to vector<8x8xf32>
    %548 = vector.extract_strided_slice %489 {offsets = [0, 24], sizes = [8, 8], strides = [1, 1]} : vector<8x32xf32> to vector<8x8xf32>
    %549 = vector.extract_strided_slice %490 {offsets = [0, 24], sizes = [8, 8], strides = [1, 1]} : vector<8x32xf32> to vector<8x8xf32>
    %cst_241 = arith.constant dense<0.000000e+00> : vector<8x8xf32>
    %550 = tpu.matmul %547, %548, %cst_241 {dimension_numbers = #tpu.dot_dimension_numbers<[1], [1], [0], [0], [0, 0, 1, 0], [], []>} : vector<8x8xf32>, vector<8x8xf32>, vector<8x8xf32> -> vector<8x8xf32>
    %cst_242 = arith.constant 0.353553385 : f32
    %551 = vector.broadcast %cst_242 : f32 to vector<8x8xf32>
    %552 = arith.mulf %550, %551 : vector<8x8xf32>
    %cst_243 = arith.constant dense<0xFF800000> : vector<8xf32>
    %553 = vector.multi_reduction <maximumf>, %552, %cst_243 [1] : vector<8x8xf32> to vector<8xf32>
    %554 = vector.shape_cast %553 : vector<8xf32> to vector<8x1xf32>
    %555 = vector.broadcast %554 : vector<8x1xf32> to vector<8x8xf32>
    %556 = arith.subf %552, %555 : vector<8x8xf32>
    %557 = math.exp %556 : vector<8x8xf32>
    %cst_244 = arith.constant dense<0.000000e+00> : vector<8xf32>
    %558 = vector.multi_reduction <add>, %557, %cst_244 [1] : vector<8x8xf32> to vector<8xf32>
    %559 = vector.shape_cast %558 : vector<8xf32> to vector<8x1xf32>
    %560 = vector.broadcast %559 : vector<8x1xf32> to vector<8x8xf32>
    %561 = arith.divf %557, %560 : vector<8x8xf32>
    %cst_245 = arith.constant dense<0.000000e+00> : vector<8x8xf32>
    %562 = tpu.matmul %561, %549, %cst_245 {dimension_numbers = #tpu.dot_dimension_numbers<[1], [0], [0], [1], [0, 0, 1, 1], [], []>} : vector<8x8xf32>, vector<8x8xf32>, vector<8x8xf32> -> vector<8x8xf32>
    %563 = vector.extract_strided_slice %482 {offsets = [24, 0], sizes = [8, 32], strides = [1, 1]} : vector<32x32xf32> to vector<8x32xf32>
    %cst_246 = arith.constant dense<0.000000e+00> : vector<8x32xf32>
    %564 = tpu.matmul %562, %563, %cst_246 {dimension_numbers = #tpu.dot_dimension_numbers<[1], [0], [0], [1], [0, 0, 1, 1], [], []>} : vector<8x8xf32>, vector<8x32xf32>, vector<8x32xf32> -> vector<8x32xf32>
    %565 = arith.addf %546, %564 : vector<8x32xf32>
    %566 = vector.broadcast %484 : vector<1x32xf32> to vector<8x32xf32>
    %567 = arith.addf %565, %566 : vector<8x32xf32>
    %568 = arith.addf %472, %567 : vector<8x32xf32>
    %569 = vector.extract_strided_slice %474 {offsets = [0, 0], sizes = [1, 32], strides = [1, 1]} : vector<3x32xf32> to vector<1x32xf32>
    %570 = vector.extract_strided_slice %476 {offsets = [0, 0], sizes = [1, 32], strides = [1, 1]} : vector<3x32xf32> to vector<1x32xf32>
    %cst_247 = arith.constant dense<0.000000e+00> : vector<8xf32>
    %571 = vector.multi_reduction <add>, %568, %cst_247 [1] : vector<8x32xf32> to vector<8xf32>
    %572 = vector.shape_cast %571 : vector<8xf32> to vector<8x1xf32>
    %cst_248 = arith.constant 3.200000e+01 : f32
    %573 = vector.broadcast %cst_248 : f32 to vector<8x1xf32>
    %574 = arith.divf %572, %573 : vector<8x1xf32>
    %575 = vector.broadcast %574 : vector<8x1xf32> to vector<8x32xf32>
    %576 = arith.subf %568, %575 : vector<8x32xf32>
    %577 = arith.mulf %576, %576 : vector<8x32xf32>
    %cst_249 = arith.constant dense<0.000000e+00> : vector<8xf32>
    %578 = vector.multi_reduction <add>, %577, %cst_249 [1] : vector<8x32xf32> to vector<8xf32>
    %579 = vector.shape_cast %578 : vector<8xf32> to vector<8x1xf32>
    %cst_250 = arith.constant 3.200000e+01 : f32
    %580 = vector.broadcast %cst_250 : f32 to vector<8x1xf32>
    %581 = arith.divf %579, %580 : vector<8x1xf32>
    %cst_251 = arith.constant 9.99999974E-6 : f32
    %582 = vector.broadcast %cst_251 : f32 to vector<8x1xf32>
    %583 = arith.addf %581, %582 : vector<8x1xf32>
    %584 = math.rsqrt %583 : vector<8x1xf32>
    %585 = vector.broadcast %584 : vector<8x1xf32> to vector<8x32xf32>
    %586 = arith.mulf %576, %585 : vector<8x32xf32>
    %587 = vector.broadcast %569 : vector<1x32xf32> to vector<8x32xf32>
    %588 = arith.mulf %586, %587 : vector<8x32xf32>
    %589 = vector.broadcast %570 : vector<1x32xf32> to vector<8x32xf32>
    %590 = arith.addf %588, %589 : vector<8x32xf32>
    %c0_252 = arith.constant 0 : index
    %c0_253 = arith.constant 0 : index
    %c0_254 = arith.constant 0 : index
    %591 = vector.load %arg17[%c0_252, %c0_253, %c0_254] : memref<3x32x96xf32, #tpu.memory_space<vmem>>, vector<1x32x96xf32>
    %592 = vector.shape_cast %591 : vector<1x32x96xf32> to vector<32x96xf32>
    %c0_255 = arith.constant 0 : index
    %c0_256 = arith.constant 0 : index
    %c0_257 = arith.constant 0 : index
    %593 = vector.load %arg18[%c0_255, %c0_256, %c0_257] : memref<3x1x96xf32, #tpu.memory_space<vmem>>, vector<1x1x96xf32>
    %594 = vector.shape_cast %593 : vector<1x1x96xf32> to vector<1x96xf32>
    %c0_258 = arith.constant 0 : index
    %c0_259 = arith.constant 0 : index
    %c0_260 = arith.constant 0 : index
    %595 = vector.load %arg19[%c0_258, %c0_259, %c0_260] : memref<3x32x32xf32, #tpu.memory_space<vmem>>, vector<1x32x32xf32>
    %596 = vector.shape_cast %595 : vector<1x32x32xf32> to vector<32x32xf32>
    %c0_261 = arith.constant 0 : index
    %c0_262 = arith.constant 0 : index
    %c0_263 = arith.constant 0 : index
    %597 = vector.load %arg20[%c0_261, %c0_262, %c0_263] : memref<3x1x32xf32, #tpu.memory_space<vmem>>, vector<1x1x32xf32>
    %598 = vector.shape_cast %597 : vector<1x1x32xf32> to vector<1x32xf32>
    %599 = vector.extract_strided_slice %592 {offsets = [0, 0], sizes = [32, 32], strides = [1, 1]} : vector<32x96xf32> to vector<32x32xf32>
    %cst_264 = arith.constant dense<0.000000e+00> : vector<8x32xf32>
    %600 = tpu.matmul %590, %599, %cst_264 {dimension_numbers = #tpu.dot_dimension_numbers<[1], [0], [0], [1], [0, 0, 1, 1], [], []>} : vector<8x32xf32>, vector<32x32xf32>, vector<8x32xf32> -> vector<8x32xf32>
    %601 = vector.extract_strided_slice %594 {offsets = [0, 0], sizes = [1, 32], strides = [1, 1]} : vector<1x96xf32> to vector<1x32xf32>
    %602 = vector.broadcast %601 : vector<1x32xf32> to vector<8x32xf32>
    %603 = arith.addf %600, %602 : vector<8x32xf32>
    %604 = vector.extract_strided_slice %592 {offsets = [0, 32], sizes = [32, 64], strides = [1, 1]} : vector<32x96xf32> to vector<32x64xf32>
    %cst_265 = arith.constant dense<0.000000e+00> : vector<8x64xf32>
    %605 = tpu.matmul %471, %604, %cst_265 {dimension_numbers = #tpu.dot_dimension_numbers<[1], [0], [0], [1], [0, 0, 1, 1], [], []>} : vector<8x32xf32>, vector<32x64xf32>, vector<8x64xf32> -> vector<8x64xf32>
    %606 = vector.extract_strided_slice %594 {offsets = [0, 32], sizes = [1, 64], strides = [1, 1]} : vector<1x96xf32> to vector<1x64xf32>
    %607 = vector.broadcast %606 : vector<1x64xf32> to vector<8x64xf32>
    %608 = arith.addf %605, %607 : vector<8x64xf32>
    %609 = vector.extract_strided_slice %608 {offsets = [0, 0], sizes = [8, 32], strides = [1, 1]} : vector<8x64xf32> to vector<8x32xf32>
    %610 = vector.extract_strided_slice %608 {offsets = [0, 32], sizes = [8, 32], strides = [1, 1]} : vector<8x64xf32> to vector<8x32xf32>
    %611 = vector.extract_strided_slice %603 {offsets = [0, 0], sizes = [8, 8], strides = [1, 1]} : vector<8x32xf32> to vector<8x8xf32>
    %612 = vector.extract_strided_slice %609 {offsets = [0, 0], sizes = [8, 8], strides = [1, 1]} : vector<8x32xf32> to vector<8x8xf32>
    %613 = vector.extract_strided_slice %610 {offsets = [0, 0], sizes = [8, 8], strides = [1, 1]} : vector<8x32xf32> to vector<8x8xf32>
    %cst_266 = arith.constant dense<0.000000e+00> : vector<8x8xf32>
    %614 = tpu.matmul %611, %612, %cst_266 {dimension_numbers = #tpu.dot_dimension_numbers<[1], [1], [0], [0], [0, 0, 1, 0], [], []>} : vector<8x8xf32>, vector<8x8xf32>, vector<8x8xf32> -> vector<8x8xf32>
    %cst_267 = arith.constant 0.353553385 : f32
    %615 = vector.broadcast %cst_267 : f32 to vector<8x8xf32>
    %616 = arith.mulf %614, %615 : vector<8x8xf32>
    %cst_268 = arith.constant dense<0xFF800000> : vector<8xf32>
    %617 = vector.multi_reduction <maximumf>, %616, %cst_268 [1] : vector<8x8xf32> to vector<8xf32>
    %618 = vector.shape_cast %617 : vector<8xf32> to vector<8x1xf32>
    %619 = vector.broadcast %618 : vector<8x1xf32> to vector<8x8xf32>
    %620 = arith.subf %616, %619 : vector<8x8xf32>
    %621 = math.exp %620 : vector<8x8xf32>
    %cst_269 = arith.constant dense<0.000000e+00> : vector<8xf32>
    %622 = vector.multi_reduction <add>, %621, %cst_269 [1] : vector<8x8xf32> to vector<8xf32>
    %623 = vector.shape_cast %622 : vector<8xf32> to vector<8x1xf32>
    %624 = vector.broadcast %623 : vector<8x1xf32> to vector<8x8xf32>
    %625 = arith.divf %621, %624 : vector<8x8xf32>
    %cst_270 = arith.constant dense<0.000000e+00> : vector<8x8xf32>
    %626 = tpu.matmul %625, %613, %cst_270 {dimension_numbers = #tpu.dot_dimension_numbers<[1], [0], [0], [1], [0, 0, 1, 1], [], []>} : vector<8x8xf32>, vector<8x8xf32>, vector<8x8xf32> -> vector<8x8xf32>
    %627 = vector.extract_strided_slice %596 {offsets = [0, 0], sizes = [8, 32], strides = [1, 1]} : vector<32x32xf32> to vector<8x32xf32>
    %cst_271 = arith.constant dense<0.000000e+00> : vector<8x32xf32>
    %628 = tpu.matmul %626, %627, %cst_271 {dimension_numbers = #tpu.dot_dimension_numbers<[1], [0], [0], [1], [0, 0, 1, 1], [], []>} : vector<8x8xf32>, vector<8x32xf32>, vector<8x32xf32> -> vector<8x32xf32>
    %629 = vector.extract_strided_slice %603 {offsets = [0, 8], sizes = [8, 8], strides = [1, 1]} : vector<8x32xf32> to vector<8x8xf32>
    %630 = vector.extract_strided_slice %609 {offsets = [0, 8], sizes = [8, 8], strides = [1, 1]} : vector<8x32xf32> to vector<8x8xf32>
    %631 = vector.extract_strided_slice %610 {offsets = [0, 8], sizes = [8, 8], strides = [1, 1]} : vector<8x32xf32> to vector<8x8xf32>
    %cst_272 = arith.constant dense<0.000000e+00> : vector<8x8xf32>
    %632 = tpu.matmul %629, %630, %cst_272 {dimension_numbers = #tpu.dot_dimension_numbers<[1], [1], [0], [0], [0, 0, 1, 0], [], []>} : vector<8x8xf32>, vector<8x8xf32>, vector<8x8xf32> -> vector<8x8xf32>
    %cst_273 = arith.constant 0.353553385 : f32
    %633 = vector.broadcast %cst_273 : f32 to vector<8x8xf32>
    %634 = arith.mulf %632, %633 : vector<8x8xf32>
    %cst_274 = arith.constant dense<0xFF800000> : vector<8xf32>
    %635 = vector.multi_reduction <maximumf>, %634, %cst_274 [1] : vector<8x8xf32> to vector<8xf32>
    %636 = vector.shape_cast %635 : vector<8xf32> to vector<8x1xf32>
    %637 = vector.broadcast %636 : vector<8x1xf32> to vector<8x8xf32>
    %638 = arith.subf %634, %637 : vector<8x8xf32>
    %639 = math.exp %638 : vector<8x8xf32>
    %cst_275 = arith.constant dense<0.000000e+00> : vector<8xf32>
    %640 = vector.multi_reduction <add>, %639, %cst_275 [1] : vector<8x8xf32> to vector<8xf32>
    %641 = vector.shape_cast %640 : vector<8xf32> to vector<8x1xf32>
    %642 = vector.broadcast %641 : vector<8x1xf32> to vector<8x8xf32>
    %643 = arith.divf %639, %642 : vector<8x8xf32>
    %cst_276 = arith.constant dense<0.000000e+00> : vector<8x8xf32>
    %644 = tpu.matmul %643, %631, %cst_276 {dimension_numbers = #tpu.dot_dimension_numbers<[1], [0], [0], [1], [0, 0, 1, 1], [], []>} : vector<8x8xf32>, vector<8x8xf32>, vector<8x8xf32> -> vector<8x8xf32>
    %645 = vector.extract_strided_slice %596 {offsets = [8, 0], sizes = [8, 32], strides = [1, 1]} : vector<32x32xf32> to vector<8x32xf32>
    %cst_277 = arith.constant dense<0.000000e+00> : vector<8x32xf32>
    %646 = tpu.matmul %644, %645, %cst_277 {dimension_numbers = #tpu.dot_dimension_numbers<[1], [0], [0], [1], [0, 0, 1, 1], [], []>} : vector<8x8xf32>, vector<8x32xf32>, vector<8x32xf32> -> vector<8x32xf32>
    %647 = arith.addf %628, %646 : vector<8x32xf32>
    %648 = vector.extract_strided_slice %603 {offsets = [0, 16], sizes = [8, 8], strides = [1, 1]} : vector<8x32xf32> to vector<8x8xf32>
    %649 = vector.extract_strided_slice %609 {offsets = [0, 16], sizes = [8, 8], strides = [1, 1]} : vector<8x32xf32> to vector<8x8xf32>
    %650 = vector.extract_strided_slice %610 {offsets = [0, 16], sizes = [8, 8], strides = [1, 1]} : vector<8x32xf32> to vector<8x8xf32>
    %cst_278 = arith.constant dense<0.000000e+00> : vector<8x8xf32>
    %651 = tpu.matmul %648, %649, %cst_278 {dimension_numbers = #tpu.dot_dimension_numbers<[1], [1], [0], [0], [0, 0, 1, 0], [], []>} : vector<8x8xf32>, vector<8x8xf32>, vector<8x8xf32> -> vector<8x8xf32>
    %cst_279 = arith.constant 0.353553385 : f32
    %652 = vector.broadcast %cst_279 : f32 to vector<8x8xf32>
    %653 = arith.mulf %651, %652 : vector<8x8xf32>
    %cst_280 = arith.constant dense<0xFF800000> : vector<8xf32>
    %654 = vector.multi_reduction <maximumf>, %653, %cst_280 [1] : vector<8x8xf32> to vector<8xf32>
    %655 = vector.shape_cast %654 : vector<8xf32> to vector<8x1xf32>
    %656 = vector.broadcast %655 : vector<8x1xf32> to vector<8x8xf32>
    %657 = arith.subf %653, %656 : vector<8x8xf32>
    %658 = math.exp %657 : vector<8x8xf32>
    %cst_281 = arith.constant dense<0.000000e+00> : vector<8xf32>
    %659 = vector.multi_reduction <add>, %658, %cst_281 [1] : vector<8x8xf32> to vector<8xf32>
    %660 = vector.shape_cast %659 : vector<8xf32> to vector<8x1xf32>
    %661 = vector.broadcast %660 : vector<8x1xf32> to vector<8x8xf32>
    %662 = arith.divf %658, %661 : vector<8x8xf32>
    %cst_282 = arith.constant dense<0.000000e+00> : vector<8x8xf32>
    %663 = tpu.matmul %662, %650, %cst_282 {dimension_numbers = #tpu.dot_dimension_numbers<[1], [0], [0], [1], [0, 0, 1, 1], [], []>} : vector<8x8xf32>, vector<8x8xf32>, vector<8x8xf32> -> vector<8x8xf32>
    %664 = vector.extract_strided_slice %596 {offsets = [16, 0], sizes = [8, 32], strides = [1, 1]} : vector<32x32xf32> to vector<8x32xf32>
    %cst_283 = arith.constant dense<0.000000e+00> : vector<8x32xf32>
    %665 = tpu.matmul %663, %664, %cst_283 {dimension_numbers = #tpu.dot_dimension_numbers<[1], [0], [0], [1], [0, 0, 1, 1], [], []>} : vector<8x8xf32>, vector<8x32xf32>, vector<8x32xf32> -> vector<8x32xf32>
    %666 = arith.addf %647, %665 : vector<8x32xf32>
    %667 = vector.extract_strided_slice %603 {offsets = [0, 24], sizes = [8, 8], strides = [1, 1]} : vector<8x32xf32> to vector<8x8xf32>
    %668 = vector.extract_strided_slice %609 {offsets = [0, 24], sizes = [8, 8], strides = [1, 1]} : vector<8x32xf32> to vector<8x8xf32>
    %669 = vector.extract_strided_slice %610 {offsets = [0, 24], sizes = [8, 8], strides = [1, 1]} : vector<8x32xf32> to vector<8x8xf32>
    %cst_284 = arith.constant dense<0.000000e+00> : vector<8x8xf32>
    %670 = tpu.matmul %667, %668, %cst_284 {dimension_numbers = #tpu.dot_dimension_numbers<[1], [1], [0], [0], [0, 0, 1, 0], [], []>} : vector<8x8xf32>, vector<8x8xf32>, vector<8x8xf32> -> vector<8x8xf32>
    %cst_285 = arith.constant 0.353553385 : f32
    %671 = vector.broadcast %cst_285 : f32 to vector<8x8xf32>
    %672 = arith.mulf %670, %671 : vector<8x8xf32>
    %cst_286 = arith.constant dense<0xFF800000> : vector<8xf32>
    %673 = vector.multi_reduction <maximumf>, %672, %cst_286 [1] : vector<8x8xf32> to vector<8xf32>
    %674 = vector.shape_cast %673 : vector<8xf32> to vector<8x1xf32>
    %675 = vector.broadcast %674 : vector<8x1xf32> to vector<8x8xf32>
    %676 = arith.subf %672, %675 : vector<8x8xf32>
    %677 = math.exp %676 : vector<8x8xf32>
    %cst_287 = arith.constant dense<0.000000e+00> : vector<8xf32>
    %678 = vector.multi_reduction <add>, %677, %cst_287 [1] : vector<8x8xf32> to vector<8xf32>
    %679 = vector.shape_cast %678 : vector<8xf32> to vector<8x1xf32>
    %680 = vector.broadcast %679 : vector<8x1xf32> to vector<8x8xf32>
    %681 = arith.divf %677, %680 : vector<8x8xf32>
    %cst_288 = arith.constant dense<0.000000e+00> : vector<8x8xf32>
    %682 = tpu.matmul %681, %669, %cst_288 {dimension_numbers = #tpu.dot_dimension_numbers<[1], [0], [0], [1], [0, 0, 1, 1], [], []>} : vector<8x8xf32>, vector<8x8xf32>, vector<8x8xf32> -> vector<8x8xf32>
    %683 = vector.extract_strided_slice %596 {offsets = [24, 0], sizes = [8, 32], strides = [1, 1]} : vector<32x32xf32> to vector<8x32xf32>
    %cst_289 = arith.constant dense<0.000000e+00> : vector<8x32xf32>
    %684 = tpu.matmul %682, %683, %cst_289 {dimension_numbers = #tpu.dot_dimension_numbers<[1], [0], [0], [1], [0, 0, 1, 1], [], []>} : vector<8x8xf32>, vector<8x32xf32>, vector<8x32xf32> -> vector<8x32xf32>
    %685 = arith.addf %666, %684 : vector<8x32xf32>
    %686 = vector.broadcast %598 : vector<1x32xf32> to vector<8x32xf32>
    %687 = arith.addf %685, %686 : vector<8x32xf32>
    %688 = arith.addf %590, %687 : vector<8x32xf32>
    %689 = vector.extract_strided_slice %474 {offsets = [1, 0], sizes = [1, 32], strides = [1, 1]} : vector<3x32xf32> to vector<1x32xf32>
    %690 = vector.extract_strided_slice %476 {offsets = [1, 0], sizes = [1, 32], strides = [1, 1]} : vector<3x32xf32> to vector<1x32xf32>
    %cst_290 = arith.constant dense<0.000000e+00> : vector<8xf32>
    %691 = vector.multi_reduction <add>, %688, %cst_290 [1] : vector<8x32xf32> to vector<8xf32>
    %692 = vector.shape_cast %691 : vector<8xf32> to vector<8x1xf32>
    %cst_291 = arith.constant 3.200000e+01 : f32
    %693 = vector.broadcast %cst_291 : f32 to vector<8x1xf32>
    %694 = arith.divf %692, %693 : vector<8x1xf32>
    %695 = vector.broadcast %694 : vector<8x1xf32> to vector<8x32xf32>
    %696 = arith.subf %688, %695 : vector<8x32xf32>
    %697 = arith.mulf %696, %696 : vector<8x32xf32>
    %cst_292 = arith.constant dense<0.000000e+00> : vector<8xf32>
    %698 = vector.multi_reduction <add>, %697, %cst_292 [1] : vector<8x32xf32> to vector<8xf32>
    %699 = vector.shape_cast %698 : vector<8xf32> to vector<8x1xf32>
    %cst_293 = arith.constant 3.200000e+01 : f32
    %700 = vector.broadcast %cst_293 : f32 to vector<8x1xf32>
    %701 = arith.divf %699, %700 : vector<8x1xf32>
    %cst_294 = arith.constant 9.99999974E-6 : f32
    %702 = vector.broadcast %cst_294 : f32 to vector<8x1xf32>
    %703 = arith.addf %701, %702 : vector<8x1xf32>
    %704 = math.rsqrt %703 : vector<8x1xf32>
    %705 = vector.broadcast %704 : vector<8x1xf32> to vector<8x32xf32>
    %706 = arith.mulf %696, %705 : vector<8x32xf32>
    %707 = vector.broadcast %689 : vector<1x32xf32> to vector<8x32xf32>
    %708 = arith.mulf %706, %707 : vector<8x32xf32>
    %709 = vector.broadcast %690 : vector<1x32xf32> to vector<8x32xf32>
    %710 = arith.addf %708, %709 : vector<8x32xf32>
    %c0_295 = arith.constant 0 : index
    %c0_296 = arith.constant 0 : index
    %c0_297 = arith.constant 0 : index
    %711 = vector.load %arg21[%c0_295, %c0_296, %c0_297] : memref<3x32x1024xf32, #tpu.memory_space<vmem>>, vector<1x32x1024xf32>
    %712 = vector.shape_cast %711 : vector<1x32x1024xf32> to vector<32x1024xf32>
    %c0_298 = arith.constant 0 : index
    %c0_299 = arith.constant 0 : index
    %c0_300 = arith.constant 0 : index
    %713 = vector.load %arg22[%c0_298, %c0_299, %c0_300] : memref<3x1x1024xf32, #tpu.memory_space<vmem>>, vector<1x1x1024xf32>
    %714 = vector.shape_cast %713 : vector<1x1x1024xf32> to vector<1x1024xf32>
    %c0_301 = arith.constant 0 : index
    %c0_302 = arith.constant 0 : index
    %c0_303 = arith.constant 0 : index
    %715 = vector.load %arg23[%c0_301, %c0_302, %c0_303] : memref<3x1024x32xf32, #tpu.memory_space<vmem>>, vector<1x1024x32xf32>
    %716 = vector.shape_cast %715 : vector<1x1024x32xf32> to vector<1024x32xf32>
    %c0_304 = arith.constant 0 : index
    %c0_305 = arith.constant 0 : index
    %c0_306 = arith.constant 0 : index
    %717 = vector.load %arg24[%c0_304, %c0_305, %c0_306] : memref<3x1x32xf32, #tpu.memory_space<vmem>>, vector<1x1x32xf32>
    %718 = vector.shape_cast %717 : vector<1x1x32xf32> to vector<1x32xf32>
    %cst_307 = arith.constant dense<0.000000e+00> : vector<8x1024xf32>
    %719 = tpu.matmul %710, %712, %cst_307 {dimension_numbers = #tpu.dot_dimension_numbers<[1], [0], [0], [1], [0, 0, 1, 1], [], []>} : vector<8x32xf32>, vector<32x1024xf32>, vector<8x1024xf32> -> vector<8x1024xf32>
    %720 = vector.broadcast %714 : vector<1x1024xf32> to vector<8x1024xf32>
    %721 = arith.addf %719, %720 : vector<8x1024xf32>
    %cst_308 = arith.constant 0.000000e+00 : f32
    %722 = vector.broadcast %cst_308 : f32 to vector<8x1024xf32>
    %723 = arith.maximumf %721, %722 : vector<8x1024xf32>
    %cst_309 = arith.constant dense<0.000000e+00> : vector<8x32xf32>
    %724 = tpu.matmul %723, %716, %cst_309 {dimension_numbers = #tpu.dot_dimension_numbers<[1], [0], [0], [1], [0, 0, 1, 1], [], []>} : vector<8x1024xf32>, vector<1024x32xf32>, vector<8x32xf32> -> vector<8x32xf32>
    %725 = vector.broadcast %718 : vector<1x32xf32> to vector<8x32xf32>
    %726 = arith.addf %724, %725 : vector<8x32xf32>
    %727 = arith.addf %710, %726 : vector<8x32xf32>
    %728 = vector.extract_strided_slice %474 {offsets = [2, 0], sizes = [1, 32], strides = [1, 1]} : vector<3x32xf32> to vector<1x32xf32>
    %729 = vector.extract_strided_slice %476 {offsets = [2, 0], sizes = [1, 32], strides = [1, 1]} : vector<3x32xf32> to vector<1x32xf32>
    %cst_310 = arith.constant dense<0.000000e+00> : vector<8xf32>
    %730 = vector.multi_reduction <add>, %727, %cst_310 [1] : vector<8x32xf32> to vector<8xf32>
    %731 = vector.shape_cast %730 : vector<8xf32> to vector<8x1xf32>
    %cst_311 = arith.constant 3.200000e+01 : f32
    %732 = vector.broadcast %cst_311 : f32 to vector<8x1xf32>
    %733 = arith.divf %731, %732 : vector<8x1xf32>
    %734 = vector.broadcast %733 : vector<8x1xf32> to vector<8x32xf32>
    %735 = arith.subf %727, %734 : vector<8x32xf32>
    %736 = arith.mulf %735, %735 : vector<8x32xf32>
    %cst_312 = arith.constant dense<0.000000e+00> : vector<8xf32>
    %737 = vector.multi_reduction <add>, %736, %cst_312 [1] : vector<8x32xf32> to vector<8xf32>
    %738 = vector.shape_cast %737 : vector<8xf32> to vector<8x1xf32>
    %cst_313 = arith.constant 3.200000e+01 : f32
    %739 = vector.broadcast %cst_313 : f32 to vector<8x1xf32>
    %740 = arith.divf %738, %739 : vector<8x1xf32>
    %cst_314 = arith.constant 9.99999974E-6 : f32
    %741 = vector.broadcast %cst_314 : f32 to vector<8x1xf32>
    %742 = arith.addf %740, %741 : vector<8x1xf32>
    %743 = math.rsqrt %742 : vector<8x1xf32>
    %744 = vector.broadcast %743 : vector<8x1xf32> to vector<8x32xf32>
    %745 = arith.mulf %735, %744 : vector<8x32xf32>
    %746 = vector.broadcast %728 : vector<1x32xf32> to vector<8x32xf32>
    %747 = arith.mulf %745, %746 : vector<8x32xf32>
    %748 = vector.broadcast %729 : vector<1x32xf32> to vector<8x32xf32>
    %749 = arith.addf %747, %748 : vector<8x32xf32>
    %c1_315 = arith.constant 1 : index
    %c0_316 = arith.constant 0 : index
    %c0_317 = arith.constant 0 : index
    %750 = vector.load %arg25[%c1_315, %c0_316, %c0_317] : memref<3x3x32xf32, #tpu.memory_space<vmem>>, vector<1x3x32xf32>
    %751 = vector.shape_cast %750 : vector<1x3x32xf32> to vector<3x32xf32>
    %c1_318 = arith.constant 1 : index
    %c0_319 = arith.constant 0 : index
    %c0_320 = arith.constant 0 : index
    %752 = vector.load %arg26[%c1_318, %c0_319, %c0_320] : memref<3x3x32xf32, #tpu.memory_space<vmem>>, vector<1x3x32xf32>
    %753 = vector.shape_cast %752 : vector<1x3x32xf32> to vector<3x32xf32>
    %c1_321 = arith.constant 1 : index
    %c0_322 = arith.constant 0 : index
    %c0_323 = arith.constant 0 : index
    %754 = vector.load %arg13[%c1_321, %c0_322, %c0_323] : memref<3x32x96xf32, #tpu.memory_space<vmem>>, vector<1x32x96xf32>
    %755 = vector.shape_cast %754 : vector<1x32x96xf32> to vector<32x96xf32>
    %c1_324 = arith.constant 1 : index
    %c0_325 = arith.constant 0 : index
    %c0_326 = arith.constant 0 : index
    %756 = vector.load %arg14[%c1_324, %c0_325, %c0_326] : memref<3x1x96xf32, #tpu.memory_space<vmem>>, vector<1x1x96xf32>
    %757 = vector.shape_cast %756 : vector<1x1x96xf32> to vector<1x96xf32>
    %c1_327 = arith.constant 1 : index
    %c0_328 = arith.constant 0 : index
    %c0_329 = arith.constant 0 : index
    %758 = vector.load %arg15[%c1_327, %c0_328, %c0_329] : memref<3x32x32xf32, #tpu.memory_space<vmem>>, vector<1x32x32xf32>
    %759 = vector.shape_cast %758 : vector<1x32x32xf32> to vector<32x32xf32>
    %c1_330 = arith.constant 1 : index
    %c0_331 = arith.constant 0 : index
    %c0_332 = arith.constant 0 : index
    %760 = vector.load %arg16[%c1_330, %c0_331, %c0_332] : memref<3x1x32xf32, #tpu.memory_space<vmem>>, vector<1x1x32xf32>
    %761 = vector.shape_cast %760 : vector<1x1x32xf32> to vector<1x32xf32>
    %cst_333 = arith.constant dense<0.000000e+00> : vector<8x96xf32>
    %762 = tpu.matmul %749, %755, %cst_333 {dimension_numbers = #tpu.dot_dimension_numbers<[1], [0], [0], [1], [0, 0, 1, 1], [], []>} : vector<8x32xf32>, vector<32x96xf32>, vector<8x96xf32> -> vector<8x96xf32>
    %763 = vector.broadcast %757 : vector<1x96xf32> to vector<8x96xf32>
    %764 = arith.addf %762, %763 : vector<8x96xf32>
    %765 = vector.extract_strided_slice %764 {offsets = [0, 0], sizes = [8, 32], strides = [1, 1]} : vector<8x96xf32> to vector<8x32xf32>
    %766 = vector.extract_strided_slice %764 {offsets = [0, 32], sizes = [8, 32], strides = [1, 1]} : vector<8x96xf32> to vector<8x32xf32>
    %767 = vector.extract_strided_slice %764 {offsets = [0, 64], sizes = [8, 32], strides = [1, 1]} : vector<8x96xf32> to vector<8x32xf32>
    %768 = vector.extract_strided_slice %765 {offsets = [0, 0], sizes = [8, 8], strides = [1, 1]} : vector<8x32xf32> to vector<8x8xf32>
    %769 = vector.extract_strided_slice %766 {offsets = [0, 0], sizes = [8, 8], strides = [1, 1]} : vector<8x32xf32> to vector<8x8xf32>
    %770 = vector.extract_strided_slice %767 {offsets = [0, 0], sizes = [8, 8], strides = [1, 1]} : vector<8x32xf32> to vector<8x8xf32>
    %cst_334 = arith.constant dense<0.000000e+00> : vector<8x8xf32>
    %771 = tpu.matmul %768, %769, %cst_334 {dimension_numbers = #tpu.dot_dimension_numbers<[1], [1], [0], [0], [0, 0, 1, 0], [], []>} : vector<8x8xf32>, vector<8x8xf32>, vector<8x8xf32> -> vector<8x8xf32>
    %cst_335 = arith.constant 0.353553385 : f32
    %772 = vector.broadcast %cst_335 : f32 to vector<8x8xf32>
    %773 = arith.mulf %771, %772 : vector<8x8xf32>
    %cst_336 = arith.constant dense<0xFF800000> : vector<8xf32>
    %774 = vector.multi_reduction <maximumf>, %773, %cst_336 [1] : vector<8x8xf32> to vector<8xf32>
    %775 = vector.shape_cast %774 : vector<8xf32> to vector<8x1xf32>
    %776 = vector.broadcast %775 : vector<8x1xf32> to vector<8x8xf32>
    %777 = arith.subf %773, %776 : vector<8x8xf32>
    %778 = math.exp %777 : vector<8x8xf32>
    %cst_337 = arith.constant dense<0.000000e+00> : vector<8xf32>
    %779 = vector.multi_reduction <add>, %778, %cst_337 [1] : vector<8x8xf32> to vector<8xf32>
    %780 = vector.shape_cast %779 : vector<8xf32> to vector<8x1xf32>
    %781 = vector.broadcast %780 : vector<8x1xf32> to vector<8x8xf32>
    %782 = arith.divf %778, %781 : vector<8x8xf32>
    %cst_338 = arith.constant dense<0.000000e+00> : vector<8x8xf32>
    %783 = tpu.matmul %782, %770, %cst_338 {dimension_numbers = #tpu.dot_dimension_numbers<[1], [0], [0], [1], [0, 0, 1, 1], [], []>} : vector<8x8xf32>, vector<8x8xf32>, vector<8x8xf32> -> vector<8x8xf32>
    %784 = vector.extract_strided_slice %759 {offsets = [0, 0], sizes = [8, 32], strides = [1, 1]} : vector<32x32xf32> to vector<8x32xf32>
    %cst_339 = arith.constant dense<0.000000e+00> : vector<8x32xf32>
    %785 = tpu.matmul %783, %784, %cst_339 {dimension_numbers = #tpu.dot_dimension_numbers<[1], [0], [0], [1], [0, 0, 1, 1], [], []>} : vector<8x8xf32>, vector<8x32xf32>, vector<8x32xf32> -> vector<8x32xf32>
    %786 = vector.extract_strided_slice %765 {offsets = [0, 8], sizes = [8, 8], strides = [1, 1]} : vector<8x32xf32> to vector<8x8xf32>
    %787 = vector.extract_strided_slice %766 {offsets = [0, 8], sizes = [8, 8], strides = [1, 1]} : vector<8x32xf32> to vector<8x8xf32>
    %788 = vector.extract_strided_slice %767 {offsets = [0, 8], sizes = [8, 8], strides = [1, 1]} : vector<8x32xf32> to vector<8x8xf32>
    %cst_340 = arith.constant dense<0.000000e+00> : vector<8x8xf32>
    %789 = tpu.matmul %786, %787, %cst_340 {dimension_numbers = #tpu.dot_dimension_numbers<[1], [1], [0], [0], [0, 0, 1, 0], [], []>} : vector<8x8xf32>, vector<8x8xf32>, vector<8x8xf32> -> vector<8x8xf32>
    %cst_341 = arith.constant 0.353553385 : f32
    %790 = vector.broadcast %cst_341 : f32 to vector<8x8xf32>
    %791 = arith.mulf %789, %790 : vector<8x8xf32>
    %cst_342 = arith.constant dense<0xFF800000> : vector<8xf32>
    %792 = vector.multi_reduction <maximumf>, %791, %cst_342 [1] : vector<8x8xf32> to vector<8xf32>
    %793 = vector.shape_cast %792 : vector<8xf32> to vector<8x1xf32>
    %794 = vector.broadcast %793 : vector<8x1xf32> to vector<8x8xf32>
    %795 = arith.subf %791, %794 : vector<8x8xf32>
    %796 = math.exp %795 : vector<8x8xf32>
    %cst_343 = arith.constant dense<0.000000e+00> : vector<8xf32>
    %797 = vector.multi_reduction <add>, %796, %cst_343 [1] : vector<8x8xf32> to vector<8xf32>
    %798 = vector.shape_cast %797 : vector<8xf32> to vector<8x1xf32>
    %799 = vector.broadcast %798 : vector<8x1xf32> to vector<8x8xf32>
    %800 = arith.divf %796, %799 : vector<8x8xf32>
    %cst_344 = arith.constant dense<0.000000e+00> : vector<8x8xf32>
    %801 = tpu.matmul %800, %788, %cst_344 {dimension_numbers = #tpu.dot_dimension_numbers<[1], [0], [0], [1], [0, 0, 1, 1], [], []>} : vector<8x8xf32>, vector<8x8xf32>, vector<8x8xf32> -> vector<8x8xf32>
    %802 = vector.extract_strided_slice %759 {offsets = [8, 0], sizes = [8, 32], strides = [1, 1]} : vector<32x32xf32> to vector<8x32xf32>
    %cst_345 = arith.constant dense<0.000000e+00> : vector<8x32xf32>
    %803 = tpu.matmul %801, %802, %cst_345 {dimension_numbers = #tpu.dot_dimension_numbers<[1], [0], [0], [1], [0, 0, 1, 1], [], []>} : vector<8x8xf32>, vector<8x32xf32>, vector<8x32xf32> -> vector<8x32xf32>
    %804 = arith.addf %785, %803 : vector<8x32xf32>
    %805 = vector.extract_strided_slice %765 {offsets = [0, 16], sizes = [8, 8], strides = [1, 1]} : vector<8x32xf32> to vector<8x8xf32>
    %806 = vector.extract_strided_slice %766 {offsets = [0, 16], sizes = [8, 8], strides = [1, 1]} : vector<8x32xf32> to vector<8x8xf32>
    %807 = vector.extract_strided_slice %767 {offsets = [0, 16], sizes = [8, 8], strides = [1, 1]} : vector<8x32xf32> to vector<8x8xf32>
    %cst_346 = arith.constant dense<0.000000e+00> : vector<8x8xf32>
    %808 = tpu.matmul %805, %806, %cst_346 {dimension_numbers = #tpu.dot_dimension_numbers<[1], [1], [0], [0], [0, 0, 1, 0], [], []>} : vector<8x8xf32>, vector<8x8xf32>, vector<8x8xf32> -> vector<8x8xf32>
    %cst_347 = arith.constant 0.353553385 : f32
    %809 = vector.broadcast %cst_347 : f32 to vector<8x8xf32>
    %810 = arith.mulf %808, %809 : vector<8x8xf32>
    %cst_348 = arith.constant dense<0xFF800000> : vector<8xf32>
    %811 = vector.multi_reduction <maximumf>, %810, %cst_348 [1] : vector<8x8xf32> to vector<8xf32>
    %812 = vector.shape_cast %811 : vector<8xf32> to vector<8x1xf32>
    %813 = vector.broadcast %812 : vector<8x1xf32> to vector<8x8xf32>
    %814 = arith.subf %810, %813 : vector<8x8xf32>
    %815 = math.exp %814 : vector<8x8xf32>
    %cst_349 = arith.constant dense<0.000000e+00> : vector<8xf32>
    %816 = vector.multi_reduction <add>, %815, %cst_349 [1] : vector<8x8xf32> to vector<8xf32>
    %817 = vector.shape_cast %816 : vector<8xf32> to vector<8x1xf32>
    %818 = vector.broadcast %817 : vector<8x1xf32> to vector<8x8xf32>
    %819 = arith.divf %815, %818 : vector<8x8xf32>
    %cst_350 = arith.constant dense<0.000000e+00> : vector<8x8xf32>
    %820 = tpu.matmul %819, %807, %cst_350 {dimension_numbers = #tpu.dot_dimension_numbers<[1], [0], [0], [1], [0, 0, 1, 1], [], []>} : vector<8x8xf32>, vector<8x8xf32>, vector<8x8xf32> -> vector<8x8xf32>
    %821 = vector.extract_strided_slice %759 {offsets = [16, 0], sizes = [8, 32], strides = [1, 1]} : vector<32x32xf32> to vector<8x32xf32>
    %cst_351 = arith.constant dense<0.000000e+00> : vector<8x32xf32>
    %822 = tpu.matmul %820, %821, %cst_351 {dimension_numbers = #tpu.dot_dimension_numbers<[1], [0], [0], [1], [0, 0, 1, 1], [], []>} : vector<8x8xf32>, vector<8x32xf32>, vector<8x32xf32> -> vector<8x32xf32>
    %823 = arith.addf %804, %822 : vector<8x32xf32>
    %824 = vector.extract_strided_slice %765 {offsets = [0, 24], sizes = [8, 8], strides = [1, 1]} : vector<8x32xf32> to vector<8x8xf32>
    %825 = vector.extract_strided_slice %766 {offsets = [0, 24], sizes = [8, 8], strides = [1, 1]} : vector<8x32xf32> to vector<8x8xf32>
    %826 = vector.extract_strided_slice %767 {offsets = [0, 24], sizes = [8, 8], strides = [1, 1]} : vector<8x32xf32> to vector<8x8xf32>
    %cst_352 = arith.constant dense<0.000000e+00> : vector<8x8xf32>
    %827 = tpu.matmul %824, %825, %cst_352 {dimension_numbers = #tpu.dot_dimension_numbers<[1], [1], [0], [0], [0, 0, 1, 0], [], []>} : vector<8x8xf32>, vector<8x8xf32>, vector<8x8xf32> -> vector<8x8xf32>
    %cst_353 = arith.constant 0.353553385 : f32
    %828 = vector.broadcast %cst_353 : f32 to vector<8x8xf32>
    %829 = arith.mulf %827, %828 : vector<8x8xf32>
    %cst_354 = arith.constant dense<0xFF800000> : vector<8xf32>
    %830 = vector.multi_reduction <maximumf>, %829, %cst_354 [1] : vector<8x8xf32> to vector<8xf32>
    %831 = vector.shape_cast %830 : vector<8xf32> to vector<8x1xf32>
    %832 = vector.broadcast %831 : vector<8x1xf32> to vector<8x8xf32>
    %833 = arith.subf %829, %832 : vector<8x8xf32>
    %834 = math.exp %833 : vector<8x8xf32>
    %cst_355 = arith.constant dense<0.000000e+00> : vector<8xf32>
    %835 = vector.multi_reduction <add>, %834, %cst_355 [1] : vector<8x8xf32> to vector<8xf32>
    %836 = vector.shape_cast %835 : vector<8xf32> to vector<8x1xf32>
    %837 = vector.broadcast %836 : vector<8x1xf32> to vector<8x8xf32>
    %838 = arith.divf %834, %837 : vector<8x8xf32>
    %cst_356 = arith.constant dense<0.000000e+00> : vector<8x8xf32>
    %839 = tpu.matmul %838, %826, %cst_356 {dimension_numbers = #tpu.dot_dimension_numbers<[1], [0], [0], [1], [0, 0, 1, 1], [], []>} : vector<8x8xf32>, vector<8x8xf32>, vector<8x8xf32> -> vector<8x8xf32>
    %840 = vector.extract_strided_slice %759 {offsets = [24, 0], sizes = [8, 32], strides = [1, 1]} : vector<32x32xf32> to vector<8x32xf32>
    %cst_357 = arith.constant dense<0.000000e+00> : vector<8x32xf32>
    %841 = tpu.matmul %839, %840, %cst_357 {dimension_numbers = #tpu.dot_dimension_numbers<[1], [0], [0], [1], [0, 0, 1, 1], [], []>} : vector<8x8xf32>, vector<8x32xf32>, vector<8x32xf32> -> vector<8x32xf32>
    %842 = arith.addf %823, %841 : vector<8x32xf32>
    %843 = vector.broadcast %761 : vector<1x32xf32> to vector<8x32xf32>
    %844 = arith.addf %842, %843 : vector<8x32xf32>
    %845 = arith.addf %749, %844 : vector<8x32xf32>
    %846 = vector.extract_strided_slice %751 {offsets = [0, 0], sizes = [1, 32], strides = [1, 1]} : vector<3x32xf32> to vector<1x32xf32>
    %847 = vector.extract_strided_slice %753 {offsets = [0, 0], sizes = [1, 32], strides = [1, 1]} : vector<3x32xf32> to vector<1x32xf32>
    %cst_358 = arith.constant dense<0.000000e+00> : vector<8xf32>
    %848 = vector.multi_reduction <add>, %845, %cst_358 [1] : vector<8x32xf32> to vector<8xf32>
    %849 = vector.shape_cast %848 : vector<8xf32> to vector<8x1xf32>
    %cst_359 = arith.constant 3.200000e+01 : f32
    %850 = vector.broadcast %cst_359 : f32 to vector<8x1xf32>
    %851 = arith.divf %849, %850 : vector<8x1xf32>
    %852 = vector.broadcast %851 : vector<8x1xf32> to vector<8x32xf32>
    %853 = arith.subf %845, %852 : vector<8x32xf32>
    %854 = arith.mulf %853, %853 : vector<8x32xf32>
    %cst_360 = arith.constant dense<0.000000e+00> : vector<8xf32>
    %855 = vector.multi_reduction <add>, %854, %cst_360 [1] : vector<8x32xf32> to vector<8xf32>
    %856 = vector.shape_cast %855 : vector<8xf32> to vector<8x1xf32>
    %cst_361 = arith.constant 3.200000e+01 : f32
    %857 = vector.broadcast %cst_361 : f32 to vector<8x1xf32>
    %858 = arith.divf %856, %857 : vector<8x1xf32>
    %cst_362 = arith.constant 9.99999974E-6 : f32
    %859 = vector.broadcast %cst_362 : f32 to vector<8x1xf32>
    %860 = arith.addf %858, %859 : vector<8x1xf32>
    %861 = math.rsqrt %860 : vector<8x1xf32>
    %862 = vector.broadcast %861 : vector<8x1xf32> to vector<8x32xf32>
    %863 = arith.mulf %853, %862 : vector<8x32xf32>
    %864 = vector.broadcast %846 : vector<1x32xf32> to vector<8x32xf32>
    %865 = arith.mulf %863, %864 : vector<8x32xf32>
    %866 = vector.broadcast %847 : vector<1x32xf32> to vector<8x32xf32>
    %867 = arith.addf %865, %866 : vector<8x32xf32>
    %c1_363 = arith.constant 1 : index
    %c0_364 = arith.constant 0 : index
    %c0_365 = arith.constant 0 : index
    %868 = vector.load %arg17[%c1_363, %c0_364, %c0_365] : memref<3x32x96xf32, #tpu.memory_space<vmem>>, vector<1x32x96xf32>
    %869 = vector.shape_cast %868 : vector<1x32x96xf32> to vector<32x96xf32>
    %c1_366 = arith.constant 1 : index
    %c0_367 = arith.constant 0 : index
    %c0_368 = arith.constant 0 : index
    %870 = vector.load %arg18[%c1_366, %c0_367, %c0_368] : memref<3x1x96xf32, #tpu.memory_space<vmem>>, vector<1x1x96xf32>
    %871 = vector.shape_cast %870 : vector<1x1x96xf32> to vector<1x96xf32>
    %c1_369 = arith.constant 1 : index
    %c0_370 = arith.constant 0 : index
    %c0_371 = arith.constant 0 : index
    %872 = vector.load %arg19[%c1_369, %c0_370, %c0_371] : memref<3x32x32xf32, #tpu.memory_space<vmem>>, vector<1x32x32xf32>
    %873 = vector.shape_cast %872 : vector<1x32x32xf32> to vector<32x32xf32>
    %c1_372 = arith.constant 1 : index
    %c0_373 = arith.constant 0 : index
    %c0_374 = arith.constant 0 : index
    %874 = vector.load %arg20[%c1_372, %c0_373, %c0_374] : memref<3x1x32xf32, #tpu.memory_space<vmem>>, vector<1x1x32xf32>
    %875 = vector.shape_cast %874 : vector<1x1x32xf32> to vector<1x32xf32>
    %876 = vector.extract_strided_slice %869 {offsets = [0, 0], sizes = [32, 32], strides = [1, 1]} : vector<32x96xf32> to vector<32x32xf32>
    %cst_375 = arith.constant dense<0.000000e+00> : vector<8x32xf32>
    %877 = tpu.matmul %867, %876, %cst_375 {dimension_numbers = #tpu.dot_dimension_numbers<[1], [0], [0], [1], [0, 0, 1, 1], [], []>} : vector<8x32xf32>, vector<32x32xf32>, vector<8x32xf32> -> vector<8x32xf32>
    %878 = vector.extract_strided_slice %871 {offsets = [0, 0], sizes = [1, 32], strides = [1, 1]} : vector<1x96xf32> to vector<1x32xf32>
    %879 = vector.broadcast %878 : vector<1x32xf32> to vector<8x32xf32>
    %880 = arith.addf %877, %879 : vector<8x32xf32>
    %881 = vector.extract_strided_slice %869 {offsets = [0, 32], sizes = [32, 64], strides = [1, 1]} : vector<32x96xf32> to vector<32x64xf32>
    %cst_376 = arith.constant dense<0.000000e+00> : vector<8x64xf32>
    %882 = tpu.matmul %471, %881, %cst_376 {dimension_numbers = #tpu.dot_dimension_numbers<[1], [0], [0], [1], [0, 0, 1, 1], [], []>} : vector<8x32xf32>, vector<32x64xf32>, vector<8x64xf32> -> vector<8x64xf32>
    %883 = vector.extract_strided_slice %871 {offsets = [0, 32], sizes = [1, 64], strides = [1, 1]} : vector<1x96xf32> to vector<1x64xf32>
    %884 = vector.broadcast %883 : vector<1x64xf32> to vector<8x64xf32>
    %885 = arith.addf %882, %884 : vector<8x64xf32>
    %886 = vector.extract_strided_slice %885 {offsets = [0, 0], sizes = [8, 32], strides = [1, 1]} : vector<8x64xf32> to vector<8x32xf32>
    %887 = vector.extract_strided_slice %885 {offsets = [0, 32], sizes = [8, 32], strides = [1, 1]} : vector<8x64xf32> to vector<8x32xf32>
    %888 = vector.extract_strided_slice %880 {offsets = [0, 0], sizes = [8, 8], strides = [1, 1]} : vector<8x32xf32> to vector<8x8xf32>
    %889 = vector.extract_strided_slice %886 {offsets = [0, 0], sizes = [8, 8], strides = [1, 1]} : vector<8x32xf32> to vector<8x8xf32>
    %890 = vector.extract_strided_slice %887 {offsets = [0, 0], sizes = [8, 8], strides = [1, 1]} : vector<8x32xf32> to vector<8x8xf32>
    %cst_377 = arith.constant dense<0.000000e+00> : vector<8x8xf32>
    %891 = tpu.matmul %888, %889, %cst_377 {dimension_numbers = #tpu.dot_dimension_numbers<[1], [1], [0], [0], [0, 0, 1, 0], [], []>} : vector<8x8xf32>, vector<8x8xf32>, vector<8x8xf32> -> vector<8x8xf32>
    %cst_378 = arith.constant 0.353553385 : f32
    %892 = vector.broadcast %cst_378 : f32 to vector<8x8xf32>
    %893 = arith.mulf %891, %892 : vector<8x8xf32>
    %cst_379 = arith.constant dense<0xFF800000> : vector<8xf32>
    %894 = vector.multi_reduction <maximumf>, %893, %cst_379 [1] : vector<8x8xf32> to vector<8xf32>
    %895 = vector.shape_cast %894 : vector<8xf32> to vector<8x1xf32>
    %896 = vector.broadcast %895 : vector<8x1xf32> to vector<8x8xf32>
    %897 = arith.subf %893, %896 : vector<8x8xf32>
    %898 = math.exp %897 : vector<8x8xf32>
    %cst_380 = arith.constant dense<0.000000e+00> : vector<8xf32>
    %899 = vector.multi_reduction <add>, %898, %cst_380 [1] : vector<8x8xf32> to vector<8xf32>
    %900 = vector.shape_cast %899 : vector<8xf32> to vector<8x1xf32>
    %901 = vector.broadcast %900 : vector<8x1xf32> to vector<8x8xf32>
    %902 = arith.divf %898, %901 : vector<8x8xf32>
    %cst_381 = arith.constant dense<0.000000e+00> : vector<8x8xf32>
    %903 = tpu.matmul %902, %890, %cst_381 {dimension_numbers = #tpu.dot_dimension_numbers<[1], [0], [0], [1], [0, 0, 1, 1], [], []>} : vector<8x8xf32>, vector<8x8xf32>, vector<8x8xf32> -> vector<8x8xf32>
    %904 = vector.extract_strided_slice %873 {offsets = [0, 0], sizes = [8, 32], strides = [1, 1]} : vector<32x32xf32> to vector<8x32xf32>
    %cst_382 = arith.constant dense<0.000000e+00> : vector<8x32xf32>
    %905 = tpu.matmul %903, %904, %cst_382 {dimension_numbers = #tpu.dot_dimension_numbers<[1], [0], [0], [1], [0, 0, 1, 1], [], []>} : vector<8x8xf32>, vector<8x32xf32>, vector<8x32xf32> -> vector<8x32xf32>
    %906 = vector.extract_strided_slice %880 {offsets = [0, 8], sizes = [8, 8], strides = [1, 1]} : vector<8x32xf32> to vector<8x8xf32>
    %907 = vector.extract_strided_slice %886 {offsets = [0, 8], sizes = [8, 8], strides = [1, 1]} : vector<8x32xf32> to vector<8x8xf32>
    %908 = vector.extract_strided_slice %887 {offsets = [0, 8], sizes = [8, 8], strides = [1, 1]} : vector<8x32xf32> to vector<8x8xf32>
    %cst_383 = arith.constant dense<0.000000e+00> : vector<8x8xf32>
    %909 = tpu.matmul %906, %907, %cst_383 {dimension_numbers = #tpu.dot_dimension_numbers<[1], [1], [0], [0], [0, 0, 1, 0], [], []>} : vector<8x8xf32>, vector<8x8xf32>, vector<8x8xf32> -> vector<8x8xf32>
    %cst_384 = arith.constant 0.353553385 : f32
    %910 = vector.broadcast %cst_384 : f32 to vector<8x8xf32>
    %911 = arith.mulf %909, %910 : vector<8x8xf32>
    %cst_385 = arith.constant dense<0xFF800000> : vector<8xf32>
    %912 = vector.multi_reduction <maximumf>, %911, %cst_385 [1] : vector<8x8xf32> to vector<8xf32>
    %913 = vector.shape_cast %912 : vector<8xf32> to vector<8x1xf32>
    %914 = vector.broadcast %913 : vector<8x1xf32> to vector<8x8xf32>
    %915 = arith.subf %911, %914 : vector<8x8xf32>
    %916 = math.exp %915 : vector<8x8xf32>
    %cst_386 = arith.constant dense<0.000000e+00> : vector<8xf32>
    %917 = vector.multi_reduction <add>, %916, %cst_386 [1] : vector<8x8xf32> to vector<8xf32>
    %918 = vector.shape_cast %917 : vector<8xf32> to vector<8x1xf32>
    %919 = vector.broadcast %918 : vector<8x1xf32> to vector<8x8xf32>
    %920 = arith.divf %916, %919 : vector<8x8xf32>
    %cst_387 = arith.constant dense<0.000000e+00> : vector<8x8xf32>
    %921 = tpu.matmul %920, %908, %cst_387 {dimension_numbers = #tpu.dot_dimension_numbers<[1], [0], [0], [1], [0, 0, 1, 1], [], []>} : vector<8x8xf32>, vector<8x8xf32>, vector<8x8xf32> -> vector<8x8xf32>
    %922 = vector.extract_strided_slice %873 {offsets = [8, 0], sizes = [8, 32], strides = [1, 1]} : vector<32x32xf32> to vector<8x32xf32>
    %cst_388 = arith.constant dense<0.000000e+00> : vector<8x32xf32>
    %923 = tpu.matmul %921, %922, %cst_388 {dimension_numbers = #tpu.dot_dimension_numbers<[1], [0], [0], [1], [0, 0, 1, 1], [], []>} : vector<8x8xf32>, vector<8x32xf32>, vector<8x32xf32> -> vector<8x32xf32>
    %924 = arith.addf %905, %923 : vector<8x32xf32>
    %925 = vector.extract_strided_slice %880 {offsets = [0, 16], sizes = [8, 8], strides = [1, 1]} : vector<8x32xf32> to vector<8x8xf32>
    %926 = vector.extract_strided_slice %886 {offsets = [0, 16], sizes = [8, 8], strides = [1, 1]} : vector<8x32xf32> to vector<8x8xf32>
    %927 = vector.extract_strided_slice %887 {offsets = [0, 16], sizes = [8, 8], strides = [1, 1]} : vector<8x32xf32> to vector<8x8xf32>
    %cst_389 = arith.constant dense<0.000000e+00> : vector<8x8xf32>
    %928 = tpu.matmul %925, %926, %cst_389 {dimension_numbers = #tpu.dot_dimension_numbers<[1], [1], [0], [0], [0, 0, 1, 0], [], []>} : vector<8x8xf32>, vector<8x8xf32>, vector<8x8xf32> -> vector<8x8xf32>
    %cst_390 = arith.constant 0.353553385 : f32
    %929 = vector.broadcast %cst_390 : f32 to vector<8x8xf32>
    %930 = arith.mulf %928, %929 : vector<8x8xf32>
    %cst_391 = arith.constant dense<0xFF800000> : vector<8xf32>
    %931 = vector.multi_reduction <maximumf>, %930, %cst_391 [1] : vector<8x8xf32> to vector<8xf32>
    %932 = vector.shape_cast %931 : vector<8xf32> to vector<8x1xf32>
    %933 = vector.broadcast %932 : vector<8x1xf32> to vector<8x8xf32>
    %934 = arith.subf %930, %933 : vector<8x8xf32>
    %935 = math.exp %934 : vector<8x8xf32>
    %cst_392 = arith.constant dense<0.000000e+00> : vector<8xf32>
    %936 = vector.multi_reduction <add>, %935, %cst_392 [1] : vector<8x8xf32> to vector<8xf32>
    %937 = vector.shape_cast %936 : vector<8xf32> to vector<8x1xf32>
    %938 = vector.broadcast %937 : vector<8x1xf32> to vector<8x8xf32>
    %939 = arith.divf %935, %938 : vector<8x8xf32>
    %cst_393 = arith.constant dense<0.000000e+00> : vector<8x8xf32>
    %940 = tpu.matmul %939, %927, %cst_393 {dimension_numbers = #tpu.dot_dimension_numbers<[1], [0], [0], [1], [0, 0, 1, 1], [], []>} : vector<8x8xf32>, vector<8x8xf32>, vector<8x8xf32> -> vector<8x8xf32>
    %941 = vector.extract_strided_slice %873 {offsets = [16, 0], sizes = [8, 32], strides = [1, 1]} : vector<32x32xf32> to vector<8x32xf32>
    %cst_394 = arith.constant dense<0.000000e+00> : vector<8x32xf32>
    %942 = tpu.matmul %940, %941, %cst_394 {dimension_numbers = #tpu.dot_dimension_numbers<[1], [0], [0], [1], [0, 0, 1, 1], [], []>} : vector<8x8xf32>, vector<8x32xf32>, vector<8x32xf32> -> vector<8x32xf32>
    %943 = arith.addf %924, %942 : vector<8x32xf32>
    %944 = vector.extract_strided_slice %880 {offsets = [0, 24], sizes = [8, 8], strides = [1, 1]} : vector<8x32xf32> to vector<8x8xf32>
    %945 = vector.extract_strided_slice %886 {offsets = [0, 24], sizes = [8, 8], strides = [1, 1]} : vector<8x32xf32> to vector<8x8xf32>
    %946 = vector.extract_strided_slice %887 {offsets = [0, 24], sizes = [8, 8], strides = [1, 1]} : vector<8x32xf32> to vector<8x8xf32>
    %cst_395 = arith.constant dense<0.000000e+00> : vector<8x8xf32>
    %947 = tpu.matmul %944, %945, %cst_395 {dimension_numbers = #tpu.dot_dimension_numbers<[1], [1], [0], [0], [0, 0, 1, 0], [], []>} : vector<8x8xf32>, vector<8x8xf32>, vector<8x8xf32> -> vector<8x8xf32>
    %cst_396 = arith.constant 0.353553385 : f32
    %948 = vector.broadcast %cst_396 : f32 to vector<8x8xf32>
    %949 = arith.mulf %947, %948 : vector<8x8xf32>
    %cst_397 = arith.constant dense<0xFF800000> : vector<8xf32>
    %950 = vector.multi_reduction <maximumf>, %949, %cst_397 [1] : vector<8x8xf32> to vector<8xf32>
    %951 = vector.shape_cast %950 : vector<8xf32> to vector<8x1xf32>
    %952 = vector.broadcast %951 : vector<8x1xf32> to vector<8x8xf32>
    %953 = arith.subf %949, %952 : vector<8x8xf32>
    %954 = math.exp %953 : vector<8x8xf32>
    %cst_398 = arith.constant dense<0.000000e+00> : vector<8xf32>
    %955 = vector.multi_reduction <add>, %954, %cst_398 [1] : vector<8x8xf32> to vector<8xf32>
    %956 = vector.shape_cast %955 : vector<8xf32> to vector<8x1xf32>
    %957 = vector.broadcast %956 : vector<8x1xf32> to vector<8x8xf32>
    %958 = arith.divf %954, %957 : vector<8x8xf32>
    %cst_399 = arith.constant dense<0.000000e+00> : vector<8x8xf32>
    %959 = tpu.matmul %958, %946, %cst_399 {dimension_numbers = #tpu.dot_dimension_numbers<[1], [0], [0], [1], [0, 0, 1, 1], [], []>} : vector<8x8xf32>, vector<8x8xf32>, vector<8x8xf32> -> vector<8x8xf32>
    %960 = vector.extract_strided_slice %873 {offsets = [24, 0], sizes = [8, 32], strides = [1, 1]} : vector<32x32xf32> to vector<8x32xf32>
    %cst_400 = arith.constant dense<0.000000e+00> : vector<8x32xf32>
    %961 = tpu.matmul %959, %960, %cst_400 {dimension_numbers = #tpu.dot_dimension_numbers<[1], [0], [0], [1], [0, 0, 1, 1], [], []>} : vector<8x8xf32>, vector<8x32xf32>, vector<8x32xf32> -> vector<8x32xf32>
    %962 = arith.addf %943, %961 : vector<8x32xf32>
    %963 = vector.broadcast %875 : vector<1x32xf32> to vector<8x32xf32>
    %964 = arith.addf %962, %963 : vector<8x32xf32>
    %965 = arith.addf %867, %964 : vector<8x32xf32>
    %966 = vector.extract_strided_slice %751 {offsets = [1, 0], sizes = [1, 32], strides = [1, 1]} : vector<3x32xf32> to vector<1x32xf32>
    %967 = vector.extract_strided_slice %753 {offsets = [1, 0], sizes = [1, 32], strides = [1, 1]} : vector<3x32xf32> to vector<1x32xf32>
    %cst_401 = arith.constant dense<0.000000e+00> : vector<8xf32>
    %968 = vector.multi_reduction <add>, %965, %cst_401 [1] : vector<8x32xf32> to vector<8xf32>
    %969 = vector.shape_cast %968 : vector<8xf32> to vector<8x1xf32>
    %cst_402 = arith.constant 3.200000e+01 : f32
    %970 = vector.broadcast %cst_402 : f32 to vector<8x1xf32>
    %971 = arith.divf %969, %970 : vector<8x1xf32>
    %972 = vector.broadcast %971 : vector<8x1xf32> to vector<8x32xf32>
    %973 = arith.subf %965, %972 : vector<8x32xf32>
    %974 = arith.mulf %973, %973 : vector<8x32xf32>
    %cst_403 = arith.constant dense<0.000000e+00> : vector<8xf32>
    %975 = vector.multi_reduction <add>, %974, %cst_403 [1] : vector<8x32xf32> to vector<8xf32>
    %976 = vector.shape_cast %975 : vector<8xf32> to vector<8x1xf32>
    %cst_404 = arith.constant 3.200000e+01 : f32
    %977 = vector.broadcast %cst_404 : f32 to vector<8x1xf32>
    %978 = arith.divf %976, %977 : vector<8x1xf32>
    %cst_405 = arith.constant 9.99999974E-6 : f32
    %979 = vector.broadcast %cst_405 : f32 to vector<8x1xf32>
    %980 = arith.addf %978, %979 : vector<8x1xf32>
    %981 = math.rsqrt %980 : vector<8x1xf32>
    %982 = vector.broadcast %981 : vector<8x1xf32> to vector<8x32xf32>
    %983 = arith.mulf %973, %982 : vector<8x32xf32>
    %984 = vector.broadcast %966 : vector<1x32xf32> to vector<8x32xf32>
    %985 = arith.mulf %983, %984 : vector<8x32xf32>
    %986 = vector.broadcast %967 : vector<1x32xf32> to vector<8x32xf32>
    %987 = arith.addf %985, %986 : vector<8x32xf32>
    %c1_406 = arith.constant 1 : index
    %c0_407 = arith.constant 0 : index
    %c0_408 = arith.constant 0 : index
    %988 = vector.load %arg21[%c1_406, %c0_407, %c0_408] : memref<3x32x1024xf32, #tpu.memory_space<vmem>>, vector<1x32x1024xf32>
    %989 = vector.shape_cast %988 : vector<1x32x1024xf32> to vector<32x1024xf32>
    %c1_409 = arith.constant 1 : index
    %c0_410 = arith.constant 0 : index
    %c0_411 = arith.constant 0 : index
    %990 = vector.load %arg22[%c1_409, %c0_410, %c0_411] : memref<3x1x1024xf32, #tpu.memory_space<vmem>>, vector<1x1x1024xf32>
    %991 = vector.shape_cast %990 : vector<1x1x1024xf32> to vector<1x1024xf32>
    %c1_412 = arith.constant 1 : index
    %c0_413 = arith.constant 0 : index
    %c0_414 = arith.constant 0 : index
    %992 = vector.load %arg23[%c1_412, %c0_413, %c0_414] : memref<3x1024x32xf32, #tpu.memory_space<vmem>>, vector<1x1024x32xf32>
    %993 = vector.shape_cast %992 : vector<1x1024x32xf32> to vector<1024x32xf32>
    %c1_415 = arith.constant 1 : index
    %c0_416 = arith.constant 0 : index
    %c0_417 = arith.constant 0 : index
    %994 = vector.load %arg24[%c1_415, %c0_416, %c0_417] : memref<3x1x32xf32, #tpu.memory_space<vmem>>, vector<1x1x32xf32>
    %995 = vector.shape_cast %994 : vector<1x1x32xf32> to vector<1x32xf32>
    %cst_418 = arith.constant dense<0.000000e+00> : vector<8x1024xf32>
    %996 = tpu.matmul %987, %989, %cst_418 {dimension_numbers = #tpu.dot_dimension_numbers<[1], [0], [0], [1], [0, 0, 1, 1], [], []>} : vector<8x32xf32>, vector<32x1024xf32>, vector<8x1024xf32> -> vector<8x1024xf32>
    %997 = vector.broadcast %991 : vector<1x1024xf32> to vector<8x1024xf32>
    %998 = arith.addf %996, %997 : vector<8x1024xf32>
    %cst_419 = arith.constant 0.000000e+00 : f32
    %999 = vector.broadcast %cst_419 : f32 to vector<8x1024xf32>
    %1000 = arith.maximumf %998, %999 : vector<8x1024xf32>
    %cst_420 = arith.constant dense<0.000000e+00> : vector<8x32xf32>
    %1001 = tpu.matmul %1000, %993, %cst_420 {dimension_numbers = #tpu.dot_dimension_numbers<[1], [0], [0], [1], [0, 0, 1, 1], [], []>} : vector<8x1024xf32>, vector<1024x32xf32>, vector<8x32xf32> -> vector<8x32xf32>
    %1002 = vector.broadcast %995 : vector<1x32xf32> to vector<8x32xf32>
    %1003 = arith.addf %1001, %1002 : vector<8x32xf32>
    %1004 = arith.addf %987, %1003 : vector<8x32xf32>
    %1005 = vector.extract_strided_slice %751 {offsets = [2, 0], sizes = [1, 32], strides = [1, 1]} : vector<3x32xf32> to vector<1x32xf32>
    %1006 = vector.extract_strided_slice %753 {offsets = [2, 0], sizes = [1, 32], strides = [1, 1]} : vector<3x32xf32> to vector<1x32xf32>
    %cst_421 = arith.constant dense<0.000000e+00> : vector<8xf32>
    %1007 = vector.multi_reduction <add>, %1004, %cst_421 [1] : vector<8x32xf32> to vector<8xf32>
    %1008 = vector.shape_cast %1007 : vector<8xf32> to vector<8x1xf32>
    %cst_422 = arith.constant 3.200000e+01 : f32
    %1009 = vector.broadcast %cst_422 : f32 to vector<8x1xf32>
    %1010 = arith.divf %1008, %1009 : vector<8x1xf32>
    %1011 = vector.broadcast %1010 : vector<8x1xf32> to vector<8x32xf32>
    %1012 = arith.subf %1004, %1011 : vector<8x32xf32>
    %1013 = arith.mulf %1012, %1012 : vector<8x32xf32>
    %cst_423 = arith.constant dense<0.000000e+00> : vector<8xf32>
    %1014 = vector.multi_reduction <add>, %1013, %cst_423 [1] : vector<8x32xf32> to vector<8xf32>
    %1015 = vector.shape_cast %1014 : vector<8xf32> to vector<8x1xf32>
    %cst_424 = arith.constant 3.200000e+01 : f32
    %1016 = vector.broadcast %cst_424 : f32 to vector<8x1xf32>
    %1017 = arith.divf %1015, %1016 : vector<8x1xf32>
    %cst_425 = arith.constant 9.99999974E-6 : f32
    %1018 = vector.broadcast %cst_425 : f32 to vector<8x1xf32>
    %1019 = arith.addf %1017, %1018 : vector<8x1xf32>
    %1020 = math.rsqrt %1019 : vector<8x1xf32>
    %1021 = vector.broadcast %1020 : vector<8x1xf32> to vector<8x32xf32>
    %1022 = arith.mulf %1012, %1021 : vector<8x32xf32>
    %1023 = vector.broadcast %1005 : vector<1x32xf32> to vector<8x32xf32>
    %1024 = arith.mulf %1022, %1023 : vector<8x32xf32>
    %1025 = vector.broadcast %1006 : vector<1x32xf32> to vector<8x32xf32>
    %1026 = arith.addf %1024, %1025 : vector<8x32xf32>
    %c2_426 = arith.constant 2 : index
    %c0_427 = arith.constant 0 : index
    %c0_428 = arith.constant 0 : index
    %1027 = vector.load %arg25[%c2_426, %c0_427, %c0_428] : memref<3x3x32xf32, #tpu.memory_space<vmem>>, vector<1x3x32xf32>
    %1028 = vector.shape_cast %1027 : vector<1x3x32xf32> to vector<3x32xf32>
    %c2_429 = arith.constant 2 : index
    %c0_430 = arith.constant 0 : index
    %c0_431 = arith.constant 0 : index
    %1029 = vector.load %arg26[%c2_429, %c0_430, %c0_431] : memref<3x3x32xf32, #tpu.memory_space<vmem>>, vector<1x3x32xf32>
    %1030 = vector.shape_cast %1029 : vector<1x3x32xf32> to vector<3x32xf32>
    %c2_432 = arith.constant 2 : index
    %c0_433 = arith.constant 0 : index
    %c0_434 = arith.constant 0 : index
    %1031 = vector.load %arg13[%c2_432, %c0_433, %c0_434] : memref<3x32x96xf32, #tpu.memory_space<vmem>>, vector<1x32x96xf32>
    %1032 = vector.shape_cast %1031 : vector<1x32x96xf32> to vector<32x96xf32>
    %c2_435 = arith.constant 2 : index
    %c0_436 = arith.constant 0 : index
    %c0_437 = arith.constant 0 : index
    %1033 = vector.load %arg14[%c2_435, %c0_436, %c0_437] : memref<3x1x96xf32, #tpu.memory_space<vmem>>, vector<1x1x96xf32>
    %1034 = vector.shape_cast %1033 : vector<1x1x96xf32> to vector<1x96xf32>
    %c2_438 = arith.constant 2 : index
    %c0_439 = arith.constant 0 : index
    %c0_440 = arith.constant 0 : index
    %1035 = vector.load %arg15[%c2_438, %c0_439, %c0_440] : memref<3x32x32xf32, #tpu.memory_space<vmem>>, vector<1x32x32xf32>
    %1036 = vector.shape_cast %1035 : vector<1x32x32xf32> to vector<32x32xf32>
    %c2_441 = arith.constant 2 : index
    %c0_442 = arith.constant 0 : index
    %c0_443 = arith.constant 0 : index
    %1037 = vector.load %arg16[%c2_441, %c0_442, %c0_443] : memref<3x1x32xf32, #tpu.memory_space<vmem>>, vector<1x1x32xf32>
    %1038 = vector.shape_cast %1037 : vector<1x1x32xf32> to vector<1x32xf32>
    %cst_444 = arith.constant dense<0.000000e+00> : vector<8x96xf32>
    %1039 = tpu.matmul %1026, %1032, %cst_444 {dimension_numbers = #tpu.dot_dimension_numbers<[1], [0], [0], [1], [0, 0, 1, 1], [], []>} : vector<8x32xf32>, vector<32x96xf32>, vector<8x96xf32> -> vector<8x96xf32>
    %1040 = vector.broadcast %1034 : vector<1x96xf32> to vector<8x96xf32>
    %1041 = arith.addf %1039, %1040 : vector<8x96xf32>
    %1042 = vector.extract_strided_slice %1041 {offsets = [0, 0], sizes = [8, 32], strides = [1, 1]} : vector<8x96xf32> to vector<8x32xf32>
    %1043 = vector.extract_strided_slice %1041 {offsets = [0, 32], sizes = [8, 32], strides = [1, 1]} : vector<8x96xf32> to vector<8x32xf32>
    %1044 = vector.extract_strided_slice %1041 {offsets = [0, 64], sizes = [8, 32], strides = [1, 1]} : vector<8x96xf32> to vector<8x32xf32>
    %1045 = vector.extract_strided_slice %1042 {offsets = [0, 0], sizes = [8, 8], strides = [1, 1]} : vector<8x32xf32> to vector<8x8xf32>
    %1046 = vector.extract_strided_slice %1043 {offsets = [0, 0], sizes = [8, 8], strides = [1, 1]} : vector<8x32xf32> to vector<8x8xf32>
    %1047 = vector.extract_strided_slice %1044 {offsets = [0, 0], sizes = [8, 8], strides = [1, 1]} : vector<8x32xf32> to vector<8x8xf32>
    %cst_445 = arith.constant dense<0.000000e+00> : vector<8x8xf32>
    %1048 = tpu.matmul %1045, %1046, %cst_445 {dimension_numbers = #tpu.dot_dimension_numbers<[1], [1], [0], [0], [0, 0, 1, 0], [], []>} : vector<8x8xf32>, vector<8x8xf32>, vector<8x8xf32> -> vector<8x8xf32>
    %cst_446 = arith.constant 0.353553385 : f32
    %1049 = vector.broadcast %cst_446 : f32 to vector<8x8xf32>
    %1050 = arith.mulf %1048, %1049 : vector<8x8xf32>
    %cst_447 = arith.constant dense<0xFF800000> : vector<8xf32>
    %1051 = vector.multi_reduction <maximumf>, %1050, %cst_447 [1] : vector<8x8xf32> to vector<8xf32>
    %1052 = vector.shape_cast %1051 : vector<8xf32> to vector<8x1xf32>
    %1053 = vector.broadcast %1052 : vector<8x1xf32> to vector<8x8xf32>
    %1054 = arith.subf %1050, %1053 : vector<8x8xf32>
    %1055 = math.exp %1054 : vector<8x8xf32>
    %cst_448 = arith.constant dense<0.000000e+00> : vector<8xf32>
    %1056 = vector.multi_reduction <add>, %1055, %cst_448 [1] : vector<8x8xf32> to vector<8xf32>
    %1057 = vector.shape_cast %1056 : vector<8xf32> to vector<8x1xf32>
    %1058 = vector.broadcast %1057 : vector<8x1xf32> to vector<8x8xf32>
    %1059 = arith.divf %1055, %1058 : vector<8x8xf32>
    %cst_449 = arith.constant dense<0.000000e+00> : vector<8x8xf32>
    %1060 = tpu.matmul %1059, %1047, %cst_449 {dimension_numbers = #tpu.dot_dimension_numbers<[1], [0], [0], [1], [0, 0, 1, 1], [], []>} : vector<8x8xf32>, vector<8x8xf32>, vector<8x8xf32> -> vector<8x8xf32>
    %1061 = vector.extract_strided_slice %1036 {offsets = [0, 0], sizes = [8, 32], strides = [1, 1]} : vector<32x32xf32> to vector<8x32xf32>
    %cst_450 = arith.constant dense<0.000000e+00> : vector<8x32xf32>
    %1062 = tpu.matmul %1060, %1061, %cst_450 {dimension_numbers = #tpu.dot_dimension_numbers<[1], [0], [0], [1], [0, 0, 1, 1], [], []>} : vector<8x8xf32>, vector<8x32xf32>, vector<8x32xf32> -> vector<8x32xf32>
    %1063 = vector.extract_strided_slice %1042 {offsets = [0, 8], sizes = [8, 8], strides = [1, 1]} : vector<8x32xf32> to vector<8x8xf32>
    %1064 = vector.extract_strided_slice %1043 {offsets = [0, 8], sizes = [8, 8], strides = [1, 1]} : vector<8x32xf32> to vector<8x8xf32>
    %1065 = vector.extract_strided_slice %1044 {offsets = [0, 8], sizes = [8, 8], strides = [1, 1]} : vector<8x32xf32> to vector<8x8xf32>
    %cst_451 = arith.constant dense<0.000000e+00> : vector<8x8xf32>
    %1066 = tpu.matmul %1063, %1064, %cst_451 {dimension_numbers = #tpu.dot_dimension_numbers<[1], [1], [0], [0], [0, 0, 1, 0], [], []>} : vector<8x8xf32>, vector<8x8xf32>, vector<8x8xf32> -> vector<8x8xf32>
    %cst_452 = arith.constant 0.353553385 : f32
    %1067 = vector.broadcast %cst_452 : f32 to vector<8x8xf32>
    %1068 = arith.mulf %1066, %1067 : vector<8x8xf32>
    %cst_453 = arith.constant dense<0xFF800000> : vector<8xf32>
    %1069 = vector.multi_reduction <maximumf>, %1068, %cst_453 [1] : vector<8x8xf32> to vector<8xf32>
    %1070 = vector.shape_cast %1069 : vector<8xf32> to vector<8x1xf32>
    %1071 = vector.broadcast %1070 : vector<8x1xf32> to vector<8x8xf32>
    %1072 = arith.subf %1068, %1071 : vector<8x8xf32>
    %1073 = math.exp %1072 : vector<8x8xf32>
    %cst_454 = arith.constant dense<0.000000e+00> : vector<8xf32>
    %1074 = vector.multi_reduction <add>, %1073, %cst_454 [1] : vector<8x8xf32> to vector<8xf32>
    %1075 = vector.shape_cast %1074 : vector<8xf32> to vector<8x1xf32>
    %1076 = vector.broadcast %1075 : vector<8x1xf32> to vector<8x8xf32>
    %1077 = arith.divf %1073, %1076 : vector<8x8xf32>
    %cst_455 = arith.constant dense<0.000000e+00> : vector<8x8xf32>
    %1078 = tpu.matmul %1077, %1065, %cst_455 {dimension_numbers = #tpu.dot_dimension_numbers<[1], [0], [0], [1], [0, 0, 1, 1], [], []>} : vector<8x8xf32>, vector<8x8xf32>, vector<8x8xf32> -> vector<8x8xf32>
    %1079 = vector.extract_strided_slice %1036 {offsets = [8, 0], sizes = [8, 32], strides = [1, 1]} : vector<32x32xf32> to vector<8x32xf32>
    %cst_456 = arith.constant dense<0.000000e+00> : vector<8x32xf32>
    %1080 = tpu.matmul %1078, %1079, %cst_456 {dimension_numbers = #tpu.dot_dimension_numbers<[1], [0], [0], [1], [0, 0, 1, 1], [], []>} : vector<8x8xf32>, vector<8x32xf32>, vector<8x32xf32> -> vector<8x32xf32>
    %1081 = arith.addf %1062, %1080 : vector<8x32xf32>
    %1082 = vector.extract_strided_slice %1042 {offsets = [0, 16], sizes = [8, 8], strides = [1, 1]} : vector<8x32xf32> to vector<8x8xf32>
    %1083 = vector.extract_strided_slice %1043 {offsets = [0, 16], sizes = [8, 8], strides = [1, 1]} : vector<8x32xf32> to vector<8x8xf32>
    %1084 = vector.extract_strided_slice %1044 {offsets = [0, 16], sizes = [8, 8], strides = [1, 1]} : vector<8x32xf32> to vector<8x8xf32>
    %cst_457 = arith.constant dense<0.000000e+00> : vector<8x8xf32>
    %1085 = tpu.matmul %1082, %1083, %cst_457 {dimension_numbers = #tpu.dot_dimension_numbers<[1], [1], [0], [0], [0, 0, 1, 0], [], []>} : vector<8x8xf32>, vector<8x8xf32>, vector<8x8xf32> -> vector<8x8xf32>
    %cst_458 = arith.constant 0.353553385 : f32
    %1086 = vector.broadcast %cst_458 : f32 to vector<8x8xf32>
    %1087 = arith.mulf %1085, %1086 : vector<8x8xf32>
    %cst_459 = arith.constant dense<0xFF800000> : vector<8xf32>
    %1088 = vector.multi_reduction <maximumf>, %1087, %cst_459 [1] : vector<8x8xf32> to vector<8xf32>
    %1089 = vector.shape_cast %1088 : vector<8xf32> to vector<8x1xf32>
    %1090 = vector.broadcast %1089 : vector<8x1xf32> to vector<8x8xf32>
    %1091 = arith.subf %1087, %1090 : vector<8x8xf32>
    %1092 = math.exp %1091 : vector<8x8xf32>
    %cst_460 = arith.constant dense<0.000000e+00> : vector<8xf32>
    %1093 = vector.multi_reduction <add>, %1092, %cst_460 [1] : vector<8x8xf32> to vector<8xf32>
    %1094 = vector.shape_cast %1093 : vector<8xf32> to vector<8x1xf32>
    %1095 = vector.broadcast %1094 : vector<8x1xf32> to vector<8x8xf32>
    %1096 = arith.divf %1092, %1095 : vector<8x8xf32>
    %cst_461 = arith.constant dense<0.000000e+00> : vector<8x8xf32>
    %1097 = tpu.matmul %1096, %1084, %cst_461 {dimension_numbers = #tpu.dot_dimension_numbers<[1], [0], [0], [1], [0, 0, 1, 1], [], []>} : vector<8x8xf32>, vector<8x8xf32>, vector<8x8xf32> -> vector<8x8xf32>
    %1098 = vector.extract_strided_slice %1036 {offsets = [16, 0], sizes = [8, 32], strides = [1, 1]} : vector<32x32xf32> to vector<8x32xf32>
    %cst_462 = arith.constant dense<0.000000e+00> : vector<8x32xf32>
    %1099 = tpu.matmul %1097, %1098, %cst_462 {dimension_numbers = #tpu.dot_dimension_numbers<[1], [0], [0], [1], [0, 0, 1, 1], [], []>} : vector<8x8xf32>, vector<8x32xf32>, vector<8x32xf32> -> vector<8x32xf32>
    %1100 = arith.addf %1081, %1099 : vector<8x32xf32>
    %1101 = vector.extract_strided_slice %1042 {offsets = [0, 24], sizes = [8, 8], strides = [1, 1]} : vector<8x32xf32> to vector<8x8xf32>
    %1102 = vector.extract_strided_slice %1043 {offsets = [0, 24], sizes = [8, 8], strides = [1, 1]} : vector<8x32xf32> to vector<8x8xf32>
    %1103 = vector.extract_strided_slice %1044 {offsets = [0, 24], sizes = [8, 8], strides = [1, 1]} : vector<8x32xf32> to vector<8x8xf32>
    %cst_463 = arith.constant dense<0.000000e+00> : vector<8x8xf32>
    %1104 = tpu.matmul %1101, %1102, %cst_463 {dimension_numbers = #tpu.dot_dimension_numbers<[1], [1], [0], [0], [0, 0, 1, 0], [], []>} : vector<8x8xf32>, vector<8x8xf32>, vector<8x8xf32> -> vector<8x8xf32>
    %cst_464 = arith.constant 0.353553385 : f32
    %1105 = vector.broadcast %cst_464 : f32 to vector<8x8xf32>
    %1106 = arith.mulf %1104, %1105 : vector<8x8xf32>
    %cst_465 = arith.constant dense<0xFF800000> : vector<8xf32>
    %1107 = vector.multi_reduction <maximumf>, %1106, %cst_465 [1] : vector<8x8xf32> to vector<8xf32>
    %1108 = vector.shape_cast %1107 : vector<8xf32> to vector<8x1xf32>
    %1109 = vector.broadcast %1108 : vector<8x1xf32> to vector<8x8xf32>
    %1110 = arith.subf %1106, %1109 : vector<8x8xf32>
    %1111 = math.exp %1110 : vector<8x8xf32>
    %cst_466 = arith.constant dense<0.000000e+00> : vector<8xf32>
    %1112 = vector.multi_reduction <add>, %1111, %cst_466 [1] : vector<8x8xf32> to vector<8xf32>
    %1113 = vector.shape_cast %1112 : vector<8xf32> to vector<8x1xf32>
    %1114 = vector.broadcast %1113 : vector<8x1xf32> to vector<8x8xf32>
    %1115 = arith.divf %1111, %1114 : vector<8x8xf32>
    %cst_467 = arith.constant dense<0.000000e+00> : vector<8x8xf32>
    %1116 = tpu.matmul %1115, %1103, %cst_467 {dimension_numbers = #tpu.dot_dimension_numbers<[1], [0], [0], [1], [0, 0, 1, 1], [], []>} : vector<8x8xf32>, vector<8x8xf32>, vector<8x8xf32> -> vector<8x8xf32>
    %1117 = vector.extract_strided_slice %1036 {offsets = [24, 0], sizes = [8, 32], strides = [1, 1]} : vector<32x32xf32> to vector<8x32xf32>
    %cst_468 = arith.constant dense<0.000000e+00> : vector<8x32xf32>
    %1118 = tpu.matmul %1116, %1117, %cst_468 {dimension_numbers = #tpu.dot_dimension_numbers<[1], [0], [0], [1], [0, 0, 1, 1], [], []>} : vector<8x8xf32>, vector<8x32xf32>, vector<8x32xf32> -> vector<8x32xf32>
    %1119 = arith.addf %1100, %1118 : vector<8x32xf32>
    %1120 = vector.broadcast %1038 : vector<1x32xf32> to vector<8x32xf32>
    %1121 = arith.addf %1119, %1120 : vector<8x32xf32>
    %1122 = arith.addf %1026, %1121 : vector<8x32xf32>
    %1123 = vector.extract_strided_slice %1028 {offsets = [0, 0], sizes = [1, 32], strides = [1, 1]} : vector<3x32xf32> to vector<1x32xf32>
    %1124 = vector.extract_strided_slice %1030 {offsets = [0, 0], sizes = [1, 32], strides = [1, 1]} : vector<3x32xf32> to vector<1x32xf32>
    %cst_469 = arith.constant dense<0.000000e+00> : vector<8xf32>
    %1125 = vector.multi_reduction <add>, %1122, %cst_469 [1] : vector<8x32xf32> to vector<8xf32>
    %1126 = vector.shape_cast %1125 : vector<8xf32> to vector<8x1xf32>
    %cst_470 = arith.constant 3.200000e+01 : f32
    %1127 = vector.broadcast %cst_470 : f32 to vector<8x1xf32>
    %1128 = arith.divf %1126, %1127 : vector<8x1xf32>
    %1129 = vector.broadcast %1128 : vector<8x1xf32> to vector<8x32xf32>
    %1130 = arith.subf %1122, %1129 : vector<8x32xf32>
    %1131 = arith.mulf %1130, %1130 : vector<8x32xf32>
    %cst_471 = arith.constant dense<0.000000e+00> : vector<8xf32>
    %1132 = vector.multi_reduction <add>, %1131, %cst_471 [1] : vector<8x32xf32> to vector<8xf32>
    %1133 = vector.shape_cast %1132 : vector<8xf32> to vector<8x1xf32>
    %cst_472 = arith.constant 3.200000e+01 : f32
    %1134 = vector.broadcast %cst_472 : f32 to vector<8x1xf32>
    %1135 = arith.divf %1133, %1134 : vector<8x1xf32>
    %cst_473 = arith.constant 9.99999974E-6 : f32
    %1136 = vector.broadcast %cst_473 : f32 to vector<8x1xf32>
    %1137 = arith.addf %1135, %1136 : vector<8x1xf32>
    %1138 = math.rsqrt %1137 : vector<8x1xf32>
    %1139 = vector.broadcast %1138 : vector<8x1xf32> to vector<8x32xf32>
    %1140 = arith.mulf %1130, %1139 : vector<8x32xf32>
    %1141 = vector.broadcast %1123 : vector<1x32xf32> to vector<8x32xf32>
    %1142 = arith.mulf %1140, %1141 : vector<8x32xf32>
    %1143 = vector.broadcast %1124 : vector<1x32xf32> to vector<8x32xf32>
    %1144 = arith.addf %1142, %1143 : vector<8x32xf32>
    %c2_474 = arith.constant 2 : index
    %c0_475 = arith.constant 0 : index
    %c0_476 = arith.constant 0 : index
    %1145 = vector.load %arg17[%c2_474, %c0_475, %c0_476] : memref<3x32x96xf32, #tpu.memory_space<vmem>>, vector<1x32x96xf32>
    %1146 = vector.shape_cast %1145 : vector<1x32x96xf32> to vector<32x96xf32>
    %c2_477 = arith.constant 2 : index
    %c0_478 = arith.constant 0 : index
    %c0_479 = arith.constant 0 : index
    %1147 = vector.load %arg18[%c2_477, %c0_478, %c0_479] : memref<3x1x96xf32, #tpu.memory_space<vmem>>, vector<1x1x96xf32>
    %1148 = vector.shape_cast %1147 : vector<1x1x96xf32> to vector<1x96xf32>
    %c2_480 = arith.constant 2 : index
    %c0_481 = arith.constant 0 : index
    %c0_482 = arith.constant 0 : index
    %1149 = vector.load %arg19[%c2_480, %c0_481, %c0_482] : memref<3x32x32xf32, #tpu.memory_space<vmem>>, vector<1x32x32xf32>
    %1150 = vector.shape_cast %1149 : vector<1x32x32xf32> to vector<32x32xf32>
    %c2_483 = arith.constant 2 : index
    %c0_484 = arith.constant 0 : index
    %c0_485 = arith.constant 0 : index
    %1151 = vector.load %arg20[%c2_483, %c0_484, %c0_485] : memref<3x1x32xf32, #tpu.memory_space<vmem>>, vector<1x1x32xf32>
    %1152 = vector.shape_cast %1151 : vector<1x1x32xf32> to vector<1x32xf32>
    %1153 = vector.extract_strided_slice %1146 {offsets = [0, 0], sizes = [32, 32], strides = [1, 1]} : vector<32x96xf32> to vector<32x32xf32>
    %cst_486 = arith.constant dense<0.000000e+00> : vector<8x32xf32>
    %1154 = tpu.matmul %1144, %1153, %cst_486 {dimension_numbers = #tpu.dot_dimension_numbers<[1], [0], [0], [1], [0, 0, 1, 1], [], []>} : vector<8x32xf32>, vector<32x32xf32>, vector<8x32xf32> -> vector<8x32xf32>
    %1155 = vector.extract_strided_slice %1148 {offsets = [0, 0], sizes = [1, 32], strides = [1, 1]} : vector<1x96xf32> to vector<1x32xf32>
    %1156 = vector.broadcast %1155 : vector<1x32xf32> to vector<8x32xf32>
    %1157 = arith.addf %1154, %1156 : vector<8x32xf32>
    %1158 = vector.extract_strided_slice %1146 {offsets = [0, 32], sizes = [32, 64], strides = [1, 1]} : vector<32x96xf32> to vector<32x64xf32>
    %cst_487 = arith.constant dense<0.000000e+00> : vector<8x64xf32>
    %1159 = tpu.matmul %471, %1158, %cst_487 {dimension_numbers = #tpu.dot_dimension_numbers<[1], [0], [0], [1], [0, 0, 1, 1], [], []>} : vector<8x32xf32>, vector<32x64xf32>, vector<8x64xf32> -> vector<8x64xf32>
    %1160 = vector.extract_strided_slice %1148 {offsets = [0, 32], sizes = [1, 64], strides = [1, 1]} : vector<1x96xf32> to vector<1x64xf32>
    %1161 = vector.broadcast %1160 : vector<1x64xf32> to vector<8x64xf32>
    %1162 = arith.addf %1159, %1161 : vector<8x64xf32>
    %1163 = vector.extract_strided_slice %1162 {offsets = [0, 0], sizes = [8, 32], strides = [1, 1]} : vector<8x64xf32> to vector<8x32xf32>
    %1164 = vector.extract_strided_slice %1162 {offsets = [0, 32], sizes = [8, 32], strides = [1, 1]} : vector<8x64xf32> to vector<8x32xf32>
    %1165 = vector.extract_strided_slice %1157 {offsets = [0, 0], sizes = [8, 8], strides = [1, 1]} : vector<8x32xf32> to vector<8x8xf32>
    %1166 = vector.extract_strided_slice %1163 {offsets = [0, 0], sizes = [8, 8], strides = [1, 1]} : vector<8x32xf32> to vector<8x8xf32>
    %1167 = vector.extract_strided_slice %1164 {offsets = [0, 0], sizes = [8, 8], strides = [1, 1]} : vector<8x32xf32> to vector<8x8xf32>
    %cst_488 = arith.constant dense<0.000000e+00> : vector<8x8xf32>
    %1168 = tpu.matmul %1165, %1166, %cst_488 {dimension_numbers = #tpu.dot_dimension_numbers<[1], [1], [0], [0], [0, 0, 1, 0], [], []>} : vector<8x8xf32>, vector<8x8xf32>, vector<8x8xf32> -> vector<8x8xf32>
    %cst_489 = arith.constant 0.353553385 : f32
    %1169 = vector.broadcast %cst_489 : f32 to vector<8x8xf32>
    %1170 = arith.mulf %1168, %1169 : vector<8x8xf32>
    %cst_490 = arith.constant dense<0xFF800000> : vector<8xf32>
    %1171 = vector.multi_reduction <maximumf>, %1170, %cst_490 [1] : vector<8x8xf32> to vector<8xf32>
    %1172 = vector.shape_cast %1171 : vector<8xf32> to vector<8x1xf32>
    %1173 = vector.broadcast %1172 : vector<8x1xf32> to vector<8x8xf32>
    %1174 = arith.subf %1170, %1173 : vector<8x8xf32>
    %1175 = math.exp %1174 : vector<8x8xf32>
    %cst_491 = arith.constant dense<0.000000e+00> : vector<8xf32>
    %1176 = vector.multi_reduction <add>, %1175, %cst_491 [1] : vector<8x8xf32> to vector<8xf32>
    %1177 = vector.shape_cast %1176 : vector<8xf32> to vector<8x1xf32>
    %1178 = vector.broadcast %1177 : vector<8x1xf32> to vector<8x8xf32>
    %1179 = arith.divf %1175, %1178 : vector<8x8xf32>
    %cst_492 = arith.constant dense<0.000000e+00> : vector<8x8xf32>
    %1180 = tpu.matmul %1179, %1167, %cst_492 {dimension_numbers = #tpu.dot_dimension_numbers<[1], [0], [0], [1], [0, 0, 1, 1], [], []>} : vector<8x8xf32>, vector<8x8xf32>, vector<8x8xf32> -> vector<8x8xf32>
    %1181 = vector.extract_strided_slice %1150 {offsets = [0, 0], sizes = [8, 32], strides = [1, 1]} : vector<32x32xf32> to vector<8x32xf32>
    %cst_493 = arith.constant dense<0.000000e+00> : vector<8x32xf32>
    %1182 = tpu.matmul %1180, %1181, %cst_493 {dimension_numbers = #tpu.dot_dimension_numbers<[1], [0], [0], [1], [0, 0, 1, 1], [], []>} : vector<8x8xf32>, vector<8x32xf32>, vector<8x32xf32> -> vector<8x32xf32>
    %1183 = vector.extract_strided_slice %1157 {offsets = [0, 8], sizes = [8, 8], strides = [1, 1]} : vector<8x32xf32> to vector<8x8xf32>
    %1184 = vector.extract_strided_slice %1163 {offsets = [0, 8], sizes = [8, 8], strides = [1, 1]} : vector<8x32xf32> to vector<8x8xf32>
    %1185 = vector.extract_strided_slice %1164 {offsets = [0, 8], sizes = [8, 8], strides = [1, 1]} : vector<8x32xf32> to vector<8x8xf32>
    %cst_494 = arith.constant dense<0.000000e+00> : vector<8x8xf32>
    %1186 = tpu.matmul %1183, %1184, %cst_494 {dimension_numbers = #tpu.dot_dimension_numbers<[1], [1], [0], [0], [0, 0, 1, 0], [], []>} : vector<8x8xf32>, vector<8x8xf32>, vector<8x8xf32> -> vector<8x8xf32>
    %cst_495 = arith.constant 0.353553385 : f32
    %1187 = vector.broadcast %cst_495 : f32 to vector<8x8xf32>
    %1188 = arith.mulf %1186, %1187 : vector<8x8xf32>
    %cst_496 = arith.constant dense<0xFF800000> : vector<8xf32>
    %1189 = vector.multi_reduction <maximumf>, %1188, %cst_496 [1] : vector<8x8xf32> to vector<8xf32>
    %1190 = vector.shape_cast %1189 : vector<8xf32> to vector<8x1xf32>
    %1191 = vector.broadcast %1190 : vector<8x1xf32> to vector<8x8xf32>
    %1192 = arith.subf %1188, %1191 : vector<8x8xf32>
    %1193 = math.exp %1192 : vector<8x8xf32>
    %cst_497 = arith.constant dense<0.000000e+00> : vector<8xf32>
    %1194 = vector.multi_reduction <add>, %1193, %cst_497 [1] : vector<8x8xf32> to vector<8xf32>
    %1195 = vector.shape_cast %1194 : vector<8xf32> to vector<8x1xf32>
    %1196 = vector.broadcast %1195 : vector<8x1xf32> to vector<8x8xf32>
    %1197 = arith.divf %1193, %1196 : vector<8x8xf32>
    %cst_498 = arith.constant dense<0.000000e+00> : vector<8x8xf32>
    %1198 = tpu.matmul %1197, %1185, %cst_498 {dimension_numbers = #tpu.dot_dimension_numbers<[1], [0], [0], [1], [0, 0, 1, 1], [], []>} : vector<8x8xf32>, vector<8x8xf32>, vector<8x8xf32> -> vector<8x8xf32>
    %1199 = vector.extract_strided_slice %1150 {offsets = [8, 0], sizes = [8, 32], strides = [1, 1]} : vector<32x32xf32> to vector<8x32xf32>
    %cst_499 = arith.constant dense<0.000000e+00> : vector<8x32xf32>
    %1200 = tpu.matmul %1198, %1199, %cst_499 {dimension_numbers = #tpu.dot_dimension_numbers<[1], [0], [0], [1], [0, 0, 1, 1], [], []>} : vector<8x8xf32>, vector<8x32xf32>, vector<8x32xf32> -> vector<8x32xf32>
    %1201 = arith.addf %1182, %1200 : vector<8x32xf32>
    %1202 = vector.extract_strided_slice %1157 {offsets = [0, 16], sizes = [8, 8], strides = [1, 1]} : vector<8x32xf32> to vector<8x8xf32>
    %1203 = vector.extract_strided_slice %1163 {offsets = [0, 16], sizes = [8, 8], strides = [1, 1]} : vector<8x32xf32> to vector<8x8xf32>
    %1204 = vector.extract_strided_slice %1164 {offsets = [0, 16], sizes = [8, 8], strides = [1, 1]} : vector<8x32xf32> to vector<8x8xf32>
    %cst_500 = arith.constant dense<0.000000e+00> : vector<8x8xf32>
    %1205 = tpu.matmul %1202, %1203, %cst_500 {dimension_numbers = #tpu.dot_dimension_numbers<[1], [1], [0], [0], [0, 0, 1, 0], [], []>} : vector<8x8xf32>, vector<8x8xf32>, vector<8x8xf32> -> vector<8x8xf32>
    %cst_501 = arith.constant 0.353553385 : f32
    %1206 = vector.broadcast %cst_501 : f32 to vector<8x8xf32>
    %1207 = arith.mulf %1205, %1206 : vector<8x8xf32>
    %cst_502 = arith.constant dense<0xFF800000> : vector<8xf32>
    %1208 = vector.multi_reduction <maximumf>, %1207, %cst_502 [1] : vector<8x8xf32> to vector<8xf32>
    %1209 = vector.shape_cast %1208 : vector<8xf32> to vector<8x1xf32>
    %1210 = vector.broadcast %1209 : vector<8x1xf32> to vector<8x8xf32>
    %1211 = arith.subf %1207, %1210 : vector<8x8xf32>
    %1212 = math.exp %1211 : vector<8x8xf32>
    %cst_503 = arith.constant dense<0.000000e+00> : vector<8xf32>
    %1213 = vector.multi_reduction <add>, %1212, %cst_503 [1] : vector<8x8xf32> to vector<8xf32>
    %1214 = vector.shape_cast %1213 : vector<8xf32> to vector<8x1xf32>
    %1215 = vector.broadcast %1214 : vector<8x1xf32> to vector<8x8xf32>
    %1216 = arith.divf %1212, %1215 : vector<8x8xf32>
    %cst_504 = arith.constant dense<0.000000e+00> : vector<8x8xf32>
    %1217 = tpu.matmul %1216, %1204, %cst_504 {dimension_numbers = #tpu.dot_dimension_numbers<[1], [0], [0], [1], [0, 0, 1, 1], [], []>} : vector<8x8xf32>, vector<8x8xf32>, vector<8x8xf32> -> vector<8x8xf32>
    %1218 = vector.extract_strided_slice %1150 {offsets = [16, 0], sizes = [8, 32], strides = [1, 1]} : vector<32x32xf32> to vector<8x32xf32>
    %cst_505 = arith.constant dense<0.000000e+00> : vector<8x32xf32>
    %1219 = tpu.matmul %1217, %1218, %cst_505 {dimension_numbers = #tpu.dot_dimension_numbers<[1], [0], [0], [1], [0, 0, 1, 1], [], []>} : vector<8x8xf32>, vector<8x32xf32>, vector<8x32xf32> -> vector<8x32xf32>
    %1220 = arith.addf %1201, %1219 : vector<8x32xf32>
    %1221 = vector.extract_strided_slice %1157 {offsets = [0, 24], sizes = [8, 8], strides = [1, 1]} : vector<8x32xf32> to vector<8x8xf32>
    %1222 = vector.extract_strided_slice %1163 {offsets = [0, 24], sizes = [8, 8], strides = [1, 1]} : vector<8x32xf32> to vector<8x8xf32>
    %1223 = vector.extract_strided_slice %1164 {offsets = [0, 24], sizes = [8, 8], strides = [1, 1]} : vector<8x32xf32> to vector<8x8xf32>
    %cst_506 = arith.constant dense<0.000000e+00> : vector<8x8xf32>
    %1224 = tpu.matmul %1221, %1222, %cst_506 {dimension_numbers = #tpu.dot_dimension_numbers<[1], [1], [0], [0], [0, 0, 1, 0], [], []>} : vector<8x8xf32>, vector<8x8xf32>, vector<8x8xf32> -> vector<8x8xf32>
    %cst_507 = arith.constant 0.353553385 : f32
    %1225 = vector.broadcast %cst_507 : f32 to vector<8x8xf32>
    %1226 = arith.mulf %1224, %1225 : vector<8x8xf32>
    %cst_508 = arith.constant dense<0xFF800000> : vector<8xf32>
    %1227 = vector.multi_reduction <maximumf>, %1226, %cst_508 [1] : vector<8x8xf32> to vector<8xf32>
    %1228 = vector.shape_cast %1227 : vector<8xf32> to vector<8x1xf32>
    %1229 = vector.broadcast %1228 : vector<8x1xf32> to vector<8x8xf32>
    %1230 = arith.subf %1226, %1229 : vector<8x8xf32>
    %1231 = math.exp %1230 : vector<8x8xf32>
    %cst_509 = arith.constant dense<0.000000e+00> : vector<8xf32>
    %1232 = vector.multi_reduction <add>, %1231, %cst_509 [1] : vector<8x8xf32> to vector<8xf32>
    %1233 = vector.shape_cast %1232 : vector<8xf32> to vector<8x1xf32>
    %1234 = vector.broadcast %1233 : vector<8x1xf32> to vector<8x8xf32>
    %1235 = arith.divf %1231, %1234 : vector<8x8xf32>
    %cst_510 = arith.constant dense<0.000000e+00> : vector<8x8xf32>
    %1236 = tpu.matmul %1235, %1223, %cst_510 {dimension_numbers = #tpu.dot_dimension_numbers<[1], [0], [0], [1], [0, 0, 1, 1], [], []>} : vector<8x8xf32>, vector<8x8xf32>, vector<8x8xf32> -> vector<8x8xf32>
    %1237 = vector.extract_strided_slice %1150 {offsets = [24, 0], sizes = [8, 32], strides = [1, 1]} : vector<32x32xf32> to vector<8x32xf32>
    %cst_511 = arith.constant dense<0.000000e+00> : vector<8x32xf32>
    %1238 = tpu.matmul %1236, %1237, %cst_511 {dimension_numbers = #tpu.dot_dimension_numbers<[1], [0], [0], [1], [0, 0, 1, 1], [], []>} : vector<8x8xf32>, vector<8x32xf32>, vector<8x32xf32> -> vector<8x32xf32>
    %1239 = arith.addf %1220, %1238 : vector<8x32xf32>
    %1240 = vector.broadcast %1152 : vector<1x32xf32> to vector<8x32xf32>
    %1241 = arith.addf %1239, %1240 : vector<8x32xf32>
    %1242 = arith.addf %1144, %1241 : vector<8x32xf32>
    %1243 = vector.extract_strided_slice %1028 {offsets = [1, 0], sizes = [1, 32], strides = [1, 1]} : vector<3x32xf32> to vector<1x32xf32>
    %1244 = vector.extract_strided_slice %1030 {offsets = [1, 0], sizes = [1, 32], strides = [1, 1]} : vector<3x32xf32> to vector<1x32xf32>
    %cst_512 = arith.constant dense<0.000000e+00> : vector<8xf32>
    %1245 = vector.multi_reduction <add>, %1242, %cst_512 [1] : vector<8x32xf32> to vector<8xf32>
    %1246 = vector.shape_cast %1245 : vector<8xf32> to vector<8x1xf32>
    %cst_513 = arith.constant 3.200000e+01 : f32
    %1247 = vector.broadcast %cst_513 : f32 to vector<8x1xf32>
    %1248 = arith.divf %1246, %1247 : vector<8x1xf32>
    %1249 = vector.broadcast %1248 : vector<8x1xf32> to vector<8x32xf32>
    %1250 = arith.subf %1242, %1249 : vector<8x32xf32>
    %1251 = arith.mulf %1250, %1250 : vector<8x32xf32>
    %cst_514 = arith.constant dense<0.000000e+00> : vector<8xf32>
    %1252 = vector.multi_reduction <add>, %1251, %cst_514 [1] : vector<8x32xf32> to vector<8xf32>
    %1253 = vector.shape_cast %1252 : vector<8xf32> to vector<8x1xf32>
    %cst_515 = arith.constant 3.200000e+01 : f32
    %1254 = vector.broadcast %cst_515 : f32 to vector<8x1xf32>
    %1255 = arith.divf %1253, %1254 : vector<8x1xf32>
    %cst_516 = arith.constant 9.99999974E-6 : f32
    %1256 = vector.broadcast %cst_516 : f32 to vector<8x1xf32>
    %1257 = arith.addf %1255, %1256 : vector<8x1xf32>
    %1258 = math.rsqrt %1257 : vector<8x1xf32>
    %1259 = vector.broadcast %1258 : vector<8x1xf32> to vector<8x32xf32>
    %1260 = arith.mulf %1250, %1259 : vector<8x32xf32>
    %1261 = vector.broadcast %1243 : vector<1x32xf32> to vector<8x32xf32>
    %1262 = arith.mulf %1260, %1261 : vector<8x32xf32>
    %1263 = vector.broadcast %1244 : vector<1x32xf32> to vector<8x32xf32>
    %1264 = arith.addf %1262, %1263 : vector<8x32xf32>
    %c2_517 = arith.constant 2 : index
    %c0_518 = arith.constant 0 : index
    %c0_519 = arith.constant 0 : index
    %1265 = vector.load %arg21[%c2_517, %c0_518, %c0_519] : memref<3x32x1024xf32, #tpu.memory_space<vmem>>, vector<1x32x1024xf32>
    %1266 = vector.shape_cast %1265 : vector<1x32x1024xf32> to vector<32x1024xf32>
    %c2_520 = arith.constant 2 : index
    %c0_521 = arith.constant 0 : index
    %c0_522 = arith.constant 0 : index
    %1267 = vector.load %arg22[%c2_520, %c0_521, %c0_522] : memref<3x1x1024xf32, #tpu.memory_space<vmem>>, vector<1x1x1024xf32>
    %1268 = vector.shape_cast %1267 : vector<1x1x1024xf32> to vector<1x1024xf32>
    %c2_523 = arith.constant 2 : index
    %c0_524 = arith.constant 0 : index
    %c0_525 = arith.constant 0 : index
    %1269 = vector.load %arg23[%c2_523, %c0_524, %c0_525] : memref<3x1024x32xf32, #tpu.memory_space<vmem>>, vector<1x1024x32xf32>
    %1270 = vector.shape_cast %1269 : vector<1x1024x32xf32> to vector<1024x32xf32>
    %c2_526 = arith.constant 2 : index
    %c0_527 = arith.constant 0 : index
    %c0_528 = arith.constant 0 : index
    %1271 = vector.load %arg24[%c2_526, %c0_527, %c0_528] : memref<3x1x32xf32, #tpu.memory_space<vmem>>, vector<1x1x32xf32>
    %1272 = vector.shape_cast %1271 : vector<1x1x32xf32> to vector<1x32xf32>
    %cst_529 = arith.constant dense<0.000000e+00> : vector<8x1024xf32>
    %1273 = tpu.matmul %1264, %1266, %cst_529 {dimension_numbers = #tpu.dot_dimension_numbers<[1], [0], [0], [1], [0, 0, 1, 1], [], []>} : vector<8x32xf32>, vector<32x1024xf32>, vector<8x1024xf32> -> vector<8x1024xf32>
    %1274 = vector.broadcast %1268 : vector<1x1024xf32> to vector<8x1024xf32>
    %1275 = arith.addf %1273, %1274 : vector<8x1024xf32>
    %cst_530 = arith.constant 0.000000e+00 : f32
    %1276 = vector.broadcast %cst_530 : f32 to vector<8x1024xf32>
    %1277 = arith.maximumf %1275, %1276 : vector<8x1024xf32>
    %cst_531 = arith.constant dense<0.000000e+00> : vector<8x32xf32>
    %1278 = tpu.matmul %1277, %1270, %cst_531 {dimension_numbers = #tpu.dot_dimension_numbers<[1], [0], [0], [1], [0, 0, 1, 1], [], []>} : vector<8x1024xf32>, vector<1024x32xf32>, vector<8x32xf32> -> vector<8x32xf32>
    %1279 = vector.broadcast %1272 : vector<1x32xf32> to vector<8x32xf32>
    %1280 = arith.addf %1278, %1279 : vector<8x32xf32>
    %1281 = arith.addf %1264, %1280 : vector<8x32xf32>
    %1282 = vector.extract_strided_slice %1028 {offsets = [2, 0], sizes = [1, 32], strides = [1, 1]} : vector<3x32xf32> to vector<1x32xf32>
    %1283 = vector.extract_strided_slice %1030 {offsets = [2, 0], sizes = [1, 32], strides = [1, 1]} : vector<3x32xf32> to vector<1x32xf32>
    %cst_532 = arith.constant dense<0.000000e+00> : vector<8xf32>
    %1284 = vector.multi_reduction <add>, %1281, %cst_532 [1] : vector<8x32xf32> to vector<8xf32>
    %1285 = vector.shape_cast %1284 : vector<8xf32> to vector<8x1xf32>
    %cst_533 = arith.constant 3.200000e+01 : f32
    %1286 = vector.broadcast %cst_533 : f32 to vector<8x1xf32>
    %1287 = arith.divf %1285, %1286 : vector<8x1xf32>
    %1288 = vector.broadcast %1287 : vector<8x1xf32> to vector<8x32xf32>
    %1289 = arith.subf %1281, %1288 : vector<8x32xf32>
    %1290 = arith.mulf %1289, %1289 : vector<8x32xf32>
    %cst_534 = arith.constant dense<0.000000e+00> : vector<8xf32>
    %1291 = vector.multi_reduction <add>, %1290, %cst_534 [1] : vector<8x32xf32> to vector<8xf32>
    %1292 = vector.shape_cast %1291 : vector<8xf32> to vector<8x1xf32>
    %cst_535 = arith.constant 3.200000e+01 : f32
    %1293 = vector.broadcast %cst_535 : f32 to vector<8x1xf32>
    %1294 = arith.divf %1292, %1293 : vector<8x1xf32>
    %cst_536 = arith.constant 9.99999974E-6 : f32
    %1295 = vector.broadcast %cst_536 : f32 to vector<8x1xf32>
    %1296 = arith.addf %1294, %1295 : vector<8x1xf32>
    %1297 = math.rsqrt %1296 : vector<8x1xf32>
    %1298 = vector.broadcast %1297 : vector<8x1xf32> to vector<8x32xf32>
    %1299 = arith.mulf %1289, %1298 : vector<8x32xf32>
    %1300 = vector.broadcast %1282 : vector<1x32xf32> to vector<8x32xf32>
    %1301 = arith.mulf %1299, %1300 : vector<8x32xf32>
    %1302 = vector.broadcast %1283 : vector<1x32xf32> to vector<8x32xf32>
    %1303 = arith.addf %1301, %1302 : vector<8x32xf32>
    %c0_537 = arith.constant 0 : index
    %c0_538 = arith.constant 0 : index
    %1304 = vector.load %arg30[%c0_537, %c0_538] : memref<8x32xf32, #tpu.memory_space<vmem>>, vector<8x32xf32>
    tpu.vector_store %arg30[%c0_537, %c0_538], %1303 {strides = array<i32>} : memref<8x32xf32, #tpu.memory_space<vmem>>, vector<8x32xf32>,
    %c0_539 = arith.constant 0 : index
    %c0_540 = arith.constant 0 : index
    %1305 = vector.load %arg31[%c0_539, %c0_540] : memref<8x32xf32, #tpu.memory_space<vmem>>, vector<8x32xf32>
    tpu.vector_store %arg31[%c0_539, %c0_540], %471 {strides = array<i32>} : memref<8x32xf32, #tpu.memory_space<vmem>>, vector<8x32xf32>,
    %c0_541 = arith.constant 0 : index
    %c0_542 = arith.constant 0 : index
    %1306 = vector.load %arg27[%c0_541, %c0_542] : memref<32x4xf32, #tpu.memory_space<vmem>>, vector<32x4xf32>
    %cst_543 = arith.constant dense<0.000000e+00> : vector<8x4xf32>
    %1307 = tpu.matmul %471, %1306, %cst_543 {dimension_numbers = #tpu.dot_dimension_numbers<[1], [0], [0], [1], [0, 0, 1, 1], [], []>} : vector<8x32xf32>, vector<32x4xf32>, vector<8x4xf32> -> vector<8x4xf32>
    %c0_544 = arith.constant 0 : index
    %c0_545 = arith.constant 0 : index
    %1308 = vector.load %arg28[%c0_544, %c0_545] : memref<1x4xf32, #tpu.memory_space<vmem>>, vector<1x4xf32>
    %1309 = vector.broadcast %1308 : vector<1x4xf32> to vector<8x4xf32>
    %1310 = arith.addf %1307, %1309 : vector<8x4xf32>
    %c0_546 = arith.constant 0 : index
    %c0_547 = arith.constant 0 : index
    %1311 = vector.load %arg32[%c0_546, %c0_547] : memref<8x4xf32, #tpu.memory_space<vmem>>, vector<8x4xf32>
    tpu.vector_store %arg32[%c0_546, %c0_547], %1310 {strides = array<i32>} : memref<8x4xf32, #tpu.memory_space<vmem>>, vector<8x4xf32>,
    %c0_548 = arith.constant 0 : index
    %c0_549 = arith.constant 0 : index
    %1312 = vector.load %arg29[%c0_548, %c0_549] : memref<4x32xf32, #tpu.memory_space<vmem>>, vector<4x32xf32>
    %cst_550 = arith.constant dense<0.000000e+00> : vector<8x4xf32>
    %1313 = tpu.matmul %471, %1312, %cst_550 {dimension_numbers = #tpu.dot_dimension_numbers<[1], [1], [0], [0], [0, 0, 1, 0], [], []>} : vector<8x32xf32>, vector<4x32xf32>, vector<8x4xf32> -> vector<8x4xf32>
    %1314 = arith.mulf %471, %471 : vector<8x32xf32>
    %cst_551 = arith.constant dense<0.000000e+00> : vector<8xf32>
    %1315 = vector.multi_reduction <add>, %1314, %cst_551 [1] : vector<8x32xf32> to vector<8xf32>
    %1316 = vector.shape_cast %1315 : vector<8xf32> to vector<8x1xf32>
    %cst_552 = arith.constant 1.000000e+00 : f32
    %1317 = vector.broadcast %cst_552 : f32 to vector<1x32xf32>
    %1318 = arith.mulf %1312, %1312 : vector<4x32xf32>
    %cst_553 = arith.constant dense<0.000000e+00> : vector<1x4xf32>
    %1319 = tpu.matmul %1317, %1318, %cst_553 {dimension_numbers = #tpu.dot_dimension_numbers<[1], [1], [0], [0], [0, 0, 1, 0], [], []>} : vector<1x32xf32>, vector<4x32xf32>, vector<1x4xf32> -> vector<1x4xf32>
    %1320 = vector.broadcast %1316 : vector<8x1xf32> to vector<8x4xf32>
    %1321 = vector.broadcast %1319 : vector<1x4xf32> to vector<8x4xf32>
    %1322 = arith.addf %1320, %1321 : vector<8x4xf32>
    %cst_554 = arith.constant 2.000000e+00 : f32
    %1323 = vector.broadcast %cst_554 : f32 to vector<8x4xf32>
    %1324 = arith.mulf %1323, %1313 : vector<8x4xf32>
    %1325 = arith.subf %1322, %1324 : vector<8x4xf32>
    %cst_555 = arith.constant 0.000000e+00 : f32
    %1326 = vector.broadcast %cst_555 : f32 to vector<8x4xf32>
    %1327 = arith.maximumf %1325, %1326 : vector<8x4xf32>
    %cst_556 = arith.constant 1.000000e+00 : f32
    %1328 = vector.broadcast %cst_556 : f32 to vector<8x4xf32>
    %1329 = arith.divf %1327, %1328 : vector<8x4xf32>
    %cst_557 = arith.constant 1.000000e+00 : f32
    %1330 = vector.broadcast %cst_557 : f32 to vector<8x4xf32>
    %1331 = arith.addf %1330, %1329 : vector<8x4xf32>
    %cst_558 = arith.constant 1.000000e+00 : f32
    %1332 = vector.broadcast %cst_558 : f32 to vector<8x4xf32>
    %1333 = arith.divf %1332, %1331 : vector<8x4xf32>
    %cst_559 = arith.constant dense<0.000000e+00> : vector<8xf32>
    %1334 = vector.multi_reduction <add>, %1333, %cst_559 [1] : vector<8x4xf32> to vector<8xf32>
    %1335 = vector.shape_cast %1334 : vector<8xf32> to vector<8x1xf32>
    %1336 = vector.broadcast %1335 : vector<8x1xf32> to vector<8x4xf32>
    %1337 = arith.divf %1333, %1336 : vector<8x4xf32>
    %c0_560 = arith.constant 0 : index
    %c0_561 = arith.constant 0 : index
    %1338 = vector.load %arg33[%c0_560, %c0_561] : memref<8x4xf32, #tpu.memory_space<vmem>>, vector<8x4xf32>
    tpu.vector_store %arg33[%c0_560, %c0_561], %1337 {strides = array<i32>} : memref<8x4xf32, #tpu.memory_space<vmem>>, vector<8x4xf32>,
    return
  }
  func.func @transform_0(%arg0: i32) -> (i32, i32) {
    %c0_i32 = arith.constant 0 : i32
    %c0_i32_0 = arith.constant 0 : i32
    %c0_i32_1 = arith.constant 0 : i32
    return %c0_i32, %c0_i32_0 : i32, i32
  }
  func.func @transform_1(%arg0: i32) -> (i32, i32) {
    %c0_i32 = arith.constant 0 : i32
    %c0_i32_0 = arith.constant 0 : i32
    %c0_i32_1 = arith.constant 0 : i32
    return %c0_i32, %c0_i32_0 : i32, i32
  }
  func.func @transform_2(%arg0: i32) -> (i32, i32, i32) {
    %c0_i32 = arith.constant 0 : i32
    %c0_i32_0 = arith.constant 0 : i32
    %c0_i32_1 = arith.constant 0 : i32
    %c0_i32_2 = arith.constant 0 : i32
    return %c0_i32, %c0_i32_0, %c0_i32_1 : i32, i32, i32
  }
  func.func @transform_3(%arg0: i32) -> (i32, i32, i32) {
    %c0_i32 = arith.constant 0 : i32
    %c0_i32_0 = arith.constant 0 : i32
    %c0_i32_1 = arith.constant 0 : i32
    %c0_i32_2 = arith.constant 0 : i32
    return %c0_i32, %c0_i32_0, %c0_i32_1 : i32, i32, i32
  }
  func.func @transform_4(%arg0: i32) -> (i32, i32, i32) {
    %c0_i32 = arith.constant 0 : i32
    %c0_i32_0 = arith.constant 0 : i32
    %c0_i32_1 = arith.constant 0 : i32
    %c0_i32_2 = arith.constant 0 : i32
    return %c0_i32, %c0_i32_0, %c0_i32_1 : i32, i32, i32
  }
  func.func @transform_5(%arg0: i32) -> (i32, i32, i32) {
    %c0_i32 = arith.constant 0 : i32
    %c0_i32_0 = arith.constant 0 : i32
    %c0_i32_1 = arith.constant 0 : i32
    %c0_i32_2 = arith.constant 0 : i32
    return %c0_i32, %c0_i32_0, %c0_i32_1 : i32, i32, i32
  }
  func.func @transform_6(%arg0: i32) -> (i32, i32, i32) {
    %c0_i32 = arith.constant 0 : i32
    %c0_i32_0 = arith.constant 0 : i32
    %c0_i32_1 = arith.constant 0 : i32
    %c0_i32_2 = arith.constant 0 : i32
    return %c0_i32, %c0_i32_0, %c0_i32_1 : i32, i32, i32
  }
  func.func @transform_7(%arg0: i32) -> (i32, i32, i32) {
    %c0_i32 = arith.constant 0 : i32
    %c0_i32_0 = arith.constant 0 : i32
    %c0_i32_1 = arith.constant 0 : i32
    %c0_i32_2 = arith.constant 0 : i32
    return %c0_i32, %c0_i32_0, %c0_i32_1 : i32, i32, i32
  }
  func.func @transform_8(%arg0: i32) -> (i32, i32, i32) {
    %c0_i32 = arith.constant 0 : i32
    %c0_i32_0 = arith.constant 0 : i32
    %c0_i32_1 = arith.constant 0 : i32
    %c0_i32_2 = arith.constant 0 : i32
    return %c0_i32, %c0_i32_0, %c0_i32_1 : i32, i32, i32
  }
  func.func @transform_9(%arg0: i32) -> (i32, i32, i32) {
    %c0_i32 = arith.constant 0 : i32
    %c0_i32_0 = arith.constant 0 : i32
    %c0_i32_1 = arith.constant 0 : i32
    %c0_i32_2 = arith.constant 0 : i32
    return %c0_i32, %c0_i32_0, %c0_i32_1 : i32, i32, i32
  }
  func.func @transform_10(%arg0: i32) -> (i32, i32, i32) {
    %c0_i32 = arith.constant 0 : i32
    %c0_i32_0 = arith.constant 0 : i32
    %c0_i32_1 = arith.constant 0 : i32
    %c0_i32_2 = arith.constant 0 : i32
    return %c0_i32, %c0_i32_0, %c0_i32_1 : i32, i32, i32
  }
  func.func @transform_11(%arg0: i32) -> (i32, i32, i32) {
    %c0_i32 = arith.constant 0 : i32
    %c0_i32_0 = arith.constant 0 : i32
    %c0_i32_1 = arith.constant 0 : i32
    %c0_i32_2 = arith.constant 0 : i32
    return %c0_i32, %c0_i32_0, %c0_i32_1 : i32, i32, i32
  }
  func.func @transform_12(%arg0: i32) -> (i32, i32, i32) {
    %c0_i32 = arith.constant 0 : i32
    %c0_i32_0 = arith.constant 0 : i32
    %c0_i32_1 = arith.constant 0 : i32
    %c0_i32_2 = arith.constant 0 : i32
    return %c0_i32, %c0_i32_0, %c0_i32_1 : i32, i32, i32
  }
  func.func @transform_13(%arg0: i32) -> (i32, i32, i32) {
    %c0_i32 = arith.constant 0 : i32
    %c0_i32_0 = arith.constant 0 : i32
    %c0_i32_1 = arith.constant 0 : i32
    %c0_i32_2 = arith.constant 0 : i32
    return %c0_i32, %c0_i32_0, %c0_i32_1 : i32, i32, i32
  }
  func.func @transform_14(%arg0: i32) -> (i32, i32, i32) {
    %c0_i32 = arith.constant 0 : i32
    %c0_i32_0 = arith.constant 0 : i32
    %c0_i32_1 = arith.constant 0 : i32
    %c0_i32_2 = arith.constant 0 : i32
    return %c0_i32, %c0_i32_0, %c0_i32_1 : i32, i32, i32
  }
  func.func @transform_15(%arg0: i32) -> (i32, i32, i32) {
    %c0_i32 = arith.constant 0 : i32
    %c0_i32_0 = arith.constant 0 : i32
    %c0_i32_1 = arith.constant 0 : i32
    %c0_i32_2 = arith.constant 0 : i32
    return %c0_i32, %c0_i32_0, %c0_i32_1 : i32, i32, i32
  }
  func.func @transform_16(%arg0: i32) -> (i32, i32, i32) {
    %c0_i32 = arith.constant 0 : i32
    %c0_i32_0 = arith.constant 0 : i32
    %c0_i32_1 = arith.constant 0 : i32
    %c0_i32_2 = arith.constant 0 : i32
    return %c0_i32, %c0_i32_0, %c0_i32_1 : i32, i32, i32
  }
  func.func @transform_17(%arg0: i32) -> (i32, i32, i32) {
    %c0_i32 = arith.constant 0 : i32
    %c0_i32_0 = arith.constant 0 : i32
    %c0_i32_1 = arith.constant 0 : i32
    %c0_i32_2 = arith.constant 0 : i32
    return %c0_i32, %c0_i32_0, %c0_i32_1 : i32, i32, i32
  }
  func.func @transform_18(%arg0: i32) -> (i32, i32, i32) {
    %c0_i32 = arith.constant 0 : i32
    %c0_i32_0 = arith.constant 0 : i32
    %c0_i32_1 = arith.constant 0 : i32
    %c0_i32_2 = arith.constant 0 : i32
    return %c0_i32, %c0_i32_0, %c0_i32_1 : i32, i32, i32
  }
  func.func @transform_19(%arg0: i32) -> (i32, i32, i32) {
    %c0_i32 = arith.constant 0 : i32
    %c0_i32_0 = arith.constant 0 : i32
    %c0_i32_1 = arith.constant 0 : i32
    %c0_i32_2 = arith.constant 0 : i32
    return %c0_i32, %c0_i32_0, %c0_i32_1 : i32, i32, i32
  }
  func.func @transform_20(%arg0: i32) -> (i32, i32, i32) {
    %c0_i32 = arith.constant 0 : i32
    %c0_i32_0 = arith.constant 0 : i32
    %c0_i32_1 = arith.constant 0 : i32
    %c0_i32_2 = arith.constant 0 : i32
    return %c0_i32, %c0_i32_0, %c0_i32_1 : i32, i32, i32
  }
  func.func @transform_21(%arg0: i32) -> (i32, i32, i32) {
    %c0_i32 = arith.constant 0 : i32
    %c0_i32_0 = arith.constant 0 : i32
    %c0_i32_1 = arith.constant 0 : i32
    %c0_i32_2 = arith.constant 0 : i32
    return %c0_i32, %c0_i32_0, %c0_i32_1 : i32, i32, i32
  }
  func.func @transform_22(%arg0: i32) -> (i32, i32, i32) {
    %c0_i32 = arith.constant 0 : i32
    %c0_i32_0 = arith.constant 0 : i32
    %c0_i32_1 = arith.constant 0 : i32
    %c0_i32_2 = arith.constant 0 : i32
    return %c0_i32, %c0_i32_0, %c0_i32_1 : i32, i32, i32
  }
  func.func @transform_23(%arg0: i32) -> (i32, i32, i32) {
    %c0_i32 = arith.constant 0 : i32
    %c0_i32_0 = arith.constant 0 : i32
    %c0_i32_1 = arith.constant 0 : i32
    %c0_i32_2 = arith.constant 0 : i32
    return %c0_i32, %c0_i32_0, %c0_i32_1 : i32, i32, i32
  }
  func.func @transform_24(%arg0: i32) -> (i32, i32, i32) {
    %c0_i32 = arith.constant 0 : i32
    %c0_i32_0 = arith.constant 0 : i32
    %c0_i32_1 = arith.constant 0 : i32
    %c0_i32_2 = arith.constant 0 : i32
    return %c0_i32, %c0_i32_0, %c0_i32_1 : i32, i32, i32
  }
  func.func @transform_25(%arg0: i32) -> (i32, i32, i32) {
    %c0_i32 = arith.constant 0 : i32
    %c0_i32_0 = arith.constant 0 : i32
    %c0_i32_1 = arith.constant 0 : i32
    %c0_i32_2 = arith.constant 0 : i32
    return %c0_i32, %c0_i32_0, %c0_i32_1 : i32, i32, i32
  }
  func.func @transform_26(%arg0: i32) -> (i32, i32) {
    %c0_i32 = arith.constant 0 : i32
    %c0_i32_0 = arith.constant 0 : i32
    %c0_i32_1 = arith.constant 0 : i32
    return %c0_i32, %c0_i32_0 : i32, i32
  }
  func.func @transform_27(%arg0: i32) -> (i32, i32) {
    %c0_i32 = arith.constant 0 : i32
    %c0_i32_0 = arith.constant 0 : i32
    %c0_i32_1 = arith.constant 0 : i32
    return %c0_i32, %c0_i32_0 : i32, i32
  }
  func.func @transform_28(%arg0: i32) -> (i32, i32) {
    %c0_i32 = arith.constant 0 : i32
    %c0_i32_0 = arith.constant 0 : i32
    %c0_i32_1 = arith.constant 0 : i32
    return %c0_i32, %c0_i32_0 : i32, i32
  }
  func.func @transform_29(%arg0: i32) -> (i32, i32) {
    %c0_i32 = arith.constant 0 : i32
    %c0_i32_0 = arith.constant 0 : i32
    %c0_i32_1 = arith.constant 0 : i32
    return %c0_i32, %c0_i32_0 : i32, i32
  }
  func.func @transform_30(%arg0: i32) -> (i32, i32) {
    %c0_i32 = arith.constant 0 : i32
    %c0_i32_0 = arith.constant 0 : i32
    %c0_i32_1 = arith.constant 0 : i32
    return %c0_i32, %c0_i32_0 : i32, i32
  }
  func.func @transform_31(%arg0: i32) -> (i32, i32) {
    %c0_i32 = arith.constant 0 : i32
    %c0_i32_0 = arith.constant 0 : i32
    %c0_i32_1 = arith.constant 0 : i32
    return %c0_i32, %c0_i32_0 : i32, i32
  }
  func.func @transform_32(%arg0: i32) -> (i32, i32) {
    %c0_i32 = arith.constant 0 : i32
    %c0_i32_0 = arith.constant 0 : i32
    %c0_i32_1 = arith.constant 0 : i32
    return %c0_i32, %c0_i32_0 : i32, i32
  }
}

</mosaic_0001>

<bundles_post_ra>
// kernel: dect_forward.1
= control target key start
LH: loop header
LB: loop body
LE: loop exit
PB: predicated region body
PF: predicated region fallthrough
CT: control target
= control target key end

     0   :  { %s19424_s6 = smov 1   ;;  %s19425_s10 = smov 2   ;;  %s22011_s0 = inlined_call_operand.smem [shape: u32[33], index: -1, kind: input, shape index: {}] }
   0x1   :  { %s19481_s5 = sld [smem:[%s22011_s0]]   ;;  %s19426_s14 = smov 3  }
   0x2   :  { %s19486_s9 = sld [smem:[%s22011_s0 + %s19424_s6]]   ;;  %s19427_s18 = smov 4  }
   0x3   :  { %s19491_s13 = sld [smem:[%s22011_s0 + %s19425_s10]]   ;;  %s19428_s22 = smov 5  }
   0x4   :  { %s19496_s17 = sld [smem:[%s22011_s0 + %s19426_s14]]   ;;  %s19429_s26 = smov 6  }
   0x5   :  { %s19501_s21 = sld [smem:[%s22011_s0 + %s19427_s18]]   ;;  %s19430_s30 = smov 7  }
   0x6   :  { %s19506_s25 = sld [smem:[%s22011_s0 + %s19428_s22]]   ;;  %s19431_s4 = smov 8  }
   0x7   :  { %s19511_s29 = sld [smem:[%s22011_s0 + %s19429_s26]]   ;;  %s19432_s10 = smov 9  }
   0x8   :  { %s19516_s3 = sld [smem:[%s22011_s0 + %s19430_s30]]   ;;  %s19433_s15 = smov 10  }
   0x9   :  { %s19521_s8 = sld [smem:[%s22011_s0 + %s19431_s4]]   ;;  %s19434_s20 = smov 11  }
   0xa   :  { %s19526_s14 = sld [smem:[%s22011_s0 + %s19432_s10]]   ;;  %s19435_s26 = smov 12  }
   0xb   :  { %s19531_s19 = sld [smem:[%s22011_s0 + %s19433_s15]]   ;;  %s19436_s1 = smov 13  }
   0xc   :  { %s19536_s24 = sld [smem:[%s22011_s0 + %s19434_s20]]   ;;  %s19437_s7 = smov 14  }
   0xd   :  { %s19541_s30 = sld [smem:[%s22011_s0 + %s19435_s26]]   ;;  %s19438_s15 = smov 15  }
   0xe   :  { %s19546_s6 = sld [smem:[%s22011_s0 + %s19436_s1]]   ;;  %s19439_s22 = smov 16  }
   0xf   :  { %s19551_s12 = sld [smem:[%s22011_s0 + %s19437_s7]]   ;;  %s19440_s28 = smov 17  }
  0x10   :  { %s19556_s20 = sld [smem:[%s22011_s0 + %s19438_s15]]   ;;  %s19441_s7 = smov 18  }
  0x11   :  { %s19561_s27 = sld [smem:[%s22011_s0 + %s19439_s22]]   ;;  %s19442_s15 = smov 19  }
  0x12   :  { %s19566_s4 = sld [smem:[%s22011_s0 + %s19440_s28]]   ;;  %s19443_s22 = smov 20  }
  0x13   :  { %s19444_s28 = smov 21  }
  0x15   :  { %22025 = sst [smem:[#allocation8_spill]] %s19551_s12 }
  0x16   :  { %22026 = sst [smem:[#allocation9_spill]] %s19556_s20 }
  0x17   :  { %22027 = sst [smem:[#allocation10_spill]] %s19561_s27 }
  0x18   :  { %22028 = sst [smem:[#allocation11_spill]] %s19566_s4 }
  0x19   :  { %s19571_s12 = sld [smem:[%s22011_s0 + %s19441_s7]]   ;;  %s19445_s7 = smov 22  }
  0x1a   :  { %s19576_s20 = sld [smem:[%s22011_s0 + %s19442_s15]]   ;;  %s19446_s15 = smov 23  }
  0x1b   :  { %s19581_s27 = sld [smem:[%s22011_s0 + %s19443_s22]]   ;;  %s19447_s22 = smov 24  }
  0x1c   :  { %s19586_s4 = sld [smem:[%s22011_s0 + %s19444_s28]]   ;;  %s19448_s28 = smov 25  }
  0x1f   :  { %22029 = sst [smem:[#allocation12_spill]] %s19571_s12 }
  0x20   :  { %22030 = sst [smem:[#allocation13_spill]] %s19576_s20 }
  0x21   :  { %22031 = sst [smem:[#allocation14_spill]] %s19581_s27 }
  0x22   :  { %22032 = sst [smem:[#allocation15_spill]] %s19586_s4 }
  0x23   :  { %s19591_s12 = sld [smem:[%s22011_s0 + %s19445_s7]]   ;;  %s19449_s7 = smov 26  }
  0x24   :  { %s19596_s20 = sld [smem:[%s22011_s0 + %s19446_s15]]   ;;  %s19450_s15 = smov 27  }
  0x25   :  { %s19601_s27 = sld [smem:[%s22011_s0 + %s19447_s22]]   ;;  %s19451_s22 = smov 28  }
  0x26   :  { %s19606_s4 = sld [smem:[%s22011_s0 + %s19448_s28]]   ;;  %s19452_s28 = smov 29  }
  0x29   :  { %22033 = sst [smem:[#allocation16_spill]] %s19591_s12 }
  0x2a   :  { %22034 = sst [smem:[#allocation17_spill]] %s19596_s20 }
  0x2b   :  { %22035 = sst [smem:[#allocation18_spill]] %s19601_s27 }
  0x2c   :  { %22036 = sst [smem:[#allocation19_spill]] %s19606_s4 }
  0x2d   :  { %s19611_s12 = sld [smem:[%s22011_s0 + %s19449_s7]]   ;;  %s19453_s7 = smov 30  }
  0x2e   :  { %s19616_s20 = sld [smem:[%s22011_s0 + %s19450_s15]]   ;;  %s19454_s15 = smov 31  }
  0x2f   :  { %s19621_s27 = sld [smem:[%s22011_s0 + %s19451_s22]]   ;;  %s19455_s22 = smov 32  }
  0x30   :  { %s19626_s4 = sld [smem:[%s22011_s0 + %s19452_s28]]  }
  0x33   :  { %22037 = sst [smem:[#allocation20_spill]] %s19611_s12 }
  0x34   :  { %22038 = sst [smem:[#allocation21_spill]] %s19616_s20 }
  0x35   :  { %22039 = sst [smem:[#allocation22_spill]] %s19621_s27 }
  0x36   :  { %s19631_s12 = sld [smem:[%s22011_s0 + %s19453_s7]]  }
  0x37   :  { %s19636_s20 = sld [smem:[%s22011_s0 + %s19454_s15]]  }
  0x38   :  { %s19641_s27 = sld [smem:[%s22011_s0 + %s19455_s22]]  }
  0x39   :  { %71 = vsyncpa [#allocation3], 0  ;;  %v134_v0 = vld [vmem:[%s19491_s13] sm:$0xff]  ;;  %v135_v1 = vld [vmem:[%s19491_s13 + $0x8] sm:$0xff]  ;;  %v19456_v3 = vmov 0.0|0.0   ;;  %vm19457_vm0 = vmmov 0  }
  0x3a   :  { %v136_v2 = vld [vmem:[%s19491_s13 + $0x10] sm:$0xff]  ;;  %18073 = vmatprep.subr.bf16.mxu0 %v19456_v3  ;;  %v18074_v4 = vpack.c.bf16 %v135_v1, %v134_v0  ;;  %v137_v5 = vld [vmem:[%s19491_s13 + $0x18] sm:$0xff]  ;;  %v19458_v6 = vmov 0.0  }
  0x3b   :  { %17388 = vmatprep.mubr.msk.f32.mxu0 %vm19457_vm0, %v19458_v6  ;;  %17391 = vmatprep.subr.mxu1 %v19458_v6 }
  0x3c   :  { %17393 = vmatprep.mubr.msk.f32.mxu1 %vm19457_vm0, %v19458_v6 }
  0x3d   :  { %72 = vsyncpa [#allocation5], 0  ;;  %18075 = vmatpush3.bf16.msra.mxu0 %v18074_v4  ;;  %v18077_v7 = vpack.c.bf16 %v137_v5, %v136_v2  ;;  %v19655_v8 = vld [vmem:[%s19481_s5] sm:$0xff]  ;;  %vm150_vm1 = vcmask 261120   ;;  %s19459_s0 = smov 120   ;;  %s19460_s5 = smov 96  }
  0x3e   :  { %18076 = vmatprep.subr.bf16.mxu0 %v19456_v3  ;;  %v15329_v9 = vld [vmem:[%s19496_s17] ss:$0 sm:$0xff]  ;;  %s19461_s28 = smov 88   ;;  %vm227_vm2 = vcmask 64512   ;;  %s19462_s1 = smov 56   ;;  %v140_v34 = vld [vmem:[%s19501_s21 + $0x8] sm:$0xff] }
  0x3f   :  { %s19463_s2 = smov 64   ;;  %s19464_s7 = smov 80   ;;  %v139_v43 = vld [vmem:[%s19501_s21] sm:$0xff]  ;;  %vm15087_vm3 = vcmask 31744  }
  0x40   :  { %s19465_s10 = smov 112   ;;  %s19466_s11 = smov 72  }
  0x41   :  { %18078 = vmatpush3.bf16.msra.mxu0 %v18077_v7  ;;  %s19467_s15 = smov 104   ;;  %s19468_s16 = smov 48  }
  0x42   :  { %17401 = vmatprep.subr.mxu0 %v19458_v6  ;;  %s19469_s18 = smov 40   ;;  %s22051_s22 = sld [smem:[#allocation17_spill]] }
  0x43   :  { %s22054_s23 = sld [smem:[#allocation21_spill]] }
  0x44   :  { %17389 = vmatmul.mubr.msk.f32.vlgmr.msra.gmra.mrb[0].mxu0 %vm150_vm1, %v19655_v8 }
  0x45   :  { %17403 = vmatprep.mubr.msk.f32.mxu0 %vm19457_vm0, %v19458_v6 }
 0x117   :  { %v220_v10 = vpop.f32.mrb[0].mxu0 }
 0x118   :  { %v19663_v11 = vadd.f32 %v15329_v9, %v220_v10  ;;  %v17390_v12 = vpop.f32.mrb[1].mxu0  ;;  %v141_v9 = vld [vmem:[%s19501_s21 + $0x10] sm:$0xff] }
 0x11a   :  { %390 = vrot.lane.b32.xlu1 %v19663_v11, %s19459_s0  ;;  %225 = vrot.lane.b32.xlu0 %v19663_v11, %s19460_s5 }
 0x11e   :  { %392 = vrot.lane.b32.xlu0 %v19663_v11, %s19461_s28 }
 0x18c   :  { %v226_v13 = vpop.permute.xlu0 %225  ;;  %v391_v15 = vpop.permute.xlu1 %390 }
 0x18d   :  { %17392 = vmatpush3.xpose.msk.msra.mxu1 %vm227_vm2, %v226_v13 }
 0x18e   :  { %17396 = vmatprep.subr.mxu1 %v19458_v6 }
 0x190   :  { %17394 = vmatmul.mubr.msk.f32.vlgmr.msra.gmra.mrb[0].mxu1 %vm227_vm2, %v19663_v11  ;;  %v393_v14 = vpop.permute.xlu0 %392 }
 0x191   :  { %17402 = vmatpush3.xpose.msk.msra.mxu0 %vm227_vm2, %v393_v14  ;;  %17398 = vmatprep.mubr.msk.f32.mxu1 %vm19457_vm0, %v19458_v6 }
 0x192   :  { %17411 = vmatprep.subr.mxu0 %v19458_v6 }
 0x194   :  { %17404 = vmatmul.mubr.msk.f32.vlgmr.msra.gmra.mrb[2].mxu0 %vm227_vm2, %v391_v15 }
 0x195   :  { %17413 = vmatprep.mubr.msk.f32.mxu0 %vm19457_vm0, %v19458_v6  ;;  %17412 = vmatpush3.msra.mxu0 %v140_v34 }
 0x196   :  { %17421 = vmatprep.subr.mxu0 %v19458_v6 }
 0x263   :  { %v298_v16 = vpop.f32.mrb[0].mxu1 }
 0x264   :  { %v302_v17 = vmul.f32 0.35355338, %v298_v16  ;;  %v17395_v18 = vpop.f32.mrb[1].mxu1 }
 0x266   :  { %v303_v19 = vsel %vm227_vm2, %v302_v17, -inf }
 0x267   :  { %304 = vmax.xlane.f32.xlu1 %v303_v19  ;;  %v464_v20 = vpop.f32.mrb[2].mxu0 }
 0x268   :  { %v468_v21 = vmul.f32 0.35355338, %v464_v20  ;;  %v17405_v22 = vpop.f32.mrb[3].mxu0 }
 0x26a   :  { %v469_v23 = vsel %vm227_vm2, %v468_v21, -inf }
 0x26b   :  { %470 = vmax.xlane.f32.xlu0 %v469_v23  ;;  %v142_v23 = vld [vmem:[%s19501_s21 + $0x18] sm:$0xff] }
 0x2f4   :  { %v305_v24 = vpop.xlane.xlu1 %304 }
 0x2f5   :  { %v306_v25 = vsub.f32 %v302_v17, %v305_v24 }
 0x2f7   :  { %v307_v26 = vmul.f32 1.442695, %v306_v25 }
 0x2f8   :  { %v471_v27 = vpop.xlane.xlu0 %470 }
 0x2f9   :  { %19190 = vpow2.f32 %v307_v26  ;;  %v472_v28 = vsub.f32 %v468_v21, %v471_v27 }
 0x2fb   :  { %v473_v29 = vmul.f32 1.442695, %v472_v28 }
 0x2fd   :  { %19192 = vpow2.f32 %v473_v29 }
 0x303   :  { %v19191_v30 = vpop.eup %19190 }
 0x304   :  { %v309_v31 = vsel %vm227_vm2, %v19191_v30, 0.0 }
 0x305   :  { %310 = vadd.xlane.f32.xlu0 %v309_v31  ;;  %v15347_v31 = vld [vmem:[%s19506_s25] ss:$0 sm:$0xff] }
 0x307   :  { %v19193_v32 = vpop.eup %19192 }
 0x308   :  { %v475_v33 = vsel %vm227_vm2, %v19193_v32, 0.0 }
 0x309   :  { %476 = vadd.xlane.f32.xlu1 %v475_v33 }
 0x31a   :  { %480 = vrot.lane.b32.xlu1 %v19663_v11, %s19462_s1 }
 0x31b   :  { %314 = vrot.lane.b32.xlu0 %v19663_v11, %s19463_s2 }
 0x31e   :  { %704 = vrot.lane.b32.xlu1 %v19663_v11, %s19464_s7 }
 0x31f   :  { %702 = vrot.lane.b32.xlu0 %v19663_v11, %s19465_s10 }
 0x392   :  { %v311_v35 = vpop.xlane.xlu0 %310 }
 0x393   :  { %19194 = vrcp.f32 %v311_v35 }
 0x396   :  { %v477_v36 = vpop.xlane.xlu1 %476  ;;  %v315_v37 = vpop.permute.xlu0 %314 }
 0x397   :  { %19196 = vrcp.f32 %v477_v36  ;;  %17397 = vmatpush3.msra.mxu1 %v315_v37 }
 0x398   :  { %17406 = vmatprep.subr.mxu1 %v19458_v6 }
 0x39a   :  { %v481_v40 = vpop.permute.xlu1 %480  ;;  %v703_v49 = vpop.permute.xlu0 %702 }
 0x39d   :  { %v19195_v38 = vpop.eup %19194 }
 0x39e   :  { %v313_v39 = vmul.f32 %v19195_v38, %v19191_v30  ;;  %v705_v47 = vpop.permute.xlu1 %704 }
 0x3a0   :  { %17399 = vmatmul.mubr.msk.f32.vlgmr.msra.gmra.mrb[2].mxu1 %vm227_vm2, %v313_v39 }
 0x3a1   :  { %v19197_v41 = vpop.eup %19196  ;;  %17407 = vmatpush3.msra.mxu1 %v481_v40  ;;  %17408 = vmatprep.mubr.msk.f32.mxu1 %vm19457_vm0, %v19458_v6 }
 0x3a2   :  { %v479_v42 = vmul.f32 %v19197_v41, %v19193_v32  ;;  %17416 = vmatprep.subr.mxu1 %v19458_v6 }
 0x3a4   :  { %17409 = vmatmul.mubr.msk.f32.vlgmr.msra.gmra.mrb[4].mxu1 %vm227_vm2, %v479_v42 }
 0x3a5   :  { %17418 = vmatprep.mubr.msk.f32.mxu1 %vm19457_vm0, %v19458_v6  ;;  %17417 = vmatpush3.msra.mxu1 %v139_v43  ;;  %v1215_v43 = vld [vmem:[%s19511_s29 + $0x8] sm:$0xff] }
 0x3a6   :  { %17426 = vmatprep.subr.mxu1 %v19458_v6 }
 0x473   :  { %v386_v44 = vpop.f32.mrb[2].mxu1 }
 0x474   :  { %v17400_v45 = vpop.f32.mrb[3].mxu1  ;;  %17419 = vmatmul.mubr.msk.f32.vlgmr.msra.gmra.mrb[6].mxu1 %vm227_vm2, %v386_v44  ;;  %v1223_v44 = vld [vmem:[%s19511_s29 + $0x48] sm:$0xff] }
 0x475   :  { %17428 = vmatprep.mubr.msk.f32.mxu1 %vm19457_vm0, %v19458_v6  ;;  %v1217_v45 = vld [vmem:[%s19511_s29 + $0x18] sm:$0xff] }
 0x477   :  { %v552_v46 = vpop.f32.mrb[4].mxu1 }
 0x478   :  { %v17410_v48 = vpop.f32.mrb[5].mxu1  ;;  %17414 = vmatmul.mubr.msk.f32.vlgmr.msra.gmra.mrb[4].mxu0 %vm227_vm2, %v552_v46  ;;  %v18079_v46 = vpack.c.bf16 %v1223_v44, %v1215_v43  ;;  %v1295_v43 = vld [vmem:[%s19521_s8 + $0x180] sm:$0xff]  ;;  %v1296_v44 = vld [vmem:[%s19521_s8 + $0x188] sm:$0xff] }
 0x479   :  { %17422 = vmatpush3.xpose.msk.msra.mxu0 %vm227_vm2, %v705_v47  ;;  %17423 = vmatprep.mubr.msk.f32.mxu0 %vm19457_vm0, %v19458_v6  ;;  %v1214_v47 = vld [vmem:[%s19511_s29] sm:$0xff] }
 0x47a   :  { %17431 = vmatprep.subr.mxu0 %v19458_v6  ;;  %v1222_v48 = vld [vmem:[%s19511_s29 + $0x40] sm:$0xff] }
 0x47c   :  { %17424 = vmatmul.mubr.msk.f32.vlgmr.msra.gmra.mrb[6].mxu0 %vm227_vm2, %v703_v49 }
 0x47d   :  { %17433 = vmatprep.mubr.msk.f32.mxu0 %vm19457_vm0, %v19458_v6  ;;  %17432 = vmatpush3.msra.mxu0 %v141_v9 }
 0x47e   :  { %17441 = vmatprep.subr.mxu0 %v19458_v6 }
 0x547   :  { %v698_v50 = vpop.f32.mrb[6].mxu1 }
 0x548   :  { %v17420_v51 = vpop.f32.mrb[7].mxu1 }
 0x549   :  { %v1216_v51 = vld [vmem:[%s19511_s29 + $0x10] sm:$0xff] }
 0x54b   :  { %v625_v52 = vpop.f32.mrb[4].mxu0 }
 0x54c   :  { %v699_v53 = vadd.f32 %v698_v50, %v625_v52  ;;  %v17415_v54 = vpop.f32.mrb[5].mxu0  ;;  %v18081_v50 = vpack.c.bf16 %v1222_v48, %v1214_v47  ;;  %v1224_v52 = vld [vmem:[%s19511_s29 + $0x50] sm:$0xff]  ;;  %v1248_v47 = vld [vmem:[%s19521_s8 + $0x8] sm:$0xff] }
 0x54d   :  { %v1231_v54 = vld [vmem:[%s19511_s29 + $0x88] sm:$0xff] }
 0x54f   :  { %v776_v55 = vpop.f32.mrb[6].mxu0 }
 0x550   :  { %v780_v56 = vmul.f32 0.35355338, %v776_v55  ;;  %v17425_v57 = vpop.f32.mrb[7].mxu0  ;;  %v1239_v55 = vld [vmem:[%s19511_s29 + $0xc8] sm:$0xff] }
 0x551   :  { %v18083_v57 = vpack.c.bf16 %v1239_v55, %v1231_v54  ;;  %v1297_v54 = vld [vmem:[%s19521_s8 + $0x190] sm:$0xff]  ;;  %v1298_v55 = vld [vmem:[%s19521_s8 + $0x198] sm:$0xff] }
 0x552   :  { %v781_v58 = vsel %vm227_vm2, %v780_v56, -inf }
 0x553   :  { %782 = vmax.xlane.f32.xlu1 %v781_v58  ;;  %v1241_v58 = vld [vmem:[%s19511_s29 + $0xd8] sm:$0xff] }
 0x564   :  { %944 = vrot.lane.b32.xlu1 %v19663_v11, %s19466_s11 }
 0x568   :  { %942 = vrot.lane.b32.xlu1 %v19663_v11, %s19467_s15 }
 0x5e0   :  { %v783_v59 = vpop.xlane.xlu1 %782 }
 0x5e1   :  { %v784_v60 = vsub.f32 %v780_v56, %v783_v59  ;;  %v1233_v56 = vld [vmem:[%s19511_s29 + $0x98] sm:$0xff]  ;;  %v1230_v59 = vld [vmem:[%s19511_s29 + $0x80] sm:$0xff] }
 0x5e3   :  { %v785_v61 = vmul.f32 1.442695, %v784_v60  ;;  %v1238_v60 = vld [vmem:[%s19511_s29 + $0xc0] sm:$0xff] }
 0x5e4   :  { %v945_v4 = vpop.permute.xlu1 %944 }
 0x5e5   :  { %19198 = vpow2.f32 %v785_v61  ;;  %v18091_v61 = vpack.c.bf16 %v1241_v58, %v1233_v56  ;;  %v1249_v58 = vld [vmem:[%s19521_s8 + $0x10] sm:$0xff] }
 0x5e8   :  { %v943_v7 = vpop.permute.xlu1 %942 }
 0x5ef   :  { %v19199_v62 = vpop.eup %19198 }
 0x5f0   :  { %v787_v63 = vsel %vm227_vm2, %v19199_v62, 0.0 }
 0x5f1   :  { %788 = vadd.xlane.f32.xlu0 %v787_v63  ;;  %v1232_v63 = vld [vmem:[%s19511_s29 + $0x90] sm:$0xff] }
 0x607   :  { %792 = vrot.lane.b32.xlu0 %v19663_v11, %s19468_s16 }
 0x67e   :  { %v789_v0 = vpop.xlane.xlu0 %788 }
 0x67f   :  { %19200 = vrcp.f32 %v789_v0  ;;  %v1240_v0 = vld [vmem:[%s19511_s29 + $0xd0] sm:$0xff] }
 0x682   :  { %v793_v1 = vpop.permute.xlu0 %792 }
 0x683   :  { %17427 = vmatpush3.msra.mxu1 %v793_v1  ;;  %v1219_v1 = vld [vmem:[%s19511_s29 + $0x28] sm:$0xff] }
 0x684   :  { %17436 = vmatprep.subr.mxu1 %v19458_v6 }
 0x689   :  { %v19201_v2 = vpop.eup %19200 }
 0x68a   :  { %v791_v5 = vmul.f32 %v19201_v2, %v19199_v62  ;;  %v18085_v62 = vpack.c.bf16 %v1238_v60, %v1230_v59  ;;  %v18093_v2 = vpack.c.bf16 %v1240_v0, %v1232_v63  ;;  %v1250_v59 = vld [vmem:[%s19521_s8 + $0x18] sm:$0xff]  ;;  %v1267_v0 = vld [vmem:[%s19521_s8 + $0xa0] sm:$0xff] }
 0x68b   :  { %v1282_v63 = vld [vmem:[%s19521_s8 + $0x118] sm:$0xff] }
 0x68c   :  { %17429 = vmatmul.mubr.msk.f32.vlgmr.msra.gmra.mrb[8].mxu1 %vm227_vm2, %v791_v5  ;;  %v1221_v5 = vld [vmem:[%s19511_s29 + $0x38] sm:$0xff] }
 0x68d   :  { %17437 = vmatpush3.xpose.msk.msra.mxu1 %vm227_vm2, %v945_v4  ;;  %17438 = vmatprep.mubr.msk.f32.mxu1 %vm19457_vm0, %v19458_v6  ;;  %v1227_v4 = vld [vmem:[%s19511_s29 + $0x68] sm:$0xff] }
 0x68e   :  { %17446 = vmatprep.subr.mxu1 %v19458_v6  ;;  %v18095_v9 = vpack.c.bf16 %v1227_v4, %v1219_v1  ;;  %v1268_v1 = vld [vmem:[%s19521_s8 + $0xa8] sm:$0xff] }
 0x68f   :  { %v1300_v4 = vld [vmem:[%s19521_s8 + $0x1a8] sm:$0xff] }
 0x690   :  { %17439 = vmatmul.mubr.msk.f32.vlgmr.msra.gmra.mrb[10].mxu1 %vm227_vm2, %v943_v7  ;;  %v1229_v7 = vld [vmem:[%s19511_s29 + $0x78] sm:$0xff] }
 0x691   :  { %17448 = vmatprep.mubr.msk.f32.mxu1 %vm19457_vm0, %v19458_v6  ;;  %17447 = vmatpush3.msra.mxu1 %v142_v23  ;;  %v1226_v23 = vld [vmem:[%s19511_s29 + $0x60] sm:$0xff] }
 0x75f   :  { %v864_v10 = vpop.f32.mrb[8].mxu1 }
 0x760   :  { %v17430_v12 = vpop.f32.mrb[9].mxu1  ;;  %17434 = vmatmul.mubr.msk.f32.vlgmr.msra.gmra.mrb[8].mxu0 %vm227_vm2, %v864_v10  ;;  %v18103_v10 = vpack.c.bf16 %v1229_v7, %v1221_v5  ;;  %v18117_v5 = vpack.c.bf16 %v1250_v59, %v1249_v58  ;;  %v1308_v58 = vld [vmem:[%s19521_s8 + $0x1e8] sm:$0xff] }
 0x761   :  { %17443 = vmatprep.mubr.msk.f32.mxu0 %vm19457_vm0, %v19458_v6 }
 0x763   :  { %v1016_v13 = vpop.f32.mrb[10].mxu1 }
 0x764   :  { %v1020_v14 = vmul.f32 0.35355338, %v1016_v13  ;;  %v17440_v15 = vpop.f32.mrb[11].mxu1 }
 0x766   :  { %v1021_v16 = vsel %vm227_vm2, %v1020_v14, -inf }
 0x767   :  { %1022 = vmax.xlane.f32.xlu0 %v1021_v16 }
 0x77d   :  { %1032 = vrot.lane.b32.xlu0 %v19663_v11, %s19469_s18 }
 0x7f4   :  { %v1023_v17 = vpop.xlane.xlu0 %1022 }
 0x7f5   :  { %v1024_v18 = vsub.f32 %v1020_v14, %v1023_v17  ;;  %v1204_v14 = vlaneseq }
 0x7f7   :  { %v1025_v19 = vmul.f32 1.442695, %v1024_v18  ;;  %v19772_v16 = vshrl.u32 %v1204_v14, 7  ;;  %v19778_v18 = vld [vmem:[%s19531_s19] sm:$0x3] }
 0x7f8   :  { %v1033_v20 = vpop.permute.xlu0 %1032  ;;  %v1283_v14 = vld [vmem:[%s19521_s8 + $0x120] sm:$0xff] }
 0x7f9   :  { %19202 = vpow2.f32 %v1025_v19  ;;  %17442 = vmatpush3.msra.mxu0 %v1033_v20  ;;  %v19775_v17 = vsub.s32 0, %v19772_v16  ;;  %v19781_v19 = vld [vmem:[%s19536_s24] sm:$0x3] }
 0x7fa   :  { %18080 = vmatprep.subr.bf16.mxu0 %v18079_v46 }
 0x7fb   :  { %v1207_v20 = vrot.slane %v19778_v18, %v19775_v17 }
 0x803   :  { %v19203_v21 = vpop.eup %19202 }
 0x804   :  { %v1027_v22 = vsel %vm227_vm2, %v19203_v21, 0.0 }
 0x805   :  { %1028 = vadd.xlane.f32.xlu1 %v1027_v22  ;;  %v1218_v22 = vld [vmem:[%s19511_s29 + $0x20] sm:$0xff] }
 0x833   :  { %v937_v24 = vpop.f32.mrb[8].mxu0 }
 0x834   :  { %v941_v25 = vadd.f32 %v937_v24, %v699_v53  ;;  %v17435_v26 = vpop.f32.mrb[9].mxu0  ;;  %v18089_v53 = vpack.c.bf16 %v1224_v52, %v1216_v51  ;;  %v1280_v51 = vld [vmem:[%s19521_s8 + $0x108] sm:$0xff]  ;;  %v1265_v52 = vld [vmem:[%s19521_s8 + $0x90] sm:$0xff] }
 0x835   :  { %v1220_v26 = vld [vmem:[%s19511_s29 + $0x30] sm:$0xff] }
 0x892   :  { %v1029_v27 = vpop.xlane.xlu1 %1028 }
 0x893   :  { %19204 = vrcp.f32 %v1029_v27  ;;  %v1228_v27 = vld [vmem:[%s19511_s29 + $0x70] sm:$0xff] }
 0x89d   :  { %v19205_v28 = vpop.eup %19204 }
 0x89e   :  { %v1031_v11 = vmul.f32 %v19205_v28, %v19203_v21  ;;  %v1235_v28 = vld [vmem:[%s19511_s29 + $0xa8] sm:$0xff] }
 0x8a0   :  { %17444 = vmatmul.mubr.msk.f32.vlgmr.msra.gmra.mrb[10].mxu0 %vm227_vm2, %v1031_v11  ;;  %v1243_v11 = vld [vmem:[%s19511_s29 + $0xe8] sm:$0xff] }
 0x8a1   :  { %1484 = vmatprep.mubr.f32.mxu0 %v19458_v6  ;;  %18082 = vmatpush1.bf16.msra.mxu0 %v18081_v50  ;;  %v1279_v50 = vld [vmem:[%s19521_s8 + $0x100] sm:$0xff] }
 0x8a2   :  { %18084 = vmatprep.subr.bf16.mxu0 %v18083_v57  ;;  %v18145_v57 = vpack.c.bf16 %v1280_v51, %v1279_v50  ;;  %v1258_v50 = vld [vmem:[%s19521_s8 + $0x58] sm:$0xff] }
 0x8a5   :  { %18086 = vmatpush1.bf16.msra.mxu0 %v18085_v62  ;;  %v1281_v62 = vld [vmem:[%s19521_s8 + $0x110] sm:$0xff] }
 0x8a6   :  { %18096 = vmatprep.subr.bf16.mxu0 %v18095_v9  ;;  %v18149_v7 = vpack.c.bf16 %v1282_v63, %v1281_v62  ;;  %v1251_v9 = vld [vmem:[%s19521_s8 + $0x20] sm:$0xff] }
 0x973   :  { %v1104_v29 = vpop.f32.mrb[10].mxu0 }
 0x974   :  { %v17445_v30 = vpop.f32.mrb[11].mxu0  ;;  %17449 = vmatmul.mubr.msk.f32.vlgmr.msra.gmra.mrb[12].mxu1 %vm227_vm2, %v1104_v29  ;;  %v1237_v29 = vld [vmem:[%s19511_s29 + $0xb8] sm:$0xff] }
 0x975   :  { %1555 = vmatprep.mubr.f32.mxu1 %v19458_v6  ;;  %v1245_v30 = vld [vmem:[%s19511_s29 + $0xf8] sm:$0xff] }
 0xa47   :  { %v1177_v32 = vpop.f32.mrb[12].mxu1 }
 0xa48   :  { %v1181_v33 = vadd.f32 %v1177_v32, %v941_v25  ;;  %v17450_v34 = vpop.f32.mrb[13].mxu1  ;;  %v1212_v25 = vrot.slane %v19781_v19, %v19775_v17  ;;  %v18097_v32 = vpack.c.bf16 %v1226_v23, %v1218_v22  ;;  %v1301_v22 = vld [vmem:[%s19521_s8 + $0x1b0] sm:$0xff]  ;;  %v1302_v23 = vld [vmem:[%s19521_s8 + $0x1b8] sm:$0xff] }
 0xa49   :  { %v1234_v34 = vld [vmem:[%s19511_s29 + $0xa0] sm:$0xff] }
 0xa4a   :  { %v1188_v35 = vadd.f32 %v15347_v31, %v1181_v33  ;;  %v18105_v33 = vpack.c.bf16 %v1228_v27, %v1220_v26  ;;  %v1253_v26 = vld [vmem:[%s19521_s8 + $0x30] sm:$0xff]  ;;  %v1254_v27 = vld [vmem:[%s19521_s8 + $0x38] sm:$0xff] }
 0xa4c   :  { %v1189_v36 = vadd.f32 %v1188_v35, %v19655_v8  ;;  %v1225_v8 = vld [vmem:[%s19511_s29 + $0x58] sm:$0xff]  ;;  %v1242_v35 = vld [vmem:[%s19511_s29 + $0xe0] sm:$0xff] }
 0xa4d   :  { %v18087_v49 = vpack.c.bf16 %v1225_v8, %v1217_v45  ;;  %v18101_v45 = vpack.c.bf16 %v1242_v35, %v1234_v34  ;;  %v1247_v8 = vld [vmem:[%s19521_s8] sm:$0xff]  ;;  %v1304_v34 = vld [vmem:[%s19521_s8 + $0x1c8] sm:$0xff]  ;;  %v18125_v35 = vpack.c.bf16 %v1254_v27, %v1253_v26 }
 0xa4e   :  { %v1190_v37 = vsel %vm150_vm1, %v1189_v36, 0.0  ;;  %v18113_v56 = vpack.c.bf16 %v1248_v47, %v1247_v8  ;;  %v1306_v8 = vld [vmem:[%s19521_s8 + $0x1d8] sm:$0xff]  ;;  %v1328_v26 = vld [vmem:[%s19521_s8 + $0x288] sm:$0xff]  ;;  %v1359_v27 = vld [vmem:[%s19521_s8 + $0x380] sm:$0xff] }
 0xa4f   :  { %1191 = vadd.xlane.f32.xlu1 %v1190_v37  ;;  %18088 = vmatprep.subr.bf16.mxu1 %v18087_v49  ;;  %v18099_v37 = vpack.c.bf16 %v1243_v11, %v1235_v28  ;;  %v18143_v49 = vpack.c.bf16 %v1296_v44, %v1295_v43  ;;  %v18155_v11 = vpack.c.bf16 %v1302_v23, %v1301_v22  ;;  %v1288_v43 = vld [vmem:[%s19521_s8 + $0x148] sm:$0xff]  ;;  %v1273_v44 = vld [vmem:[%s19521_s8 + $0xd0] sm:$0xff]  ;;  %v1294_v23 = vld [vmem:[%s19521_s8 + $0x178] sm:$0xff] }
 0xa50   :  { %18090 = vmatpush1.bf16.msra.mxu1 %v18089_v53  ;;  %v1266_v53 = vld [vmem:[%s19521_s8 + $0x98] sm:$0xff]  ;;  %v1293_v22 = vld [vmem:[%s19521_s8 + $0x170] sm:$0xff] }
 0xa51   :  { %18092 = vmatprep.subr.bf16.mxu1 %v18091_v61  ;;  %v18115_v60 = vpack.c.bf16 %v1266_v53, %v1265_v52  ;;  %v18147_v61 = vpack.c.bf16 %v1298_v55, %v1297_v54  ;;  %v1289_v53 = vld [vmem:[%s19521_s8 + $0x150] sm:$0xff]  ;;  %v1290_v54 = vld [vmem:[%s19521_s8 + $0x158] sm:$0xff]  ;;  %v1275_v55 = vld [vmem:[%s19521_s8 + $0xe0] sm:$0xff] }
 0xa54   :  { %18094 = vmatpush1.bf16.msra.mxu1 %v18093_v2  ;;  %v1299_v2 = vld [vmem:[%s19521_s8 + $0x1a0] sm:$0xff] }
 0xa55   :  { %18104 = vmatprep.subr.bf16.mxu1 %v18103_v10  ;;  %v1252_v10 = vld [vmem:[%s19521_s8 + $0x28] sm:$0xff] }
 0xadc   :  { %v1192_v38 = vpop.xlane.xlu1 %1191 }
 0xadd   :  { %v1194_v39 = vmul.f32 0.03125, %v1192_v38  ;;  %v18107_v38 = vpack.c.bf16 %v1245_v30, %v1237_v29  ;;  %v1285_v29 = vld [vmem:[%s19521_s8 + $0x130] sm:$0xff]  ;;  %v1286_v30 = vld [vmem:[%s19521_s8 + $0x138] sm:$0xff] }
 0xadf   :  { %v1195_v40 = vsub.f32 %v1189_v36, %v1194_v39  ;;  %v1236_v39 = vld [vmem:[%s19511_s29 + $0xb0] sm:$0xff] }
 0xae1   :  { %v1196_v41 = vmul.f32 %v1195_v40, %v1195_v40 }
 0xae3   :  { %v1197_v42 = vsel %vm150_vm1, %v1196_v41, 0.0  ;;  %v1263_v41 = vld [vmem:[%s19521_s8 + $0x80] sm:$0xff] }
 0xae4   :  { %1198 = vadd.xlane.f32.xlu1 %v1197_v42  ;;  %v1264_v42 = vld [vmem:[%s19521_s8 + $0x88] sm:$0xff] }
 0xae5   :  { %v18111_v48 = vpack.c.bf16 %v1264_v42, %v1263_v41  ;;  %v1287_v42 = vld [vmem:[%s19521_s8 + $0x140] sm:$0xff] }
 0xb71   :  { %v1199_v12 = vpop.xlane.xlu1 %1198 }
 0xb72   :  { %v1200_v13 = vmul.f32 0.03125, %v1199_v12  ;;  %v18119_v12 = vpack.c.bf16 %v1268_v1, %v1267_v0  ;;  %v1260_v0 = vld [vmem:[%s19521_s8 + $0x68] sm:$0xff]  ;;  %v1291_v1 = vld [vmem:[%s19521_s8 + $0x160] sm:$0xff] }
 0xb74   :  { %v1201_v15 = vadd.f32 1e-05, %v1200_v13  ;;  %v18151_v13 = vpack.c.bf16 %v1300_v4, %v1299_v2  ;;  %v1292_v2 = vld [vmem:[%s19521_s8 + $0x168] sm:$0xff] }
 0xb76   :  { %19206 = vrsqrt.f32 %v1201_v15  ;;  %v1284_v15 = vld [vmem:[%s19521_s8 + $0x128] sm:$0xff] }
 0xb80   :  { %v19207_v21 = vpop.eup %19206 }
 0xb81   :  { %v1203_v24 = vmul.f32 %v19207_v21, %v1195_v40  ;;  %v1244_v40 = vld [vmem:[%s19511_s29 + $0xf0] sm:$0xff]  ;;  %v1270_v21 = vld [vmem:[%s19521_s8 + $0xb8] sm:$0xff] }
 0xb82   :  { %v18109_v46 = vpack.c.bf16 %v1244_v40, %v1236_v39  ;;  %v1256_v39 = vld [vmem:[%s19521_s8 + $0x48] sm:$0xff] }
 0xb83   :  { %v1208_v31 = vmul.f32 %v1207_v20, %v1203_v24  ;;  %v1269_v20 = vld [vmem:[%s19521_s8 + $0xb0] sm:$0xff]  ;;  %v18121_v24 = vpack.c.bf16 %v1252_v10, %v1251_v9  ;;  %v1278_v9 = vld [vmem:[%s19521_s8 + $0xf8] sm:$0xff] }
 0xb84   :  { %v18123_v28 = vpack.c.bf16 %v1270_v21, %v1269_v20  ;;  %v1309_v10 = vld [vmem:[%s19521_s8 + $0x1f0] sm:$0xff] }
 0xb85   :  { %v19797_v36 = vadd.f32 %v1212_v25, %v1208_v31  ;;  %v18153_v25 = vpack.c.bf16 %v1284_v15, %v1283_v14  ;;  %v1271_v31 = vld [vmem:[%s19521_s8 + $0xc0] sm:$0xff]  ;;  %v1261_v14 = vld [vmem:[%s19521_s8 + $0x70] sm:$0xff]  ;;  %v1262_v15 = vld [vmem:[%s19521_s8 + $0x78] sm:$0xff] }
 0xb86   :  { %v18141_v21 = vpack.c.bf16 %v1262_v15, %v1261_v14 }
 0xb87   :  { %15348 = vmatmul.mubr.msk.f32.vlgmr.msra.gmra.mrb[12].mxu0 %vm150_vm1, %v19797_v36  ;;  %15349 = vmatmul.mubr.msk.f32.vlgmr.msra.gmra.mrb[14].mxu1 %vm150_vm1, %v19797_v36 }
 0xb88   :  { %18098 = vmatpush1.bf16.msra.mxu0 %v18097_v32  ;;  %18106 = vmatpush1.bf16.msra.mxu1 %v18105_v33  ;;  %v1272_v32 = vld [vmem:[%s19521_s8 + $0xc8] sm:$0xff]  ;;  %v1303_v33 = vld [vmem:[%s19521_s8 + $0x1c0] sm:$0xff] }
 0xb89   :  { %18100 = vmatprep.subr.bf16.mxu0 %v18099_v37  ;;  %18108 = vmatprep.subr.bf16.mxu1 %v18107_v38  ;;  %v18157_v37 = vpack.c.bf16 %v1286_v30, %v1285_v29  ;;  %v1255_v38 = vld [vmem:[%s19521_s8 + $0x40] sm:$0xff]  ;;  %v18127_v40 = vpack.c.bf16 %v1272_v32, %v1271_v31  ;;  %v18159_v41 = vpack.c.bf16 %v1304_v34, %v1303_v33  ;;  %v19880_v30 = vsub.s32 2, %v19772_v16 }
 0xb8a   :  { %1626 = vmatprep.mubr.f32.mxu0 %v19458_v6  ;;  %1697 = vmatprep.mubr.f32.mxu1 %v19458_v6  ;;  %v18129_v47 = vpack.c.bf16 %v1256_v39, %v1255_v38  ;;  %v19883_v31 = vld [vmem:[%s19516_s3] sm:$0xff]  ;;  %v19886_v32 = vsub.s32 1, %v19772_v16  ;;  %v19889_v33 = vsub.s32 3, %v19772_v16 }
 0xb8b   :  { %v1380_v34 = vrot.slane %v19883_v31, %v19775_v17 }
 0xb8c   :  { %18102 = vmatpush1.bf16.msra.mxu0 %v18101_v45  ;;  %18110 = vmatpush1.bf16.msra.mxu1 %v18109_v46  ;;  %v1274_v45 = vld [vmem:[%s19521_s8 + $0xd8] sm:$0xff]  ;;  %v1305_v46 = vld [vmem:[%s19521_s8 + $0x1d0] sm:$0xff]  ;;  %v1392_v38 = vrot.slane %v19883_v31, %v19889_v33 }
 0xb8d   :  { %18112 = vmatprep.subr.bf16.mxu0 %v18111_v48  ;;  %18144 = vmatprep.subr.bf16.mxu1 %v18143_v49  ;;  %v18161_v48 = vpack.c.bf16 %v1288_v43, %v1287_v42  ;;  %v1257_v49 = vld [vmem:[%s19521_s8 + $0x50] sm:$0xff]  ;;  %v18131_v51 = vpack.c.bf16 %v1274_v45, %v1273_v44  ;;  %v18163_v52 = vpack.c.bf16 %v1306_v8, %v1305_v46  ;;  %v1312_v42 = vld [vmem:[%s19521_s8 + $0x208] sm:$0xff]  ;;  %v1343_v8 = vld [vmem:[%s19521_s8 + $0x300] sm:$0xff] }
 0xb8e   :  { %v18133_v59 = vpack.c.bf16 %v1258_v50, %v1257_v49 }
 0xb8f   :  { %15350 = vmatmul.mubr.msk.f32.vlgmr.msra.gmra.mrb[14].mxu0 %vm150_vm1, %v19797_v36  ;;  %15351 = vmatmul.mubr.msk.f32.vlgmr.msra.gmra.mrb[16].mxu1 %vm150_vm1, %v19797_v36 }
 0xb90   :  { %18114 = vmatpush3.bf16.msra.mxu0 %v18113_v56  ;;  %18146 = vmatpush3.bf16.msra.mxu1 %v18145_v57  ;;  %v1276_v56 = vld [vmem:[%s19521_s8 + $0xe8] sm:$0xff]  ;;  %v1307_v57 = vld [vmem:[%s19521_s8 + $0x1e0] sm:$0xff] }
 0xb91   :  { %18116 = vmatprep.subr.bf16.mxu0 %v18115_v60  ;;  %18148 = vmatprep.subr.bf16.mxu1 %v18147_v61  ;;  %v18165_v60 = vpack.c.bf16 %v1290_v54, %v1289_v53  ;;  %v1259_v61 = vld [vmem:[%s19521_s8 + $0x60] sm:$0xff]  ;;  %v18135_v62 = vpack.c.bf16 %v1276_v56, %v1275_v55  ;;  %v18167_v63 = vpack.c.bf16 %v1308_v58, %v1307_v57  ;;  %v1330_v53 = vld [vmem:[%s19521_s8 + $0x298] sm:$0xff]  ;;  %v1361_v54 = vld [vmem:[%s19521_s8 + $0x390] sm:$0xff] }
 0xb92   :  { %v18137_v4 = vpack.c.bf16 %v1260_v0, %v1259_v61  ;;  %v1362_v55 = vld [vmem:[%s19521_s8 + $0x398] sm:$0xff] }
 0xb93   :  { %v1314_v61 = vld [vmem:[%s19521_s8 + $0x218] sm:$0xff] }
 0xb94   :  { %18118 = vmatpush3.bf16.msra.mxu0 %v18117_v5  ;;  %18150 = vmatpush3.bf16.msra.mxu1 %v18149_v7  ;;  %v18169_v5 = vpack.c.bf16 %v1292_v2, %v1291_v1  ;;  %v1277_v7 = vld [vmem:[%s19521_s8 + $0xf0] sm:$0xff]  ;;  %v18211_v1 = vpack.c.bf16 %v1362_v55, %v1361_v54  ;;  %v1368_v54 = vld [vmem:[%s19521_s8 + $0x3c8] sm:$0xff] }
 0xb95   :  { %18120 = vmatprep.subr.bf16.mxu0 %v18119_v12  ;;  %18152 = vmatprep.subr.bf16.mxu1 %v18151_v13  ;;  %v18139_v12 = vpack.c.bf16 %v1278_v9, %v1277_v7  ;;  %v1310_v13 = vld [vmem:[%s19521_s8 + $0x1f8] sm:$0xff]  ;;  %v1345_v2 = vld [vmem:[%s19521_s8 + $0x310] sm:$0xff] }
 0xb96   :  { %v18171_v20 = vpack.c.bf16 %v1310_v13, %v1309_v10  ;;  %v1332_v10 = vld [vmem:[%s19521_s8 + $0x2a8] sm:$0xff] }
 0xb97   :  { %v1364_v13 = vld [vmem:[%s19521_s8 + $0x3a8] sm:$0xff] }
 0xb98   :  { %18122 = vmatpush3.bf16.msra.mxu0 %v18121_v24  ;;  %18154 = vmatpush3.bf16.msra.mxu1 %v18153_v25  ;;  %v18173_v24 = vpack.c.bf16 %v1294_v23, %v1293_v22  ;;  %v1327_v25 = vld [vmem:[%s19521_s8 + $0x280] sm:$0xff]  ;;  %v1316_v23 = vld [vmem:[%s19521_s8 + $0x228] sm:$0xff] }
 0xb99   :  { %18124 = vmatprep.subr.bf16.mxu0 %v18123_v28  ;;  %18156 = vmatprep.subr.bf16.mxu1 %v18155_v11  ;;  %v18175_v28 = vpack.c.bf16 %v1328_v26, %v1327_v25  ;;  %v1360_v11 = vld [vmem:[%s19521_s8 + $0x388] sm:$0xff]  ;;  %v1315_v22 = vld [vmem:[%s19521_s8 + $0x220] sm:$0xff] }
 0xb9a   :  { %v18207_v29 = vpack.c.bf16 %v1360_v11, %v1359_v27  ;;  %v1348_v11 = vld [vmem:[%s19521_s8 + $0x328] sm:$0xff] }
 0xb9c   :  { %18126 = vmatpush3.bf16.msra.mxu0 %v18125_v35  ;;  %18158 = vmatpush3.bf16.msra.mxu1 %v18157_v37  ;;  %v1388_v35 = vrot.slane %v19883_v31, %v19880_v30  ;;  %v1384_v37 = vrot.slane %v19883_v31, %v19886_v32 }
 0xb9d   :  { %18128 = vmatprep.subr.bf16.mxu0 %v18127_v40  ;;  %18160 = vmatprep.subr.bf16.mxu1 %v18159_v41  ;;  %v1311_v41 = vld [vmem:[%s19521_s8 + $0x200] sm:$0xff] }
 0xb9e   :  { %v18177_v58 = vpack.c.bf16 %v1312_v42, %v1311_v41  ;;  %v18185_v42 = vpack.c.bf16 %v1316_v23, %v1315_v22  ;;  %v1340_v22 = vld [vmem:[%s19521_s8 + $0x2e8] sm:$0xff]  ;;  %v1371_v23 = vld [vmem:[%s19521_s8 + $0x3e0] sm:$0xff] }
 0xba0   :  { %18130 = vmatpush3.bf16.msra.mxu0 %v18129_v47  ;;  %18162 = vmatpush3.bf16.msra.mxu1 %v18161_v48  ;;  %v1344_v47 = vld [vmem:[%s19521_s8 + $0x308] sm:$0xff]  ;;  %v1329_v48 = vld [vmem:[%s19521_s8 + $0x290] sm:$0xff] }
 0xba1   :  { %18132 = vmatprep.subr.bf16.mxu0 %v18131_v51  ;;  %18164 = vmatprep.subr.bf16.mxu1 %v18163_v52  ;;  %v19905_v51 = vsub.s32 5, %v19772_v16  ;;  %v19908_v52 = vsub.s32 7, %v19772_v16  ;;  %v18179_v0 = vpack.c.bf16 %v1330_v53, %v1329_v48  ;;  %v1350_v48 = vld [vmem:[%s19521_s8 + $0x338] sm:$0xff]  ;;  %v1367_v53 = vld [vmem:[%s19521_s8 + $0x3c0] sm:$0xff] }
 0xba3   :  { %v1400_v7 = vrot.slane %v19883_v31, %v19905_v51  ;;  %v1408_v9 = vrot.slane %v19883_v31, %v19908_v52 }
 0xba4   :  { %18134 = vmatpush3.bf16.msra.mxu0 %v18133_v59  ;;  %18166 = vmatpush3.bf16.msra.mxu1 %v18165_v60  ;;  %v18209_v59 = vpack.c.bf16 %v1344_v47, %v1343_v8  ;;  %v1313_v60 = vld [vmem:[%s19521_s8 + $0x210] sm:$0xff] }
 0xba5   :  { %18136 = vmatprep.subr.bf16.mxu0 %v18135_v62  ;;  %18168 = vmatprep.subr.bf16.mxu1 %v18167_v63  ;;  %v1349_v47 = vld [vmem:[%s19521_s8 + $0x330] sm:$0xff] }
 0xba8   :  { %18138 = vmatpush3.bf16.msra.mxu0 %v18137_v4  ;;  %18170 = vmatpush3.bf16.msra.mxu1 %v18169_v5  ;;  %v1346_v4 = vld [vmem:[%s19521_s8 + $0x318] sm:$0xff]  ;;  %v1331_v5 = vld [vmem:[%s19521_s8 + $0x2a0] sm:$0xff] }
 0xba9   :  { %18140 = vmatprep.subr.bf16.mxu0 %v18139_v12  ;;  %18172 = vmatprep.subr.bf16.mxu1 %v18171_v20  ;;  %v1363_v12 = vld [vmem:[%s19521_s8 + $0x3a0] sm:$0xff]  ;;  %v18181_v20 = vpack.c.bf16 %v1314_v61, %v1313_v60  ;;  %v18183_v26 = vpack.c.bf16 %v1332_v10, %v1331_v5  ;;  %v18223_v60 = vpack.c.bf16 %v1368_v54, %v1367_v53 }
 0xbaa   :  { %v18215_v27 = vpack.c.bf16 %v1364_v13, %v1363_v12  ;;  %v1351_v61 = vld [vmem:[%s19521_s8 + $0x340] sm:$0xff]  ;;  %v1353_v13 = vld [vmem:[%s19521_s8 + $0x350] sm:$0xff] }
 0xbac   :  { %18142 = vmatpush3.bf16.msra.mxu0 %v18141_v21  ;;  %18174 = vmatpush3.bf16.msra.mxu1 %v18173_v24  ;;  %v18213_v21 = vpack.c.bf16 %v1346_v4, %v1345_v2  ;;  %v1370_v2 = vld [vmem:[%s19521_s8 + $0x3d8] sm:$0xff] }
 0xbad   :  { %18176 = vmatprep.subr.bf16.mxu0 %v18175_v28  ;;  %18208 = vmatprep.subr.bf16.mxu1 %v18207_v29  ;;  %v1347_v28 = vld [vmem:[%s19521_s8 + $0x320] sm:$0xff]  ;;  %v1333_v29 = vld [vmem:[%s19521_s8 + $0x2b0] sm:$0xff] }
 0xc5a   :  { %v1486_v39 = vpop.f32.mrb[12].mxu0  ;;  %v1557_v40 = vpop.f32.mrb[14].mxu1 }
 0xc5b   :  { %v1487_v43 = vadd.f32 %v1486_v39, %v1380_v34  ;;  %v1558_v44 = vadd.f32 %v1557_v40, %v1388_v35  ;;  %v1488_v45 = vpop.f32.mrb[13].mxu0  ;;  %v1559_v46 = vpop.f32.mrb[15].mxu1  ;;  %v1366_v39 = vld [vmem:[%s19521_s8 + $0x3b8] sm:$0xff] }
 0xc5c   :  { %v1489_v49 = vadd.f32 %v1488_v45, %v1384_v37  ;;  %v1560_v50 = vadd.f32 %v1559_v46, %v1392_v38  ;;  %v1334_v37 = vld [vmem:[%s19521_s8 + $0x2b8] sm:$0xff]  ;;  %v1365_v38 = vld [vmem:[%s19521_s8 + $0x3b0] sm:$0xff] }
 0xc5d   :  { %v1704_v62 = vmax.f32 %v1487_v43, 0.0  ;;  %v1706_v63 = vmax.f32 %v1558_v44, 0.0  ;;  %v18217_v43 = vpack.c.bf16 %v1348_v11, %v1347_v28  ;;  %v1317_v44 = vld [vmem:[%s19521_s8 + $0x230] sm:$0xff]  ;;  %v1318_v45 = vld [vmem:[%s19521_s8 + $0x238] sm:$0xff]  ;;  %v18187_v46 = vpack.c.bf16 %v1334_v37, %v1333_v29  ;;  %v1323_v28 = vld [vmem:[%s19521_s8 + $0x260] sm:$0xff] }
 0xc5e   :  { %v1705_v56 = vmax.f32 %v1489_v49, 0.0  ;;  %v1707_v57 = vmax.f32 %v1560_v50, 0.0  ;;  %v18219_v8 = vpack.c.bf16 %v1366_v39, %v1365_v38  ;;  %v1335_v49 = vld [vmem:[%s19521_s8 + $0x2c0] sm:$0xff]  ;;  %v1336_v50 = vld [vmem:[%s19521_s8 + $0x2c8] sm:$0xff]  ;;  %v18189_v55 = vpack.c.bf16 %v1318_v45, %v1317_v44  ;;  %v1341_v39 = vld [vmem:[%s19521_s8 + $0x2f0] sm:$0xff] }
 0xc5f   :  { %v1324_v11 = vld [vmem:[%s19521_s8 + $0x268] sm:$0xff]  ;;  %v19967_v29 = vsub.s32 6, %v19772_v16  ;;  %v1355_v37 = vld [vmem:[%s19521_s8 + $0x360] sm:$0xff]  ;;  %v1325_v45 = vld [vmem:[%s19521_s8 + $0x270] sm:$0xff] }
 0xc60   :  { %1782 = vmatprep.mubr.f32.mxu0 %v1705_v56  ;;  %1852 = vmatprep.mubr.f32.mxu1 %v1707_v57  ;;  %v18221_v56 = vpack.c.bf16 %v1350_v48, %v1349_v47  ;;  %v1319_v57 = vld [vmem:[%s19521_s8 + $0x240] sm:$0xff]  ;;  %v1356_v38 = vld [vmem:[%s19521_s8 + $0x368] sm:$0xff]  ;;  %v1326_v48 = vld [vmem:[%s19521_s8 + $0x278] sm:$0xff] }
 0xc61   :  { %1783 = vmatmul.mubr.f32.vlgmr.msra.gmra.mrb[16].mxu0 %v1704_v62  ;;  %1853 = vmatmul.mubr.f32.vlgmr.msra.gmra.mrb[18].mxu1 %v1706_v63  ;;  %v1352_v62 = vld [vmem:[%s19521_s8 + $0x348] sm:$0xff]  ;;  %v1337_v63 = vld [vmem:[%s19521_s8 + $0x2d0] sm:$0xff]  ;;  %v18233_v44 = vpack.c.bf16 %v1356_v38, %v1355_v37  ;;  %v18205_v53 = vpack.c.bf16 %v1326_v48, %v1325_v45  ;;  %v15365_v45 = vld [vmem:[%s19496_s17 + $0x1] ss:$0 sm:$0xff] }
 0xc62   :  { %v19925_v14 = vpop.f32.mrb[14].mxu0  ;;  %v19927_v15 = vpop.f32.mrb[16].mxu1  ;;  %18178 = vmatpush3.bf16.msra.mxu0 %v18177_v58  ;;  %18210 = vmatpush3.bf16.msra.mxu1 %v18209_v59  ;;  %v1320_v58 = vld [vmem:[%s19521_s8 + $0x248] sm:$0xff]  ;;  %v18191_v59 = vpack.c.bf16 %v1336_v50, %v1335_v49  ;;  %v18225_v5 = vpack.c.bf16 %v1352_v62, %v1351_v61  ;;  %v1357_v49 = vld [vmem:[%s19521_s8 + $0x370] sm:$0xff]  ;;  %v1358_v50 = vld [vmem:[%s19521_s8 + $0x378] sm:$0xff] }
 0xc63   :  { %v1630_v24 = vpop.f32.mrb[15].mxu0  ;;  %v1701_v25 = vpop.f32.mrb[17].mxu1  ;;  %18180 = vmatprep.subr.bf16.mxu0 %v18179_v0  ;;  %18212 = vmatprep.subr.bf16.mxu1 %v18211_v1  ;;  %v1338_v0 = vld [vmem:[%s19521_s8 + $0x2d8] sm:$0xff]  ;;  %v1369_v1 = vld [vmem:[%s19521_s8 + $0x3d0] sm:$0xff]  ;;  %v18193_v4 = vpack.c.bf16 %v1320_v58, %v1319_v57  ;;  %v18237_v54 = vpack.c.bf16 %v1358_v50, %v1357_v49  ;;  %v15352_v58 = vld [vmem:[%s19526_s14] ss:$0 sm:$0xff] }
 0xc64   :  { %v1631_v34 = vadd.f32 %v1630_v24, %v1400_v7  ;;  %v1702_v35 = vadd.f32 %v1701_v25, %v1408_v9  ;;  %v1321_v7 = vld [vmem:[%s19521_s8 + $0x250] sm:$0xff]  ;;  %v1322_v9 = vld [vmem:[%s19521_s8 + $0x258] sm:$0xff]  ;;  %v18195_v10 = vpack.c.bf16 %v1338_v0, %v1337_v63  ;;  %v18227_v12 = vpack.c.bf16 %v1370_v2, %v1369_v1  ;;  %v1372_v24 = vld [vmem:[%s19521_s8 + $0x3e8] sm:$0xff] }
 0xc65   :  { %v19962_v25 = vsub.s32 4, %v19772_v16  ;;  %v18201_v16 = vpack.c.bf16 %v1324_v11, %v1323_v28  ;;  %v15356_v28 = vld [vmem:[%s19491_s13 + $0x28] sm:$0xff] }
 0xc66   :  { %v1709_v40 = vmax.f32 %v1631_v34, 0.0  ;;  %v1711_v41 = vmax.f32 %v1702_v35, 0.0  ;;  %18182 = vmatpush3.bf16.msra.mxu0 %v18181_v20  ;;  %18214 = vmatpush3.bf16.msra.mxu1 %v18213_v21  ;;  %v1354_v20 = vld [vmem:[%s19521_s8 + $0x358] sm:$0xff]  ;;  %v1339_v21 = vld [vmem:[%s19521_s8 + $0x2e0] sm:$0xff]  ;;  %v18231_v35 = vpack.c.bf16 %v1372_v24, %v1371_v23 }
 0xc67   :  { %18184 = vmatprep.subr.bf16.mxu0 %v18183_v26  ;;  %18216 = vmatprep.subr.bf16.mxu1 %v18215_v27  ;;  %v18197_v26 = vpack.c.bf16 %v1322_v9, %v1321_v7  ;;  %v18229_v27 = vpack.c.bf16 %v1354_v20, %v1353_v13  ;;  %v18199_v34 = vpack.c.bf16 %v1340_v22, %v1339_v21 }
 0xc68   :  { %1922 = vmatprep.mubr.f32.mxu0 %v1709_v40  ;;  %1992 = vmatprep.mubr.f32.mxu1 %v1711_v41  ;;  %v1342_v40 = vld [vmem:[%s19521_s8 + $0x2f8] sm:$0xff]  ;;  %v1373_v41 = vld [vmem:[%s19521_s8 + $0x3f0] sm:$0xff] }
 0xc6a   :  { %18186 = vmatpush3.bf16.msra.mxu0 %v18185_v42  ;;  %18218 = vmatpush3.bf16.msra.mxu1 %v18217_v43  ;;  %v1374_v42 = vld [vmem:[%s19521_s8 + $0x3f8] sm:$0xff]  ;;  %v1396_v43 = vrot.slane %v19883_v31, %v19962_v25 }
 0xc6b   :  { %18188 = vmatprep.subr.bf16.mxu0 %v18187_v46  ;;  %18220 = vmatprep.subr.bf16.mxu1 %v18219_v8  ;;  %v1404_v46 = vrot.slane %v19883_v31, %v19967_v29  ;;  %v18203_v8 = vpack.c.bf16 %v1342_v40, %v1341_v39  ;;  %v18235_v47 = vpack.c.bf16 %v1374_v42, %v1373_v41 }
 0xc6c   :  { %v2015_v40 = vrot.slane %v19778_v18, %v19886_v32 }
 0xc6e   :  { %18190 = vmatpush3.bf16.msra.mxu0 %v18189_v55  ;;  %18222 = vmatpush3.bf16.msra.mxu1 %v18221_v56  ;;  %v1629_v55 = vadd.f32 %v19925_v14, %v1396_v43  ;;  %v1700_v56 = vadd.f32 %v19927_v15, %v1404_v46  ;;  %v2020_v43 = vrot.slane %v19781_v19, %v19886_v32 }
 0xc6f   :  { %18192 = vmatprep.subr.bf16.mxu0 %v18191_v59  ;;  %18224 = vmatprep.subr.bf16.mxu1 %v18223_v60 }
 0xc70   :  { %v1708_v31 = vmax.f32 %v1629_v55, 0.0  ;;  %v1710_v57 = vmax.f32 %v1700_v56, 0.0 }
 0xc72   :  { %18194 = vmatpush3.bf16.msra.mxu0 %v18193_v4  ;;  %18226 = vmatpush3.bf16.msra.mxu1 %v18225_v5 }
 0xc73   :  { %18196 = vmatprep.subr.bf16.mxu0 %v18195_v10  ;;  %18228 = vmatprep.subr.bf16.mxu1 %v18227_v12 }
 0xc76   :  { %18198 = vmatpush3.bf16.msra.mxu0 %v18197_v26  ;;  %18230 = vmatpush3.bf16.msra.mxu1 %v18229_v27  ;;  %v15355_v27 = vld [vmem:[%s19491_s13 + $0x20] sm:$0xff] }
 0xc77   :  { %18200 = vmatprep.subr.bf16.mxu0 %v18199_v34  ;;  %18232 = vmatprep.subr.bf16.mxu1 %v18231_v35  ;;  %v18240_v11 = vpack.c.bf16 %v15356_v28, %v15355_v27  ;;  %v15357_v34 = vld [vmem:[%s19491_s13 + $0x30] sm:$0xff]  ;;  %v15358_v35 = vld [vmem:[%s19491_s13 + $0x38] sm:$0xff] }
 0xc7a   :  { %18202 = vmatpush3.bf16.msra.mxu0 %v18201_v16  ;;  %18234 = vmatpush3.bf16.msra.mxu1 %v18233_v44 }
 0xc7b   :  { %18204 = vmatprep.subr.bf16.mxu0 %v18203_v8  ;;  %18236 = vmatprep.subr.bf16.mxu1 %v18235_v47 }
 0xc7e   :  { %18206 = vmatpush3.bf16.msra.mxu0 %v18205_v53  ;;  %18238 = vmatpush3.bf16.msra.mxu1 %v18237_v54 }
 0xc7f   :  { %18239 = vmatprep.subr.bf16.mxu0 %v19456_v3  ;;  %17462 = vmatprep.subr.mxu1 %v19458_v6 }
 0xc81   :  { %1923 = vmatmul.mubr.f32.vlgmr.msra.gmra.mrb[18].mxu0 %v1708_v31  ;;  %1993 = vmatmul.mubr.f32.vlgmr.msra.gmra.mrb[20].mxu1 %v1710_v57 }
 0xc82   :  { %17459 = vmatprep.mubr.msk.f32.mxu0 %vm19457_vm0, %v19458_v6  ;;  %17464 = vmatprep.mubr.msk.f32.mxu1 %vm19457_vm0, %v19458_v6 }
 0xc83   :  { %18241 = vmatpush3.bf16.msra.mxu0 %v18240_v11 }
 0xc84   :  { %18242 = vmatprep.subr.bf16.mxu0 %v19456_v3 }
 0xd34   :  { %v16316_v14 = vpop.f32.mrb[16].mxu0  ;;  %v16351_v15 = vpop.f32.mrb[18].mxu1 }
 0xd35   :  { %v16317_v59 = vpop.f32.mrb[17].mxu0  ;;  %v16352_v60 = vpop.f32.mrb[19].mxu1 }
 0xd36   :  { %v16318_v61 = vadd.f32 %v16317_v59, %v16316_v14  ;;  %v16353_v62 = vadd.f32 %v16352_v60, %v16351_v15 }
 0xd38   :  { %v1785_v63 = vadd.f32 %v16318_v61, %v15352_v58 }
 0xd3a   :  { %v1855_v0 = vadd.f32 %v16353_v62, %v1785_v63 }
 0xd54   :  { %v16386_v1 = vpop.f32.mrb[18].mxu0  ;;  %v16421_v2 = vpop.f32.mrb[20].mxu1 }
 0xd55   :  { %v16387_v4 = vpop.f32.mrb[19].mxu0  ;;  %v16422_v5 = vpop.f32.mrb[21].mxu1 }
 0xd56   :  { %v16388_v7 = vadd.f32 %v16387_v4, %v16386_v1  ;;  %v16423_v9 = vadd.f32 %v16422_v5, %v16421_v2  ;;  %v15361_v2 = vld [vmem:[%s19501_s21 + $0x28] sm:$0xff] }
 0xd58   :  { %v1925_v10 = vadd.f32 %v16388_v7, %v1855_v0 }
 0xd5a   :  { %v1995_v12 = vadd.f32 %v16423_v9, %v1925_v10 }
 0xd5c   :  { %v1998_v13 = vadd.f32 %v1995_v12, %v19797_v36  ;;  %v18243_v36 = vpack.c.bf16 %v15358_v35, %v15357_v34 }
 0xd5e   :  { %v1999_v20 = vsel %vm150_vm1, %v1998_v13, 0.0  ;;  %18244 = vmatpush3.bf16.msra.mxu0 %v18243_v36 }
 0xd5f   :  { %2000 = vadd.xlane.f32.xlu1 %v1999_v20  ;;  %17472 = vmatprep.subr.mxu0 %v19458_v6 }
 0xdec   :  { %v2001_v21 = vpop.xlane.xlu1 %2000 }
 0xded   :  { %v2002_v22 = vmul.f32 0.03125, %v2001_v21  ;;  %v15360_v21 = vld [vmem:[%s19501_s21 + $0x20] sm:$0xff] }
 0xdef   :  { %v2003_v23 = vsub.f32 %v1998_v13, %v2002_v22 }
 0xdf1   :  { %v2004_v24 = vmul.f32 %v2003_v23, %v2003_v23 }
 0xdf3   :  { %v2005_v26 = vsel %vm150_vm1, %v2004_v24, 0.0 }
 0xdf4   :  { %2006 = vadd.xlane.f32.xlu1 %v2005_v26 }
 0xe81   :  { %v2007_v37 = vpop.xlane.xlu1 %2006 }
 0xe82   :  { %v2008_v38 = vmul.f32 0.03125, %v2007_v37 }
 0xe84   :  { %v2009_v39 = vadd.f32 1e-05, %v2008_v38 }
 0xe86   :  { %19208 = vrsqrt.f32 %v2009_v39 }
 0xe90   :  { %v19209_v41 = vpop.eup %19208 }
 0xe91   :  { %v2011_v42 = vmul.f32 %v19209_v41, %v2003_v23 }
 0xe93   :  { %v2016_v16 = vmul.f32 %v2015_v40, %v2011_v42 }
 0xe95   :  { %v20005_v44 = vadd.f32 %v2020_v43, %v2016_v16 }
 0xe97   :  { %17460 = vmatmul.mubr.msk.f32.vlgmr.msra.gmra.mrb[20].mxu0 %vm150_vm1, %v20005_v44 }
 0xe98   :  { %17474 = vmatprep.mubr.msk.f32.mxu0 %vm19457_vm0, %v19458_v6 }
 0xf6a   :  { %v2115_v46 = vpop.f32.mrb[20].mxu0 }
 0xf6b   :  { %v20012_v8 = vadd.f32 %v15365_v45, %v2115_v46  ;;  %v17461_v47 = vpop.f32.mrb[21].mxu0 }
 0xf6d   :  { %2286 = vrot.lane.b32.xlu0 %v20012_v8, %s19461_s28  ;;  %2120 = vrot.lane.b32.xlu1 %v20012_v8, %s19460_s5 }
 0xf71   :  { %2284 = vrot.lane.b32.xlu0 %v20012_v8, %s19459_s0 }
 0xfdf   :  { %v2287_v18 = vpop.permute.xlu0 %2286  ;;  %v2121_v19 = vpop.permute.xlu1 %2120 }
 0xfe0   :  { %17463 = vmatpush3.xpose.msk.msra.mxu1 %vm227_vm2, %v2121_v19  ;;  %17473 = vmatpush3.xpose.msk.msra.mxu0 %vm227_vm2, %v2287_v18 }
 0xfe1   :  { %17467 = vmatprep.subr.mxu1 %v19458_v6  ;;  %17482 = vmatprep.subr.mxu0 %v19458_v6 }
 0xfe3   :  { %v2285_v48 = vpop.permute.xlu0 %2284  ;;  %17465 = vmatmul.mubr.msk.f32.vlgmr.msra.gmra.mrb[22].mxu1 %vm227_vm2, %v20012_v8 }
 0xfe4   :  { %17475 = vmatmul.mubr.msk.f32.vlgmr.msra.gmra.mrb[22].mxu0 %vm227_vm2, %v2285_v48  ;;  %17469 = vmatprep.mubr.msk.f32.mxu1 %vm19457_vm0, %v19458_v6 }
 0xfe5   :  { %17484 = vmatprep.mubr.msk.f32.mxu0 %vm19457_vm0, %v19458_v6  ;;  %17483 = vmatpush3.msra.mxu0 %v15361_v2 }
 0xfe6   :  { %17492 = vmatprep.subr.mxu0 %v19458_v6 }
0x10b6   :  { %v2192_v49 = vpop.f32.mrb[22].mxu1 }
0x10b7   :  { %v2196_v50 = vmul.f32 0.35355338, %v2192_v49  ;;  %v17466_v53 = vpop.f32.mrb[23].mxu1  ;;  %v2358_v54 = vpop.f32.mrb[22].mxu0 }
0x10b8   :  { %v2362_v55 = vmul.f32 0.35355338, %v2358_v54  ;;  %v17476_v56 = vpop.f32.mrb[23].mxu0  ;;  %v15362_v53 = vld [vmem:[%s19501_s21 + $0x30] sm:$0xff] }
0x10b9   :  { %v2197_v31 = vsel %vm227_vm2, %v2196_v50, -inf }
0x10ba   :  { %2198 = vmax.xlane.f32.xlu0 %v2197_v31  ;;  %v2363_v57 = vsel %vm227_vm2, %v2362_v55, -inf }
0x10bb   :  { %2364 = vmax.xlane.f32.xlu1 %v2363_v57 }
0x10cc   :  { %2374 = vrot.lane.b32.xlu1 %v20012_v8, %s19462_s1 }
0x10d0   :  { %2596 = vrot.lane.b32.xlu1 %v20012_v8, %s19465_s10 }
0x1147   :  { %v2199_v14 = vpop.xlane.xlu0 %2198 }
0x1148   :  { %v2200_v15 = vsub.f32 %v2196_v50, %v2199_v14  ;;  %v2365_v58 = vpop.xlane.xlu1 %2364 }
0x1149   :  { %v2366_v59 = vsub.f32 %v2362_v55, %v2365_v58 }
0x114a   :  { %v2201_v60 = vmul.f32 1.442695, %v2200_v15 }
0x114b   :  { %v2367_v61 = vmul.f32 1.442695, %v2366_v59 }
0x114c   :  { %19210 = vpow2.f32 %v2201_v60  ;;  %v2375_v12 = vpop.permute.xlu1 %2374 }
0x114d   :  { %19212 = vpow2.f32 %v2367_v61 }
0x1150   :  { %v2597_v28 = vpop.permute.xlu1 %2596 }
0x1156   :  { %v19211_v62 = vpop.eup %19210 }
0x1157   :  { %v2203_v63 = vsel %vm227_vm2, %v19211_v62, 0.0  ;;  %v19213_v0 = vpop.eup %19212 }
0x1158   :  { %2204 = vadd.xlane.f32.xlu0 %v2203_v63  ;;  %v2369_v1 = vsel %vm227_vm2, %v19213_v0, 0.0 }
0x115c   :  { %2370 = vadd.xlane.f32.xlu0 %v2369_v1 }
0x1172   :  { %2208 = vrot.lane.b32.xlu0 %v20012_v8, %s19463_s2 }
0x1176   :  { %2598 = vrot.lane.b32.xlu0 %v20012_v8, %s19464_s7 }
0x11e5   :  { %v2205_v4 = vpop.xlane.xlu0 %2204 }
0x11e6   :  { %19214 = vrcp.f32 %v2205_v4 }
0x11e9   :  { %v2371_v5 = vpop.xlane.xlu0 %2370 }
0x11ea   :  { %19216 = vrcp.f32 %v2371_v5 }
0x11ed   :  { %v2209_v7 = vpop.permute.xlu0 %2208 }
0x11ee   :  { %17468 = vmatpush3.msra.mxu1 %v2209_v7 }
0x11ef   :  { %17477 = vmatprep.subr.mxu1 %v19458_v6 }
0x11f0   :  { %v19215_v9 = vpop.eup %19214 }
0x11f1   :  { %v2207_v10 = vmul.f32 %v19215_v9, %v19211_v62  ;;  %v2599_v26 = vpop.permute.xlu0 %2598  ;;  %v15363_v62 = vld [vmem:[%s19501_s21 + $0x38] sm:$0xff] }
0x11f3   :  { %17470 = vmatmul.mubr.msk.f32.vlgmr.msra.gmra.mrb[24].mxu1 %vm227_vm2, %v2207_v10 }
0x11f4   :  { %v19217_v13 = vpop.eup %19216  ;;  %17478 = vmatpush3.msra.mxu1 %v2375_v12  ;;  %17479 = vmatprep.mubr.msk.f32.mxu1 %vm19457_vm0, %v19458_v6 }
0x11f5   :  { %v2373_v20 = vmul.f32 %v19217_v13, %v19213_v0  ;;  %17487 = vmatprep.subr.mxu1 %v19458_v6 }
0x11f7   :  { %17480 = vmatmul.mubr.msk.f32.vlgmr.msra.gmra.mrb[26].mxu1 %vm227_vm2, %v2373_v20 }
0x11f8   :  { %17489 = vmatprep.mubr.msk.f32.mxu1 %vm19457_vm0, %v19458_v6  ;;  %17488 = vmatpush3.msra.mxu1 %v15360_v21 }
0x11f9   :  { %17497 = vmatprep.subr.mxu1 %v19458_v6 }
0x12c6   :  { %v2280_v22 = vpop.f32.mrb[24].mxu1 }
0x12c7   :  { %v17471_v23 = vpop.f32.mrb[25].mxu1  ;;  %17490 = vmatmul.mubr.msk.f32.vlgmr.msra.gmra.mrb[28].mxu1 %vm227_vm2, %v2280_v22 }
0x12c8   :  { %17499 = vmatprep.mubr.msk.f32.mxu1 %vm19457_vm0, %v19458_v6 }
0x12ca   :  { %v2446_v24 = vpop.f32.mrb[26].mxu1 }
0x12cb   :  { %v17481_v27 = vpop.f32.mrb[27].mxu1  ;;  %17485 = vmatmul.mubr.msk.f32.vlgmr.msra.gmra.mrb[24].mxu0 %vm227_vm2, %v2446_v24 }
0x12cc   :  { %17493 = vmatpush3.xpose.msk.msra.mxu0 %vm227_vm2, %v2599_v26  ;;  %17494 = vmatprep.mubr.msk.f32.mxu0 %vm19457_vm0, %v19458_v6 }
0x12cd   :  { %17502 = vmatprep.subr.mxu0 %v19458_v6 }
0x12cf   :  { %17495 = vmatmul.mubr.msk.f32.vlgmr.msra.gmra.mrb[26].mxu0 %vm227_vm2, %v2597_v28 }
0x12d0   :  { %17504 = vmatprep.mubr.msk.f32.mxu0 %vm19457_vm0, %v19458_v6  ;;  %17503 = vmatpush3.msra.mxu0 %v15362_v53 }
0x12d1   :  { %17512 = vmatprep.subr.mxu0 %v19458_v6 }
0x139a   :  { %v2592_v11 = vpop.f32.mrb[28].mxu1 }
0x139b   :  { %v17491_v34 = vpop.f32.mrb[29].mxu1 }
0x139c   :  { %v15385_v34 = vld [vmem:[%s19511_s29 + $0x108] sm:$0xff] }
0x139e   :  { %v2519_v35 = vpop.f32.mrb[24].mxu0 }
0x139f   :  { %v2593_v36 = vadd.f32 %v2592_v11, %v2519_v35  ;;  %v17486_v37 = vpop.f32.mrb[25].mxu0  ;;  %v15393_v35 = vld [vmem:[%s19511_s29 + $0x148] sm:$0xff] }
0x13a0   :  { %v18245_v37 = vpack.c.bf16 %v15393_v35, %v15385_v34  ;;  %v15406_v35 = vld [vmem:[%s19511_s29 + $0x1b0] sm:$0xff] }
0x13a2   :  { %v2670_v38 = vpop.f32.mrb[26].mxu0 }
0x13a3   :  { %v2674_v39 = vmul.f32 0.35355338, %v2670_v38  ;;  %v17496_v40 = vpop.f32.mrb[27].mxu0  ;;  %v15384_v38 = vld [vmem:[%s19511_s29 + $0x100] sm:$0xff] }
0x13a5   :  { %v2675_v41 = vsel %vm227_vm2, %v2674_v39, -inf }
0x13a6   :  { %2676 = vmax.xlane.f32.xlu0 %v2675_v41 }
0x13bc   :  { %2686 = vrot.lane.b32.xlu0 %v20012_v8, %s19468_s16 }
0x13c0   :  { %2836 = vrot.lane.b32.xlu0 %v20012_v8, %s19467_s15 }
0x1433   :  { %v2677_v42 = vpop.xlane.xlu0 %2676 }
0x1434   :  { %v2678_v43 = vsub.f32 %v2674_v39, %v2677_v42  ;;  %v15392_v39 = vld [vmem:[%s19511_s29 + $0x140] sm:$0xff]  ;;  %v15386_v42 = vld [vmem:[%s19511_s29 + $0x110] sm:$0xff] }
0x1435   :  { %v18247_v41 = vpack.c.bf16 %v15392_v39, %v15384_v38  ;;  %v15465_v38 = vld [vmem:[%s19521_s8 + $0x580] sm:$0xff]  ;;  %v15466_v39 = vld [vmem:[%s19521_s8 + $0x588] sm:$0xff] }
0x1436   :  { %v2679_v16 = vmul.f32 1.442695, %v2678_v43  ;;  %v15394_v43 = vld [vmem:[%s19511_s29 + $0x150] sm:$0xff] }
0x1437   :  { %v2687_v45 = vpop.permute.xlu0 %2686 }
0x1438   :  { %19218 = vpow2.f32 %v2679_v16  ;;  %17498 = vmatpush3.msra.mxu1 %v2687_v45  ;;  %v18255_v16 = vpack.c.bf16 %v15394_v43, %v15386_v42  ;;  %v15401_v45 = vld [vmem:[%s19511_s29 + $0x188] sm:$0xff]  ;;  %v15417_v42 = vld [vmem:[%s19521_s8 + $0x400] sm:$0xff] }
0x1439   :  { %17507 = vmatprep.subr.mxu1 %v19458_v6  ;;  %v15418_v43 = vld [vmem:[%s19521_s8 + $0x408] sm:$0xff] }
0x143b   :  { %v2837_v50 = vpop.permute.xlu0 %2836 }
0x1442   :  { %v19219_v46 = vpop.eup %19218 }
0x1443   :  { %v2681_v47 = vsel %vm227_vm2, %v19219_v46, 0.0 }
0x1444   :  { %2682 = vadd.xlane.f32.xlu1 %v2681_v47  ;;  %v15403_v47 = vld [vmem:[%s19511_s29 + $0x198] sm:$0xff] }
0x1455   :  { %2838 = vrot.lane.b32.xlu1 %v20012_v8, %s19466_s11 }
0x14d1   :  { %v2683_v18 = vpop.xlane.xlu1 %2682 }
0x14d2   :  { %19220 = vrcp.f32 %v2683_v18 }
0x14d5   :  { %v2839_v49 = vpop.permute.xlu1 %2838 }
0x14dc   :  { %v19221_v19 = vpop.eup %19220 }
0x14dd   :  { %v2685_v48 = vmul.f32 %v19221_v19, %v19219_v46  ;;  %v15409_v46 = vld [vmem:[%s19511_s29 + $0x1c8] sm:$0xff]  ;;  %v15411_v19 = vld [vmem:[%s19511_s29 + $0x1d8] sm:$0xff] }
0x14de   :  { %v18249_v18 = vpack.c.bf16 %v15409_v46, %v15401_v45  ;;  %v18309_v45 = vpack.c.bf16 %v15466_v39, %v15465_v38  ;;  %v15449_v46 = vld [vmem:[%s19521_s8 + $0x500] sm:$0xff] }
0x14df   :  { %17500 = vmatmul.mubr.msk.f32.vlgmr.msra.gmra.mrb[30].mxu1 %vm227_vm2, %v2685_v48  ;;  %v15400_v48 = vld [vmem:[%s19511_s29 + $0x180] sm:$0xff] }
0x14e0   :  { %17508 = vmatpush3.xpose.msk.msra.mxu1 %vm227_vm2, %v2839_v49  ;;  %17509 = vmatprep.mubr.msk.f32.mxu1 %vm19457_vm0, %v19458_v6  ;;  %v15408_v49 = vld [vmem:[%s19511_s29 + $0x1c0] sm:$0xff] }
0x14e1   :  { %17517 = vmatprep.subr.mxu1 %v19458_v6  ;;  %v18251_v53 = vpack.c.bf16 %v15408_v49, %v15400_v48  ;;  %v15467_v48 = vld [vmem:[%s19521_s8 + $0x590] sm:$0xff]  ;;  %v15468_v49 = vld [vmem:[%s19521_s8 + $0x598] sm:$0xff]  ;;  %v15425_v39 = vld [vmem:[%s19521_s8 + $0x440] sm:$0xff] }
0x14e3   :  { %17510 = vmatmul.mubr.msk.f32.vlgmr.msra.gmra.mrb[32].mxu1 %vm227_vm2, %v2837_v50  ;;  %v18257_v50 = vpack.c.bf16 %v15411_v19, %v15403_v47  ;;  %v15450_v47 = vld [vmem:[%s19521_s8 + $0x508] sm:$0xff]  ;;  %v15436_v19 = vld [vmem:[%s19521_s8 + $0x498] sm:$0xff] }
0x14e4   :  { %17519 = vmatprep.mubr.msk.f32.mxu1 %vm19457_vm0, %v19458_v6  ;;  %17518 = vmatpush3.msra.mxu1 %v15363_v62 }
0x15b2   :  { %v2758_v54 = vpop.f32.mrb[30].mxu1 }
0x15b3   :  { %v17501_v55 = vpop.f32.mrb[31].mxu1  ;;  %17505 = vmatmul.mubr.msk.f32.vlgmr.msra.gmra.mrb[28].mxu0 %vm227_vm2, %v2758_v54  ;;  %v15402_v54 = vld [vmem:[%s19511_s29 + $0x190] sm:$0xff] }
0x15b4   :  { %17514 = vmatprep.mubr.msk.f32.mxu0 %vm19457_vm0, %v19458_v6  ;;  %v15410_v55 = vld [vmem:[%s19511_s29 + $0x1d0] sm:$0xff] }
0x15b6   :  { %v2910_v56 = vpop.f32.mrb[32].mxu1 }
0x15b7   :  { %v2914_v31 = vmul.f32 0.35355338, %v2910_v56  ;;  %v17511_v57 = vpop.f32.mrb[33].mxu1  ;;  %v15389_v56 = vld [vmem:[%s19511_s29 + $0x128] sm:$0xff] }
0x15b8   :  { %v15397_v57 = vld [vmem:[%s19511_s29 + $0x168] sm:$0xff] }
0x15b9   :  { %v2915_v14 = vsel %vm227_vm2, %v2914_v31, -inf }
0x15ba   :  { %2916 = vmax.xlane.f32.xlu1 %v2915_v14  ;;  %v15391_v14 = vld [vmem:[%s19511_s29 + $0x138] sm:$0xff] }
0x1647   :  { %v2917_v15 = vpop.xlane.xlu1 %2916 }
0x1648   :  { %v2918_v58 = vsub.f32 %v2914_v31, %v2917_v15  ;;  %v18259_v31 = vpack.c.bf16 %v15410_v55, %v15402_v54  ;;  %v15399_v15 = vld [vmem:[%s19511_s29 + $0x178] sm:$0xff]  ;;  %v15419_v54 = vld [vmem:[%s19521_s8 + $0x410] sm:$0xff] }
0x1649   :  { %v15420_v55 = vld [vmem:[%s19521_s8 + $0x418] sm:$0xff] }
0x164a   :  { %v2919_v59 = vmul.f32 1.442695, %v2918_v58  ;;  %v18261_v58 = vpack.c.bf16 %v15397_v57, %v15389_v56  ;;  %v15451_v57 = vld [vmem:[%s19521_s8 + $0x510] sm:$0xff] }
0x164c   :  { %19222 = vpow2.f32 %v2919_v59  ;;  %v18269_v59 = vpack.c.bf16 %v15399_v15, %v15391_v14  ;;  %v15452_v14 = vld [vmem:[%s19521_s8 + $0x518] sm:$0xff]  ;;  %v15437_v15 = vld [vmem:[%s19521_s8 + $0x4a0] sm:$0xff] }
0x1656   :  { %v19223_v60 = vpop.eup %19222 }
0x1657   :  { %v2921_v61 = vsel %vm227_vm2, %v19223_v60, 0.0 }
0x1658   :  { %2922 = vadd.xlane.f32.xlu0 %v2921_v61 }
0x166e   :  { %2926 = vrot.lane.b32.xlu0 %v20012_v8, %s19469_s18  ;;  %v15383_v8 = vld [vmem:[%s19506_s25 + $0x1] ss:$0 sm:$0xff] }
0x1686   :  { %v2831_v63 = vpop.f32.mrb[28].mxu0 }
0x1687   :  { %v2835_v0 = vadd.f32 %v2831_v63, %v2593_v36  ;;  %v17506_v1 = vpop.f32.mrb[29].mxu0  ;;  %v15387_v36 = vld [vmem:[%s19511_s29 + $0x118] sm:$0xff]  ;;  %v20122_v63 = vld [vmem:[%s19531_s19 + $0x2] sm:$0x3] }
0x1688   :  { %v3100_v1 = vrot.slane %v20122_v63, %v19775_v17 }
0x16e5   :  { %v2923_v2 = vpop.xlane.xlu0 %2922 }
0x16e6   :  { %19224 = vrcp.f32 %v2923_v2 }
0x16e9   :  { %v2927_v4 = vpop.permute.xlu0 %2926 }
0x16ea   :  { %17513 = vmatpush3.msra.mxu0 %v2927_v4  ;;  %v15388_v4 = vld [vmem:[%s19511_s29 + $0x120] sm:$0xff] }
0x16eb   :  { %18246 = vmatprep.subr.bf16.mxu0 %v18245_v37  ;;  %v15433_v37 = vld [vmem:[%s19521_s8 + $0x480] sm:$0xff] }
0x16f0   :  { %v19225_v5 = vpop.eup %19224 }
0x16f1   :  { %v2925_v7 = vmul.f32 %v19225_v5, %v19223_v60  ;;  %v15396_v5 = vld [vmem:[%s19511_s29 + $0x160] sm:$0xff] }
0x16f3   :  { %17515 = vmatmul.mubr.msk.f32.vlgmr.msra.gmra.mrb[30].mxu0 %vm227_vm2, %v2925_v7 }
0x16f4   :  { %3381 = vmatprep.mubr.f32.mxu0 %v19458_v6  ;;  %18248 = vmatpush1.bf16.msra.mxu0 %v18247_v41 }
0x16f5   :  { %18250 = vmatprep.subr.bf16.mxu0 %v18249_v18  ;;  %v15435_v18 = vld [vmem:[%s19521_s8 + $0x490] sm:$0xff] }
0x16f6   :  { %v18281_v56 = vpack.c.bf16 %v15436_v19, %v15435_v18  ;;  %v15476_v18 = vld [vmem:[%s19521_s8 + $0x5d8] sm:$0xff] }
0x16f8   :  { %18252 = vmatpush1.bf16.msra.mxu0 %v18251_v53  ;;  %v18311_v53 = vpack.c.bf16 %v15450_v47, %v15449_v46  ;;  %v15444_v46 = vld [vmem:[%s19521_s8 + $0x4d8] sm:$0xff]  ;;  %v15475_v47 = vld [vmem:[%s19521_s8 + $0x5d0] sm:$0xff] }
0x16f9   :  { %18262 = vmatprep.subr.bf16.mxu0 %v18261_v58  ;;  %v15438_v58 = vld [vmem:[%s19521_s8 + $0x4a8] sm:$0xff] }
0x17c6   :  { %v2998_v9 = vpop.f32.mrb[30].mxu0 }
0x17c7   :  { %v17516_v10 = vpop.f32.mrb[31].mxu0  ;;  %17520 = vmatmul.mubr.msk.f32.vlgmr.msra.gmra.mrb[34].mxu1 %vm227_vm2, %v2998_v9 }
0x17c8   :  { %3452 = vmatprep.mubr.f32.mxu1 %v19458_v6  ;;  %v15390_v10 = vld [vmem:[%s19511_s29 + $0x130] sm:$0xff] }
0x189a   :  { %v3071_v12 = vpop.f32.mrb[34].mxu1 }
0x189b   :  { %v3075_v13 = vadd.f32 %v3071_v12, %v2835_v0  ;;  %v17521_v20 = vpop.f32.mrb[35].mxu1  ;;  %v20125_v0 = vld [vmem:[%s19536_s24 + $0x2] sm:$0x3]  ;;  %v15405_v12 = vld [vmem:[%s19511_s29 + $0x1a8] sm:$0xff] }
0x189c   :  { %v3105_v9 = vrot.slane %v20125_v0, %v19775_v17  ;;  %v15407_v20 = vld [vmem:[%s19511_s29 + $0x1b8] sm:$0xff] }
0x189d   :  { %v3082_v21 = vadd.f32 %v15383_v8, %v3075_v13  ;;  %v15398_v8 = vld [vmem:[%s19511_s29 + $0x170] sm:$0xff]  ;;  %v15413_v13 = vld [vmem:[%s19511_s29 + $0x1e8] sm:$0xff] }
0x189f   :  { %v3083_v22 = vadd.f32 %v3082_v21, %v20005_v44  ;;  %v15395_v44 = vld [vmem:[%s19511_s29 + $0x158] sm:$0xff] }
0x18a0   :  { %v18253_v40 = vpack.c.bf16 %v15395_v44, %v15387_v36  ;;  %v15415_v21 = vld [vmem:[%s19511_s29 + $0x1f8] sm:$0xff]  ;;  %v15414_v36 = vld [vmem:[%s19511_s29 + $0x1f0] sm:$0xff]  ;;  %v15434_v44 = vld [vmem:[%s19521_s8 + $0x488] sm:$0xff] }
0x18a1   :  { %v3084_v23 = vsel %vm150_vm1, %v3083_v22, 0.0  ;;  %v18273_v34 = vpack.c.bf16 %v15415_v21, %v15407_v20  ;;  %v18275_v41 = vpack.c.bf16 %v15414_v36, %v15406_v35  ;;  %v15442_v35 = vld [vmem:[%s19521_s8 + $0x4c8] sm:$0xff]  ;;  %v15473_v36 = vld [vmem:[%s19521_s8 + $0x5c0] sm:$0xff] }
0x18a2   :  { %3085 = vadd.xlane.f32.xlu1 %v3084_v23  ;;  %18254 = vmatprep.subr.bf16.mxu1 %v18253_v40  ;;  %v18263_v23 = vpack.c.bf16 %v15396_v5, %v15388_v4  ;;  %v18285_v4 = vpack.c.bf16 %v15438_v58, %v15437_v15  ;;  %v15478_v15 = vld [vmem:[%s19521_s8 + $0x5e8] sm:$0xff] }
0x18a3   :  { %18256 = vmatpush1.bf16.msra.mxu1 %v18255_v16  ;;  %v18277_v16 = vpack.c.bf16 %v15434_v44, %v15433_v37  ;;  %v15474_v37 = vld [vmem:[%s19521_s8 + $0x5c8] sm:$0xff] }
0x18a4   :  { %18258 = vmatprep.subr.bf16.mxu1 %v18257_v50  ;;  %v18279_v50 = vpack.c.bf16 %v15418_v43, %v15417_v42  ;;  %v18325_v42 = vpack.c.bf16 %v15474_v37, %v15473_v36  ;;  %v15457_v43 = vld [vmem:[%s19521_s8 + $0x540] sm:$0xff]  ;;  %v15530_v37 = vld [vmem:[%s19521_s8 + $0x788] sm:$0xff] }
0x18a7   :  { %18260 = vmatpush1.bf16.msra.mxu1 %v18259_v31  ;;  %v18313_v31 = vpack.c.bf16 %v15468_v49, %v15467_v48  ;;  %v15427_v49 = vld [vmem:[%s19521_s8 + $0x450] sm:$0xff] }
0x18a8   :  { %18270 = vmatprep.subr.bf16.mxu1 %v18269_v59  ;;  %v15469_v59 = vld [vmem:[%s19521_s8 + $0x5a0] sm:$0xff] }
0x192f   :  { %v3086_v24 = vpop.xlane.xlu1 %3085 }
0x1930   :  { %v3087_v26 = vmul.f32 0.03125, %v3086_v24  ;;  %v18271_v24 = vpack.c.bf16 %v15398_v8, %v15390_v10  ;;  %v15439_v10 = vld [vmem:[%s19521_s8 + $0x4b0] sm:$0xff]  ;;  %v15440_v8 = vld [vmem:[%s19521_s8 + $0x4b8] sm:$0xff] }
0x1932   :  { %v3088_v27 = vsub.f32 %v3083_v22, %v3087_v26  ;;  %v15404_v26 = vld [vmem:[%s19511_s29 + $0x1a0] sm:$0xff] }
0x1934   :  { %v3089_v28 = vmul.f32 %v3088_v27, %v3088_v27 }
0x1936   :  { %v3090_v11 = vsel %vm150_vm1, %v3089_v28, 0.0 }
0x1937   :  { %3091 = vadd.xlane.f32.xlu1 %v3090_v11  ;;  %v18265_v11 = vpack.c.bf16 %v15413_v13, %v15405_v12  ;;  %v15471_v12 = vld [vmem:[%s19521_s8 + $0x5b0] sm:$0xff]  ;;  %v15472_v13 = vld [vmem:[%s19521_s8 + $0x5b8] sm:$0xff] }
0x19c4   :  { %v3092_v60 = vpop.xlane.xlu1 %3091 }
0x19c5   :  { %v3093_v61 = vmul.f32 0.03125, %v3092_v60  ;;  %v15470_v60 = vld [vmem:[%s19521_s8 + $0x5a8] sm:$0xff] }
0x19c6   :  { %v18317_v5 = vpack.c.bf16 %v15470_v60, %v15469_v59  ;;  %v15429_v60 = vld [vmem:[%s19521_s8 + $0x460] sm:$0xff] }
0x19c7   :  { %v3094_v62 = vadd.f32 1e-05, %v3093_v61  ;;  %v18283_v61 = vpack.c.bf16 %v15420_v55, %v15419_v54  ;;  %v18329_v54 = vpack.c.bf16 %v15476_v18, %v15475_v47  ;;  %v15459_v55 = vld [vmem:[%s19521_s8 + $0x550] sm:$0xff] }
0x19c9   :  { %19226 = vrsqrt.f32 %v3094_v62  ;;  %v18315_v62 = vpack.c.bf16 %v15452_v14, %v15451_v57  ;;  %v15446_v57 = vld [vmem:[%s19521_s8 + $0x4e8] sm:$0xff]  ;;  %v15477_v14 = vld [vmem:[%s19521_s8 + $0x5e0] sm:$0xff] }
0x19d3   :  { %v19227_v2 = vpop.eup %19226 }
0x19d4   :  { %v3096_v7 = vmul.f32 %v19227_v2, %v3088_v27  ;;  %v15412_v27 = vld [vmem:[%s19511_s29 + $0x1e0] sm:$0xff]  ;;  %v15422_v2 = vld [vmem:[%s19521_s8 + $0x428] sm:$0xff] }
0x19d5   :  { %v18267_v40 = vpack.c.bf16 %v15412_v27, %v15404_v26  ;;  %v18321_v26 = vpack.c.bf16 %v15472_v13, %v15471_v12  ;;  %v15455_v27 = vld [vmem:[%s19521_s8 + $0x530] sm:$0xff]  ;;  %v15480_v13 = vld [vmem:[%s19521_s8 + $0x5f8] sm:$0xff] }
0x19d6   :  { %v3101_v22 = vmul.f32 %v3100_v1, %v3096_v7  ;;  %v15421_v1 = vld [vmem:[%s19521_s8 + $0x420] sm:$0xff] }
0x19d7   :  { %v15453_v7 = vld [vmem:[%s19521_s8 + $0x520] sm:$0xff]  ;;  %v18287_v20 = vpack.c.bf16 %v15422_v2, %v15421_v1  ;;  %v15430_v1 = vld [vmem:[%s19521_s8 + $0x468] sm:$0xff] }
0x19d8   :  { %v20141_v28 = vadd.f32 %v3105_v9, %v3101_v22  ;;  %v15454_v9 = vld [vmem:[%s19521_s8 + $0x528] sm:$0xff]  ;;  %v15423_v22 = vld [vmem:[%s19521_s8 + $0x430] sm:$0xff]  ;;  %v15461_v2 = vld [vmem:[%s19521_s8 + $0x560] sm:$0xff] }
0x19d9   :  { %v18319_v21 = vpack.c.bf16 %v15454_v9, %v15453_v7  ;;  %v15447_v9 = vld [vmem:[%s19521_s8 + $0x4f0] sm:$0xff] }
0x19da   :  { %15546 = vmatmul.mubr.msk.f32.vlgmr.msra.gmra.mrb[32].mxu0 %vm150_vm1, %v20141_v28  ;;  %15547 = vmatmul.mubr.msk.f32.vlgmr.msra.gmra.mrb[36].mxu1 %vm150_vm1, %v20141_v28 }
0x19db   :  { %18264 = vmatpush1.bf16.msra.mxu0 %v18263_v23  ;;  %18272 = vmatpush1.bf16.msra.mxu1 %v18271_v24  ;;  %v15424_v23 = vld [vmem:[%s19521_s8 + $0x438] sm:$0xff]  ;;  %v18289_v24 = vpack.c.bf16 %v15440_v8, %v15439_v10  ;;  %v15479_v8 = vld [vmem:[%s19521_s8 + $0x5f0] sm:$0xff] }
0x19dc   :  { %18266 = vmatprep.subr.bf16.mxu0 %v18265_v11  ;;  %18274 = vmatprep.subr.bf16.mxu1 %v18273_v34  ;;  %v15456_v11 = vld [vmem:[%s19521_s8 + $0x538] sm:$0xff]  ;;  %v15441_v34 = vld [vmem:[%s19521_s8 + $0x4c0] sm:$0xff]  ;;  %v18291_v44 = vpack.c.bf16 %v15424_v23, %v15423_v22  ;;  %v18337_v22 = vpack.c.bf16 %v15480_v13, %v15479_v8 }
0x19dd   :  { %3523 = vmatprep.mubr.f32.mxu0 %v19458_v6  ;;  %3594 = vmatprep.mubr.f32.mxu1 %v19458_v6  ;;  %v18323_v38 = vpack.c.bf16 %v15456_v11, %v15455_v27  ;;  %v15448_v10 = vld [vmem:[%s19521_s8 + $0x4f8] sm:$0xff]  ;;  %v15497_v11 = vld [vmem:[%s19521_s8 + $0x680] sm:$0xff] }
0x19de   :  { %v18305_v12 = vpack.c.bf16 %v15448_v10, %v15447_v9  ;;  %v15501_v9 = vld [vmem:[%s19521_s8 + $0x6a0] sm:$0xff] }
0x19df   :  { %18268 = vmatpush1.bf16.msra.mxu0 %v18267_v40  ;;  %18276 = vmatpush1.bf16.msra.mxu1 %v18275_v41  ;;  %v15426_v40 = vld [vmem:[%s19521_s8 + $0x448] sm:$0xff]  ;;  %v18293_v41 = vpack.c.bf16 %v15442_v35, %v15441_v34  ;;  %v15529_v35 = vld [vmem:[%s19521_s8 + $0x780] sm:$0xff] }
0x19e0   :  { %18278 = vmatprep.subr.bf16.mxu0 %v18277_v16  ;;  %18310 = vmatprep.subr.bf16.mxu1 %v18309_v45  ;;  %v15458_v16 = vld [vmem:[%s19521_s8 + $0x548] sm:$0xff]  ;;  %v15443_v45 = vld [vmem:[%s19521_s8 + $0x4d0] sm:$0xff]  ;;  %v18295_v19 = vpack.c.bf16 %v15426_v40, %v15425_v39  ;;  %v15533_v13 = vld [vmem:[%s19521_s8 + $0x7a0] sm:$0xff] }
0x19e1   :  { %v18327_v48 = vpack.c.bf16 %v15458_v16, %v15457_v43  ;;  %v15498_v34 = vld [vmem:[%s19521_s8 + $0x688] sm:$0xff] }
0x19e2   :  { %15548 = vmatmul.mubr.msk.f32.vlgmr.msra.gmra.mrb[34].mxu0 %vm150_vm1, %v20141_v28  ;;  %15549 = vmatmul.mubr.msk.f32.vlgmr.msra.gmra.mrb[38].mxu1 %vm150_vm1, %v20141_v28  ;;  %v18341_v36 = vpack.c.bf16 %v15498_v34, %v15497_v11 }
0x19e3   :  { %18280 = vmatpush3.bf16.msra.mxu0 %v18279_v50  ;;  %18312 = vmatpush3.bf16.msra.mxu1 %v18311_v53  ;;  %v15428_v50 = vld [vmem:[%s19521_s8 + $0x458] sm:$0xff]  ;;  %v18297_v53 = vpack.c.bf16 %v15444_v46, %v15443_v45  ;;  %v15481_v45 = vld [vmem:[%s19521_s8 + $0x600] sm:$0xff]  ;;  %v15482_v46 = vld [vmem:[%s19521_s8 + $0x608] sm:$0xff] }
0x19e4   :  { %18282 = vmatprep.subr.bf16.mxu0 %v18281_v56  ;;  %18314 = vmatprep.subr.bf16.mxu1 %v18313_v31  ;;  %v15460_v56 = vld [vmem:[%s19521_s8 + $0x558] sm:$0xff]  ;;  %v15445_v31 = vld [vmem:[%s19521_s8 + $0x4e0] sm:$0xff]  ;;  %v18299_v58 = vpack.c.bf16 %v15428_v50, %v15427_v49  ;;  %v15514_v50 = vld [vmem:[%s19521_s8 + $0x708] sm:$0xff] }
0x19e5   :  { %v18331_v59 = vpack.c.bf16 %v15460_v56, %v15459_v55  ;;  %v15513_v49 = vld [vmem:[%s19521_s8 + $0x700] sm:$0xff]  ;;  %v15500_v56 = vld [vmem:[%s19521_s8 + $0x698] sm:$0xff] }
0x19e7   :  { %18284 = vmatpush3.bf16.msra.mxu0 %v18283_v61  ;;  %18316 = vmatpush3.bf16.msra.mxu1 %v18315_v62  ;;  %v18301_v61 = vpack.c.bf16 %v15446_v57, %v15445_v31  ;;  %v18333_v62 = vpack.c.bf16 %v15478_v15, %v15477_v14  ;;  %v15531_v31 = vld [vmem:[%s19521_s8 + $0x790] sm:$0xff]  ;;  %v15532_v57 = vld [vmem:[%s19521_s8 + $0x798] sm:$0xff] }
0x19e8   :  { %18286 = vmatprep.subr.bf16.mxu0 %v18285_v4  ;;  %18318 = vmatprep.subr.bf16.mxu1 %v18317_v5  ;;  %v15462_v4 = vld [vmem:[%s19521_s8 + $0x568] sm:$0xff]  ;;  %v18303_v5 = vpack.c.bf16 %v15430_v1, %v15429_v60  ;;  %v15483_v60 = vld [vmem:[%s19521_s8 + $0x610] sm:$0xff] }
0x19e9   :  { %v18335_v7 = vpack.c.bf16 %v15462_v4, %v15461_v2  ;;  %v18377_v4 = vpack.c.bf16 %v15532_v57, %v15531_v31  ;;  %v15537_v31 = vld [vmem:[%s19521_s8 + $0x7c0] sm:$0xff]  ;;  %v15538_v57 = vld [vmem:[%s19521_s8 + $0x7c8] sm:$0xff] }
0x19eb   :  { %18288 = vmatpush3.bf16.msra.mxu0 %v18287_v20  ;;  %18320 = vmatpush3.bf16.msra.mxu1 %v18319_v21  ;;  %v15431_v20 = vld [vmem:[%s19521_s8 + $0x470] sm:$0xff]  ;;  %v15432_v21 = vld [vmem:[%s19521_s8 + $0x478] sm:$0xff] }
0x19ec   :  { %18290 = vmatprep.subr.bf16.mxu0 %v18289_v24  ;;  %18322 = vmatprep.subr.bf16.mxu1 %v18321_v26  ;;  %v18307_v23 = vpack.c.bf16 %v15432_v21, %v15431_v20  ;;  %v15463_v24 = vld [vmem:[%s19521_s8 + $0x570] sm:$0xff]  ;;  %v15464_v26 = vld [vmem:[%s19521_s8 + $0x578] sm:$0xff]  ;;  %v15534_v20 = vld [vmem:[%s19521_s8 + $0x7a8] sm:$0xff] }
0x19ed   :  { %v18339_v27 = vpack.c.bf16 %v15464_v26, %v15463_v24  ;;  %v15485_v26 = vld [vmem:[%s19521_s8 + $0x620] sm:$0xff] }
0x19ef   :  { %18292 = vmatpush3.bf16.msra.mxu0 %v18291_v44  ;;  %18324 = vmatpush3.bf16.msra.mxu1 %v18323_v38  ;;  %v18373_v44 = vpack.c.bf16 %v15530_v37, %v15529_v35  ;;  %v20224_v38 = vld [vmem:[%s19516_s3 + $0x8] sm:$0xff]  ;;  %v15517_v37 = vld [vmem:[%s19521_s8 + $0x720] sm:$0xff] }
0x19f0   :  { %18294 = vmatprep.subr.bf16.mxu0 %v18293_v41  ;;  %18326 = vmatprep.subr.bf16.mxu1 %v18325_v42  ;;  %v3277_v39 = vrot.slane %v20224_v38, %v19775_v17  ;;  %v3285_v40 = vrot.slane %v20224_v38, %v19880_v30  ;;  %v3281_v41 = vrot.slane %v20224_v38, %v19886_v32 }
0x19f1   :  { %v3289_v42 = vrot.slane %v20224_v38, %v19889_v33  ;;  %v3297_v10 = vrot.slane %v20224_v38, %v19905_v51  ;;  %v3305_v8 = vrot.slane %v20224_v38, %v19908_v52 }
0x19f3   :  { %18296 = vmatpush3.bf16.msra.mxu0 %v18295_v19  ;;  %18328 = vmatpush3.bf16.msra.mxu1 %v18327_v48 }
0x19f4   :  { %18298 = vmatprep.subr.bf16.mxu0 %v18297_v53  ;;  %18330 = vmatprep.subr.bf16.mxu1 %v18329_v54  ;;  %v15499_v53 = vld [vmem:[%s19521_s8 + $0x690] sm:$0xff] }
0x19f5   :  { %v18345_v2 = vpack.c.bf16 %v15500_v56, %v15499_v53  ;;  %v15519_v53 = vld [vmem:[%s19521_s8 + $0x730] sm:$0xff]  ;;  %v15506_v56 = vld [vmem:[%s19521_s8 + $0x6c8] sm:$0xff] }
0x19f7   :  { %18300 = vmatpush3.bf16.msra.mxu0 %v18299_v58  ;;  %18332 = vmatpush3.bf16.msra.mxu1 %v18331_v59  ;;  %v18343_v58 = vpack.c.bf16 %v15482_v46, %v15481_v45  ;;  %v18375_v59 = vpack.c.bf16 %v15514_v50, %v15513_v49 }
0x19f8   :  { %18302 = vmatprep.subr.bf16.mxu0 %v18301_v61  ;;  %18334 = vmatprep.subr.bf16.mxu1 %v18333_v62  ;;  %v15484_v61 = vld [vmem:[%s19521_s8 + $0x618] sm:$0xff] }
0x19fb   :  { %18304 = vmatpush3.bf16.msra.mxu0 %v18303_v5  ;;  %18336 = vmatpush3.bf16.msra.mxu1 %v18335_v7  ;;  %v15515_v5 = vld [vmem:[%s19521_s8 + $0x710] sm:$0xff]  ;;  %v15516_v7 = vld [vmem:[%s19521_s8 + $0x718] sm:$0xff] }
0x19fc   :  { %18306 = vmatprep.subr.bf16.mxu0 %v18305_v12  ;;  %18338 = vmatprep.subr.bf16.mxu1 %v18337_v22  ;;  %v15502_v12 = vld [vmem:[%s19521_s8 + $0x6a8] sm:$0xff]  ;;  %v18379_v24 = vpack.c.bf16 %v15516_v7, %v15515_v5  ;;  %v15539_v5 = vld [vmem:[%s19521_s8 + $0x7d0] sm:$0xff]  ;;  %v15540_v7 = vld [vmem:[%s19521_s8 + $0x7d8] sm:$0xff] }
0x19fd   :  { %v18349_v35 = vpack.c.bf16 %v15502_v12, %v15501_v9  ;;  %v15492_v12 = vld [vmem:[%s19521_s8 + $0x658] sm:$0xff] }
0x19ff   :  { %18308 = vmatpush3.bf16.msra.mxu0 %v18307_v23  ;;  %18340 = vmatpush3.bf16.msra.mxu1 %v18339_v27  ;;  %v18347_v23 = vpack.c.bf16 %v15484_v61, %v15483_v60  ;;  %v15486_v27 = vld [vmem:[%s19521_s8 + $0x628] sm:$0xff]  ;;  %v18389_v61 = vpack.c.bf16 %v15538_v57, %v15537_v31 }
0x1a00   :  { %18342 = vmatprep.subr.bf16.mxu0 %v18341_v36  ;;  %18374 = vmatprep.subr.bf16.mxu1 %v18373_v44  ;;  %v18381_v36 = vpack.c.bf16 %v15534_v20, %v15533_v13  ;;  %v15518_v44 = vld [vmem:[%s19521_s8 + $0x728] sm:$0xff]  ;;  %v18393_v20 = vpack.c.bf16 %v15540_v7, %v15539_v5 }
0x1aad   :  { %v3383_v43 = vpop.f32.mrb[32].mxu0  ;;  %v3454_v16 = vpop.f32.mrb[36].mxu1 }
0x1aae   :  { %v3384_v47 = vadd.f32 %v3383_v43, %v3277_v39  ;;  %v3455_v18 = vadd.f32 %v3454_v16, %v3285_v40  ;;  %v3385_v19 = vpop.f32.mrb[33].mxu0  ;;  %v3456_v48 = vpop.f32.mrb[37].mxu1  ;;  %v15503_v39 = vld [vmem:[%s19521_s8 + $0x6b0] sm:$0xff]  ;;  %v15536_v16 = vld [vmem:[%s19521_s8 + $0x7b8] sm:$0xff] }
0x1aaf   :  { %v3386_v54 = vadd.f32 %v3385_v19, %v3281_v41  ;;  %v3457_v55 = vadd.f32 %v3456_v48, %v3289_v42  ;;  %v15504_v42 = vld [vmem:[%s19521_s8 + $0x6b8] sm:$0xff]  ;;  %v15535_v43 = vld [vmem:[%s19521_s8 + $0x7b0] sm:$0xff] }
0x1ab0   :  { %v3601_v62 = vmax.f32 %v3384_v47, 0.0  ;;  %v3603_v1 = vmax.f32 %v3455_v18, 0.0  ;;  %v18351_v47 = vpack.c.bf16 %v15486_v27, %v15485_v26  ;;  %v18383_v18 = vpack.c.bf16 %v15518_v44, %v15517_v37  ;;  %v15487_v19 = vld [vmem:[%s19521_s8 + $0x630] sm:$0xff]  ;;  %v15488_v48 = vld [vmem:[%s19521_s8 + $0x638] sm:$0xff]  ;;  %v15509_v26 = vld [vmem:[%s19521_s8 + $0x6e0] sm:$0xff] }
0x1ab1   :  { %v3602_v14 = vmax.f32 %v3386_v54, 0.0  ;;  %v3604_v15 = vmax.f32 %v3457_v55, 0.0  ;;  %v18353_v49 = vpack.c.bf16 %v15504_v42, %v15503_v39  ;;  %v18385_v50 = vpack.c.bf16 %v15536_v16, %v15535_v43  ;;  %v15520_v54 = vld [vmem:[%s19521_s8 + $0x738] sm:$0xff]  ;;  %v15505_v55 = vld [vmem:[%s19521_s8 + $0x6c0] sm:$0xff]  ;;  %v15510_v27 = vld [vmem:[%s19521_s8 + $0x6e8] sm:$0xff] }
0x1ab2   :  { %v18357_v60 = vpack.c.bf16 %v15506_v56, %v15505_v55  ;;  %v15493_v37 = vld [vmem:[%s19521_s8 + $0x660] sm:$0xff]  ;;  %v15494_v44 = vld [vmem:[%s19521_s8 + $0x668] sm:$0xff]  ;;  %v18365_v39 = vpack.c.bf16 %v15510_v27, %v15509_v26  ;;  %v15511_v43 = vld [vmem:[%s19521_s8 + $0x6f0] sm:$0xff] }
0x1ab3   :  { %3679 = vmatprep.mubr.f32.mxu0 %v3602_v14  ;;  %3749 = vmatprep.mubr.f32.mxu1 %v3604_v15  ;;  %v18355_v14 = vpack.c.bf16 %v15488_v48, %v15487_v19  ;;  %v18387_v15 = vpack.c.bf16 %v15520_v54, %v15519_v53  ;;  %v15526_v42 = vld [vmem:[%s19521_s8 + $0x768] sm:$0xff]  ;;  %v15512_v16 = vld [vmem:[%s19521_s8 + $0x6f8] sm:$0xff]  ;;  %v15495_v48 = vld [vmem:[%s19521_s8 + $0x670] sm:$0xff] }
0x1ab4   :  { %3680 = vmatmul.mubr.f32.vlgmr.msra.gmra.mrb[36].mxu0 %v3601_v62  ;;  %3750 = vmatmul.mubr.f32.vlgmr.msra.gmra.mrb[40].mxu1 %v3603_v1  ;;  %v15521_v62 = vld [vmem:[%s19521_s8 + $0x740] sm:$0xff]  ;;  %v15522_v1 = vld [vmem:[%s19521_s8 + $0x748] sm:$0xff]  ;;  %v15496_v54 = vld [vmem:[%s19521_s8 + $0x678] sm:$0xff] }
0x1ab5   :  { %v20254_v21 = vpop.f32.mrb[34].mxu0  ;;  %v20256_v22 = vpop.f32.mrb[38].mxu1  ;;  %18344 = vmatpush3.bf16.msra.mxu0 %v18343_v58  ;;  %18376 = vmatpush3.bf16.msra.mxu1 %v18375_v59  ;;  %v15489_v58 = vld [vmem:[%s19521_s8 + $0x640] sm:$0xff]  ;;  %v15490_v59 = vld [vmem:[%s19521_s8 + $0x648] sm:$0xff]  ;;  %v15527_v55 = vld [vmem:[%s19521_s8 + $0x770] sm:$0xff]  ;;  %v18371_v31 = vpack.c.bf16 %v15496_v54, %v15495_v48 }
0x1ab6   :  { %v3527_v11 = vpop.f32.mrb[35].mxu0  ;;  %v3598_v34 = vpop.f32.mrb[39].mxu1  ;;  %18346 = vmatprep.subr.bf16.mxu0 %v18345_v2  ;;  %18378 = vmatprep.subr.bf16.mxu1 %v18377_v4  ;;  %v15507_v2 = vld [vmem:[%s19521_s8 + $0x6d0] sm:$0xff]  ;;  %v15508_v4 = vld [vmem:[%s19521_s8 + $0x6d8] sm:$0xff]  ;;  %v18359_v9 = vpack.c.bf16 %v15490_v59, %v15489_v58  ;;  %v15550_v59 = vld [vmem:[%s19526_s14 + $0x1] ss:$0 sm:$0xff] }
0x1ab7   :  { %v3528_v40 = vadd.f32 %v3527_v11, %v3297_v10  ;;  %v3599_v41 = vadd.f32 %v3598_v34, %v3305_v8  ;;  %v18391_v10 = vpack.c.bf16 %v15522_v1, %v15521_v62  ;;  %v15491_v8 = vld [vmem:[%s19521_s8 + $0x650] sm:$0xff]  ;;  %v18361_v13 = vpack.c.bf16 %v15508_v4, %v15507_v2  ;;  %v15541_v11 = vld [vmem:[%s19521_s8 + $0x7e0] sm:$0xff]  ;;  %v15542_v34 = vld [vmem:[%s19521_s8 + $0x7e8] sm:$0xff] }
0x1ab8   :  { %v15528_v56 = vld [vmem:[%s19521_s8 + $0x778] sm:$0xff]  ;;  %v15563_v48 = vld [vmem:[%s19496_s17 + $0x2] ss:$0 sm:$0xff]  ;;  %s22042_s17 = sld [smem:[#allocation10_spill]] }
0x1ab9   :  { %v3606_v45 = vmax.f32 %v3528_v40, 0.0  ;;  %v3608_v46 = vmax.f32 %v3599_v41, 0.0  ;;  %18348 = vmatpush3.bf16.msra.mxu0 %v18347_v23  ;;  %18380 = vmatpush3.bf16.msra.mxu1 %v18379_v24  ;;  %v15523_v23 = vld [vmem:[%s19521_s8 + $0x750] sm:$0xff]  ;;  %v15524_v24 = vld [vmem:[%s19521_s8 + $0x758] sm:$0xff]  ;;  %v18397_v40 = vpack.c.bf16 %v15542_v34, %v15541_v11  ;;  %v15525_v41 = vld [vmem:[%s19521_s8 + $0x760] sm:$0xff]  ;;  %v18403_v57 = vpack.c.bf16 %v15528_v56, %v15527_v55 }
0x1aba   :  { %18350 = vmatprep.subr.bf16.mxu0 %v18349_v35  ;;  %18382 = vmatprep.subr.bf16.mxu1 %v18381_v36  ;;  %v18363_v35 = vpack.c.bf16 %v15492_v12, %v15491_v8  ;;  %v18395_v36 = vpack.c.bf16 %v15524_v24, %v15523_v23  ;;  %v18399_v19 = vpack.c.bf16 %v15526_v42, %v15525_v41 }
0x1abb   :  { %3819 = vmatprep.mubr.f32.mxu0 %v3606_v45  ;;  %3889 = vmatprep.mubr.f32.mxu1 %v3608_v46  ;;  %v15543_v45 = vld [vmem:[%s19521_s8 + $0x7f0] sm:$0xff]  ;;  %v15544_v46 = vld [vmem:[%s19521_s8 + $0x7f8] sm:$0xff] }
0x1abc   :  { %v18401_v53 = vpack.c.bf16 %v15544_v46, %v15543_v45 }
0x1abd   :  { %18352 = vmatpush3.bf16.msra.mxu0 %v18351_v47  ;;  %18384 = vmatpush3.bf16.msra.mxu1 %v18383_v18  ;;  %v3293_v47 = vrot.slane %v20224_v38, %v19962_v25  ;;  %v18367_v18 = vpack.c.bf16 %v15494_v44, %v15493_v37  ;;  %v15554_v37 = vld [vmem:[%s19491_s13 + $0x48] sm:$0xff] }
0x1abe   :  { %18354 = vmatprep.subr.bf16.mxu0 %v18353_v49  ;;  %18386 = vmatprep.subr.bf16.mxu1 %v18385_v50  ;;  %v3301_v49 = vrot.slane %v20224_v38, %v19967_v29  ;;  %v18369_v50 = vpack.c.bf16 %v15512_v16, %v15511_v43  ;;  %v3912_v16 = vrot.slane %v20122_v63, %v19886_v32 }
0x1ac1   :  { %18356 = vmatpush3.bf16.msra.mxu0 %v18355_v14  ;;  %18388 = vmatpush3.bf16.msra.mxu1 %v18387_v15  ;;  %v3526_v14 = vadd.f32 %v20254_v21, %v3293_v47  ;;  %v3597_v15 = vadd.f32 %v20256_v22, %v3301_v49  ;;  %v3917_v47 = vrot.slane %v20125_v0, %v19886_v32 }
0x1ac2   :  { %18358 = vmatprep.subr.bf16.mxu0 %v18357_v60  ;;  %18390 = vmatprep.subr.bf16.mxu1 %v18389_v61 }
0x1ac3   :  { %v3605_v38 = vmax.f32 %v3526_v14, 0.0  ;;  %v3607_v58 = vmax.f32 %v3597_v15, 0.0 }
0x1ac5   :  { %18360 = vmatpush3.bf16.msra.mxu0 %v18359_v9  ;;  %18392 = vmatpush3.bf16.msra.mxu1 %v18391_v10 }
0x1ac6   :  { %18362 = vmatprep.subr.bf16.mxu0 %v18361_v13  ;;  %18394 = vmatprep.subr.bf16.mxu1 %v18393_v20 }
0x1ac9   :  { %18364 = vmatpush3.bf16.msra.mxu0 %v18363_v35  ;;  %18396 = vmatpush3.bf16.msra.mxu1 %v18395_v36  ;;  %v15553_v36 = vld [vmem:[%s19491_s13 + $0x40] sm:$0xff] }
0x1aca   :  { %18366 = vmatprep.subr.bf16.mxu0 %v18365_v39  ;;  %18398 = vmatprep.subr.bf16.mxu1 %v18397_v40  ;;  %v18406_v44 = vpack.c.bf16 %v15554_v37, %v15553_v36  ;;  %v15555_v39 = vld [vmem:[%s19491_s13 + $0x50] sm:$0xff]  ;;  %v15556_v40 = vld [vmem:[%s19491_s13 + $0x58] sm:$0xff]  ;;  %s22041_s13 = sld [smem:[#allocation9_spill]] }
0x1acd   :  { %18368 = vmatpush3.bf16.msra.mxu0 %v18367_v18  ;;  %18400 = vmatpush3.bf16.msra.mxu1 %v18399_v19 }
0x1ace   :  { %18370 = vmatprep.subr.bf16.mxu0 %v18369_v50  ;;  %18402 = vmatprep.subr.bf16.mxu1 %v18401_v53 }
0x1ad1   :  { %18372 = vmatpush3.bf16.msra.mxu0 %v18371_v31  ;;  %18404 = vmatpush3.bf16.msra.mxu1 %v18403_v57 }
0x1ad2   :  { %18405 = vmatprep.subr.bf16.mxu0 %v19456_v3  ;;  %17533 = vmatprep.subr.mxu1 %v19458_v6 }
0x1ad4   :  { %3820 = vmatmul.mubr.f32.vlgmr.msra.gmra.mrb[38].mxu0 %v3605_v38  ;;  %3890 = vmatmul.mubr.f32.vlgmr.msra.gmra.mrb[42].mxu1 %v3607_v58 }
0x1ad5   :  { %17530 = vmatprep.mubr.msk.f32.mxu0 %vm19457_vm0, %v19458_v6  ;;  %17535 = vmatprep.mubr.msk.f32.mxu1 %vm19457_vm0, %v19458_v6 }
0x1ad6   :  { %18407 = vmatpush3.bf16.msra.mxu0 %v18406_v44 }
0x1ad7   :  { %18408 = vmatprep.subr.bf16.mxu0 %v19456_v3 }
0x1b87   :  { %v16485_v21 = vpop.f32.mrb[36].mxu0  ;;  %v16520_v22 = vpop.f32.mrb[40].mxu1 }
0x1b88   :  { %v16486_v60 = vpop.f32.mrb[37].mxu0  ;;  %v16521_v61 = vpop.f32.mrb[41].mxu1 }
0x1b89   :  { %v16487_v62 = vadd.f32 %v16486_v60, %v16485_v21  ;;  %v16522_v1 = vadd.f32 %v16521_v61, %v16520_v22 }
0x1b8b   :  { %v3682_v2 = vadd.f32 %v16487_v62, %v15550_v59 }
0x1b8d   :  { %v3752_v4 = vadd.f32 %v16522_v1, %v3682_v2 }
0x1ba7   :  { %v16555_v5 = vpop.f32.mrb[38].mxu0  ;;  %v16590_v7 = vpop.f32.mrb[42].mxu1 }
0x1ba8   :  { %v16556_v9 = vpop.f32.mrb[39].mxu0  ;;  %v16591_v10 = vpop.f32.mrb[43].mxu1 }
0x1ba9   :  { %v16557_v8 = vadd.f32 %v16556_v9, %v16555_v5  ;;  %v16592_v12 = vadd.f32 %v16591_v10, %v16590_v7  ;;  %v15559_v7 = vld [vmem:[%s19501_s21 + $0x48] sm:$0xff] }
0x1bab   :  { %v3822_v13 = vadd.f32 %v16557_v8, %v3752_v4 }
0x1bad   :  { %v3892_v20 = vadd.f32 %v16592_v12, %v3822_v13 }
0x1baf   :  { %v3895_v23 = vadd.f32 %v3892_v20, %v20141_v28  ;;  %v18409_v28 = vpack.c.bf16 %v15556_v40, %v15555_v39 }
0x1bb1   :  { %v3896_v24 = vsel %vm150_vm1, %v3895_v23, 0.0  ;;  %18410 = vmatpush3.bf16.msra.mxu0 %v18409_v28 }
0x1bb2   :  { %3897 = vadd.xlane.f32.xlu1 %v3896_v24  ;;  %17543 = vmatprep.subr.mxu0 %v19458_v6 }
0x1c3f   :  { %v3898_v26 = vpop.xlane.xlu1 %3897 }
0x1c40   :  { %v3899_v27 = vmul.f32 0.03125, %v3898_v26  ;;  %v15558_v26 = vld [vmem:[%s19501_s21 + $0x40] sm:$0xff] }
0x1c42   :  { %v3900_v11 = vsub.f32 %v3895_v23, %v3899_v27 }
0x1c44   :  { %v3901_v34 = vmul.f32 %v3900_v11, %v3900_v11 }
0x1c46   :  { %v3902_v35 = vsel %vm150_vm1, %v3901_v34, 0.0 }
0x1c47   :  { %3903 = vadd.xlane.f32.xlu1 %v3902_v35 }
0x1cd4   :  { %v3904_v41 = vpop.xlane.xlu1 %3903 }
0x1cd5   :  { %v3905_v42 = vmul.f32 0.03125, %v3904_v41 }
0x1cd7   :  { %v3906_v43 = vadd.f32 1e-05, %v3905_v42 }
0x1cd9   :  { %19228 = vrsqrt.f32 %v3906_v43 }
0x1ce3   :  { %v19229_v45 = vpop.eup %19228 }
0x1ce4   :  { %v3908_v46 = vmul.f32 %v19229_v45, %v3900_v11 }
0x1ce6   :  { %v3913_v18 = vmul.f32 %v3912_v16, %v3908_v46 }
0x1ce8   :  { %v20328_v19 = vadd.f32 %v3917_v47, %v3913_v18 }
0x1cea   :  { %17531 = vmatmul.mubr.msk.f32.vlgmr.msra.gmra.mrb[40].mxu0 %vm150_vm1, %v20328_v19 }
0x1ceb   :  { %17545 = vmatprep.mubr.msk.f32.mxu0 %vm19457_vm0, %v19458_v6 }
0x1dbd   :  { %v4012_v49 = vpop.f32.mrb[40].mxu0 }
0x1dbe   :  { %v20335_v50 = vadd.f32 %v15563_v48, %v4012_v49  ;;  %v17532_v53 = vpop.f32.mrb[41].mxu0 }
0x1dc0   :  { %4183 = vrot.lane.b32.xlu0 %v20335_v50, %s19461_s28  ;;  %4017 = vrot.lane.b32.xlu1 %v20335_v50, %s19460_s5 }
0x1dc4   :  { %4181 = vrot.lane.b32.xlu0 %v20335_v50, %s19459_s0 }
0x1e32   :  { %v4184_v63 = vpop.permute.xlu0 %4183  ;;  %v4018_v0 = vpop.permute.xlu1 %4017 }
0x1e33   :  { %17534 = vmatpush3.xpose.msk.msra.mxu1 %vm227_vm2, %v4018_v0  ;;  %17544 = vmatpush3.xpose.msk.msra.mxu0 %vm227_vm2, %v4184_v63 }
0x1e34   :  { %17538 = vmatprep.subr.mxu1 %v19458_v6  ;;  %17553 = vmatprep.subr.mxu0 %v19458_v6 }
0x1e36   :  { %v4182_v54 = vpop.permute.xlu0 %4181  ;;  %17536 = vmatmul.mubr.msk.f32.vlgmr.msra.gmra.mrb[44].mxu1 %vm227_vm2, %v20335_v50 }
0x1e37   :  { %17546 = vmatmul.mubr.msk.f32.vlgmr.msra.gmra.mrb[42].mxu0 %vm227_vm2, %v4182_v54  ;;  %17540 = vmatprep.mubr.msk.f32.mxu1 %vm19457_vm0, %v19458_v6 }
0x1e38   :  { %17555 = vmatprep.mubr.msk.f32.mxu0 %vm19457_vm0, %v19458_v6  ;;  %17554 = vmatpush3.msra.mxu0 %v15559_v7 }
0x1e39   :  { %17563 = vmatprep.subr.mxu0 %v19458_v6 }
0x1f09   :  { %v4089_v55 = vpop.f32.mrb[44].mxu1 }
0x1f0a   :  { %v4093_v56 = vmul.f32 0.35355338, %v4089_v55  ;;  %v17537_v31 = vpop.f32.mrb[45].mxu1  ;;  %v4255_v57 = vpop.f32.mrb[42].mxu0 }
0x1f0b   :  { %v4259_v14 = vmul.f32 0.35355338, %v4255_v57  ;;  %v17547_v15 = vpop.f32.mrb[43].mxu0  ;;  %v15560_v31 = vld [vmem:[%s19501_s21 + $0x50] sm:$0xff] }
0x1f0c   :  { %v4094_v38 = vsel %vm227_vm2, %v4093_v56, -inf }
0x1f0d   :  { %4095 = vmax.xlane.f32.xlu0 %v4094_v38  ;;  %v4260_v58 = vsel %vm227_vm2, %v4259_v14, -inf }
0x1f0e   :  { %4261 = vmax.xlane.f32.xlu1 %v4260_v58 }
0x1f1f   :  { %4271 = vrot.lane.b32.xlu1 %v20335_v50, %s19462_s1 }
0x1f23   :  { %4495 = vrot.lane.b32.xlu1 %v20335_v50, %s19464_s7 }
0x1f9a   :  { %v4096_v21 = vpop.xlane.xlu0 %4095 }
0x1f9b   :  { %v4097_v22 = vsub.f32 %v4093_v56, %v4096_v21  ;;  %v4262_v59 = vpop.xlane.xlu1 %4261 }
0x1f9c   :  { %v4263_v60 = vsub.f32 %v4259_v14, %v4262_v59 }
0x1f9d   :  { %v4098_v61 = vmul.f32 1.442695, %v4097_v22 }
0x1f9e   :  { %v4264_v62 = vmul.f32 1.442695, %v4263_v60 }
0x1f9f   :  { %19230 = vpow2.f32 %v4098_v61  ;;  %v4272_v20 = vpop.permute.xlu1 %4271 }
0x1fa0   :  { %19232 = vpow2.f32 %v4264_v62 }
0x1fa3   :  { %v4496_v35 = vpop.permute.xlu1 %4495 }
0x1fa9   :  { %v19231_v1 = vpop.eup %19230 }
0x1faa   :  { %v4100_v2 = vsel %vm227_vm2, %v19231_v1, 0.0  ;;  %v19233_v4 = vpop.eup %19232 }
0x1fab   :  { %4101 = vadd.xlane.f32.xlu0 %v4100_v2  ;;  %v4266_v5 = vsel %vm227_vm2, %v19233_v4, 0.0  ;;  %v15561_v2 = vld [vmem:[%s19501_s21 + $0x58] sm:$0xff]  ;;  %s22043_s21 = sld [smem:[#allocation11_spill]] }
0x1faf   :  { %4267 = vadd.xlane.f32.xlu0 %v4266_v5 }
0x1fc5   :  { %4105 = vrot.lane.b32.xlu0 %v20335_v50, %s19463_s2 }
0x1fc9   :  { %4493 = vrot.lane.b32.xlu0 %v20335_v50, %s19465_s10 }
0x2038   :  { %v4102_v9 = vpop.xlane.xlu0 %4101 }
0x2039   :  { %19234 = vrcp.f32 %v4102_v9 }
0x203c   :  { %v4268_v10 = vpop.xlane.xlu0 %4267 }
0x203d   :  { %19236 = vrcp.f32 %v4268_v10 }
0x2040   :  { %v4106_v8 = vpop.permute.xlu0 %4105 }
0x2041   :  { %17539 = vmatpush3.msra.mxu1 %v4106_v8 }
0x2042   :  { %17548 = vmatprep.subr.mxu1 %v19458_v6 }
0x2043   :  { %v19235_v12 = vpop.eup %19234 }
0x2044   :  { %v4104_v13 = vmul.f32 %v19235_v12, %v19231_v1  ;;  %v4494_v37 = vpop.permute.xlu0 %4493 }
0x2046   :  { %17541 = vmatmul.mubr.msk.f32.vlgmr.msra.gmra.mrb[46].mxu1 %vm227_vm2, %v4104_v13  ;;  %v15581_v13 = vld [vmem:[%s19506_s25 + $0x2] ss:$0 sm:$0xff]  ;;  %s22044_s25 = sld [smem:[#allocation18_spill]] }
0x2047   :  { %v19237_v23 = vpop.eup %19236  ;;  %17549 = vmatpush3.msra.mxu1 %v4272_v20  ;;  %17550 = vmatprep.mubr.msk.f32.mxu1 %vm19457_vm0, %v19458_v6 }
0x2048   :  { %v4270_v24 = vmul.f32 %v19237_v23, %v19233_v4  ;;  %17558 = vmatprep.subr.mxu1 %v19458_v6 }
0x204a   :  { %17551 = vmatmul.mubr.msk.f32.vlgmr.msra.gmra.mrb[48].mxu1 %vm227_vm2, %v4270_v24 }
0x204b   :  { %17560 = vmatprep.mubr.msk.f32.mxu1 %vm19457_vm0, %v19458_v6  ;;  %17559 = vmatpush3.msra.mxu1 %v15558_v26 }
0x204c   :  { %17568 = vmatprep.subr.mxu1 %v19458_v6 }
0x2119   :  { %v4177_v27 = vpop.f32.mrb[46].mxu1 }
0x211a   :  { %v17542_v11 = vpop.f32.mrb[47].mxu1  ;;  %17561 = vmatmul.mubr.msk.f32.vlgmr.msra.gmra.mrb[50].mxu1 %vm227_vm2, %v4177_v27 }
0x211b   :  { %17570 = vmatprep.mubr.msk.f32.mxu1 %vm19457_vm0, %v19458_v6 }
0x211d   :  { %v4343_v34 = vpop.f32.mrb[48].mxu1 }
0x211e   :  { %v17552_v36 = vpop.f32.mrb[49].mxu1  ;;  %17556 = vmatmul.mubr.msk.f32.vlgmr.msra.gmra.mrb[44].mxu0 %vm227_vm2, %v4343_v34 }
0x211f   :  { %17564 = vmatpush3.xpose.msk.msra.mxu0 %vm227_vm2, %v4496_v35  ;;  %17565 = vmatprep.mubr.msk.f32.mxu0 %vm19457_vm0, %v19458_v6 }
0x2120   :  { %17573 = vmatprep.subr.mxu0 %v19458_v6 }
0x2122   :  { %17566 = vmatmul.mubr.msk.f32.vlgmr.msra.gmra.mrb[46].mxu0 %vm227_vm2, %v4494_v37 }
0x2123   :  { %17575 = vmatprep.mubr.msk.f32.mxu0 %vm19457_vm0, %v19458_v6  ;;  %17574 = vmatpush3.msra.mxu0 %v15560_v31 }
0x2124   :  { %17583 = vmatprep.subr.mxu0 %v19458_v6 }
0x21ed   :  { %v4489_v44 = vpop.f32.mrb[50].mxu1 }
0x21ee   :  { %v17562_v39 = vpop.f32.mrb[51].mxu1 }
0x21ef   :  { %v15583_v39 = vld [vmem:[%s19511_s29 + $0x208] sm:$0xff] }
0x21f1   :  { %v4416_v40 = vpop.f32.mrb[44].mxu0 }
0x21f2   :  { %v4490_v28 = vadd.f32 %v4489_v44, %v4416_v40  ;;  %v17557_v41 = vpop.f32.mrb[45].mxu0  ;;  %v15591_v40 = vld [vmem:[%s19511_s29 + $0x248] sm:$0xff] }
0x21f3   :  { %v18411_v41 = vpack.c.bf16 %v15591_v40, %v15583_v39  ;;  %v15604_v40 = vld [vmem:[%s19511_s29 + $0x2b0] sm:$0xff] }
0x21f5   :  { %v4567_v42 = vpop.f32.mrb[46].mxu0 }
0x21f6   :  { %v4571_v43 = vmul.f32 0.35355338, %v4567_v42  ;;  %v17567_v16 = vpop.f32.mrb[47].mxu0  ;;  %v15582_v42 = vld [vmem:[%s19511_s29 + $0x200] sm:$0xff] }
0x21f8   :  { %v4572_v45 = vsel %vm227_vm2, %v4571_v43, -inf }
0x21f9   :  { %4573 = vmax.xlane.f32.xlu1 %v4572_v45 }
0x220a   :  { %4735 = vrot.lane.b32.xlu1 %v20335_v50, %s19466_s11 }
0x220e   :  { %4733 = vrot.lane.b32.xlu1 %v20335_v50, %s19467_s15 }
0x2286   :  { %v4574_v46 = vpop.xlane.xlu1 %4573 }
0x2287   :  { %v4575_v47 = vsub.f32 %v4571_v43, %v4574_v46  ;;  %v15590_v43 = vld [vmem:[%s19511_s29 + $0x240] sm:$0xff]  ;;  %v15584_v46 = vld [vmem:[%s19511_s29 + $0x210] sm:$0xff] }
0x2288   :  { %v18413_v45 = vpack.c.bf16 %v15590_v43, %v15582_v42  ;;  %v15663_v42 = vld [vmem:[%s19521_s8 + $0x980] sm:$0xff]  ;;  %v15664_v43 = vld [vmem:[%s19521_s8 + $0x988] sm:$0xff] }
0x2289   :  { %v4576_v18 = vmul.f32 1.442695, %v4575_v47  ;;  %v15592_v47 = vld [vmem:[%s19511_s29 + $0x250] sm:$0xff] }
0x228a   :  { %v4736_v54 = vpop.permute.xlu1 %4735 }
0x228b   :  { %19238 = vpow2.f32 %v4576_v18  ;;  %v18421_v18 = vpack.c.bf16 %v15592_v47, %v15584_v46  ;;  %v15615_v46 = vld [vmem:[%s19521_s8 + $0x800] sm:$0xff]  ;;  %v15616_v47 = vld [vmem:[%s19521_s8 + $0x808] sm:$0xff] }
0x228e   :  { %v4734_v56 = vpop.permute.xlu1 %4733 }
0x2295   :  { %v19239_v48 = vpop.eup %19238 }
0x2296   :  { %v4578_v49 = vsel %vm227_vm2, %v19239_v48, 0.0 }
0x2297   :  { %4579 = vadd.xlane.f32.xlu0 %v4578_v49  ;;  %v15607_v49 = vld [vmem:[%s19511_s29 + $0x2c8] sm:$0xff] }
0x22ad   :  { %4583 = vrot.lane.b32.xlu0 %v20335_v50, %s19468_s16 }
0x2324   :  { %v4580_v53 = vpop.xlane.xlu0 %4579 }
0x2325   :  { %19240 = vrcp.f32 %v4580_v53  ;;  %v15601_v53 = vld [vmem:[%s19511_s29 + $0x298] sm:$0xff] }
0x2328   :  { %v4584_v63 = vpop.permute.xlu0 %4583 }
0x2329   :  { %17569 = vmatpush3.msra.mxu1 %v4584_v63 }
0x232a   :  { %17578 = vmatprep.subr.mxu1 %v19458_v6 }
0x232f   :  { %v19241_v0 = vpop.eup %19240 }
0x2330   :  { %v4582_v55 = vmul.f32 %v19241_v0, %v19239_v48  ;;  %v15599_v48 = vld [vmem:[%s19511_s29 + $0x288] sm:$0xff]  ;;  %v15609_v0 = vld [vmem:[%s19511_s29 + $0x2d8] sm:$0xff] }
0x2331   :  { %v18415_v63 = vpack.c.bf16 %v15607_v49, %v15599_v48  ;;  %v18475_v48 = vpack.c.bf16 %v15664_v43, %v15663_v42  ;;  %v15647_v49 = vld [vmem:[%s19521_s8 + $0x900] sm:$0xff]  ;;  %v15624_v42 = vld [vmem:[%s19521_s8 + $0x848] sm:$0xff] }
0x2332   :  { %17571 = vmatmul.mubr.msk.f32.vlgmr.msra.gmra.mrb[52].mxu1 %vm227_vm2, %v4582_v55  ;;  %v15606_v55 = vld [vmem:[%s19511_s29 + $0x2c0] sm:$0xff] }
0x2333   :  { %17579 = vmatpush3.xpose.msk.msra.mxu1 %vm227_vm2, %v4736_v54  ;;  %17580 = vmatprep.mubr.msk.f32.mxu1 %vm19457_vm0, %v19458_v6  ;;  %v15598_v54 = vld [vmem:[%s19511_s29 + $0x280] sm:$0xff] }
0x2334   :  { %17588 = vmatprep.subr.mxu1 %v19458_v6  ;;  %v18417_v31 = vpack.c.bf16 %v15606_v55, %v15598_v54  ;;  %v15665_v54 = vld [vmem:[%s19521_s8 + $0x990] sm:$0xff]  ;;  %v15666_v55 = vld [vmem:[%s19521_s8 + $0x998] sm:$0xff] }
0x2336   :  { %17581 = vmatmul.mubr.msk.f32.vlgmr.msra.gmra.mrb[54].mxu1 %vm227_vm2, %v4734_v56  ;;  %v18423_v56 = vpack.c.bf16 %v15609_v0, %v15601_v53  ;;  %v15648_v53 = vld [vmem:[%s19521_s8 + $0x908] sm:$0xff]  ;;  %v15634_v0 = vld [vmem:[%s19521_s8 + $0x898] sm:$0xff] }
0x2337   :  { %17590 = vmatprep.mubr.msk.f32.mxu1 %vm19457_vm0, %v19458_v6  ;;  %17589 = vmatpush3.msra.mxu1 %v15561_v2  ;;  %v15551_v2 = vld [vmem:[%s19531_s19 + $0x4] sm:$0x3] }
0x2405   :  { %v4655_v57 = vpop.f32.mrb[52].mxu1 }
0x2406   :  { %v17572_v14 = vpop.f32.mrb[53].mxu1  ;;  %17576 = vmatmul.mubr.msk.f32.vlgmr.msra.gmra.mrb[48].mxu0 %vm227_vm2, %v4655_v57  ;;  %v15600_v57 = vld [vmem:[%s19511_s29 + $0x290] sm:$0xff] }
0x2407   :  { %17585 = vmatprep.mubr.msk.f32.mxu0 %vm19457_vm0, %v19458_v6  ;;  %v15608_v14 = vld [vmem:[%s19511_s29 + $0x2d0] sm:$0xff] }
0x2409   :  { %v4807_v15 = vpop.f32.mrb[54].mxu1 }
0x240a   :  { %v4811_v38 = vmul.f32 0.35355338, %v4807_v15  ;;  %v17582_v58 = vpop.f32.mrb[55].mxu1  ;;  %v15587_v15 = vld [vmem:[%s19511_s29 + $0x228] sm:$0xff] }
0x240b   :  { %v15595_v58 = vld [vmem:[%s19511_s29 + $0x268] sm:$0xff] }
0x240c   :  { %v4812_v21 = vsel %vm227_vm2, %v4811_v38, -inf }
0x240d   :  { %4813 = vmax.xlane.f32.xlu0 %v4812_v21  ;;  %v15589_v21 = vld [vmem:[%s19511_s29 + $0x238] sm:$0xff] }
0x2423   :  { %4823 = vrot.lane.b32.xlu0 %v20335_v50, %s19469_s18 }
0x249a   :  { %v4814_v22 = vpop.xlane.xlu0 %4813 }
0x249b   :  { %v4815_v59 = vsub.f32 %v4811_v38, %v4814_v22  ;;  %v18425_v38 = vpack.c.bf16 %v15608_v14, %v15600_v57  ;;  %v15597_v22 = vld [vmem:[%s19511_s29 + $0x278] sm:$0xff]  ;;  %v15617_v57 = vld [vmem:[%s19521_s8 + $0x810] sm:$0xff] }
0x249c   :  { %v15618_v14 = vld [vmem:[%s19521_s8 + $0x818] sm:$0xff] }
0x249d   :  { %v4816_v60 = vmul.f32 1.442695, %v4815_v59  ;;  %v18427_v59 = vpack.c.bf16 %v15595_v58, %v15587_v15  ;;  %v15649_v58 = vld [vmem:[%s19521_s8 + $0x910] sm:$0xff] }
0x249e   :  { %v4824_v61 = vpop.permute.xlu0 %4823 }
0x249f   :  { %19242 = vpow2.f32 %v4816_v60  ;;  %17584 = vmatpush3.msra.mxu0 %v4824_v61  ;;  %v18435_v60 = vpack.c.bf16 %v15597_v22, %v15589_v21  ;;  %v15650_v21 = vld [vmem:[%s19521_s8 + $0x918] sm:$0xff]  ;;  %v15635_v22 = vld [vmem:[%s19521_s8 + $0x8a0] sm:$0xff] }
0x24a0   :  { %18412 = vmatprep.subr.bf16.mxu0 %v18411_v41  ;;  %v15631_v41 = vld [vmem:[%s19521_s8 + $0x880] sm:$0xff] }
0x24a9   :  { %v19243_v62 = vpop.eup %19242 }
0x24aa   :  { %v4818_v1 = vsel %vm227_vm2, %v19243_v62, 0.0 }
0x24ab   :  { %4819 = vadd.xlane.f32.xlu1 %v4818_v1 }
0x24d9   :  { %v4728_v4 = vpop.f32.mrb[48].mxu0 }
0x24da   :  { %v4732_v5 = vadd.f32 %v4728_v4, %v4490_v28  ;;  %v17577_v7 = vpop.f32.mrb[49].mxu0  ;;  %v15585_v28 = vld [vmem:[%s19511_s29 + $0x218] sm:$0xff]  ;;  %v15552_v4 = vld [vmem:[%s19536_s24 + $0x4] sm:$0x3] }
0x2538   :  { %v4820_v9 = vpop.xlane.xlu1 %4819 }
0x2539   :  { %19244 = vrcp.f32 %v4820_v9  ;;  %v15586_v9 = vld [vmem:[%s19511_s29 + $0x220] sm:$0xff] }
0x2543   :  { %v19245_v10 = vpop.eup %19244 }
0x2544   :  { %v4822_v50 = vmul.f32 %v19245_v10, %v19243_v62  ;;  %v15594_v10 = vld [vmem:[%s19511_s29 + $0x260] sm:$0xff] }
0x2546   :  { %17586 = vmatmul.mubr.msk.f32.vlgmr.msra.gmra.mrb[50].mxu0 %vm227_vm2, %v4822_v50 }
0x2547   :  { %5278 = vmatprep.mubr.f32.mxu0 %v19458_v6  ;;  %18414 = vmatpush1.bf16.msra.mxu0 %v18413_v45 }
0x2548   :  { %18416 = vmatprep.subr.bf16.mxu0 %v18415_v63  ;;  %v15633_v63 = vld [vmem:[%s19521_s8 + $0x890] sm:$0xff] }
0x2549   :  { %v18447_v15 = vpack.c.bf16 %v15634_v0, %v15633_v63  ;;  %v15625_v0 = vld [vmem:[%s19521_s8 + $0x850] sm:$0xff] }
0x254b   :  { %18418 = vmatpush1.bf16.msra.mxu0 %v18417_v31  ;;  %v18477_v31 = vpack.c.bf16 %v15648_v53, %v15647_v49  ;;  %v15674_v49 = vld [vmem:[%s19521_s8 + $0x9d8] sm:$0xff] }
0x254c   :  { %18428 = vmatprep.subr.bf16.mxu0 %v18427_v59  ;;  %v15636_v59 = vld [vmem:[%s19521_s8 + $0x8a8] sm:$0xff] }
0x2619   :  { %v4895_v8 = vpop.f32.mrb[50].mxu0 }
0x261a   :  { %v17587_v12 = vpop.f32.mrb[51].mxu0  ;;  %17591 = vmatmul.mubr.msk.f32.vlgmr.msra.gmra.mrb[56].mxu1 %vm227_vm2, %v4895_v8  ;;  %v5002_v8 = vrot.slane %v15552_v4, %v19775_v17  ;;  %v15620_v4 = vld [vmem:[%s19521_s8 + $0x828] sm:$0xff] }
0x261b   :  { %5349 = vmatprep.mubr.f32.mxu1 %v19458_v6  ;;  %v15588_v12 = vld [vmem:[%s19511_s29 + $0x230] sm:$0xff] }
0x26ed   :  { %v4968_v20 = vpop.f32.mrb[56].mxu1 }
0x26ee   :  { %v4972_v23 = vadd.f32 %v4968_v20, %v4732_v5  ;;  %v17592_v24 = vpop.f32.mrb[57].mxu1  ;;  %v4997_v5 = vrot.slane %v15551_v2, %v19775_v17  ;;  %v15603_v20 = vld [vmem:[%s19511_s29 + $0x2a8] sm:$0xff]  ;;  %v15619_v2 = vld [vmem:[%s19521_s8 + $0x820] sm:$0xff] }
0x26ef   :  { %v15605_v24 = vld [vmem:[%s19511_s29 + $0x2b8] sm:$0xff] }
0x26f0   :  { %v4979_v26 = vadd.f32 %v15581_v13, %v4972_v23  ;;  %v15596_v13 = vld [vmem:[%s19511_s29 + $0x270] sm:$0xff]  ;;  %v15611_v23 = vld [vmem:[%s19511_s29 + $0x2e8] sm:$0xff] }
0x26f2   :  { %v4980_v27 = vadd.f32 %v4979_v26, %v20328_v19  ;;  %v15593_v19 = vld [vmem:[%s19511_s29 + $0x258] sm:$0xff] }
0x26f3   :  { %v18419_v16 = vpack.c.bf16 %v15593_v19, %v15585_v28  ;;  %v15613_v26 = vld [vmem:[%s19511_s29 + $0x2f8] sm:$0xff]  ;;  %v15612_v28 = vld [vmem:[%s19511_s29 + $0x2f0] sm:$0xff]  ;;  %v15632_v19 = vld [vmem:[%s19521_s8 + $0x888] sm:$0xff] }
0x26f4   :  { %v4981_v11 = vsel %vm150_vm1, %v4980_v27, 0.0  ;;  %v18439_v39 = vpack.c.bf16 %v15613_v26, %v15605_v24  ;;  %v18441_v45 = vpack.c.bf16 %v15612_v28, %v15604_v40  ;;  %v15621_v24 = vld [vmem:[%s19521_s8 + $0x830] sm:$0xff]  ;;  %v15622_v26 = vld [vmem:[%s19521_s8 + $0x838] sm:$0xff]  ;;  %v15672_v40 = vld [vmem:[%s19521_s8 + $0x9c8] sm:$0xff] }
0x26f5   :  { %4982 = vadd.xlane.f32.xlu1 %v4981_v11  ;;  %18420 = vmatprep.subr.bf16.mxu1 %v18419_v16  ;;  %v18429_v11 = vpack.c.bf16 %v15594_v10, %v15586_v9  ;;  %v15651_v9 = vld [vmem:[%s19521_s8 + $0x920] sm:$0xff]  ;;  %v15652_v10 = vld [vmem:[%s19521_s8 + $0x928] sm:$0xff]  ;;  %v18457_v28 = vpack.c.bf16 %v15622_v26, %v15621_v24  ;;  %v15661_v24 = vld [vmem:[%s19521_s8 + $0x970] sm:$0xff] }
0x26f6   :  { %18422 = vmatpush1.bf16.msra.mxu1 %v18421_v18  ;;  %v18443_v18 = vpack.c.bf16 %v15632_v19, %v15631_v41  ;;  %v15623_v19 = vld [vmem:[%s19521_s8 + $0x840] sm:$0xff]  ;;  %v15662_v26 = vld [vmem:[%s19521_s8 + $0x978] sm:$0xff] }
0x26f7   :  { %18424 = vmatprep.subr.bf16.mxu1 %v18423_v56  ;;  %v18445_v56 = vpack.c.bf16 %v15616_v47, %v15615_v46  ;;  %v15656_v46 = vld [vmem:[%s19521_s8 + $0x948] sm:$0xff]  ;;  %v15641_v47 = vld [vmem:[%s19521_s8 + $0x8d0] sm:$0xff]  ;;  %v18461_v53 = vpack.c.bf16 %v15624_v42, %v15623_v19 }
0x26fa   :  { %18426 = vmatpush1.bf16.msra.mxu1 %v18425_v38  ;;  %v18479_v38 = vpack.c.bf16 %v15666_v55, %v15665_v54  ;;  %v15626_v54 = vld [vmem:[%s19521_s8 + $0x858] sm:$0xff] }
0x26fb   :  { %18436 = vmatprep.subr.bf16.mxu1 %v18435_v60  ;;  %v15667_v60 = vld [vmem:[%s19521_s8 + $0x9a0] sm:$0xff] }
0x2782   :  { %v4983_v34 = vpop.xlane.xlu1 %4982 }
0x2783   :  { %v4984_v35 = vmul.f32 0.03125, %v4983_v34  ;;  %v18437_v34 = vpack.c.bf16 %v15596_v13, %v15588_v12  ;;  %v15669_v12 = vld [vmem:[%s19521_s8 + $0x9b0] sm:$0xff]  ;;  %v15670_v13 = vld [vmem:[%s19521_s8 + $0x9b8] sm:$0xff] }
0x2785   :  { %v4985_v36 = vsub.f32 %v4980_v27, %v4984_v35  ;;  %v15602_v35 = vld [vmem:[%s19511_s29 + $0x2a0] sm:$0xff] }
0x2787   :  { %v4986_v37 = vmul.f32 %v4985_v36, %v4985_v36 }
0x2789   :  { %v4987_v44 = vsel %vm150_vm1, %v4986_v37, 0.0  ;;  %v15610_v37 = vld [vmem:[%s19511_s29 + $0x2e0] sm:$0xff]  ;;  %s22045_s29 = sld [smem:[#allocation19_spill]] }
0x278a   :  { %4988 = vadd.xlane.f32.xlu1 %v4987_v44  ;;  %v18431_v44 = vpack.c.bf16 %v15611_v23, %v15603_v20  ;;  %v18433_v16 = vpack.c.bf16 %v15610_v37, %v15602_v35  ;;  %v18453_v20 = vpack.c.bf16 %v15620_v4, %v15619_v2  ;;  %v18485_v23 = vpack.c.bf16 %v15652_v10, %v15651_v9  ;;  %v15654_v35 = vld [vmem:[%s19521_s8 + $0x938] sm:$0xff]  ;;  %v15639_v37 = vld [vmem:[%s19521_s8 + $0x8c0] sm:$0xff]  ;;  %v15660_v2 = vld [vmem:[%s19521_s8 + $0x968] sm:$0xff] }
0x278b   :  { %v15646_v9 = vld [vmem:[%s19521_s8 + $0x8f8] sm:$0xff]  ;;  %v15677_v10 = vld [vmem:[%s19521_s8 + $0x9f0] sm:$0xff] }
0x2817   :  { %v4989_v61 = vpop.xlane.xlu1 %4988 }
0x2818   :  { %v4990_v62 = vmul.f32 0.03125, %v4989_v61  ;;  %v15668_v61 = vld [vmem:[%s19521_s8 + $0x9a8] sm:$0xff] }
0x281a   :  { %v4991_v1 = vadd.f32 1e-05, %v4990_v62  ;;  %v18449_v62 = vpack.c.bf16 %v15618_v14, %v15617_v57  ;;  %v15658_v57 = vld [vmem:[%s19521_s8 + $0x958] sm:$0xff]  ;;  %v15643_v14 = vld [vmem:[%s19521_s8 + $0x8e0] sm:$0xff] }
0x281c   :  { %19246 = vrsqrt.f32 %v4991_v1  ;;  %v18481_v1 = vpack.c.bf16 %v15650_v21, %v15649_v58  ;;  %v15676_v58 = vld [vmem:[%s19521_s8 + $0x9e8] sm:$0xff]  ;;  %v18465_v21 = vpack.c.bf16 %v15626_v54, %v15625_v0  ;;  %v15697_v0 = vld [vmem:[%s19521_s8 + $0xa90] sm:$0xff] }
0x2826   :  { %v19247_v7 = vpop.eup %19246 }
0x2827   :  { %v4993_v50 = vmul.f32 %v19247_v7, %v4985_v36  ;;  %v18483_v7 = vpack.c.bf16 %v15668_v61, %v15667_v60 }
0x2829   :  { %v4998_v27 = vmul.f32 %v4997_v5, %v4993_v50  ;;  %v18451_v5 = vpack.c.bf16 %v15636_v59, %v15635_v22  ;;  %v15637_v50 = vld [vmem:[%s19521_s8 + $0x8b0] sm:$0xff]  ;;  %v15627_v59 = vld [vmem:[%s19521_s8 + $0x860] sm:$0xff] }
0x282b   :  { %v20458_v36 = vadd.f32 %v5002_v8, %v4998_v27  ;;  %v15638_v8 = vld [vmem:[%s19521_s8 + $0x8b8] sm:$0xff] }
0x282c   :  { %v18455_v27 = vpack.c.bf16 %v15638_v8, %v15637_v50  ;;  %v15678_v8 = vld [vmem:[%s19521_s8 + $0x9f8] sm:$0xff] }
0x282d   :  { %15744 = vmatmul.mubr.msk.f32.vlgmr.msra.gmra.mrb[52].mxu0 %vm150_vm1, %v20458_v36  ;;  %15745 = vmatmul.mubr.msk.f32.vlgmr.msra.gmra.mrb[58].mxu1 %vm150_vm1, %v20458_v36 }
0x282e   :  { %18430 = vmatpush1.bf16.msra.mxu0 %v18429_v11  ;;  %18438 = vmatpush1.bf16.msra.mxu1 %v18437_v34  ;;  %v18487_v11 = vpack.c.bf16 %v15670_v13, %v15669_v12  ;;  %v15653_v34 = vld [vmem:[%s19521_s8 + $0x930] sm:$0xff]  ;;  %v15630_v13 = vld [vmem:[%s19521_s8 + $0x878] sm:$0xff] }
0x282f   :  { %18432 = vmatprep.subr.bf16.mxu0 %v18431_v44  ;;  %18440 = vmatprep.subr.bf16.mxu1 %v18439_v39  ;;  %v15640_v44 = vld [vmem:[%s19521_s8 + $0x8c8] sm:$0xff]  ;;  %v15671_v39 = vld [vmem:[%s19521_s8 + $0x9c0] sm:$0xff]  ;;  %v18489_v41 = vpack.c.bf16 %v15654_v35, %v15653_v34  ;;  %v15629_v12 = vld [vmem:[%s19521_s8 + $0x870] sm:$0xff] }
0x2830   :  { %5420 = vmatprep.mubr.f32.mxu0 %v19458_v6  ;;  %5491 = vmatprep.mubr.f32.mxu1 %v19458_v6  ;;  %v18459_v43 = vpack.c.bf16 %v15640_v44, %v15639_v37  ;;  %v15696_v34 = vld [vmem:[%s19521_s8 + $0xa88] sm:$0xff]  ;;  %v15727_v35 = vld [vmem:[%s19521_s8 + $0xb80] sm:$0xff] }
0x2831   :  { %v15728_v44 = vld [vmem:[%s19521_s8 + $0xb88] sm:$0xff] }
0x2832   :  { %18434 = vmatpush1.bf16.msra.mxu0 %v18433_v16  ;;  %18442 = vmatpush1.bf16.msra.mxu1 %v18441_v45  ;;  %v18491_v16 = vpack.c.bf16 %v15672_v40, %v15671_v39  ;;  %v15655_v45 = vld [vmem:[%s19521_s8 + $0x940] sm:$0xff]  ;;  %v18539_v39 = vpack.c.bf16 %v15728_v44, %v15727_v35  ;;  %v20541_v40 = vld [vmem:[%s19516_s3 + $0x10] sm:$0xff]  ;;  %s22046_s3 = sld [smem:[#allocation12_spill]] }
0x2833   :  { %18444 = vmatprep.subr.bf16.mxu0 %v18443_v18  ;;  %18476 = vmatprep.subr.bf16.mxu1 %v18475_v48  ;;  %v15642_v18 = vld [vmem:[%s19521_s8 + $0x8d8] sm:$0xff]  ;;  %v15673_v48 = vld [vmem:[%s19521_s8 + $0x9d0] sm:$0xff]  ;;  %v18493_v63 = vpack.c.bf16 %v15656_v46, %v15655_v45  ;;  %v5178_v19 = vrot.slane %v20541_v40, %v19886_v32  ;;  %v5186_v42 = vrot.slane %v20541_v40, %v19889_v33  ;;  %v15679_v45 = vld [vmem:[%s19521_s8 + $0xa00] sm:$0xff] }
0x2834   :  { %v18463_v55 = vpack.c.bf16 %v15642_v18, %v15641_v47  ;;  %v15680_v46 = vld [vmem:[%s19521_s8 + $0xa08] sm:$0xff]  ;;  %v15715_v35 = vld [vmem:[%s19521_s8 + $0xb20] sm:$0xff]  ;;  %v15701_v44 = vld [vmem:[%s19521_s8 + $0xab0] sm:$0xff] }
0x2835   :  { %15746 = vmatmul.mubr.msk.f32.vlgmr.msra.gmra.mrb[54].mxu0 %vm150_vm1, %v20458_v36  ;;  %15747 = vmatmul.mubr.msk.f32.vlgmr.msra.gmra.mrb[60].mxu1 %vm150_vm1, %v20458_v36 }
0x2836   :  { %18446 = vmatpush3.bf16.msra.mxu0 %v18445_v56  ;;  %18478 = vmatpush3.bf16.msra.mxu1 %v18477_v31  ;;  %v18495_v56 = vpack.c.bf16 %v15674_v49, %v15673_v48  ;;  %v15657_v31 = vld [vmem:[%s19521_s8 + $0x950] sm:$0xff] }
0x2837   :  { %18448 = vmatprep.subr.bf16.mxu0 %v18447_v15  ;;  %18480 = vmatprep.subr.bf16.mxu1 %v18479_v38  ;;  %v15644_v15 = vld [vmem:[%s19521_s8 + $0x8e8] sm:$0xff]  ;;  %v15675_v38 = vld [vmem:[%s19521_s8 + $0x9e0] sm:$0xff]  ;;  %v18497_v22 = vpack.c.bf16 %v15658_v57, %v15657_v31  ;;  %v15729_v31 = vld [vmem:[%s19521_s8 + $0xb90] sm:$0xff] }
0x2838   :  { %v18467_v60 = vpack.c.bf16 %v15644_v15, %v15643_v14  ;;  %v18499_v61 = vpack.c.bf16 %v15676_v58, %v15675_v38  ;;  %v15730_v57 = vld [vmem:[%s19521_s8 + $0xb98] sm:$0xff]  ;;  %v18509_v38 = vpack.c.bf16 %v15680_v46, %v15679_v45 }
0x283a   :  { %18450 = vmatpush3.bf16.msra.mxu0 %v18449_v62  ;;  %18482 = vmatpush3.bf16.msra.mxu1 %v18481_v1  ;;  %v15628_v62 = vld [vmem:[%s19521_s8 + $0x868] sm:$0xff]  ;;  %v15659_v1 = vld [vmem:[%s19521_s8 + $0x960] sm:$0xff] }
0x283b   :  { %18452 = vmatprep.subr.bf16.mxu0 %v18451_v5  ;;  %18484 = vmatprep.subr.bf16.mxu1 %v18483_v7  ;;  %v18469_v4 = vpack.c.bf16 %v15628_v62, %v15627_v59  ;;  %v18501_v5 = vpack.c.bf16 %v15660_v2, %v15659_v1  ;;  %v15645_v7 = vld [vmem:[%s19521_s8 + $0x8f0] sm:$0xff]  ;;  %v18543_v62 = vpack.c.bf16 %v15730_v57, %v15729_v31  ;;  %v15714_v2 = vld [vmem:[%s19521_s8 + $0xb18] sm:$0xff] }
0x283c   :  { %v18471_v50 = vpack.c.bf16 %v15646_v9, %v15645_v7  ;;  %v15713_v1 = vld [vmem:[%s19521_s8 + $0xb10] sm:$0xff]  ;;  %v5202_v7 = vrot.slane %v20541_v40, %v19908_v52  ;;  %v15700_v9 = vld [vmem:[%s19521_s8 + $0xaa8] sm:$0xff] }
0x283e   :  { %18454 = vmatpush3.bf16.msra.mxu0 %v18453_v20  ;;  %18486 = vmatpush3.bf16.msra.mxu1 %v18485_v23  ;;  %v18503_v20 = vpack.c.bf16 %v15678_v8, %v15677_v10  ;;  %v18473_v23 = vpack.c.bf16 %v15630_v13, %v15629_v12  ;;  %v15731_v10 = vld [vmem:[%s19521_s8 + $0xba0] sm:$0xff] }
0x283f   :  { %18456 = vmatprep.subr.bf16.mxu0 %v18455_v27  ;;  %18488 = vmatprep.subr.bf16.mxu1 %v18487_v11  ;;  %v18505_v27 = vpack.c.bf16 %v15662_v26, %v15661_v24  ;;  %v15695_v11 = vld [vmem:[%s19521_s8 + $0xa80] sm:$0xff]  ;;  %v15684_v24 = vld [vmem:[%s19521_s8 + $0xa28] sm:$0xff] }
0x2840   :  { %v18507_v37 = vpack.c.bf16 %v15696_v34, %v15695_v11 }
0x2842   :  { %18458 = vmatpush3.bf16.msra.mxu0 %v18457_v28  ;;  %18490 = vmatpush3.bf16.msra.mxu1 %v18489_v41  ;;  %v5174_v28 = vrot.slane %v20541_v40, %v19775_v17  ;;  %v5182_v41 = vrot.slane %v20541_v40, %v19880_v30 }
0x2843   :  { %18460 = vmatprep.subr.bf16.mxu0 %v18459_v43  ;;  %18492 = vmatprep.subr.bf16.mxu1 %v18491_v16 }
0x2846   :  { %18462 = vmatpush3.bf16.msra.mxu0 %v18461_v53  ;;  %18494 = vmatpush3.bf16.msra.mxu1 %v18493_v63  ;;  %v15711_v53 = vld [vmem:[%s19521_s8 + $0xb00] sm:$0xff]  ;;  %v15712_v63 = vld [vmem:[%s19521_s8 + $0xb08] sm:$0xff] }
0x2847   :  { %18464 = vmatprep.subr.bf16.mxu0 %v18463_v55  ;;  %18496 = vmatprep.subr.bf16.mxu1 %v18495_v56  ;;  %v15698_v56 = vld [vmem:[%s19521_s8 + $0xa98] sm:$0xff]  ;;  %v18541_v58 = vpack.c.bf16 %v15712_v63, %v15711_v53  ;;  %v15717_v53 = vld [vmem:[%s19521_s8 + $0xb30] sm:$0xff] }
0x2848   :  { %v15718_v63 = vld [vmem:[%s19521_s8 + $0xb38] sm:$0xff] }
0x2849   :  { %v18553_v57 = vpack.c.bf16 %v15718_v63, %v15717_v53  ;;  %v15725_v53 = vld [vmem:[%s19521_s8 + $0xb70] sm:$0xff]  ;;  %v15726_v63 = vld [vmem:[%s19521_s8 + $0xb78] sm:$0xff] }
0x284a   :  { %18466 = vmatpush3.bf16.msra.mxu0 %v18465_v21  ;;  %18498 = vmatpush3.bf16.msra.mxu1 %v18497_v22  ;;  %v15681_v21 = vld [vmem:[%s19521_s8 + $0xa10] sm:$0xff]  ;;  %v15682_v22 = vld [vmem:[%s19521_s8 + $0xa18] sm:$0xff] }
0x284b   :  { %18468 = vmatprep.subr.bf16.mxu0 %v18467_v60  ;;  %18500 = vmatprep.subr.bf16.mxu1 %v18499_v61  ;;  %v18511_v61 = vpack.c.bf16 %v15698_v56, %v15697_v0  ;;  %v18513_v13 = vpack.c.bf16 %v15682_v22, %v15681_v21  ;;  %v15703_v0 = vld [vmem:[%s19521_s8 + $0xac0] sm:$0xff]  ;;  %v15736_v56 = vld [vmem:[%s19521_s8 + $0xbc8] sm:$0xff] }
0x284c   :  { %v15719_v21 = vld [vmem:[%s19521_s8 + $0xb40] sm:$0xff]  ;;  %v15720_v22 = vld [vmem:[%s19521_s8 + $0xb48] sm:$0xff] }
0x284e   :  { %18470 = vmatpush3.bf16.msra.mxu0 %v18469_v4  ;;  %18502 = vmatpush3.bf16.msra.mxu1 %v18501_v5  ;;  %v15699_v4 = vld [vmem:[%s19521_s8 + $0xaa0] sm:$0xff]  ;;  %v5194_v5 = vrot.slane %v20541_v40, %v19905_v51 }
0x284f   :  { %18472 = vmatprep.subr.bf16.mxu0 %v18471_v50  ;;  %18504 = vmatprep.subr.bf16.mxu1 %v18503_v20  ;;  %v15732_v50 = vld [vmem:[%s19521_s8 + $0xba8] sm:$0xff]  ;;  %v18545_v20 = vpack.c.bf16 %v15714_v2, %v15713_v1  ;;  %v18515_v11 = vpack.c.bf16 %v15700_v9, %v15699_v4  ;;  %v18557_v2 = vpack.c.bf16 %v15720_v22, %v15719_v21  ;;  %v15689_v4 = vld [vmem:[%s19521_s8 + $0xa50] sm:$0xff] }
0x2850   :  { %v18547_v34 = vpack.c.bf16 %v15732_v50, %v15731_v10  ;;  %v15721_v10 = vld [vmem:[%s19521_s8 + $0xb50] sm:$0xff]  ;;  %v15722_v50 = vld [vmem:[%s19521_s8 + $0xb58] sm:$0xff] }
0x2852   :  { %18474 = vmatpush3.bf16.msra.mxu0 %v18473_v23  ;;  %18506 = vmatpush3.bf16.msra.mxu1 %v18505_v27  ;;  %v15683_v23 = vld [vmem:[%s19521_s8 + $0xa20] sm:$0xff] }
0x2853   :  { %18508 = vmatprep.subr.bf16.mxu0 %v18507_v37  ;;  %18540 = vmatprep.subr.bf16.mxu1 %v18539_v39  ;;  %v15716_v37 = vld [vmem:[%s19521_s8 + $0xb28] sm:$0xff]  ;;  %v18517_v45 = vpack.c.bf16 %v15684_v24, %v15683_v23  ;;  %v15739_v23 = vld [vmem:[%s19521_s8 + $0xbe0] sm:$0xff] }
0x2854   :  { %v18549_v46 = vpack.c.bf16 %v15716_v37, %v15715_v35  ;;  %v15740_v24 = vld [vmem:[%s19521_s8 + $0xbe8] sm:$0xff] }
0x2855   :  { %v18563_v37 = vpack.c.bf16 %v15740_v24, %v15739_v23  ;;  %v15749_v24 = vld [vmem:[%s19546_s6] ss:$0 sm:$0xff] }
0x2900   :  { %v5280_v43 = vpop.f32.mrb[52].mxu0  ;;  %v5351_v16 = vpop.f32.mrb[58].mxu1 }
0x2901   :  { %v5281_v47 = vadd.f32 %v5280_v43, %v5174_v28  ;;  %v5352_v18 = vadd.f32 %v5351_v16, %v5182_v41  ;;  %v5282_v48 = vpop.f32.mrb[53].mxu0  ;;  %v5353_v49 = vpop.f32.mrb[59].mxu1  ;;  %v15702_v41 = vld [vmem:[%s19521_s8 + $0xab8] sm:$0xff] }
0x2902   :  { %v5283_v54 = vadd.f32 %v5282_v48, %v5178_v19  ;;  %v5354_v55 = vadd.f32 %v5353_v49, %v5186_v42  ;;  %v15733_v19 = vld [vmem:[%s19521_s8 + $0xbb0] sm:$0xff]  ;;  %v15734_v42 = vld [vmem:[%s19521_s8 + $0xbb8] sm:$0xff]  ;;  %v18519_v48 = vpack.c.bf16 %v15702_v41, %v15701_v44  ;;  %v15723_v44 = vld [vmem:[%s19521_s8 + $0xb60] sm:$0xff] }
0x2903   :  { %v5498_v59 = vmax.f32 %v5281_v47, 0.0  ;;  %v5500_v60 = vmax.f32 %v5352_v18, 0.0  ;;  %v15685_v47 = vld [vmem:[%s19521_s8 + $0xa30] sm:$0xff]  ;;  %v15686_v18 = vld [vmem:[%s19521_s8 + $0xa38] sm:$0xff]  ;;  %v18551_v49 = vpack.c.bf16 %v15734_v42, %v15733_v19 }
0x2904   :  { %v5499_v14 = vmax.f32 %v5283_v54, 0.0  ;;  %v5501_v15 = vmax.f32 %v5354_v55, 0.0  ;;  %v15704_v54 = vld [vmem:[%s19521_s8 + $0xac8] sm:$0xff]  ;;  %v15735_v55 = vld [vmem:[%s19521_s8 + $0xbc0] sm:$0xff]  ;;  %v18521_v31 = vpack.c.bf16 %v15686_v18, %v15685_v47  ;;  %v15710_v41 = vld [vmem:[%s19521_s8 + $0xaf8] sm:$0xff]  ;;  %v5198_v47 = vrot.slane %v20541_v40, %v19967_v29 }
0x2905   :  { %v15741_v19 = vld [vmem:[%s19521_s8 + $0xbf0] sm:$0xff]  ;;  %v15742_v42 = vld [vmem:[%s19521_s8 + $0xbf8] sm:$0xff] }
0x2906   :  { %5576 = vmatprep.mubr.f32.mxu0 %v5499_v14  ;;  %5646 = vmatprep.mubr.f32.mxu1 %v5501_v15  ;;  %v15687_v14 = vld [vmem:[%s19521_s8 + $0xa40] sm:$0xff]  ;;  %v15688_v15 = vld [vmem:[%s19521_s8 + $0xa48] sm:$0xff] }
0x2907   :  { %5577 = vmatmul.mubr.f32.vlgmr.msra.gmra.mrb[56].mxu0 %v5498_v59  ;;  %5647 = vmatmul.mubr.f32.vlgmr.msra.gmra.mrb[62].mxu1 %v5500_v60  ;;  %v15705_v59 = vld [vmem:[%s19521_s8 + $0xad0] sm:$0xff]  ;;  %v15706_v60 = vld [vmem:[%s19521_s8 + $0xad8] sm:$0xff]  ;;  %v18525_v1 = vpack.c.bf16 %v15688_v15, %v15687_v14 }
0x2908   :  { %v20571_v8 = vpop.f32.mrb[54].mxu0  ;;  %v20573_v12 = vpop.f32.mrb[60].mxu1  ;;  %18510 = vmatpush3.bf16.msra.mxu0 %v18509_v38  ;;  %18542 = vmatpush3.bf16.msra.mxu1 %v18541_v58  ;;  %v18523_v38 = vpack.c.bf16 %v15704_v54, %v15703_v0  ;;  %v18555_v58 = vpack.c.bf16 %v15736_v56, %v15735_v55  ;;  %v18569_v54 = vpack.c.bf16 %v15726_v63, %v15725_v53 }
0x2909   :  { %v5424_v26 = vpop.f32.mrb[55].mxu0  ;;  %v5495_v27 = vpop.f32.mrb[61].mxu1  ;;  %18512 = vmatprep.subr.bf16.mxu0 %v18511_v61  ;;  %18544 = vmatprep.subr.bf16.mxu1 %v18543_v62  ;;  %v15737_v61 = vld [vmem:[%s19521_s8 + $0xbd0] sm:$0xff]  ;;  %v15738_v62 = vld [vmem:[%s19521_s8 + $0xbd8] sm:$0xff]  ;;  %v5494_v56 = vadd.f32 %v20573_v12, %v5198_v47  ;;  %v20637_v12 = vld [vmem:[%s19486_s9] sm:$0xff]  ;;  %s22040_s9 = sld [smem:[#allocation8_spill]] }
0x290a   :  { %v5425_v39 = vadd.f32 %v5424_v26, %v5194_v5  ;;  %v5496_v28 = vadd.f32 %v5495_v27, %v5202_v7  ;;  %v15690_v5 = vld [vmem:[%s19521_s8 + $0xa58] sm:$0xff]  ;;  %v18527_v7 = vpack.c.bf16 %v15706_v60, %v15705_v59  ;;  %v18559_v9 = vpack.c.bf16 %v15738_v62, %v15737_v61  ;;  %v15748_v59 = vld [vmem:[%s19526_s14 + $0x2] ss:$0 sm:$0xff]  ;;  %s22048_s14 = sld [smem:[#allocation14_spill]] }
0x290b   :  { %v18529_v26 = vpack.c.bf16 %v15690_v5, %v15689_v4  ;;  %v18561_v27 = vpack.c.bf16 %v15722_v50, %v15721_v10  ;;  %v5504_v15 = vmax.f32 %v5494_v56, 0.0 }
0x290c   :  { %v5503_v43 = vmax.f32 %v5425_v39, 0.0  ;;  %v5505_v16 = vmax.f32 %v5496_v28, 0.0  ;;  %18514 = vmatpush3.bf16.msra.mxu0 %v18513_v13  ;;  %18546 = vmatpush3.bf16.msra.mxu1 %v18545_v20  ;;  %v15707_v13 = vld [vmem:[%s19521_s8 + $0xae0] sm:$0xff]  ;;  %v15708_v20 = vld [vmem:[%s19521_s8 + $0xae8] sm:$0xff]  ;;  %v15709_v28 = vld [vmem:[%s19521_s8 + $0xaf0] sm:$0xff] }
0x290d   :  { %18516 = vmatprep.subr.bf16.mxu0 %v18515_v11  ;;  %18548 = vmatprep.subr.bf16.mxu1 %v18547_v34  ;;  %v15691_v11 = vld [vmem:[%s19521_s8 + $0xa60] sm:$0xff]  ;;  %v15692_v34 = vld [vmem:[%s19521_s8 + $0xa68] sm:$0xff]  ;;  %v18531_v35 = vpack.c.bf16 %v15708_v20, %v15707_v13  ;;  %v18535_v18 = vpack.c.bf16 %v15710_v41, %v15709_v28 }
0x290e   :  { %5716 = vmatprep.mubr.f32.mxu0 %v5503_v43  ;;  %5786 = vmatprep.mubr.f32.mxu1 %v5505_v16  ;;  %v15724_v39 = vld [vmem:[%s19521_s8 + $0xb68] sm:$0xff]  ;;  %v5190_v43 = vrot.slane %v20541_v40, %v19962_v25  ;;  %v18533_v16 = vpack.c.bf16 %v15692_v34, %v15691_v11  ;;  %v5819_v40 = vld [vmem:[%s19541_s30] sm:$0xff] }
0x290f   :  { %v5825_v56 = vld [vmem:[%s22040_s9 + $0x8] sm:$0xff] }
0x2910   :  { %18518 = vmatpush3.bf16.msra.mxu0 %v18517_v45  ;;  %18550 = vmatpush3.bf16.msra.mxu1 %v18549_v46  ;;  %v18565_v45 = vpack.c.bf16 %v15724_v39, %v15723_v44  ;;  %v15693_v46 = vld [vmem:[%s19521_s8 + $0xa70] sm:$0xff]  ;;  %v5423_v55 = vadd.f32 %v20571_v8, %v5190_v43 }
0x2911   :  { %18520 = vmatprep.subr.bf16.mxu0 %v18519_v48  ;;  %18552 = vmatprep.subr.bf16.mxu1 %v18551_v49  ;;  %v18567_v48 = vpack.c.bf16 %v15742_v42, %v15741_v19  ;;  %v15694_v49 = vld [vmem:[%s19521_s8 + $0xa78] sm:$0xff]  ;;  %s22047_s8 = sld [smem:[#allocation13_spill]] }
0x2912   :  { %v18537_v0 = vpack.c.bf16 %v15694_v49, %v15693_v46  ;;  %v5502_v14 = vmax.f32 %v5423_v55, 0.0 }
0x2914   :  { %18522 = vmatpush3.bf16.msra.mxu0 %v18521_v31  ;;  %18554 = vmatpush3.bf16.msra.mxu1 %v18553_v57  ;;  %v5820_v31 = vld [vmem:[%s19541_s30 + $0x8] sm:$0xff] }
0x2915   :  { %18524 = vmatprep.subr.bf16.mxu0 %v18523_v38  ;;  %18556 = vmatprep.subr.bf16.mxu1 %v18555_v58  ;;  %v18572_v57 = vpack.c.bf16 %v5820_v31, %v5819_v40  ;;  %v5821_v38 = vld [vmem:[%s19541_s30 + $0x10] sm:$0xff]  ;;  %v5822_v58 = vld [vmem:[%s19541_s30 + $0x18] sm:$0xff] }
0x2916   :  { %v18575_v8 = vpack.c.bf16 %v5822_v58, %v5821_v38 }
0x2918   :  { %18526 = vmatpush3.bf16.msra.mxu0 %v18525_v1  ;;  %18558 = vmatpush3.bf16.msra.mxu1 %v18557_v2 }
0x2919   :  { %18528 = vmatprep.subr.bf16.mxu0 %v18527_v7  ;;  %18560 = vmatprep.subr.bf16.mxu1 %v18559_v9 }
0x291c   :  { %18530 = vmatpush3.bf16.msra.mxu0 %v18529_v26  ;;  %18562 = vmatpush3.bf16.msra.mxu1 %v18561_v27 }
0x291d   :  { %18532 = vmatprep.subr.bf16.mxu0 %v18531_v35  ;;  %18564 = vmatprep.subr.bf16.mxu1 %v18563_v37 }
0x2920   :  { %18534 = vmatpush3.bf16.msra.mxu0 %v18533_v16  ;;  %18566 = vmatpush3.bf16.msra.mxu1 %v18565_v45 }
0x2921   :  { %18536 = vmatprep.subr.bf16.mxu0 %v18535_v18  ;;  %18568 = vmatprep.subr.bf16.mxu1 %v18567_v48 }
0x2924   :  { %18538 = vmatpush3.bf16.msra.mxu0 %v18537_v0  ;;  %18570 = vmatpush3.bf16.msra.mxu1 %v18569_v54 }
0x2925   :  { %18571 = vmatprep.subr.bf16.mxu0 %v19456_v3  ;;  %17604 = vmatprep.subr.mxu1 %v19458_v6 }
0x2927   :  { %5717 = vmatmul.mubr.f32.vlgmr.msra.gmra.mrb[58].mxu0 %v5502_v14  ;;  %5787 = vmatmul.mubr.f32.vlgmr.msra.gmra.mrb[64].mxu1 %v5504_v15 }
0x2928   :  { %18573 = vmatpush3.bf16.msra.mxu0 %v18572_v57  ;;  %17601 = vmatprep.mubr.msk.f32.mxu0 %vm19457_vm0, %v19458_v6 }
0x2929   :  { %18574 = vmatprep.subr.bf16.mxu0 %v19456_v3  ;;  %17606 = vmatprep.mubr.msk.f32.mxu1 %vm19457_vm0, %v19458_v6 }
0x292c   :  { %18576 = vmatpush3.bf16.msra.mxu0 %v18575_v8  ;;  %v5824_v8 = vld [vmem:[%s22040_s9] sm:$0xff] }
0x292d   :  { %17614 = vmatprep.subr.mxu0 %v19458_v6 }
0x292f   :  { %17602 = vmatmul.mubr.msk.f32.vlgmr.msra.gmra.mrb[60].mxu0 %vm150_vm1, %v20637_v12 }
0x2930   :  { %17616 = vmatprep.mubr.msk.f32.mxu0 %vm19457_vm0, %v19458_v6 }
0x29da   :  { %v16654_v21 = vpop.f32.mrb[56].mxu0  ;;  %v16689_v22 = vpop.f32.mrb[62].mxu1 }
0x29db   :  { %v16655_v60 = vpop.f32.mrb[57].mxu0  ;;  %v16690_v61 = vpop.f32.mrb[63].mxu1 }
0x29dc   :  { %v16656_v62 = vadd.f32 %v16655_v60, %v16654_v21  ;;  %v16691_v1 = vadd.f32 %v16690_v61, %v16689_v22 }
0x29de   :  { %v5579_v2 = vadd.f32 %v16656_v62, %v15748_v59 }
0x29e0   :  { %v5649_v4 = vadd.f32 %v16691_v1, %v5579_v2 }
0x29fa   :  { %v16724_v5 = vpop.f32.mrb[58].mxu0  ;;  %v16759_v7 = vpop.f32.mrb[64].mxu1 }
0x29fb   :  { %v16725_v9 = vpop.f32.mrb[59].mxu0  ;;  %v16760_v10 = vpop.f32.mrb[65].mxu1 }
0x29fc   :  { %v16726_v50 = vadd.f32 %v16725_v9, %v16724_v5  ;;  %v16761_v13 = vadd.f32 %v16760_v10, %v16759_v7 }
0x29fe   :  { %v5719_v20 = vadd.f32 %v16726_v50, %v5649_v4 }
0x2a00   :  { %v20645_v23 = vadd.f32 %v16761_v13, %v5719_v20 }
0x2a02   :  { %v5904_v26 = vpop.f32.mrb[60].mxu0 }
0x2a03   :  { %v20648_v27 = vadd.f32 %v15749_v24, %v5904_v26  ;;  %v17603_v11 = vpop.f32.mrb[61].mxu0 }
0x2a05   :  { %6075 = vrot.lane.b32.xlu0 %v20648_v27, %s19461_s28  ;;  %5909 = vrot.lane.b32.xlu1 %v20648_v27, %s19460_s5 }
0x2a09   :  { %6073 = vrot.lane.b32.xlu0 %v20648_v27, %s19459_s0 }
0x2a77   :  { %v6076_v34 = vpop.permute.xlu0 %6075  ;;  %v5910_v35 = vpop.permute.xlu1 %5909 }
0x2a78   :  { %17605 = vmatpush3.xpose.msk.msra.mxu1 %vm227_vm2, %v5910_v35  ;;  %17615 = vmatpush3.xpose.msk.msra.mxu0 %vm227_vm2, %v6076_v34 }
0x2a79   :  { %17609 = vmatprep.subr.mxu1 %v19458_v6  ;;  %17624 = vmatprep.subr.mxu0 %v19458_v6 }
0x2a7b   :  { %v6074_v37 = vpop.permute.xlu0 %6073  ;;  %17607 = vmatmul.mubr.msk.f32.vlgmr.msra.gmra.mrb[66].mxu1 %vm227_vm2, %v20648_v27 }
0x2a7c   :  { %17617 = vmatmul.mubr.msk.f32.vlgmr.msra.gmra.mrb[62].mxu0 %vm227_vm2, %v6074_v37  ;;  %17611 = vmatprep.mubr.msk.f32.mxu1 %vm19457_vm0, %v19458_v6 }
0x2a7d   :  { %17626 = vmatprep.mubr.msk.f32.mxu0 %vm19457_vm0, %v19458_v6  ;;  %17625 = vmatpush3.msra.mxu0 %v5825_v56 }
0x2a7e   :  { %17634 = vmatprep.subr.mxu0 %v19458_v6 }
0x2b4e   :  { %v5981_v44 = vpop.f32.mrb[66].mxu1 }
0x2b4f   :  { %v5985_v39 = vmul.f32 0.35355338, %v5981_v44  ;;  %v17608_v28 = vpop.f32.mrb[67].mxu1  ;;  %v6147_v41 = vpop.f32.mrb[62].mxu0 }
0x2b50   :  { %v6151_v19 = vmul.f32 0.35355338, %v6147_v41  ;;  %v17618_v42 = vpop.f32.mrb[63].mxu0 }
0x2b51   :  { %v5986_v43 = vsel %vm227_vm2, %v5985_v39, -inf }
0x2b52   :  { %5987 = vmax.xlane.f32.xlu0 %v5986_v43  ;;  %v6152_v16 = vsel %vm227_vm2, %v6151_v19, -inf }
0x2b53   :  { %6153 = vmax.xlane.f32.xlu1 %v6152_v16 }
0x2b64   :  { %5997 = vrot.lane.b32.xlu1 %v20648_v27, %s19463_s2 }
0x2b68   :  { %6387 = vrot.lane.b32.xlu1 %v20648_v27, %s19464_s7 }
0x2b6c   :  { %6385 = vrot.lane.b32.xlu1 %v20648_v27, %s19465_s10 }
0x2bdf   :  { %v5988_v45 = vpop.xlane.xlu0 %5987 }
0x2be0   :  { %v5989_v46 = vsub.f32 %v5985_v39, %v5988_v45  ;;  %v6154_v47 = vpop.xlane.xlu1 %6153 }
0x2be1   :  { %v6155_v18 = vsub.f32 %v6151_v19, %v6154_v47  ;;  %v5826_v19 = vld [vmem:[%s22040_s9 + $0x10] sm:$0xff] }
0x2be2   :  { %v5990_v48 = vmul.f32 1.442695, %v5989_v46 }
0x2be3   :  { %v6156_v49 = vmul.f32 1.442695, %v6155_v18  ;;  %v5792_v18 = vadd.f32 %v20645_v23, %v20458_v36 }
0x2be4   :  { %19248 = vpow2.f32 %v5990_v48  ;;  %v5998_v53 = vpop.permute.xlu1 %5997 }
0x2be5   :  { %17610 = vmatpush3.msra.mxu1 %v5998_v53  ;;  %19250 = vpow2.f32 %v6156_v49  ;;  %v5793_v48 = vsel %vm150_vm1, %v5792_v18, 0.0 }
0x2be6   :  { %17619 = vmatprep.subr.mxu1 %v19458_v6 }
0x2be8   :  { %v6388_v59 = vpop.permute.xlu1 %6387 }
0x2bec   :  { %v6386_v62 = vpop.permute.xlu1 %6385 }
0x2bee   :  { %v19249_v63 = vpop.eup %19248 }
0x2bef   :  { %v5992_v0 = vsel %vm227_vm2, %v19249_v63, 0.0  ;;  %v19251_v54 = vpop.eup %19250 }
0x2bf0   :  { %5993 = vadd.xlane.f32.xlu0 %v5992_v0  ;;  %v6158_v55 = vsel %vm227_vm2, %v19251_v54, 0.0 }
0x2bf4   :  { %6159 = vadd.xlane.f32.xlu0 %v6158_v55  ;;  %v5827_v55 = vld [vmem:[%s22040_s9 + $0x18] sm:$0xff] }
0x2c0a   :  { %6163 = vrot.lane.b32.xlu0 %v20648_v27, %s19462_s1 }
0x2c7d   :  { %v5994_v40 = vpop.xlane.xlu0 %5993 }
0x2c7e   :  { %19252 = vrcp.f32 %v5994_v40 }
0x2c81   :  { %v6160_v31 = vpop.xlane.xlu0 %6159 }
0x2c82   :  { %19254 = vrcp.f32 %v6160_v31 }
0x2c85   :  { %v6164_v15 = vpop.permute.xlu0 %6163 }
0x2c88   :  { %v19253_v57 = vpop.eup %19252 }
0x2c89   :  { %v5996_v14 = vmul.f32 %v19253_v57, %v19249_v63 }
0x2c8b   :  { %17612 = vmatmul.mubr.msk.f32.vlgmr.msra.gmra.mrb[68].mxu1 %vm227_vm2, %v5996_v14 }
0x2c8c   :  { %v19255_v38 = vpop.eup %19254  ;;  %17620 = vmatpush3.msra.mxu1 %v6164_v15  ;;  %17621 = vmatprep.mubr.msk.f32.mxu1 %vm19457_vm0, %v19458_v6 }
0x2c8d   :  { %v6162_v58 = vmul.f32 %v19255_v38, %v19251_v54  ;;  %17629 = vmatprep.subr.mxu1 %v19458_v6 }
0x2c8f   :  { %17622 = vmatmul.mubr.msk.f32.vlgmr.msra.gmra.mrb[70].mxu1 %vm227_vm2, %v6162_v58 }
0x2c90   :  { %17631 = vmatprep.mubr.msk.f32.mxu1 %vm19457_vm0, %v19458_v6  ;;  %17630 = vmatpush3.msra.mxu1 %v5824_v8  ;;  %v15767_v8 = vld [vmem:[%s22041_s13] ss:$0 sm:$0xff] }
0x2c91   :  { %17639 = vmatprep.subr.mxu1 %v19458_v6 }
0x2d5e   :  { %v6069_v21 = vpop.f32.mrb[68].mxu1 }
0x2d5f   :  { %v17613_v22 = vpop.f32.mrb[69].mxu1  ;;  %17632 = vmatmul.mubr.msk.f32.vlgmr.msra.gmra.mrb[72].mxu1 %vm227_vm2, %v6069_v21 }
0x2d60   :  { %17641 = vmatprep.mubr.msk.f32.mxu1 %vm19457_vm0, %v19458_v6 }
0x2d62   :  { %v6235_v60 = vpop.f32.mrb[70].mxu1 }
0x2d63   :  { %v17623_v61 = vpop.f32.mrb[71].mxu1  ;;  %17627 = vmatmul.mubr.msk.f32.vlgmr.msra.gmra.mrb[64].mxu0 %vm227_vm2, %v6235_v60 }
0x2d64   :  { %17635 = vmatpush3.xpose.msk.msra.mxu0 %vm227_vm2, %v6388_v59  ;;  %17636 = vmatprep.mubr.msk.f32.mxu0 %vm19457_vm0, %v19458_v6 }
0x2d65   :  { %17644 = vmatprep.subr.mxu0 %v19458_v6 }
0x2d67   :  { %17637 = vmatmul.mubr.msk.f32.vlgmr.msra.gmra.mrb[66].mxu0 %vm227_vm2, %v6386_v62 }
0x2d68   :  { %17646 = vmatprep.mubr.msk.f32.mxu0 %vm19457_vm0, %v19458_v6  ;;  %17645 = vmatpush3.msra.mxu0 %v5826_v19 }
0x2d69   :  { %17654 = vmatprep.subr.mxu0 %v19458_v6 }
0x2e32   :  { %v6381_v1 = vpop.f32.mrb[72].mxu1 }
0x2e33   :  { %v17633_v2 = vpop.f32.mrb[73].mxu1 }
0x2e36   :  { %v6308_v4 = vpop.f32.mrb[64].mxu0 }
0x2e37   :  { %v6382_v5 = vadd.f32 %v6381_v1, %v6308_v4  ;;  %v17628_v7 = vpop.f32.mrb[65].mxu0 }
0x2e38   :  { %v6897_v7 = vld [vmem:[%s22042_s17 + $0x8] sm:$0xff] }
0x2e3a   :  { %v6459_v9 = vpop.f32.mrb[66].mxu0 }
0x2e3b   :  { %v6463_v10 = vmul.f32 0.35355338, %v6459_v9  ;;  %v17638_v50 = vpop.f32.mrb[67].mxu0  ;;  %v6898_v9 = vld [vmem:[%s22042_s17 + $0x10] sm:$0xff] }
0x2e3d   :  { %v6464_v13 = vsel %vm227_vm2, %v6463_v10, -inf }
0x2e3e   :  { %6465 = vmax.xlane.f32.xlu0 %v6464_v13  ;;  %v6899_v13 = vld [vmem:[%s22042_s17 + $0x18] sm:$0xff] }
0x2e54   :  { %6475 = vrot.lane.b32.xlu0 %v20648_v27, %s19468_s16 }
0x2e58   :  { %6625 = vrot.lane.b32.xlu0 %v20648_v27, %s19467_s15 }
0x2ecb   :  { %v6466_v20 = vpop.xlane.xlu0 %6465 }
0x2ecc   :  { %v6467_v24 = vsub.f32 %v6463_v10, %v6466_v20  ;;  %v19165_v20 = vpack.i.bf16 %v6899_v13, %v6898_v9 }
0x2ece   :  { %v6468_v26 = vmul.f32 1.442695, %v6467_v24  ;;  %v18581_v24 = vpack.c.bf16 %v6899_v13, %v6898_v9 }
0x2ecf   :  { %v6476_v11 = vpop.permute.xlu0 %6475 }
0x2ed0   :  { %19256 = vpow2.f32 %v6468_v26  ;;  %17640 = vmatpush3.msra.mxu1 %v6476_v11 }
0x2ed1   :  { %17649 = vmatprep.subr.mxu1 %v19458_v6 }
0x2ed3   :  { %v6626_v41 = vpop.permute.xlu0 %6625 }
0x2eda   :  { %v19257_v34 = vpop.eup %19256 }
0x2edb   :  { %v6470_v35 = vsel %vm227_vm2, %v19257_v34, 0.0 }
0x2edc   :  { %6471 = vadd.xlane.f32.xlu1 %v6470_v35 }
0x2eed   :  { %6627 = vrot.lane.b32.xlu1 %v20648_v27, %s19466_s11 }
0x2f69   :  { %v6472_v37 = vpop.xlane.xlu1 %6471 }
0x2f6a   :  { %19258 = vrcp.f32 %v6472_v37 }
0x2f6d   :  { %v6628_v28 = vpop.permute.xlu1 %6627 }
0x2f74   :  { %v19259_v44 = vpop.eup %19258 }
0x2f75   :  { %v6474_v39 = vmul.f32 %v19259_v44, %v19257_v34 }
0x2f77   :  { %17642 = vmatmul.mubr.msk.f32.vlgmr.msra.gmra.mrb[74].mxu1 %vm227_vm2, %v6474_v39 }
0x2f78   :  { %17650 = vmatpush3.xpose.msk.msra.mxu1 %vm227_vm2, %v6628_v28  ;;  %17651 = vmatprep.mubr.msk.f32.mxu1 %vm19457_vm0, %v19458_v6  ;;  %v19368_v28 = vld [vmem:[%s19531_s19 + $0x4] sm:$0x3]  ;;  %s22049_s19 = sld [smem:[#allocation16_spill]] }
0x2f79   :  { %17659 = vmatprep.subr.mxu1 %v19458_v6 }
0x2f7b   :  { %17652 = vmatmul.mubr.msk.f32.vlgmr.msra.gmra.mrb[76].mxu1 %vm227_vm2, %v6626_v41  ;;  %v5809_v41 = vrot.slane %v19368_v28, %v19886_v32 }
0x2f7c   :  { %17661 = vmatprep.mubr.msk.f32.mxu1 %vm19457_vm0, %v19458_v6  ;;  %17660 = vmatpush3.msra.mxu1 %v5827_v55 }
0x2f7d   :  { %18583 = vmatprep.subr.bf16.mxu1 %v19456_v3 }
0x304a   :  { %v6547_v42 = vpop.f32.mrb[74].mxu1 }
0x304b   :  { %v17643_v43 = vpop.f32.mrb[75].mxu1  ;;  %17647 = vmatmul.mubr.msk.f32.vlgmr.msra.gmra.mrb[68].mxu0 %vm227_vm2, %v6547_v42  ;;  %v19369_v42 = vld [vmem:[%s19536_s24 + $0x4] sm:$0x3]  ;;  %s22050_s24 = sld [smem:[#allocation15_spill]] }
0x304c   :  { %17656 = vmatprep.mubr.msk.f32.mxu0 %vm19457_vm0, %v19458_v6  ;;  %v5814_v43 = vrot.slane %v19369_v42, %v19886_v32 }
0x304e   :  { %v6699_v16 = vpop.f32.mrb[76].mxu1 }
0x304f   :  { %v6703_v45 = vmul.f32 0.35355338, %v6699_v16  ;;  %v17653_v46 = vpop.f32.mrb[77].mxu1 }
0x3051   :  { %v6704_v47 = vsel %vm227_vm2, %v6703_v45, -inf }
0x3052   :  { %6705 = vmax.xlane.f32.xlu1 %v6704_v47  ;;  %v15768_v47 = vld [vmem:[%s22043_s21] ss:$0 sm:$0xff] }
0x3056   :  { %5794 = vadd.xlane.f32.xlu1 %v5793_v48 }
0x30df   :  { %v6706_v49 = vpop.xlane.xlu1 %6705 }
0x30e0   :  { %v6707_v53 = vsub.f32 %v6703_v45, %v6706_v49 }
0x30e2   :  { %v6708_v63 = vmul.f32 1.442695, %v6707_v53 }
0x30e3   :  { %v5795_v38 = vpop.xlane.xlu1 %5794 }
0x30e4   :  { %19260 = vpow2.f32 %v6708_v63  ;;  %v5796_v58 = vmul.f32 0.03125, %v5795_v38 }
0x30e6   :  { %v5797_v60 = vsub.f32 %v5792_v18, %v5796_v58 }
0x30e8   :  { %v5798_v2 = vmul.f32 %v5797_v60, %v5797_v60 }
0x30ea   :  { %v5799_v4 = vsel %vm150_vm1, %v5798_v2, 0.0 }
0x30ee   :  { %v19261_v0 = vpop.eup %19260 }
0x30ef   :  { %v6710_v54 = vsel %vm227_vm2, %v19261_v0, 0.0 }
0x30f0   :  { %6711 = vadd.xlane.f32.xlu0 %v6710_v54 }
0x3106   :  { %6715 = vrot.lane.b32.xlu0 %v20648_v27, %s19469_s18 }
0x310a   :  { %19166 = vrot.lane.b32.xlu0 %v19165_v20, %s19460_s5 }
0x310e   :  { %7001 = vrot.lane.b32.xlu0 %v15768_v47, %s19460_s5 }
0x311e   :  { %v6620_v36 = vpop.f32.mrb[68].mxu0 }
0x311f   :  { %v6624_v23 = vadd.f32 %v6620_v36, %v6382_v5  ;;  %v17648_v56 = vpop.f32.mrb[69].mxu0  ;;  %v6896_v5 = vld [vmem:[%s22042_s17] sm:$0xff] }
0x3120   :  { %v19160_v10 = vpack.i.bf16 %v6897_v7, %v6896_v5  ;;  %v18578_v50 = vpack.c.bf16 %v6897_v7, %v6896_v5 }
0x317d   :  { %v6712_v40 = vpop.xlane.xlu0 %6711 }
0x317e   :  { %19262 = vrcp.f32 %v6712_v40  ;;  %v20765_v40 = vld [vmem:[%s22044_s25] sm:$0x7] }
0x3181   :  { %v6716_v31 = vpop.permute.xlu0 %6715 }
0x3182   :  { %17655 = vmatpush3.msra.mxu0 %v6716_v31  ;;  %v20768_v31 = vld [vmem:[%s22045_s29] sm:$0x7] }
0x3183   :  { %18577 = vmatprep.subr.bf16.mxu0 %v19456_v3 }
0x3185   :  { %v19167_v49 = vpop.permute.xlu0 %19166 }
0x3186   :  { %v19168_v36 = vunpack.i.l.bf16 %v19167_v49 }
0x3188   :  { %v19263_v57 = vpop.eup %19262 }
0x3189   :  { %v6714_v14 = vmul.f32 %v19263_v57, %v19261_v0  ;;  %v19169_v0 = vunpack.i.h.bf16 %v19167_v49  ;;  %v6889_v57 = vrot.slane %v20765_v40, %v19775_v17  ;;  %v6901_v49 = vld [vmem:[%s22046_s3] sm:$0xff] }
0x318b   :  { %17657 = vmatmul.mubr.msk.f32.vlgmr.msra.gmra.mrb[70].mxu0 %vm227_vm2, %v6714_v14  ;;  %v18587_v56 = vpack.c.bf16 %v19169_v0, %v19168_v36 }
0x318c   :  { %17672 = vmatprep.mubr.msk.f32.mxu0 %vm19457_vm0, %v19458_v6  ;;  %18579 = vmatpush3.bf16.msra.mxu0 %v18578_v50 }
0x318d   :  { %18580 = vmatprep.subr.bf16.mxu0 %v19456_v3 }
0x3190   :  { %18582 = vmatpush3.bf16.msra.mxu0 %v18581_v24 }
0x3191   :  { %17686 = vmatprep.subr.mxu0 %v19458_v6 }
0x325e   :  { %v6787_v27 = vpop.f32.mrb[70].mxu0 }
0x325f   :  { %v17658_v15 = vpop.f32.mrb[71].mxu0  ;;  %17662 = vmatmul.mubr.msk.f32.vlgmr.msra.gmra.mrb[78].mxu1 %vm227_vm2, %v6787_v27 }
0x3260   :  { %17683 = vmatprep.mubr.msk.f32.mxu1 %vm19457_vm0, %v19458_v6  ;;  %v6894_v15 = vrot.slane %v20768_v31, %v19775_v17 }
0x3332   :  { %v6860_v21 = vpop.f32.mrb[78].mxu1 }
0x3333   :  { %v6864_v22 = vadd.f32 %v6860_v21, %v6624_v23  ;;  %v17663_v59 = vpop.f32.mrb[79].mxu1 }
0x3335   :  { %v6871_v61 = vadd.f32 %v15767_v8, %v6864_v22  ;;  %v7002_v8 = vpop.permute.xlu0 %7001 }
0x3337   :  { %v6872_v62 = vadd.f32 %v6871_v61, %v20637_v12 }
0x3339   :  { %v6873_v1 = vsel %vm150_vm1, %v6872_v62, 0.0 }
0x333a   :  { %6874 = vadd.xlane.f32.xlu1 %v6873_v1 }
0x333e   :  { %5800 = vadd.xlane.f32.xlu1 %v5799_v4 }
0x33c7   :  { %v6875_v12 = vpop.xlane.xlu1 %6874 }
0x33c8   :  { %v6876_v26 = vmul.f32 0.03125, %v6875_v12 }
0x33ca   :  { %v6877_v11 = vsub.f32 %v6872_v62, %v6876_v26 }
0x33cb   :  { %v5801_v34 = vpop.xlane.xlu1 %5800 }
0x33cc   :  { %v5802_v35 = vmul.f32 0.03125, %v5801_v34  ;;  %v6878_v37 = vmul.f32 %v6877_v11, %v6877_v11 }
0x33ce   :  { %v5803_v44 = vadd.f32 1e-05, %v5802_v35  ;;  %v6879_v39 = vsel %vm150_vm1, %v6878_v37, 0.0 }
0x33cf   :  { %6880 = vadd.xlane.f32.xlu1 %v6879_v39 }
0x33d0   :  { %19264 = vrsqrt.f32 %v5803_v44 }
0x33da   :  { %v19265_v19 = vpop.eup %19264 }
0x33db   :  { %v5805_v16 = vmul.f32 %v19265_v19, %v5797_v60 }
0x33dd   :  { %v5810_v45 = vmul.f32 %v5809_v41, %v5805_v16  ;;  %v6902_v16 = vld [vmem:[%s22046_s3 + $0x8] sm:$0xff] }
0x33df   :  { %v20756_v46 = vadd.f32 %v5814_v43, %v5810_v45 }
0x33e0   :  { %19161 = vrot.lane.b32.xlu1 %v19160_v10, %s19460_s5 }
0x33e1   :  { %15005 = vst.msk [vmem:[#allocation4] sm:$0xff] %vm150_vm1, %v20756_v46 }
0x345c   :  { %v6881_v18 = vpop.xlane.xlu1 %6880 }
0x345d   :  { %v6882_v48 = vmul.f32 0.03125, %v6881_v18 }
0x345f   :  { %v6883_v53 = vadd.f32 1e-05, %v6882_v48 }
0x3460   :  { %v19162_v63 = vpop.permute.xlu1 %19161 }
0x3461   :  { %19266 = vrsqrt.f32 %v6883_v53  ;;  %v19164_v54 = vunpack.i.h.bf16 %v19162_v63  ;;  %v19163_v55 = vunpack.i.l.bf16 %v19162_v63 }
0x3463   :  { %v18584_v23 = vpack.c.bf16 %v19164_v54, %v19163_v55 }
0x3465   :  { %18585 = vmatpush3.bf16.msra.mxu1 %v18584_v23 }
0x3466   :  { %18586 = vmatprep.subr.bf16.mxu1 %v19456_v3 }
0x3469   :  { %18588 = vmatpush3.bf16.msra.mxu1 %v18587_v56 }
0x346a   :  { %17691 = vmatprep.subr.mxu1 %v19458_v6 }
0x346b   :  { %v19267_v14 = vpop.eup %19266 }
0x346c   :  { %v6885_v27 = vmul.f32 %v19267_v14, %v6877_v11  ;;  %17684 = vmatmul.mubr.msk.f32.vlgmr.msra.gmra.mrb[80].mxu1 %vm150_vm1, %v20756_v46 }
0x346d   :  { %17693 = vmatprep.mubr.msk.f32.mxu1 %vm19457_vm0, %v19458_v6 }
0x346e   :  { %v6890_v38 = vmul.f32 %v6889_v57, %v6885_v27 }
0x3470   :  { %v20779_v58 = vadd.f32 %v6894_v15, %v6890_v38 }
0x3472   :  { %17673 = vmatmul.mubr.msk.f32.vlgmr.msra.gmra.mrb[72].mxu0 %vm150_vm1, %v20779_v58 }
0x3473   :  { %17688 = vmatprep.mubr.msk.f32.mxu0 %vm19457_vm0, %v19458_v6 }
0x353f   :  { %v7073_v21 = vpop.f32.mrb[80].mxu1 }
0x3540   :  { %v20785_v22 = vadd.f32 %v7073_v21, %v7002_v8  ;;  %v17685_v59 = vpop.f32.mrb[81].mxu1 }
0x3542   :  { %7243 = vrot.lane.b32.xlu0 %v20785_v22, %s19459_s0  ;;  %17687 = vmatpush3.xpose.msk.msra.mxu0 %vm227_vm2, %v20785_v22 }
0x3543   :  { %17696 = vmatprep.subr.mxu0 %v19458_v6 }
0x3545   :  { %v6981_v60 = vpop.f32.mrb[72].mxu0 }
0x3546   :  { %v20792_v61 = vadd.f32 %v15768_v47, %v6981_v60  ;;  %v17674_v62 = vpop.f32.mrb[73].mxu0 }
0x3548   :  { %7241 = vrot.lane.b32.xlu0 %v20792_v61, %s19459_s0  ;;  %17689 = vmatmul.mubr.msk.f32.vlgmr.msra.gmra.mrb[74].mxu0 %vm227_vm2, %v20792_v61 }
0x3549   :  { %17698 = vmatprep.mubr.msk.f32.mxu0 %vm19457_vm0, %v19458_v6 }
0x35b4   :  { %v7244_v1 = vpop.permute.xlu0 %7243 }
0x35b5   :  { %17697 = vmatpush3.xpose.msk.msra.mxu0 %vm227_vm2, %v7244_v1 }
0x35b6   :  { %17706 = vmatprep.subr.mxu0 %v19458_v6 }
0x35ba   :  { %v7242_v2 = vpop.permute.xlu0 %7241 }
0x35bb   :  { %17699 = vmatmul.mubr.msk.f32.vlgmr.msra.gmra.mrb[76].mxu0 %vm227_vm2, %v7242_v2 }
0x35bc   :  { %17708 = vmatprep.mubr.msk.f32.mxu0 %vm19457_vm0, %v19458_v6  ;;  %17707 = vmatpush3.msra.mxu0 %v6902_v16 }
0x35bd   :  { %17716 = vmatprep.subr.mxu0 %v19458_v6 }
0x361b   :  { %v7149_v4 = vpop.f32.mrb[74].mxu0 }
0x361c   :  { %v7153_v5 = vmul.f32 0.35355338, %v7149_v4  ;;  %v17690_v7 = vpop.f32.mrb[75].mxu0 }
0x361e   :  { %v7154_v9 = vsel %vm227_vm2, %v7153_v5, -inf }
0x361f   :  { %7155 = vmax.xlane.f32.xlu1 %v7154_v9 }
0x368e   :  { %v7315_v10 = vpop.f32.mrb[76].mxu0 }
0x368f   :  { %v7319_v50 = vmul.f32 0.35355338, %v7315_v10  ;;  %v17700_v13 = vpop.f32.mrb[77].mxu0 }
0x3691   :  { %v7320_v20 = vsel %vm227_vm2, %v7319_v50, -inf }
0x3692   :  { %7321 = vmax.xlane.f32.xlu0 %v7320_v20 }
0x36ac   :  { %v7156_v24 = vpop.xlane.xlu1 %7155 }
0x36ad   :  { %v7157_v12 = vsub.f32 %v7153_v5, %v7156_v24 }
0x36af   :  { %v7158_v26 = vmul.f32 1.442695, %v7157_v12 }
0x36b1   :  { %19268 = vpow2.f32 %v7158_v26 }
0x36bb   :  { %v19269_v11 = vpop.eup %19268 }
0x36bc   :  { %v7160_v34 = vsel %vm227_vm2, %v19269_v11, 0.0 }
0x36bd   :  { %7161 = vadd.xlane.f32.xlu0 %v7160_v34 }
0x36d3   :  { %7165 = vrot.lane.b32.xlu0 %v20785_v22, %s19460_s5 }
0x36d7   :  { %7553 = vrot.lane.b32.xlu0 %v20792_v61, %s19465_s10 }
0x371f   :  { %v7322_v35 = vpop.xlane.xlu0 %7321 }
0x3720   :  { %v7323_v37 = vsub.f32 %v7319_v50, %v7322_v35  ;;  %v6903_v50 = vld [vmem:[%s22046_s3 + $0x10] sm:$0xff] }
0x3722   :  { %v7324_v44 = vmul.f32 1.442695, %v7323_v37 }
0x3724   :  { %19270 = vpow2.f32 %v7324_v44 }
0x372e   :  { %v19271_v39 = vpop.eup %19270 }
0x372f   :  { %v7326_v28 = vsel %vm227_vm2, %v19271_v39, 0.0 }
0x3730   :  { %7327 = vadd.xlane.f32.xlu1 %v7326_v28 }
0x3741   :  { %7331 = vrot.lane.b32.xlu1 %v20785_v22, %s19461_s28 }
0x3745   :  { %7555 = vrot.lane.b32.xlu1 %v20785_v22, %s19465_s10 }
0x374a   :  { %v7162_v41 = vpop.xlane.xlu0 %7161 }
0x374b   :  { %19272 = vrcp.f32 %v7162_v41  ;;  %v6904_v41 = vld [vmem:[%s22046_s3 + $0x18] sm:$0xff] }
0x374e   :  { %v7166_v19 = vpop.permute.xlu0 %7165 }
0x374f   :  { %17692 = vmatpush3.msra.mxu1 %v7166_v19 }
0x3750   :  { %17701 = vmatprep.subr.mxu1 %v19458_v6 }
0x3752   :  { %v7554_v36 = vpop.permute.xlu0 %7553 }
0x3755   :  { %v19273_v42 = vpop.eup %19272 }
0x3756   :  { %v7164_v43 = vmul.f32 %v19273_v42, %v19269_v11 }
0x3758   :  { %17694 = vmatmul.mubr.msk.f32.vlgmr.msra.gmra.mrb[82].mxu1 %vm227_vm2, %v7164_v43 }
0x3759   :  { %17703 = vmatprep.mubr.msk.f32.mxu1 %vm19457_vm0, %v19458_v6 }
0x37bd   :  { %v7328_v45 = vpop.xlane.xlu1 %7327 }
0x37be   :  { %19274 = vrcp.f32 %v7328_v45 }
0x37c1   :  { %v7332_v47 = vpop.permute.xlu1 %7331 }
0x37c2   :  { %17702 = vmatpush3.msra.mxu1 %v7332_v47 }
0x37c3   :  { %17711 = vmatprep.subr.mxu1 %v19458_v6 }
0x37c5   :  { %v7556_v54 = vpop.permute.xlu1 %7555 }
0x37c8   :  { %v19275_v18 = vpop.eup %19274 }
0x37c9   :  { %v7330_v48 = vmul.f32 %v19275_v18, %v19271_v39 }
0x37cb   :  { %17704 = vmatmul.mubr.msk.f32.vlgmr.msra.gmra.mrb[84].mxu1 %vm227_vm2, %v7330_v48  ;;  %v15787_v48 = vld [vmem:[%s22047_s8] ss:$0 sm:$0xff] }
0x37cc   :  { %17712 = vmatpush3.msra.mxu1 %v6901_v49  ;;  %17713 = vmatprep.mubr.msk.f32.mxu1 %vm19457_vm0, %v19458_v6 }
0x37cd   :  { %17721 = vmatprep.subr.mxu1 %v19458_v6 }
0x382b   :  { %v7237_v53 = vpop.f32.mrb[82].mxu1 }
0x382c   :  { %v17695_v63 = vpop.f32.mrb[83].mxu1  ;;  %17714 = vmatmul.mubr.msk.f32.vlgmr.msra.gmra.mrb[86].mxu1 %vm227_vm2, %v7237_v53 }
0x382d   :  { %17723 = vmatprep.mubr.msk.f32.mxu1 %vm19457_vm0, %v19458_v6 }
0x389e   :  { %v7403_v0 = vpop.f32.mrb[84].mxu1 }
0x389f   :  { %v17705_v55 = vpop.f32.mrb[85].mxu1  ;;  %17709 = vmatmul.mubr.msk.f32.vlgmr.msra.gmra.mrb[78].mxu0 %vm227_vm2, %v7403_v0 }
0x38a0   :  { %17717 = vmatpush3.xpose.msk.msra.mxu0 %vm227_vm2, %v7556_v54  ;;  %17718 = vmatprep.mubr.msk.f32.mxu0 %vm19457_vm0, %v19458_v6 }
0x38a1   :  { %17726 = vmatprep.subr.mxu0 %v19458_v6 }
0x38a3   :  { %17719 = vmatmul.mubr.msk.f32.vlgmr.msra.gmra.mrb[80].mxu0 %vm227_vm2, %v7554_v36 }
0x38a4   :  { %17728 = vmatprep.mubr.msk.f32.mxu0 %vm19457_vm0, %v19458_v6  ;;  %17727 = vmatpush3.msra.mxu0 %v6903_v50  ;;  %v8080_v50 = vld [vmem:[%s22048_s14 + $0x80] sm:$0xff] }
0x38a5   :  { %17736 = vmatprep.subr.mxu0 %v19458_v6 }
0x38ff   :  { %v7549_v23 = vpop.f32.mrb[86].mxu1 }
0x3900   :  { %v17715_v56 = vpop.f32.mrb[87].mxu1 }
0x3972   :  { %v7476_v57 = vpop.f32.mrb[78].mxu0 }
0x3973   :  { %v7550_v14 = vadd.f32 %v7549_v23, %v7476_v57  ;;  %v17710_v27 = vpop.f32.mrb[79].mxu0 }
0x3974   :  { %v8065_v27 = vld [vmem:[%s22048_s14 + $0x8] sm:$0xff] }
0x3976   :  { %v7627_v15 = vpop.f32.mrb[80].mxu0 }
0x3977   :  { %v7631_v38 = vmul.f32 0.35355338, %v7627_v15  ;;  %v17720_v8 = vpop.f32.mrb[81].mxu0  ;;  %v8073_v15 = vld [vmem:[%s22048_s14 + $0x48] sm:$0xff] }
0x3978   :  { %v18589_v8 = vpack.c.bf16 %v8073_v15, %v8065_v27  ;;  %v8086_v27 = vld [vmem:[%s22048_s14 + $0xb0] sm:$0xff] }
0x3979   :  { %v7632_v21 = vsel %vm227_vm2, %v7631_v38, -inf  ;;  %v8094_v15 = vld [vmem:[%s22048_s14 + $0xf0] sm:$0xff] }
0x397a   :  { %7633 = vmax.xlane.f32.xlu1 %v7632_v21  ;;  %v8064_v21 = vld [vmem:[%s22048_s14] sm:$0xff] }
0x398b   :  { %7795 = vrot.lane.b32.xlu1 %v20785_v22, %s19467_s15 }
0x398f   :  { %7793 = vrot.lane.b32.xlu1 %v20792_v61, %s19467_s15 }
0x3a07   :  { %v7634_v59 = vpop.xlane.xlu1 %7633 }
0x3a08   :  { %v7635_v60 = vsub.f32 %v7631_v38, %v7634_v59  ;;  %v8067_v38 = vld [vmem:[%s22048_s14 + $0x18] sm:$0xff]  ;;  %v8072_v59 = vld [vmem:[%s22048_s14 + $0x40] sm:$0xff] }
0x3a0a   :  { %v7636_v62 = vmul.f32 1.442695, %v7635_v60 }
0x3a0b   :  { %v7796_v61 = vpop.permute.xlu1 %7795 }
0x3a0c   :  { %19276 = vpow2.f32 %v7636_v62  ;;  %v18591_v62 = vpack.c.bf16 %v8072_v59, %v8064_v21  ;;  %v8146_v21 = vld [vmem:[%s22049_s19 + $0x188] sm:$0xff] }
0x3a0f   :  { %v7794_v10 = vpop.permute.xlu1 %7793 }
0x3a16   :  { %v19277_v1 = vpop.eup %19276 }
0x3a17   :  { %v7638_v2 = vsel %vm227_vm2, %v19277_v1, 0.0 }
0x3a18   :  { %7639 = vadd.xlane.f32.xlu0 %v7638_v2  ;;  %v8074_v2 = vld [vmem:[%s22048_s14 + $0x50] sm:$0xff] }
0x3a2e   :  { %7643 = vrot.lane.b32.xlu0 %v20785_v22, %s19464_s7 }
0x3aa5   :  { %v7640_v4 = vpop.xlane.xlu0 %7639 }
0x3aa6   :  { %19278 = vrcp.f32 %v7640_v4 }
0x3aa9   :  { %v7644_v5 = vpop.permute.xlu0 %7643 }
0x3aaa   :  { %17722 = vmatpush3.msra.mxu1 %v7644_v5  ;;  %v8081_v5 = vld [vmem:[%s22048_s14 + $0x88] sm:$0xff] }
0x3aab   :  { %17731 = vmatprep.subr.mxu1 %v19458_v6 }
0x3ab0   :  { %v19279_v7 = vpop.eup %19278 }
0x3ab1   :  { %v7642_v9 = vmul.f32 %v19279_v7, %v19277_v1  ;;  %v8066_v1 = vld [vmem:[%s22048_s14 + $0x10] sm:$0xff]  ;;  %v8089_v7 = vld [vmem:[%s22048_s14 + $0xc8] sm:$0xff] }
0x3ab2   :  { %v18599_v4 = vpack.c.bf16 %v8074_v2, %v8066_v1  ;;  %v8098_v1 = vld [vmem:[%s22049_s19 + $0x8] sm:$0xff] }
0x3ab3   :  { %17724 = vmatmul.mubr.msk.f32.vlgmr.msra.gmra.mrb[88].mxu1 %vm227_vm2, %v7642_v9  ;;  %v18593_v9 = vpack.c.bf16 %v8089_v7, %v8081_v5  ;;  %v8129_v5 = vld [vmem:[%s22049_s19 + $0x100] sm:$0xff]  ;;  %v8130_v7 = vld [vmem:[%s22049_s19 + $0x108] sm:$0xff] }
0x3ab4   :  { %17732 = vmatpush3.xpose.msk.msra.mxu1 %vm227_vm2, %v7796_v61  ;;  %17733 = vmatprep.mubr.msk.f32.mxu1 %vm19457_vm0, %v19458_v6  ;;  %v8083_v61 = vld [vmem:[%s22048_s14 + $0x98] sm:$0xff] }
0x3ab5   :  { %17741 = vmatprep.subr.mxu1 %v19458_v6 }
0x3ab7   :  { %17734 = vmatmul.mubr.msk.f32.vlgmr.msra.gmra.mrb[90].mxu1 %vm227_vm2, %v7794_v10  ;;  %v8091_v10 = vld [vmem:[%s22048_s14 + $0xd8] sm:$0xff] }
0x3ab8   :  { %17743 = vmatprep.mubr.msk.f32.mxu1 %vm19457_vm0, %v19458_v6  ;;  %17742 = vmatpush3.msra.mxu1 %v6904_v41 }
0x3b86   :  { %v7715_v13 = vpop.f32.mrb[88].mxu1 }
0x3b87   :  { %v17725_v20 = vpop.f32.mrb[89].mxu1  ;;  %17729 = vmatmul.mubr.msk.f32.vlgmr.msra.gmra.mrb[82].mxu0 %vm227_vm2, %v7715_v13  ;;  %v8088_v13 = vld [vmem:[%s22048_s14 + $0xc0] sm:$0xff] }
0x3b88   :  { %17738 = vmatprep.mubr.msk.f32.mxu0 %vm19457_vm0, %v19458_v6  ;;  %v18601_v20 = vpack.c.bf16 %v8091_v10, %v8083_v61  ;;  %v8115_v61 = vld [vmem:[%s22049_s19 + $0x90] sm:$0xff] }
0x3b89   :  { %v8147_v10 = vld [vmem:[%s22049_s19 + $0x190] sm:$0xff] }
0x3b8a   :  { %v7867_v24 = vpop.f32.mrb[90].mxu1 }
0x3b8b   :  { %v7871_v12 = vmul.f32 0.35355338, %v7867_v24  ;;  %v17735_v26 = vpop.f32.mrb[91].mxu1  ;;  %v18595_v24 = vpack.c.bf16 %v8088_v13, %v8080_v50  ;;  %v8148_v50 = vld [vmem:[%s22049_s19 + $0x198] sm:$0xff] }
0x3b8c   :  { %v8090_v26 = vld [vmem:[%s22048_s14 + $0xd0] sm:$0xff] }
0x3b8d   :  { %v7872_v11 = vsel %vm227_vm2, %v7871_v12, -inf }
0x3b8e   :  { %7873 = vmax.xlane.f32.xlu0 %v7872_v11  ;;  %v8069_v11 = vld [vmem:[%s22048_s14 + $0x28] sm:$0xff] }
0x3ba4   :  { %7883 = vrot.lane.b32.xlu0 %v20785_v22, %s19466_s11 }
0x3c1b   :  { %v7874_v34 = vpop.xlane.xlu0 %7873 }
0x3c1c   :  { %v7875_v35 = vsub.f32 %v7871_v12, %v7874_v34  ;;  %v8082_v12 = vld [vmem:[%s22048_s14 + $0x90] sm:$0xff] }
0x3c1d   :  { %v18603_v34 = vpack.c.bf16 %v8090_v26, %v8082_v12  ;;  %v8100_v12 = vld [vmem:[%s22049_s19 + $0x18] sm:$0xff] }
0x3c1e   :  { %v7876_v37 = vmul.f32 1.442695, %v7875_v35  ;;  %v8077_v35 = vld [vmem:[%s22048_s14 + $0x68] sm:$0xff] }
0x3c1f   :  { %v7884_v44 = vpop.permute.xlu0 %7883 }
0x3c20   :  { %19280 = vpow2.f32 %v7876_v37  ;;  %17737 = vmatpush3.msra.mxu0 %v7884_v44  ;;  %v8071_v37 = vld [vmem:[%s22048_s14 + $0x38] sm:$0xff] }
0x3c21   :  { %18590 = vmatprep.subr.bf16.mxu0 %v18589_v8  ;;  %v8079_v44 = vld [vmem:[%s22048_s14 + $0x78] sm:$0xff]  ;;  %v8114_v8 = vld [vmem:[%s22049_s19 + $0x88] sm:$0xff] }
0x3c2a   :  { %v19281_v39 = vpop.eup %19280 }
0x3c2b   :  { %v7878_v28 = vsel %vm227_vm2, %v19281_v39, 0.0 }
0x3c2c   :  { %7879 = vadd.xlane.f32.xlu1 %v7878_v28  ;;  %v18613_v28 = vpack.c.bf16 %v8079_v44, %v8071_v37  ;;  %v8117_v37 = vld [vmem:[%s22049_s19 + $0xa0] sm:$0xff]  ;;  %v8118_v44 = vld [vmem:[%s22049_s19 + $0xa8] sm:$0xff] }
0x3c5a   :  { %v7788_v19 = vpop.f32.mrb[82].mxu0 }
0x3c5b   :  { %v7792_v42 = vadd.f32 %v7788_v19, %v7550_v14  ;;  %v17730_v43 = vpop.f32.mrb[83].mxu0 }
0x3c5c   :  { %v8057_v43 = vrot.slane %v20765_v40, %v19886_v32  ;;  %v8095_v40 = vld [vmem:[%s22048_s14 + $0xf8] sm:$0xff] }
0x3cb9   :  { %v7880_v16 = vpop.xlane.xlu1 %7879 }
0x3cba   :  { %19282 = vrcp.f32 %v7880_v16 }
0x3cc4   :  { %v19283_v45 = vpop.eup %19282 }
0x3cc5   :  { %v7882_v22 = vmul.f32 %v19283_v45, %v19281_v39  ;;  %v18605_v39 = vpack.c.bf16 %v8077_v35, %v8069_v11  ;;  %v8068_v45 = vld [vmem:[%s22048_s14 + $0x20] sm:$0xff]  ;;  %v18657_v11 = vpack.c.bf16 %v8148_v50, %v8147_v10  ;;  %v8132_v35 = vld [vmem:[%s22049_s19 + $0x118] sm:$0xff]  ;;  %v8107_v10 = vld [vmem:[%s22049_s19 + $0x50] sm:$0xff] }
0x3cc6   :  { %v8108_v50 = vld [vmem:[%s22049_s19 + $0x58] sm:$0xff] }
0x3cc7   :  { %17739 = vmatmul.mubr.msk.f32.vlgmr.msra.gmra.mrb[84].mxu0 %vm227_vm2, %v7882_v22  ;;  %v8076_v22 = vld [vmem:[%s22048_s14 + $0x60] sm:$0xff] }
0x3cc8   :  { %8334 = vmatprep.mubr.f32.mxu0 %v19458_v6  ;;  %18592 = vmatpush1.bf16.msra.mxu0 %v18591_v62  ;;  %v8097_v62 = vld [vmem:[%s22049_s19] sm:$0xff] }
0x3cc9   :  { %18594 = vmatprep.subr.bf16.mxu0 %v18593_v9  ;;  %v8116_v9 = vld [vmem:[%s22049_s19 + $0x98] sm:$0xff]  ;;  %v18623_v13 = vpack.c.bf16 %v8098_v1, %v8097_v62  ;;  %v8137_v62 = vld [vmem:[%s22049_s19 + $0x140] sm:$0xff]  ;;  %v8138_v1 = vld [vmem:[%s22049_s19 + $0x148] sm:$0xff] }
0x3cca   :  { %v18625_v26 = vpack.c.bf16 %v8116_v9, %v8115_v61  ;;  %v18671_v9 = vpack.c.bf16 %v8138_v1, %v8137_v62  ;;  %v8161_v1 = vld [vmem:[%s22049_s19 + $0x200] sm:$0xff] }
0x3ccc   :  { %18596 = vmatpush1.bf16.msra.mxu0 %v18595_v24  ;;  %v8099_v24 = vld [vmem:[%s22049_s19 + $0x10] sm:$0xff] }
0x3ccd   :  { %18606 = vmatprep.subr.bf16.mxu0 %v18605_v39  ;;  %v8149_v39 = vld [vmem:[%s22049_s19 + $0x1a0] sm:$0xff] }
0x3d9a   :  { %v7955_v47 = vpop.f32.mrb[84].mxu0 }
0x3d9b   :  { %v17740_v18 = vpop.f32.mrb[85].mxu0  ;;  %17744 = vmatmul.mubr.msk.f32.vlgmr.msra.gmra.mrb[92].mxu1 %vm227_vm2, %v7955_v47 }
0x3d9c   :  { %8405 = vmatprep.mubr.f32.mxu1 %v19458_v6  ;;  %v8062_v18 = vrot.slane %v20768_v31, %v19886_v32 }
0x3e6e   :  { %v8028_v49 = vpop.f32.mrb[92].mxu1 }
0x3e6f   :  { %v8032_v53 = vadd.f32 %v8028_v49, %v7792_v42  ;;  %v17745_v63 = vpop.f32.mrb[93].mxu1  ;;  %v8078_v49 = vld [vmem:[%s22048_s14 + $0x70] sm:$0xff] }
0x3e70   :  { %v8093_v63 = vld [vmem:[%s22048_s14 + $0xe8] sm:$0xff] }
0x3e71   :  { %v8039_v0 = vadd.f32 %v15787_v48, %v8032_v53  ;;  %v8070_v48 = vld [vmem:[%s22048_s14 + $0x30] sm:$0xff]  ;;  %v8085_v53 = vld [vmem:[%s22048_s14 + $0xa8] sm:$0xff] }
0x3e72   :  { %v18609_v31 = vpack.c.bf16 %v8093_v63, %v8085_v53  ;;  %v8152_v53 = vld [vmem:[%s22049_s19 + $0x1b8] sm:$0xff] }
0x3e73   :  { %v8040_v54 = vadd.f32 %v8039_v0, %v20779_v58  ;;  %v8075_v58 = vld [vmem:[%s22048_s14 + $0x58] sm:$0xff] }
0x3e74   :  { %v18597_v60 = vpack.c.bf16 %v8075_v58, %v8067_v38  ;;  %v8087_v0 = vld [vmem:[%s22048_s14 + $0xb8] sm:$0xff]  ;;  %v8113_v38 = vld [vmem:[%s22049_s19 + $0x80] sm:$0xff] }
0x3e75   :  { %v8041_v55 = vsel %vm150_vm1, %v8040_v54, 0.0  ;;  %v8145_v58 = vld [vmem:[%s22049_s19 + $0x180] sm:$0xff]  ;;  %v18621_v2 = vpack.c.bf16 %v8114_v8, %v8113_v38 }
0x3e76   :  { %8042 = vadd.xlane.f32.xlu1 %v8041_v55  ;;  %18598 = vmatprep.subr.bf16.mxu1 %v18597_v60  ;;  %v18607_v55 = vpack.c.bf16 %v8076_v22, %v8068_v45  ;;  %v18619_v60 = vpack.c.bf16 %v8094_v15, %v8086_v27  ;;  %v8133_v22 = vld [vmem:[%s22049_s19 + $0x120] sm:$0xff]  ;;  %v8154_v15 = vld [vmem:[%s22049_s19 + $0x1c8] sm:$0xff] }
0x3e77   :  { %18600 = vmatpush1.bf16.msra.mxu1 %v18599_v4  ;;  %v18653_v4 = vpack.c.bf16 %v8146_v21, %v8145_v58  ;;  %v8153_v27 = vld [vmem:[%s22049_s19 + $0x1c0] sm:$0xff]  ;;  %v8106_v21 = vld [vmem:[%s22049_s19 + $0x48] sm:$0xff] }
0x3e78   :  { %18602 = vmatprep.subr.bf16.mxu1 %v18601_v20  ;;  %v18655_v20 = vpack.c.bf16 %v8130_v7, %v8129_v5  ;;  %v8105_v58 = vld [vmem:[%s22049_s19 + $0x40] sm:$0xff]  ;;  %v8155_v5 = vld [vmem:[%s22049_s19 + $0x1d0] sm:$0xff]  ;;  %v8156_v7 = vld [vmem:[%s22049_s19 + $0x1d8] sm:$0xff] }
0x3e79   :  { %v18639_v61 = vpack.c.bf16 %v8106_v21, %v8105_v58 }
0x3e7b   :  { %18604 = vmatpush1.bf16.msra.mxu1 %v18603_v34  ;;  %v8131_v34 = vld [vmem:[%s22049_s19 + $0x110] sm:$0xff] }
0x3e7c   :  { %18614 = vmatprep.subr.bf16.mxu1 %v18613_v28  ;;  %v8150_v28 = vld [vmem:[%s22049_s19 + $0x1a8] sm:$0xff] }
0x3e7d   :  { %v18661_v45 = vpack.c.bf16 %v8150_v28, %v8149_v39  ;;  %v8109_v39 = vld [vmem:[%s22049_s19 + $0x60] sm:$0xff] }
0x3f03   :  { %v8043_v36 = vpop.xlane.xlu1 %8042 }
0x3f04   :  { %v8044_v23 = vmul.f32 0.03125, %v8043_v36  ;;  %v18615_v36 = vpack.c.bf16 %v8078_v49, %v8070_v48  ;;  %v8120_v48 = vld [vmem:[%s22049_s19 + $0xb8] sm:$0xff]  ;;  %v8151_v49 = vld [vmem:[%s22049_s19 + $0x1b0] sm:$0xff] }
0x3f06   :  { %v8045_v56 = vsub.f32 %v8040_v54, %v8044_v23  ;;  %v8084_v23 = vld [vmem:[%s22048_s14 + $0xa0] sm:$0xff] }
0x3f08   :  { %v8046_v57 = vmul.f32 %v8045_v56, %v8045_v56 }
0x3f0a   :  { %v8047_v14 = vsel %vm150_vm1, %v8046_v57, 0.0 }
0x3f0b   :  { %8048 = vadd.xlane.f32.xlu1 %v8047_v14  ;;  %v18617_v14 = vpack.c.bf16 %v8095_v40, %v8087_v0  ;;  %v8103_v40 = vld [vmem:[%s22049_s19 + $0x30] sm:$0xff] }
0x3f98   :  { %v8049_v41 = vpop.xlane.xlu1 %8048 }
0x3f99   :  { %v8050_v19 = vmul.f32 0.03125, %v8049_v41  ;;  %v18627_v41 = vpack.c.bf16 %v8100_v12, %v8099_v24  ;;  %v8139_v24 = vld [vmem:[%s22049_s19 + $0x150] sm:$0xff]  ;;  %v8140_v12 = vld [vmem:[%s22049_s19 + $0x158] sm:$0xff] }
0x3f9b   :  { %v8051_v42 = vadd.f32 1e-05, %v8050_v19  ;;  %v18659_v19 = vpack.c.bf16 %v8132_v35, %v8131_v34  ;;  %v8157_v34 = vld [vmem:[%s22049_s19 + $0x1e0] sm:$0xff]  ;;  %v8158_v35 = vld [vmem:[%s22049_s19 + $0x1e8] sm:$0xff] }
0x3f9d   :  { %19284 = vrsqrt.f32 %v8051_v42  ;;  %v8101_v42 = vld [vmem:[%s22049_s19 + $0x20] sm:$0xff] }
0x3fa7   :  { %v19285_v16 = vpop.eup %19284 }
0x3fa8   :  { %v8053_v47 = vmul.f32 %v19285_v16, %v8045_v56  ;;  %v8092_v56 = vld [vmem:[%s22048_s14 + $0xe0] sm:$0xff]  ;;  %v18629_v16 = vpack.c.bf16 %v8118_v44, %v8117_v37  ;;  %v18643_v37 = vpack.c.bf16 %v8108_v50, %v8107_v10  ;;  %v18675_v44 = vpack.c.bf16 %v8140_v12, %v8139_v24  ;;  %v8194_v10 = vld [vmem:[%s22049_s19 + $0x308] sm:$0xff]  ;;  %v8179_v50 = vld [vmem:[%s22049_s19 + $0x290] sm:$0xff] }
0x3fa9   :  { %v18611_v59 = vpack.c.bf16 %v8092_v56, %v8084_v23  ;;  %v8135_v23 = vld [vmem:[%s22049_s19 + $0x130] sm:$0xff]  ;;  %v8136_v56 = vld [vmem:[%s22049_s19 + $0x138] sm:$0xff] }
0x3faa   :  { %v8058_v54 = vmul.f32 %v8057_v43, %v8053_v47  ;;  %v8102_v43 = vld [vmem:[%s22049_s19 + $0x28] sm:$0xff]  ;;  %v18667_v8 = vpack.c.bf16 %v8136_v56, %v8135_v23  ;;  %v8177_v23 = vld [vmem:[%s22049_s19 + $0x280] sm:$0xff]  ;;  %v8180_v24 = vld [vmem:[%s22049_s19 + $0x298] sm:$0xff] }
0x3fab   :  { %v8134_v47 = vld [vmem:[%s22049_s19 + $0x128] sm:$0xff]  ;;  %v18631_v63 = vpack.c.bf16 %v8102_v43, %v8101_v42  ;;  %v8141_v42 = vld [vmem:[%s22049_s19 + $0x160] sm:$0xff]  ;;  %v8211_v12 = vld [vmem:[%s22049_s19 + $0x390] sm:$0xff] }
0x3fac   :  { %v20909_v57 = vadd.f32 %v8062_v18, %v8058_v54  ;;  %v8119_v18 = vld [vmem:[%s22049_s19 + $0xb0] sm:$0xff]  ;;  %v18663_v0 = vpack.c.bf16 %v8134_v47, %v8133_v22  ;;  %v8104_v54 = vld [vmem:[%s22049_s19 + $0x38] sm:$0xff]  ;;  %v8142_v43 = vld [vmem:[%s22049_s19 + $0x168] sm:$0xff] }
0x3fad   :  { %v18635_v38 = vpack.c.bf16 %v8104_v54, %v8103_v40  ;;  %v8127_v22 = vld [vmem:[%s22049_s19 + $0xf0] sm:$0xff]  ;;  %v8128_v47 = vld [vmem:[%s22049_s19 + $0xf8] sm:$0xff]  ;;  %v8178_v56 = vld [vmem:[%s22049_s19 + $0x288] sm:$0xff] }
0x3fae   :  { %15788 = vmatmul.mubr.msk.f32.vlgmr.msra.gmra.mrb[86].mxu0 %vm150_vm1, %v20909_v57  ;;  %15789 = vmatmul.mubr.msk.f32.vlgmr.msra.gmra.mrb[94].mxu1 %vm150_vm1, %v20909_v57  ;;  %v8143_v54 = vld [vmem:[%s22049_s19 + $0x170] sm:$0xff] }
0x3faf   :  { %18608 = vmatpush1.bf16.msra.mxu0 %v18607_v55  ;;  %18616 = vmatpush1.bf16.msra.mxu1 %v18615_v36  ;;  %v18633_v55 = vpack.c.bf16 %v8120_v48, %v8119_v18  ;;  %v18665_v36 = vpack.c.bf16 %v8152_v53, %v8151_v49  ;;  %v8159_v18 = vld [vmem:[%s22049_s19 + $0x1f0] sm:$0xff]  ;;  %v18649_v48 = vpack.c.bf16 %v8128_v47, %v8127_v22  ;;  %v8160_v49 = vld [vmem:[%s22049_s19 + $0x1f8] sm:$0xff] }
0x3fb0   :  { %18610 = vmatprep.subr.bf16.mxu0 %v18609_v31  ;;  %18618 = vmatprep.subr.bf16.mxu1 %v18617_v14  ;;  %v8121_v31 = vld [vmem:[%s22049_s19 + $0xc0] sm:$0xff]  ;;  %v8122_v14 = vld [vmem:[%s22049_s19 + $0xc8] sm:$0xff]  ;;  %v8111_v53 = vld [vmem:[%s22049_s19 + $0x70] sm:$0xff] }
0x3fb1   :  { %8476 = vmatprep.mubr.f32.mxu0 %v19458_v6  ;;  %8547 = vmatprep.mubr.f32.mxu1 %v19458_v6 }
0x3fb3   :  { %18612 = vmatpush1.bf16.msra.mxu0 %v18611_v59  ;;  %18620 = vmatpush1.bf16.msra.mxu1 %v18619_v60  ;;  %v18637_v59 = vpack.c.bf16 %v8122_v14, %v8121_v31  ;;  %v18669_v60 = vpack.c.bf16 %v8154_v15, %v8153_v27  ;;  %v8209_v31 = vld [vmem:[%s22049_s19 + $0x380] sm:$0xff]  ;;  %v18685_v14 = vpack.c.bf16 %v8178_v56, %v8177_v23  ;;  %v8210_v27 = vld [vmem:[%s22049_s19 + $0x388] sm:$0xff] }
0x3fb4   :  { %18622 = vmatprep.subr.bf16.mxu0 %v18621_v2  ;;  %18654 = vmatprep.subr.bf16.mxu1 %v18653_v4  ;;  %v8123_v2 = vld [vmem:[%s22049_s19 + $0xd0] sm:$0xff]  ;;  %v8124_v4 = vld [vmem:[%s22049_s19 + $0xd8] sm:$0xff]  ;;  %v18717_v15 = vpack.c.bf16 %v8210_v27, %v8209_v31  ;;  %v8198_v27 = vld [vmem:[%s22049_s19 + $0x328] sm:$0xff] }
0x3fb6   :  { %15790 = vmatmul.mubr.msk.f32.vlgmr.msra.gmra.mrb[88].mxu0 %vm150_vm1, %v20909_v57  ;;  %15791 = vmatmul.mubr.msk.f32.vlgmr.msra.gmra.mrb[96].mxu1 %vm150_vm1, %v20909_v57 }
0x3fb7   :  { %18624 = vmatpush3.bf16.msra.mxu0 %v18623_v13  ;;  %18656 = vmatpush3.bf16.msra.mxu1 %v18655_v20  ;;  %v18641_v13 = vpack.c.bf16 %v8124_v4, %v8123_v2  ;;  %v18673_v20 = vpack.c.bf16 %v8156_v7, %v8155_v5  ;;  %v8162_v2 = vld [vmem:[%s22049_s19 + $0x208] sm:$0xff] }
0x3fb8   :  { %18626 = vmatprep.subr.bf16.mxu0 %v18625_v26  ;;  %18658 = vmatprep.subr.bf16.mxu1 %v18657_v11  ;;  %v8125_v26 = vld [vmem:[%s22049_s19 + $0xe0] sm:$0xff]  ;;  %v8126_v11 = vld [vmem:[%s22049_s19 + $0xe8] sm:$0xff] }
0x3fb9   :  { %v18645_v28 = vpack.c.bf16 %v8126_v11, %v8125_v26  ;;  %v8212_v26 = vld [vmem:[%s22049_s19 + $0x398] sm:$0xff] }
0x3fbb   :  { %18628 = vmatpush3.bf16.msra.mxu0 %v18627_v41  ;;  %18660 = vmatpush3.bf16.msra.mxu1 %v18659_v19  ;;  %v18677_v41 = vpack.c.bf16 %v8158_v35, %v8157_v34  ;;  %v8110_v19 = vld [vmem:[%s22049_s19 + $0x68] sm:$0xff]  ;;  %v18687_v35 = vpack.c.bf16 %v8162_v2, %v8161_v1 }
0x3fbc   :  { %18630 = vmatprep.subr.bf16.mxu0 %v18629_v16  ;;  %18662 = vmatprep.subr.bf16.mxu1 %v18661_v45  ;;  %v18647_v16 = vpack.c.bf16 %v8110_v19, %v8109_v39  ;;  %v18679_v45 = vpack.c.bf16 %v8142_v43, %v8141_v42  ;;  %v8164_v39 = vld [vmem:[%s22049_s19 + $0x218] sm:$0xff]  ;;  %v18689_v19 = vpack.c.bf16 %v8180_v24, %v8179_v50  ;;  %v8195_v43 = vld [vmem:[%s22049_s19 + $0x310] sm:$0xff]  ;;  %v8217_v24 = vld [vmem:[%s22049_s19 + $0x3c0] sm:$0xff] }
0x3fbd   :  { %v18721_v42 = vpack.c.bf16 %v8212_v26, %v8211_v12  ;;  %v8200_v50 = vld [vmem:[%s22049_s19 + $0x338] sm:$0xff]  ;;  %v8218_v12 = vld [vmem:[%s22049_s19 + $0x3c8] sm:$0xff] }
0x3fbf   :  { %18632 = vmatpush3.bf16.msra.mxu0 %v18631_v63  ;;  %18664 = vmatpush3.bf16.msra.mxu1 %v18663_v0  ;;  %v8112_v63 = vld [vmem:[%s22049_s19 + $0x78] sm:$0xff]  ;;  %v18681_v0 = vpack.c.bf16 %v8160_v49, %v8159_v18  ;;  %v8182_v18 = vld [vmem:[%s22049_s19 + $0x2a8] sm:$0xff] }
0x3fc0   :  { %18634 = vmatprep.subr.bf16.mxu0 %v18633_v55  ;;  %18666 = vmatprep.subr.bf16.mxu1 %v18665_v36  ;;  %v18651_v40 = vpack.c.bf16 %v8112_v63, %v8111_v53  ;;  %v8144_v55 = vld [vmem:[%s22049_s19 + $0x178] sm:$0xff]  ;;  %v8214_v49 = vld [vmem:[%s22049_s19 + $0x3a8] sm:$0xff] }
0x3fc1   :  { %v18683_v36 = vpack.c.bf16 %v8144_v55, %v8143_v54  ;;  %v8165_v54 = vld [vmem:[%s22049_s19 + $0x220] sm:$0xff]  ;;  %v8166_v55 = vld [vmem:[%s22049_s19 + $0x228] sm:$0xff] }
0x3fc2   :  { %v18695_v2 = vpack.c.bf16 %v8166_v55, %v8165_v54  ;;  %v8190_v54 = vld [vmem:[%s22049_s19 + $0x2e8] sm:$0xff]  ;;  %v8221_v55 = vld [vmem:[%s22049_s19 + $0x3e0] sm:$0xff] }
0x3fc3   :  { %18636 = vmatpush3.bf16.msra.mxu0 %v18635_v38  ;;  %18668 = vmatpush3.bf16.msra.mxu1 %v18667_v8  ;;  %v20992_v38 = vld [vmem:[%s22050_s24] sm:$0xff] }
0x3fc4   :  { %18638 = vmatprep.subr.bf16.mxu0 %v18637_v59  ;;  %18670 = vmatprep.subr.bf16.mxu1 %v18669_v60  ;;  %v8230_v8 = vrot.slane %v20992_v38, %v19775_v17  ;;  %v8238_v58 = vrot.slane %v20992_v38, %v19880_v30  ;;  %v8234_v21 = vrot.slane %v20992_v38, %v19886_v32 }
0x3fc5   :  { %v8242_v59 = vrot.slane %v20992_v38, %v19889_v33  ;;  %v8250_v22 = vrot.slane %v20992_v38, %v19905_v51  ;;  %v8258_v47 = vrot.slane %v20992_v38, %v19908_v52 }
0x3fc7   :  { %18640 = vmatpush3.bf16.msra.mxu0 %v18639_v61  ;;  %18672 = vmatpush3.bf16.msra.mxu1 %v18671_v9  ;;  %v8193_v9 = vld [vmem:[%s22049_s19 + $0x300] sm:$0xff] }
0x3fc8   :  { %18642 = vmatprep.subr.bf16.mxu0 %v18641_v13  ;;  %18674 = vmatprep.subr.bf16.mxu1 %v18673_v20 }
0x3fcb   :  { %18644 = vmatpush3.bf16.msra.mxu0 %v18643_v37  ;;  %18676 = vmatpush3.bf16.msra.mxu1 %v18675_v44  ;;  %v18719_v37 = vpack.c.bf16 %v8194_v10, %v8193_v9  ;;  %v8163_v44 = vld [vmem:[%s22049_s19 + $0x210] sm:$0xff] }
0x3fcc   :  { %18646 = vmatprep.subr.bf16.mxu0 %v18645_v28  ;;  %18678 = vmatprep.subr.bf16.mxu1 %v18677_v41  ;;  %v8199_v10 = vld [vmem:[%s22049_s19 + $0x330] sm:$0xff] }
0x3fcf   :  { %18648 = vmatpush3.bf16.msra.mxu0 %v18647_v16  ;;  %18680 = vmatpush3.bf16.msra.mxu1 %v18679_v45  ;;  %v8196_v16 = vld [vmem:[%s22049_s19 + $0x318] sm:$0xff]  ;;  %v8181_v45 = vld [vmem:[%s22049_s19 + $0x2a0] sm:$0xff] }
0x3fd0   :  { %18650 = vmatprep.subr.bf16.mxu0 %v18649_v48  ;;  %18682 = vmatprep.subr.bf16.mxu1 %v18681_v0  ;;  %v8213_v48 = vld [vmem:[%s22049_s19 + $0x3a0] sm:$0xff]  ;;  %v18691_v0 = vpack.c.bf16 %v8164_v39, %v8163_v44  ;;  %v18693_v56 = vpack.c.bf16 %v8182_v18, %v8181_v45  ;;  %v18733_v44 = vpack.c.bf16 %v8218_v12, %v8217_v24 }
0x3fd1   :  { %v18725_v31 = vpack.c.bf16 %v8214_v49, %v8213_v48  ;;  %v8201_v39 = vld [vmem:[%s22049_s19 + $0x340] sm:$0xff]  ;;  %v8203_v49 = vld [vmem:[%s22049_s19 + $0x350] sm:$0xff] }
0x3fd3   :  { %18652 = vmatpush3.bf16.msra.mxu0 %v18651_v40  ;;  %18684 = vmatpush3.bf16.msra.mxu1 %v18683_v36  ;;  %v18723_v40 = vpack.c.bf16 %v8196_v16, %v8195_v43  ;;  %v8220_v43 = vld [vmem:[%s22049_s19 + $0x3d8] sm:$0xff] }
0x3fd4   :  { %18686 = vmatprep.subr.bf16.mxu0 %v18685_v14  ;;  %18718 = vmatprep.subr.bf16.mxu1 %v18717_v15  ;;  %v8197_v14 = vld [vmem:[%s22049_s19 + $0x320] sm:$0xff]  ;;  %v8183_v15 = vld [vmem:[%s22049_s19 + $0x2b0] sm:$0xff] }
0x4081   :  { %v8336_v60 = vpop.f32.mrb[86].mxu0  ;;  %v8407_v62 = vpop.f32.mrb[94].mxu1 }
0x4082   :  { %v8337_v4 = vadd.f32 %v8336_v60, %v8230_v8  ;;  %v8408_v5 = vadd.f32 %v8407_v62, %v8238_v58  ;;  %v8338_v7 = vpop.f32.mrb[87].mxu0  ;;  %v8409_v61 = vpop.f32.mrb[95].mxu1  ;;  %v8216_v60 = vld [vmem:[%s22049_s19 + $0x3b8] sm:$0xff] }
0x4083   :  { %v8339_v13 = vadd.f32 %v8338_v7, %v8234_v21  ;;  %v8410_v20 = vadd.f32 %v8409_v61, %v8242_v59  ;;  %v8184_v21 = vld [vmem:[%s22049_s19 + $0x2b8] sm:$0xff]  ;;  %v8215_v59 = vld [vmem:[%s22049_s19 + $0x3b0] sm:$0xff] }
0x4084   :  { %v8554_v28 = vmax.f32 %v8337_v4, 0.0  ;;  %v8556_v41 = vmax.f32 %v8408_v5, 0.0  ;;  %v18727_v4 = vpack.c.bf16 %v8198_v27, %v8197_v14  ;;  %v8167_v5 = vld [vmem:[%s22049_s19 + $0x230] sm:$0xff]  ;;  %v8168_v7 = vld [vmem:[%s22049_s19 + $0x238] sm:$0xff]  ;;  %v18697_v61 = vpack.c.bf16 %v8184_v21, %v8183_v15  ;;  %v8174_v14 = vld [vmem:[%s22049_s19 + $0x268] sm:$0xff] }
0x4085   :  { %v8555_v11 = vmax.f32 %v8339_v13, 0.0  ;;  %v8557_v34 = vmax.f32 %v8410_v20, 0.0  ;;  %v18729_v9 = vpack.c.bf16 %v8216_v60, %v8215_v59  ;;  %v8185_v13 = vld [vmem:[%s22049_s19 + $0x2c0] sm:$0xff]  ;;  %v8186_v20 = vld [vmem:[%s22049_s19 + $0x2c8] sm:$0xff]  ;;  %v18699_v26 = vpack.c.bf16 %v8168_v7, %v8167_v5  ;;  %v8191_v21 = vld [vmem:[%s22049_s19 + $0x2f0] sm:$0xff] }
0x4086   :  { %v8192_v59 = vld [vmem:[%s22049_s19 + $0x2f8] sm:$0xff]  ;;  %v8223_v60 = vld [vmem:[%s22049_s19 + $0x3f0] sm:$0xff]  ;;  %v8254_v7 = vrot.slane %v20992_v38, %v19967_v29 }
0x4087   :  { %8632 = vmatprep.mubr.f32.mxu0 %v8555_v11  ;;  %8702 = vmatprep.mubr.f32.mxu1 %v8557_v34  ;;  %v18731_v11 = vpack.c.bf16 %v8200_v50, %v8199_v10  ;;  %v8169_v34 = vld [vmem:[%s22049_s19 + $0x240] sm:$0xff]  ;;  %v8175_v5 = vld [vmem:[%s22049_s19 + $0x270] sm:$0xff]  ;;  %v8176_v10 = vld [vmem:[%s22049_s19 + $0x278] sm:$0xff] }
0x4088   :  { %8633 = vmatmul.mubr.f32.vlgmr.msra.gmra.mrb[90].mxu0 %v8554_v28  ;;  %8703 = vmatmul.mubr.f32.vlgmr.msra.gmra.mrb[98].mxu1 %v8556_v41  ;;  %v8202_v28 = vld [vmem:[%s22049_s19 + $0x348] sm:$0xff]  ;;  %v8187_v41 = vld [vmem:[%s22049_s19 + $0x2d0] sm:$0xff] }
0x4089   :  { %v21022_v53 = vpop.f32.mrb[88].mxu0  ;;  %v21024_v63 = vpop.f32.mrb[96].mxu1  ;;  %18688 = vmatpush3.bf16.msra.mxu0 %v18687_v35  ;;  %18720 = vmatpush3.bf16.msra.mxu1 %v18719_v37  ;;  %v8170_v35 = vld [vmem:[%s22049_s19 + $0x248] sm:$0xff]  ;;  %v18701_v37 = vpack.c.bf16 %v8186_v20, %v8185_v13  ;;  %v18735_v45 = vpack.c.bf16 %v8202_v28, %v8201_v39  ;;  %v8207_v50 = vld [vmem:[%s22049_s19 + $0x370] sm:$0xff]  ;;  %v8208_v13 = vld [vmem:[%s22049_s19 + $0x378] sm:$0xff]  ;;  %v18715_v20 = vpack.c.bf16 %v8176_v10, %v8175_v5 }
0x408a   :  { %v8480_v36 = vpop.f32.mrb[89].mxu0  ;;  %v8551_v23 = vpop.f32.mrb[97].mxu1  ;;  %18690 = vmatprep.subr.bf16.mxu0 %v18689_v19  ;;  %18722 = vmatprep.subr.bf16.mxu1 %v18721_v42  ;;  %v8188_v19 = vld [vmem:[%s22049_s19 + $0x2d8] sm:$0xff]  ;;  %v8219_v42 = vld [vmem:[%s22049_s19 + $0x3d0] sm:$0xff]  ;;  %v18703_v16 = vpack.c.bf16 %v8170_v35, %v8169_v34  ;;  %v18747_v24 = vpack.c.bf16 %v8208_v13, %v8207_v50  ;;  %v15792_v34 = vld [vmem:[%s22051_s22] ss:$0 sm:$0xff] }
0x408b   :  { %v8481_v8 = vadd.f32 %v8480_v36, %v8250_v22  ;;  %v8552_v58 = vadd.f32 %v8551_v23, %v8258_v47  ;;  %v8171_v22 = vld [vmem:[%s22049_s19 + $0x250] sm:$0xff]  ;;  %v8172_v47 = vld [vmem:[%s22049_s19 + $0x258] sm:$0xff]  ;;  %v18705_v18 = vpack.c.bf16 %v8188_v19, %v8187_v41  ;;  %v18737_v48 = vpack.c.bf16 %v8220_v43, %v8219_v42  ;;  %v8222_v36 = vld [vmem:[%s22049_s19 + $0x3e8] sm:$0xff] }
0x408c   :  { %v18707_v23 = vpack.c.bf16 %v8172_v47, %v8171_v22  ;;  %v18741_v15 = vpack.c.bf16 %v8222_v36, %v8221_v55 }
0x408d   :  { %v8559_v62 = vmax.f32 %v8481_v8, 0.0  ;;  %v8561_v1 = vmax.f32 %v8552_v58, 0.0  ;;  %18692 = vmatpush3.bf16.msra.mxu0 %v18691_v0  ;;  %18724 = vmatpush3.bf16.msra.mxu1 %v18723_v40  ;;  %v8204_v0 = vld [vmem:[%s22049_s19 + $0x358] sm:$0xff]  ;;  %v8189_v40 = vld [vmem:[%s22049_s19 + $0x2e0] sm:$0xff]  ;;  %v8206_v58 = vld [vmem:[%s22049_s19 + $0x368] sm:$0xff] }
0x408e   :  { %18694 = vmatprep.subr.bf16.mxu0 %v18693_v56  ;;  %18726 = vmatprep.subr.bf16.mxu1 %v18725_v31  ;;  %v18739_v56 = vpack.c.bf16 %v8204_v0, %v8203_v49  ;;  %v8173_v31 = vld [vmem:[%s22049_s19 + $0x260] sm:$0xff]  ;;  %v18709_v27 = vpack.c.bf16 %v8190_v54, %v8189_v40 }
0x408f   :  { %8772 = vmatprep.mubr.f32.mxu0 %v8559_v62  ;;  %8842 = vmatprep.mubr.f32.mxu1 %v8561_v1  ;;  %v8205_v8 = vld [vmem:[%s22049_s19 + $0x360] sm:$0xff]  ;;  %v8224_v62 = vld [vmem:[%s22049_s19 + $0x3f8] sm:$0xff]  ;;  %v8246_v1 = vrot.slane %v20992_v38, %v19962_v25 }
0x4091   :  { %18696 = vmatpush3.bf16.msra.mxu0 %v18695_v2  ;;  %18728 = vmatpush3.bf16.msra.mxu1 %v18727_v4  ;;  %v18711_v2 = vpack.c.bf16 %v8174_v14, %v8173_v31  ;;  %v18743_v4 = vpack.c.bf16 %v8206_v58, %v8205_v8  ;;  %v8479_v12 = vadd.f32 %v21022_v53, %v8246_v1  ;;  %v15797_v14 = vld [vmem:[%s19541_s30 + $0x30] sm:$0xff]  ;;  %v19371_v1 = vld [vmem:[%s22045_s29] sm:$0x7] }
0x4092   :  { %18698 = vmatprep.subr.bf16.mxu0 %v18697_v61  ;;  %18730 = vmatprep.subr.bf16.mxu1 %v18729_v9  ;;  %v18713_v61 = vpack.c.bf16 %v8192_v59, %v8191_v21  ;;  %v18745_v9 = vpack.c.bf16 %v8224_v62, %v8223_v60  ;;  %v19370_v21 = vld [vmem:[%s22044_s25] sm:$0x7] }
0x4093   :  { %v8558_v38 = vmax.f32 %v8479_v12, 0.0  ;;  %v8865_v59 = vrot.slane %v19370_v21, %v19880_v30 }
0x4095   :  { %18700 = vmatpush3.bf16.msra.mxu0 %v18699_v26  ;;  %18732 = vmatpush3.bf16.msra.mxu1 %v18731_v11  ;;  %v8550_v26 = vadd.f32 %v21024_v63, %v8254_v7  ;;  %v15805_v7 = vld [vmem:[%s19546_s6 + $0x1] ss:$0 sm:$0xff] }
0x4096   :  { %18702 = vmatprep.subr.bf16.mxu0 %v18701_v37  ;;  %18734 = vmatprep.subr.bf16.mxu1 %v18733_v44 }
0x4097   :  { %v8560_v11 = vmax.f32 %v8550_v26, 0.0 }
0x4099   :  { %18704 = vmatpush3.bf16.msra.mxu0 %v18703_v16  ;;  %18736 = vmatpush3.bf16.msra.mxu1 %v18735_v45 }
0x409a   :  { %18706 = vmatprep.subr.bf16.mxu0 %v18705_v18  ;;  %18738 = vmatprep.subr.bf16.mxu1 %v18737_v48 }
0x409d   :  { %18708 = vmatpush3.bf16.msra.mxu0 %v18707_v23  ;;  %18740 = vmatpush3.bf16.msra.mxu1 %v18739_v56  ;;  %v15795_v23 = vld [vmem:[%s19541_s30 + $0x20] sm:$0xff]  ;;  %v15796_v56 = vld [vmem:[%s19541_s30 + $0x28] sm:$0xff] }
0x409e   :  { %18710 = vmatprep.subr.bf16.mxu0 %v18709_v27  ;;  %18742 = vmatprep.subr.bf16.mxu1 %v18741_v15  ;;  %v18750_v31 = vpack.c.bf16 %v15796_v56, %v15795_v23 }
0x40a1   :  { %18712 = vmatpush3.bf16.msra.mxu0 %v18711_v2  ;;  %18744 = vmatpush3.bf16.msra.mxu1 %v18743_v4  ;;  %v8870_v2 = vrot.slane %v19371_v1, %v19880_v30 }
0x40a2   :  { %18714 = vmatprep.subr.bf16.mxu0 %v18713_v61  ;;  %18746 = vmatprep.subr.bf16.mxu1 %v18745_v9 }
0x40a5   :  { %18716 = vmatpush3.bf16.msra.mxu0 %v18715_v20  ;;  %18748 = vmatpush3.bf16.msra.mxu1 %v18747_v24 }
0x40a6   :  { %18749 = vmatprep.subr.bf16.mxu0 %v19456_v3  ;;  %17757 = vmatprep.subr.mxu1 %v19458_v6 }
0x40a8   :  { %8773 = vmatmul.mubr.f32.vlgmr.msra.gmra.mrb[92].mxu0 %v8558_v38  ;;  %8843 = vmatmul.mubr.f32.vlgmr.msra.gmra.mrb[100].mxu1 %v8560_v11 }
0x40a9   :  { %17754 = vmatprep.mubr.msk.f32.mxu0 %vm19457_vm0, %v19458_v6  ;;  %17759 = vmatprep.mubr.msk.f32.mxu1 %vm19457_vm0, %v19458_v6 }
0x40aa   :  { %18751 = vmatpush3.bf16.msra.mxu0 %v18750_v31 }
0x40ab   :  { %18752 = vmatprep.subr.bf16.mxu0 %v19456_v3 }
0x415b   :  { %v16857_v53 = vpop.f32.mrb[90].mxu0  ;;  %v16892_v63 = vpop.f32.mrb[98].mxu1 }
0x415c   :  { %v16858_v35 = vpop.f32.mrb[91].mxu0  ;;  %v16893_v37 = vpop.f32.mrb[99].mxu1 }
0x415d   :  { %v16859_v44 = vadd.f32 %v16858_v35, %v16857_v53  ;;  %v16894_v39 = vadd.f32 %v16893_v37, %v16892_v63 }
0x415f   :  { %v8635_v28 = vadd.f32 %v16859_v44, %v15792_v34 }
0x4161   :  { %v8705_v41 = vadd.f32 %v16894_v39, %v8635_v28 }
0x417b   :  { %v16927_v19 = vpop.f32.mrb[92].mxu0  ;;  %v16962_v42 = vpop.f32.mrb[100].mxu1 }
0x417c   :  { %v16928_v43 = vpop.f32.mrb[93].mxu0  ;;  %v16963_v16 = vpop.f32.mrb[101].mxu1 }
0x417d   :  { %v16929_v45 = vadd.f32 %v16928_v43, %v16927_v19  ;;  %v16964_v22 = vadd.f32 %v16963_v16, %v16962_v42 }
0x417f   :  { %v8775_v47 = vadd.f32 %v16929_v45, %v8705_v41  ;;  %v15801_v45 = vld [vmem:[%s22040_s9 + $0x28] sm:$0xff] }
0x4181   :  { %v8845_v18 = vadd.f32 %v16964_v22, %v8775_v47 }
0x4183   :  { %v8848_v48 = vadd.f32 %v8845_v18, %v20909_v57  ;;  %v15798_v57 = vld [vmem:[%s19541_s30 + $0x38] sm:$0xff] }
0x4184   :  { %v18753_v27 = vpack.c.bf16 %v15798_v57, %v15797_v14 }
0x4185   :  { %v8849_v49 = vsel %vm150_vm1, %v8848_v48, 0.0 }
0x4186   :  { %8850 = vadd.xlane.f32.xlu1 %v8849_v49  ;;  %18754 = vmatpush3.bf16.msra.mxu0 %v18753_v27 }
0x4187   :  { %17767 = vmatprep.subr.mxu0 %v19458_v6 }
0x4213   :  { %v8851_v0 = vpop.xlane.xlu1 %8850 }
0x4214   :  { %v8852_v40 = vmul.f32 0.03125, %v8851_v0 }
0x4216   :  { %v8853_v54 = vsub.f32 %v8848_v48, %v8852_v40 }
0x4218   :  { %v8854_v55 = vmul.f32 %v8853_v54, %v8853_v54 }
0x421a   :  { %v8855_v36 = vsel %vm150_vm1, %v8854_v55, 0.0  ;;  %v15800_v55 = vld [vmem:[%s22040_s9 + $0x20] sm:$0xff] }
0x421b   :  { %8856 = vadd.xlane.f32.xlu1 %v8855_v36 }
0x42a8   :  { %v8857_v15 = vpop.xlane.xlu1 %8856 }
0x42a9   :  { %v8858_v8 = vmul.f32 0.03125, %v8857_v15 }
0x42ab   :  { %v8859_v58 = vadd.f32 1e-05, %v8858_v8 }
0x42ad   :  { %19286 = vrsqrt.f32 %v8859_v58 }
0x42b7   :  { %v19287_v60 = vpop.eup %19286 }
0x42b8   :  { %v8861_v62 = vmul.f32 %v19287_v60, %v8853_v54 }
0x42ba   :  { %v8866_v4 = vmul.f32 %v8865_v59, %v8861_v62 }
0x42bc   :  { %v21096_v5 = vadd.f32 %v8870_v2, %v8866_v4 }
0x42be   :  { %17755 = vmatmul.mubr.msk.f32.vlgmr.msra.gmra.mrb[94].mxu0 %vm150_vm1, %v21096_v5 }
0x42bf   :  { %17769 = vmatprep.mubr.msk.f32.mxu0 %vm19457_vm0, %v19458_v6 }
0x4391   :  { %v8965_v61 = vpop.f32.mrb[94].mxu0 }
0x4392   :  { %v21103_v9 = vadd.f32 %v15805_v7, %v8965_v61  ;;  %v17756_v10 = vpop.f32.mrb[95].mxu0 }
0x4394   :  { %9136 = vrot.lane.b32.xlu0 %v21103_v9, %s19461_s28  ;;  %8970 = vrot.lane.b32.xlu1 %v21103_v9, %s19460_s5 }
0x4398   :  { %9134 = vrot.lane.b32.xlu0 %v21103_v9, %s19459_s0 }
0x4406   :  { %v9137_v50 = vpop.permute.xlu0 %9136  ;;  %v8971_v13 = vpop.permute.xlu1 %8970 }
0x4407   :  { %17758 = vmatpush3.xpose.msk.msra.mxu1 %vm227_vm2, %v8971_v13  ;;  %17768 = vmatpush3.xpose.msk.msra.mxu0 %vm227_vm2, %v9137_v50 }
0x4408   :  { %17762 = vmatprep.subr.mxu1 %v19458_v6  ;;  %17777 = vmatprep.subr.mxu0 %v19458_v6 }
0x440a   :  { %v9135_v20 = vpop.permute.xlu0 %9134  ;;  %17760 = vmatmul.mubr.msk.f32.vlgmr.msra.gmra.mrb[102].mxu1 %vm227_vm2, %v21103_v9 }
0x440b   :  { %17770 = vmatmul.mubr.msk.f32.vlgmr.msra.gmra.mrb[96].mxu0 %vm227_vm2, %v9135_v20  ;;  %17764 = vmatprep.mubr.msk.f32.mxu1 %vm19457_vm0, %v19458_v6 }
0x440c   :  { %17779 = vmatprep.mubr.msk.f32.mxu0 %vm19457_vm0, %v19458_v6  ;;  %17778 = vmatpush3.msra.mxu0 %v15801_v45 }
0x440d   :  { %17787 = vmatprep.subr.mxu0 %v19458_v6 }
0x44dd   :  { %v9042_v24 = vpop.f32.mrb[102].mxu1 }
0x44de   :  { %v9046_v12 = vmul.f32 0.35355338, %v9042_v24  ;;  %v17761_v26 = vpop.f32.mrb[103].mxu1  ;;  %v9208_v38 = vpop.f32.mrb[96].mxu0 }
0x44df   :  { %v9212_v11 = vmul.f32 0.35355338, %v9208_v38  ;;  %v17771_v53 = vpop.f32.mrb[97].mxu0  ;;  %v15802_v38 = vld [vmem:[%s22040_s9 + $0x30] sm:$0xff] }
0x44e0   :  { %v9047_v63 = vsel %vm227_vm2, %v9046_v12, -inf }
0x44e1   :  { %9048 = vmax.xlane.f32.xlu0 %v9047_v63  ;;  %v9213_v34 = vsel %vm227_vm2, %v9212_v11, -inf }
0x44e2   :  { %9214 = vmax.xlane.f32.xlu1 %v9213_v34 }
0x44f3   :  { %9224 = vrot.lane.b32.xlu1 %v21103_v9, %s19462_s1 }
0x44f7   :  { %9446 = vrot.lane.b32.xlu1 %v21103_v9, %s19465_s10 }
0x456e   :  { %v9049_v35 = vpop.xlane.xlu0 %9048 }
0x456f   :  { %v9050_v37 = vsub.f32 %v9046_v12, %v9049_v35  ;;  %v9215_v44 = vpop.xlane.xlu1 %9214 }
0x4570   :  { %v9216_v39 = vsub.f32 %v9212_v11, %v9215_v44 }
0x4571   :  { %v9051_v28 = vmul.f32 1.442695, %v9050_v37 }
0x4572   :  { %v9217_v41 = vmul.f32 1.442695, %v9216_v39 }
0x4573   :  { %19288 = vpow2.f32 %v9051_v28  ;;  %v9225_v0 = vpop.permute.xlu1 %9224 }
0x4574   :  { %19290 = vpow2.f32 %v9217_v41 }
0x4577   :  { %v9447_v57 = vpop.permute.xlu1 %9446 }
0x457d   :  { %v19289_v19 = vpop.eup %19288 }
0x457e   :  { %v9053_v42 = vsel %vm227_vm2, %v19289_v19, 0.0  ;;  %v19291_v43 = vpop.eup %19290 }
0x457f   :  { %9054 = vadd.xlane.f32.xlu0 %v9053_v42  ;;  %v9219_v16 = vsel %vm227_vm2, %v19291_v43, 0.0  ;;  %v15803_v42 = vld [vmem:[%s22040_s9 + $0x38] sm:$0xff] }
0x4583   :  { %9220 = vadd.xlane.f32.xlu0 %v9219_v16 }
0x4599   :  { %9058 = vrot.lane.b32.xlu0 %v21103_v9, %s19463_s2 }
0x459d   :  { %9448 = vrot.lane.b32.xlu0 %v21103_v9, %s19464_s7 }
0x460c   :  { %v9055_v22 = vpop.xlane.xlu0 %9054 }
0x460d   :  { %19292 = vrcp.f32 %v9055_v22 }
0x4610   :  { %v9221_v47 = vpop.xlane.xlu0 %9220 }
0x4611   :  { %19294 = vrcp.f32 %v9221_v47 }
0x4614   :  { %v9059_v18 = vpop.permute.xlu0 %9058 }
0x4615   :  { %17763 = vmatpush3.msra.mxu1 %v9059_v18 }
0x4616   :  { %17772 = vmatprep.subr.mxu1 %v19458_v6 }
0x4617   :  { %v19293_v48 = vpop.eup %19292 }
0x4618   :  { %v9057_v49 = vmul.f32 %v19293_v48, %v19289_v19  ;;  %v9449_v31 = vpop.permute.xlu0 %9448 }
0x461a   :  { %17765 = vmatmul.mubr.msk.f32.vlgmr.msra.gmra.mrb[104].mxu1 %vm227_vm2, %v9057_v49 }
0x461b   :  { %v19295_v40 = vpop.eup %19294  ;;  %17773 = vmatpush3.msra.mxu1 %v9225_v0  ;;  %17774 = vmatprep.mubr.msk.f32.mxu1 %vm19457_vm0, %v19458_v6  ;;  %v15823_v0 = vld [vmem:[%s22041_s13 + $0x1] ss:$0 sm:$0xff] }
0x461c   :  { %v9223_v54 = vmul.f32 %v19295_v40, %v19291_v43  ;;  %17782 = vmatprep.subr.mxu1 %v19458_v6 }
0x461e   :  { %17775 = vmatmul.mubr.msk.f32.vlgmr.msra.gmra.mrb[106].mxu1 %vm227_vm2, %v9223_v54 }
0x461f   :  { %17784 = vmatprep.mubr.msk.f32.mxu1 %vm19457_vm0, %v19458_v6  ;;  %17783 = vmatpush3.msra.mxu1 %v15800_v55 }
0x4620   :  { %17792 = vmatprep.subr.mxu1 %v19458_v6 }
0x46ed   :  { %v9130_v36 = vpop.f32.mrb[104].mxu1 }
0x46ee   :  { %v17766_v23 = vpop.f32.mrb[105].mxu1  ;;  %17785 = vmatmul.mubr.msk.f32.vlgmr.msra.gmra.mrb[108].mxu1 %vm227_vm2, %v9130_v36 }
0x46ef   :  { %17794 = vmatprep.mubr.msk.f32.mxu1 %vm19457_vm0, %v19458_v6 }
0x46f1   :  { %v9296_v56 = vpop.f32.mrb[106].mxu1 }
0x46f2   :  { %v17776_v14 = vpop.f32.mrb[107].mxu1  ;;  %17780 = vmatmul.mubr.msk.f32.vlgmr.msra.gmra.mrb[98].mxu0 %vm227_vm2, %v9296_v56 }
0x46f3   :  { %17788 = vmatpush3.xpose.msk.msra.mxu0 %vm227_vm2, %v9449_v31  ;;  %17789 = vmatprep.mubr.msk.f32.mxu0 %vm19457_vm0, %v19458_v6  ;;  %v15826_v31 = vld [vmem:[%s22042_s17 + $0x30] sm:$0xff]  ;;  %v15827_v14 = vld [vmem:[%s22042_s17 + $0x38] sm:$0xff] }
0x46f4   :  { %17797 = vmatprep.subr.mxu0 %v19458_v6 }
0x46f6   :  { %17790 = vmatmul.mubr.msk.f32.vlgmr.msra.gmra.mrb[100].mxu0 %vm227_vm2, %v9447_v57  ;;  %v19175_v57 = vpack.i.bf16 %v15827_v14, %v15826_v31 }
0x46f7   :  { %17799 = vmatprep.mubr.msk.f32.mxu0 %vm19457_vm0, %v19458_v6  ;;  %17798 = vmatpush3.msra.mxu0 %v15802_v38 }
0x46f8   :  { %17807 = vmatprep.subr.mxu0 %v19458_v6 }
0x47c1   :  { %v9442_v27 = vpop.f32.mrb[108].mxu1 }
0x47c2   :  { %v17786_v15 = vpop.f32.mrb[109].mxu1 }
0x47c5   :  { %v9369_v8 = vpop.f32.mrb[98].mxu0 }
0x47c6   :  { %v9443_v58 = vadd.f32 %v9442_v27, %v9369_v8  ;;  %v17781_v21 = vpop.f32.mrb[99].mxu0 }
0x47c9   :  { %v9520_v59 = vpop.f32.mrb[100].mxu0 }
0x47ca   :  { %v9524_v60 = vmul.f32 0.35355338, %v9520_v59  ;;  %v17791_v62 = vpop.f32.mrb[101].mxu0  ;;  %v15824_v59 = vld [vmem:[%s22042_s17 + $0x20] sm:$0xff] }
0x47cc   :  { %v9525_v1 = vsel %vm227_vm2, %v9524_v60, -inf }
0x47cd   :  { %9526 = vmax.xlane.f32.xlu0 %v9525_v1  ;;  %v18759_v1 = vpack.c.bf16 %v15827_v14, %v15826_v31 }
0x47e3   :  { %9536 = vrot.lane.b32.xlu0 %v21103_v9, %s19468_s16 }
0x47e7   :  { %9686 = vrot.lane.b32.xlu0 %v21103_v9, %s19467_s15 }
0x485a   :  { %v9527_v2 = vpop.xlane.xlu0 %9526 }
0x485b   :  { %v9528_v4 = vsub.f32 %v9524_v60, %v9527_v2  ;;  %v15825_v60 = vld [vmem:[%s22042_s17 + $0x28] sm:$0xff]  ;;  %v15834_v2 = vld [vmem:[%s22043_s21 + $0x1] ss:$0 sm:$0xff] }
0x485c   :  { %v19170_v62 = vpack.i.bf16 %v15825_v60, %v15824_v59 }
0x485d   :  { %v9529_v7 = vmul.f32 1.442695, %v9528_v4 }
0x485e   :  { %v9537_v61 = vpop.permute.xlu0 %9536 }
0x485f   :  { %19296 = vpow2.f32 %v9529_v7  ;;  %17793 = vmatpush3.msra.mxu1 %v9537_v61 }
0x4860   :  { %17802 = vmatprep.subr.mxu1 %v19458_v6 }
0x4862   :  { %v9687_v26 = vpop.permute.xlu0 %9686 }
0x4869   :  { %v19297_v10 = vpop.eup %19296 }
0x486a   :  { %v9531_v50 = vsel %vm227_vm2, %v19297_v10, 0.0 }
0x486b   :  { %9532 = vadd.xlane.f32.xlu1 %v9531_v50 }
0x487c   :  { %9688 = vrot.lane.b32.xlu1 %v21103_v9, %s19466_s11 }
0x48f8   :  { %v9533_v13 = vpop.xlane.xlu1 %9532 }
0x48f9   :  { %19298 = vrcp.f32 %v9533_v13 }
0x48fc   :  { %v9689_v12 = vpop.permute.xlu1 %9688 }
0x4903   :  { %v19299_v20 = vpop.eup %19298 }
0x4904   :  { %v9535_v24 = vmul.f32 %v19299_v20, %v19297_v10 }
0x4906   :  { %17795 = vmatmul.mubr.msk.f32.vlgmr.msra.gmra.mrb[110].mxu1 %vm227_vm2, %v9535_v24 }
0x4907   :  { %17803 = vmatpush3.xpose.msk.msra.mxu1 %vm227_vm2, %v9689_v12  ;;  %17804 = vmatprep.mubr.msk.f32.mxu1 %vm19457_vm0, %v19458_v6 }
0x4908   :  { %17812 = vmatprep.subr.mxu1 %v19458_v6 }
0x490a   :  { %17805 = vmatmul.mubr.msk.f32.vlgmr.msra.gmra.mrb[112].mxu1 %vm227_vm2, %v9687_v26 }
0x490b   :  { %17814 = vmatprep.mubr.msk.f32.mxu1 %vm19457_vm0, %v19458_v6  ;;  %17813 = vmatpush3.msra.mxu1 %v15803_v42 }
0x490c   :  { %18761 = vmatprep.subr.bf16.mxu1 %v19456_v3 }
0x49d9   :  { %v9608_v11 = vpop.f32.mrb[110].mxu1 }
0x49da   :  { %v17796_v53 = vpop.f32.mrb[111].mxu1  ;;  %17800 = vmatmul.mubr.msk.f32.vlgmr.msra.gmra.mrb[102].mxu0 %vm227_vm2, %v9608_v11  ;;  %v21208_v11 = vld [vmem:[%s22044_s25 + $0x4] sm:$0x7] }
0x49db   :  { %17809 = vmatprep.mubr.msk.f32.mxu0 %vm19457_vm0, %v19458_v6  ;;  %v21211_v53 = vld [vmem:[%s22045_s29 + $0x4] sm:$0x7] }
0x49dd   :  { %v9760_v63 = vpop.f32.mrb[112].mxu1 }
0x49de   :  { %v9764_v34 = vmul.f32 0.35355338, %v9760_v63  ;;  %v17806_v35 = vpop.f32.mrb[113].mxu1  ;;  %v9950_v63 = vrot.slane %v21208_v11, %v19775_v17 }
0x49e0   :  { %v9765_v37 = vsel %vm227_vm2, %v9764_v34, -inf }
0x49e1   :  { %9766 = vmax.xlane.f32.xlu1 %v9765_v37  ;;  %v9955_v37 = vrot.slane %v21211_v53, %v19775_v17 }
0x4a6e   :  { %v9767_v44 = vpop.xlane.xlu1 %9766 }
0x4a6f   :  { %v9768_v39 = vsub.f32 %v9764_v34, %v9767_v44 }
0x4a71   :  { %v9769_v28 = vmul.f32 1.442695, %v9768_v39 }
0x4a73   :  { %19300 = vpow2.f32 %v9769_v28 }
0x4a7d   :  { %v19301_v41 = vpop.eup %19300 }
0x4a7e   :  { %v9771_v19 = vsel %vm227_vm2, %v19301_v41, 0.0 }
0x4a7f   :  { %9772 = vadd.xlane.f32.xlu0 %v9771_v19 }
0x4a95   :  { %9776 = vrot.lane.b32.xlu0 %v21103_v9, %s19469_s18 }
0x4a99   :  { %19176 = vrot.lane.b32.xlu0 %v19175_v57, %s19460_s5 }
0x4a9d   :  { %10066 = vrot.lane.b32.xlu0 %v15834_v2, %s19460_s5 }
0x4aad   :  { %v9681_v43 = vpop.f32.mrb[102].mxu0 }
0x4aae   :  { %v9685_v16 = vadd.f32 %v9681_v43, %v9443_v58  ;;  %v17801_v45 = vpop.f32.mrb[103].mxu0 }
0x4b0c   :  { %v9773_v22 = vpop.xlane.xlu0 %9772 }
0x4b0d   :  { %19302 = vrcp.f32 %v9773_v22 }
0x4b10   :  { %v9777_v47 = vpop.permute.xlu0 %9776 }
0x4b11   :  { %17808 = vmatpush3.msra.mxu0 %v9777_v47 }
0x4b12   :  { %18755 = vmatprep.subr.bf16.mxu0 %v19456_v3 }
0x4b14   :  { %v19177_v61 = vpop.permute.xlu0 %19176 }
0x4b15   :  { %v19179_v13 = vunpack.i.h.bf16 %v19177_v61  ;;  %v19178_v12 = vunpack.i.l.bf16 %v19177_v61  ;;  %v15829_v61 = vld [vmem:[%s22046_s3 + $0x20] sm:$0xff] }
0x4b17   :  { %v19303_v18 = vpop.eup %19302  ;;  %v18765_v38 = vpack.c.bf16 %v19179_v13, %v19178_v12 }
0x4b18   :  { %v9775_v48 = vmul.f32 %v19303_v18, %v19301_v41  ;;  %v10067_v28 = vpop.permute.xlu0 %10066 }
0x4b1a   :  { %17810 = vmatmul.mubr.msk.f32.vlgmr.msra.gmra.mrb[104].mxu0 %vm227_vm2, %v9775_v48 }
0x4b1b   :  { %17825 = vmatprep.mubr.msk.f32.mxu0 %vm19457_vm0, %v19458_v6 }
0x4bed   :  { %v9848_v9 = vpop.f32.mrb[104].mxu0 }
0x4bee   :  { %v17811_v49 = vpop.f32.mrb[105].mxu0  ;;  %17815 = vmatmul.mubr.msk.f32.vlgmr.msra.gmra.mrb[114].mxu1 %vm227_vm2, %v9848_v9 }
0x4bef   :  { %17836 = vmatprep.mubr.msk.f32.mxu1 %vm19457_vm0, %v19458_v6 }
0x4cc1   :  { %v9921_v40 = vpop.f32.mrb[114].mxu1 }
0x4cc2   :  { %v9925_v54 = vadd.f32 %v9921_v40, %v9685_v16  ;;  %v17816_v55 = vpop.f32.mrb[115].mxu1 }
0x4cc4   :  { %v9932_v36 = vadd.f32 %v15823_v0, %v9925_v54 }
0x4cc6   :  { %v9933_v23 = vadd.f32 %v9932_v36, %v21096_v5  ;;  %v18756_v5 = vpack.c.bf16 %v15825_v60, %v15824_v59 }
0x4cc8   :  { %v9934_v56 = vsel %vm150_vm1, %v9933_v23, 0.0  ;;  %18757 = vmatpush3.bf16.msra.mxu0 %v18756_v5  ;;  %v15830_v5 = vld [vmem:[%s22046_s3 + $0x28] sm:$0xff] }
0x4cc9   :  { %9935 = vadd.xlane.f32.xlu1 %v9934_v56  ;;  %18758 = vmatprep.subr.bf16.mxu0 %v19456_v3 }
0x4ccc   :  { %18760 = vmatpush3.bf16.msra.mxu0 %v18759_v1 }
0x4ccd   :  { %17839 = vmatprep.subr.mxu0 %v19458_v6 }
0x4d56   :  { %v9936_v27 = vpop.xlane.xlu1 %9935 }
0x4d57   :  { %v9937_v15 = vmul.f32 0.03125, %v9936_v27 }
0x4d59   :  { %v9938_v8 = vsub.f32 %v9933_v23, %v9937_v15 }
0x4d5b   :  { %v9939_v58 = vmul.f32 %v9938_v8, %v9938_v8 }
0x4d5d   :  { %v9940_v21 = vsel %vm150_vm1, %v9939_v58, 0.0 }
0x4d5e   :  { %9941 = vadd.xlane.f32.xlu1 %v9940_v21 }
0x4d6f   :  { %19171 = vrot.lane.b32.xlu1 %v19170_v62, %s19460_s5 }
0x4deb   :  { %v9942_v4 = vpop.xlane.xlu1 %9941 }
0x4dec   :  { %v9943_v7 = vmul.f32 0.03125, %v9942_v4 }
0x4dee   :  { %v9944_v10 = vadd.f32 1e-05, %v9943_v7 }
0x4def   :  { %v19172_v50 = vpop.permute.xlu1 %19171 }
0x4df0   :  { %19304 = vrsqrt.f32 %v9944_v10  ;;  %v19174_v20 = vunpack.i.h.bf16 %v19172_v50  ;;  %v19173_v24 = vunpack.i.l.bf16 %v19172_v50 }
0x4df2   :  { %v18762_v26 = vpack.c.bf16 %v19174_v20, %v19173_v24 }
0x4df4   :  { %18763 = vmatpush3.bf16.msra.mxu1 %v18762_v26 }
0x4df5   :  { %18764 = vmatprep.subr.bf16.mxu1 %v19456_v3 }
0x4df8   :  { %18766 = vmatpush3.bf16.msra.mxu1 %v18765_v38 }
0x4df9   :  { %17844 = vmatprep.subr.mxu1 %v19458_v6 }
0x4dfa   :  { %v19305_v34 = vpop.eup %19304 }
0x4dfb   :  { %v9946_v35 = vmul.f32 %v19305_v34, %v9938_v8  ;;  %17837 = vmatmul.mubr.msk.f32.vlgmr.msra.gmra.mrb[116].mxu1 %vm150_vm1, %v20756_v46 }
0x4dfc   :  { %17846 = vmatprep.mubr.msk.f32.mxu1 %vm19457_vm0, %v19458_v6 }
0x4dfd   :  { %v9951_v44 = vmul.f32 %v9950_v63, %v9946_v35 }
0x4dff   :  { %v21222_v39 = vadd.f32 %v9955_v37, %v9951_v44 }
0x4e01   :  { %17826 = vmatmul.mubr.msk.f32.vlgmr.msra.gmra.mrb[106].mxu0 %vm150_vm1, %v21222_v39 }
0x4e02   :  { %17841 = vmatprep.mubr.msk.f32.mxu0 %vm19457_vm0, %v19458_v6 }
0x4ece   :  { %v10135_v41 = vpop.f32.mrb[116].mxu1 }
0x4ecf   :  { %v21228_v19 = vadd.f32 %v10135_v41, %v10067_v28  ;;  %v17838_v42 = vpop.f32.mrb[117].mxu1 }
0x4ed1   :  { %10305 = vrot.lane.b32.xlu1 %v21228_v19, %s19459_s0  ;;  %17840 = vmatpush3.xpose.msk.msra.mxu0 %vm227_vm2, %v21228_v19 }
0x4ed2   :  { %17849 = vmatprep.subr.mxu0 %v19458_v6 }
0x4ed4   :  { %v10046_v43 = vpop.f32.mrb[106].mxu0 }
0x4ed5   :  { %v21235_v16 = vadd.f32 %v15834_v2, %v10046_v43  ;;  %v17827_v45 = vpop.f32.mrb[107].mxu0 }
0x4ed7   :  { %10303 = vrot.lane.b32.xlu0 %v21235_v16, %s19459_s0  ;;  %17842 = vmatmul.mubr.msk.f32.vlgmr.msra.gmra.mrb[108].mxu0 %vm227_vm2, %v21235_v16 }
0x4ed8   :  { %17851 = vmatprep.mubr.msk.f32.mxu0 %vm19457_vm0, %v19458_v6 }
0x4f43   :  { %v10306_v22 = vpop.permute.xlu1 %10305 }
0x4f44   :  { %17850 = vmatpush3.xpose.msk.msra.mxu0 %vm227_vm2, %v10306_v22 }
0x4f45   :  { %17859 = vmatprep.subr.mxu0 %v19458_v6 }
0x4f49   :  { %v10304_v47 = vpop.permute.xlu0 %10303 }
0x4f4a   :  { %17852 = vmatmul.mubr.msk.f32.vlgmr.msra.gmra.mrb[110].mxu0 %vm227_vm2, %v10304_v47 }
0x4f4b   :  { %17861 = vmatprep.mubr.msk.f32.mxu0 %vm19457_vm0, %v19458_v6  ;;  %17860 = vmatpush3.msra.mxu0 %v15830_v5 }
0x4f4c   :  { %17869 = vmatprep.subr.mxu0 %v19458_v6 }
0x4faa   :  { %v10211_v18 = vpop.f32.mrb[108].mxu0 }
0x4fab   :  { %v10215_v48 = vmul.f32 0.35355338, %v10211_v18  ;;  %v17843_v9 = vpop.f32.mrb[109].mxu0 }
0x4fad   :  { %v10216_v49 = vsel %vm227_vm2, %v10215_v48, -inf }
0x4fae   :  { %10217 = vmax.xlane.f32.xlu1 %v10216_v49 }
0x501d   :  { %v10377_v0 = vpop.f32.mrb[110].mxu0 }
0x501e   :  { %v10381_v40 = vmul.f32 0.35355338, %v10377_v0  ;;  %v17853_v54 = vpop.f32.mrb[111].mxu0 }
0x5020   :  { %v10382_v55 = vsel %vm227_vm2, %v10381_v40, -inf }
0x5021   :  { %10383 = vmax.xlane.f32.xlu0 %v10382_v55 }
0x503b   :  { %v10218_v36 = vpop.xlane.xlu1 %10217 }
0x503c   :  { %v10219_v23 = vsub.f32 %v10215_v48, %v10218_v36 }
0x503e   :  { %v10220_v56 = vmul.f32 1.442695, %v10219_v23 }
0x5040   :  { %19306 = vpow2.f32 %v10220_v56 }
0x504a   :  { %v19307_v31 = vpop.eup %19306 }
0x504b   :  { %v10222_v14 = vsel %vm227_vm2, %v19307_v31, 0.0 }
0x504c   :  { %10223 = vadd.xlane.f32.xlu0 %v10222_v14 }
0x5062   :  { %10227 = vrot.lane.b32.xlu0 %v21228_v19, %s19460_s5 }
0x5066   :  { %10615 = vrot.lane.b32.xlu0 %v21235_v16, %s19465_s10 }
0x50ae   :  { %v10384_v57 = vpop.xlane.xlu0 %10383 }
0x50af   :  { %v10385_v27 = vsub.f32 %v10381_v40, %v10384_v57  ;;  %v15831_v40 = vld [vmem:[%s22046_s3 + $0x30] sm:$0xff] }
0x50b1   :  { %v10386_v15 = vmul.f32 1.442695, %v10385_v27 }
0x50b3   :  { %19308 = vpow2.f32 %v10386_v15 }
0x50bd   :  { %v19309_v8 = vpop.eup %19308 }
0x50be   :  { %v10388_v58 = vsel %vm227_vm2, %v19309_v8, 0.0 }
0x50bf   :  { %10389 = vadd.xlane.f32.xlu1 %v10388_v58 }
0x50d0   :  { %10393 = vrot.lane.b32.xlu1 %v21228_v19, %s19461_s28 }
0x50d4   :  { %10617 = vrot.lane.b32.xlu1 %v21228_v19, %s19465_s10 }
0x50d9   :  { %v10224_v21 = vpop.xlane.xlu0 %10223 }
0x50da   :  { %19310 = vrcp.f32 %v10224_v21  ;;  %v15832_v21 = vld [vmem:[%s22046_s3 + $0x38] sm:$0xff] }
0x50dd   :  { %v10228_v59 = vpop.permute.xlu0 %10227 }
0x50de   :  { %17845 = vmatpush3.msra.mxu1 %v10228_v59 }
0x50df   :  { %17854 = vmatprep.subr.mxu1 %v19458_v6 }
0x50e1   :  { %v10616_v12 = vpop.permute.xlu0 %10615 }
0x50e4   :  { %v19311_v60 = vpop.eup %19310 }
0x50e5   :  { %v10226_v62 = vmul.f32 %v19311_v60, %v19307_v31 }
0x50e7   :  { %17847 = vmatmul.mubr.msk.f32.vlgmr.msra.gmra.mrb[118].mxu1 %vm227_vm2, %v10226_v62 }
0x50e8   :  { %17856 = vmatprep.mubr.msk.f32.mxu1 %vm19457_vm0, %v19458_v6 }
0x514c   :  { %v10390_v1 = vpop.xlane.xlu1 %10389 }
0x514d   :  { %19312 = vrcp.f32 %v10390_v1 }
0x5150   :  { %v10394_v2 = vpop.permute.xlu1 %10393 }
0x5151   :  { %17855 = vmatpush3.msra.mxu1 %v10394_v2 }
0x5152   :  { %17864 = vmatprep.subr.mxu1 %v19458_v6 }
0x5154   :  { %v10618_v20 = vpop.permute.xlu1 %10617 }
0x5157   :  { %v19313_v4 = vpop.eup %19312 }
0x5158   :  { %v10392_v7 = vmul.f32 %v19313_v4, %v19309_v8 }
0x515a   :  { %17857 = vmatmul.mubr.msk.f32.vlgmr.msra.gmra.mrb[120].mxu1 %vm227_vm2, %v10392_v7  ;;  %v15853_v7 = vld [vmem:[%s22047_s8 + $0x1] ss:$0 sm:$0xff] }
0x515b   :  { %17865 = vmatpush3.msra.mxu1 %v15829_v61  ;;  %17866 = vmatprep.mubr.msk.f32.mxu1 %vm19457_vm0, %v19458_v6 }
0x515c   :  { %17874 = vmatprep.subr.mxu1 %v19458_v6 }
0x51ba   :  { %v10299_v10 = vpop.f32.mrb[118].mxu1 }
0x51bb   :  { %v17848_v50 = vpop.f32.mrb[119].mxu1  ;;  %17867 = vmatmul.mubr.msk.f32.vlgmr.msra.gmra.mrb[122].mxu1 %vm227_vm2, %v10299_v10 }
0x51bc   :  { %17876 = vmatprep.mubr.msk.f32.mxu1 %vm19457_vm0, %v19458_v6 }
0x522d   :  { %v10465_v13 = vpop.f32.mrb[120].mxu1 }
0x522e   :  { %v17858_v24 = vpop.f32.mrb[121].mxu1  ;;  %17862 = vmatmul.mubr.msk.f32.vlgmr.msra.gmra.mrb[112].mxu0 %vm227_vm2, %v10465_v13 }
0x522f   :  { %17870 = vmatpush3.xpose.msk.msra.mxu0 %vm227_vm2, %v10618_v20  ;;  %17871 = vmatprep.mubr.msk.f32.mxu0 %vm19457_vm0, %v19458_v6 }
0x5230   :  { %17879 = vmatprep.subr.mxu0 %v19458_v6 }
0x5232   :  { %17872 = vmatmul.mubr.msk.f32.vlgmr.msra.gmra.mrb[114].mxu0 %vm227_vm2, %v10616_v12 }
0x5233   :  { %17881 = vmatprep.mubr.msk.f32.mxu0 %vm19457_vm0, %v19458_v6  ;;  %17880 = vmatpush3.msra.mxu0 %v15831_v40  ;;  %v15870_v40 = vld [vmem:[%s22048_s14 + $0x180] sm:$0xff] }
0x5234   :  { %17889 = vmatprep.subr.mxu0 %v19458_v6 }
0x528e   :  { %v10611_v26 = vpop.f32.mrb[122].mxu1 }
0x528f   :  { %v17868_v38 = vpop.f32.mrb[123].mxu1 }
0x5301   :  { %v10538_v63 = vpop.f32.mrb[112].mxu0 }
0x5302   :  { %v10612_v34 = vadd.f32 %v10611_v26, %v10538_v63  ;;  %v17863_v35 = vpop.f32.mrb[113].mxu0 }
0x5303   :  { %v15855_v35 = vld [vmem:[%s22048_s14 + $0x108] sm:$0xff] }
0x5305   :  { %v10689_v37 = vpop.f32.mrb[114].mxu0 }
0x5306   :  { %v10693_v44 = vmul.f32 0.35355338, %v10689_v37  ;;  %v17873_v28 = vpop.f32.mrb[115].mxu0  ;;  %v15863_v37 = vld [vmem:[%s22048_s14 + $0x148] sm:$0xff] }
0x5307   :  { %v18767_v28 = vpack.c.bf16 %v15863_v37, %v15855_v35  ;;  %v15876_v35 = vld [vmem:[%s22048_s14 + $0x1b0] sm:$0xff] }
0x5308   :  { %v10694_v41 = vsel %vm227_vm2, %v10693_v44, -inf  ;;  %v15884_v37 = vld [vmem:[%s22048_s14 + $0x1f0] sm:$0xff] }
0x5309   :  { %10695 = vmax.xlane.f32.xlu1 %v10694_v41  ;;  %v15854_v41 = vld [vmem:[%s22048_s14 + $0x100] sm:$0xff] }
0x531a   :  { %10857 = vrot.lane.b32.xlu1 %v21228_v19, %s19467_s15 }
0x531e   :  { %10855 = vrot.lane.b32.xlu1 %v21235_v16, %s19467_s15 }
0x5396   :  { %v10696_v42 = vpop.xlane.xlu1 %10695 }
0x5397   :  { %v10697_v43 = vsub.f32 %v10693_v44, %v10696_v42  ;;  %v15857_v44 = vld [vmem:[%s22048_s14 + $0x118] sm:$0xff]  ;;  %v15862_v42 = vld [vmem:[%s22048_s14 + $0x140] sm:$0xff] }
0x5399   :  { %v10698_v45 = vmul.f32 1.442695, %v10697_v43 }
0x539a   :  { %v10858_v16 = vpop.permute.xlu1 %10857 }
0x539b   :  { %19314 = vpow2.f32 %v10698_v45  ;;  %v18769_v45 = vpack.c.bf16 %v15862_v42, %v15854_v41  ;;  %v15936_v41 = vld [vmem:[%s22049_s19 + $0x588] sm:$0xff] }
0x539e   :  { %v10856_v0 = vpop.permute.xlu1 %10855 }
0x53a5   :  { %v19315_v22 = vpop.eup %19314 }
0x53a6   :  { %v10700_v47 = vsel %vm227_vm2, %v19315_v22, 0.0 }
0x53a7   :  { %10701 = vadd.xlane.f32.xlu0 %v10700_v47  ;;  %v15864_v47 = vld [vmem:[%s22048_s14 + $0x150] sm:$0xff] }
0x53bd   :  { %10705 = vrot.lane.b32.xlu0 %v21228_v19, %s19464_s7 }
0x5434   :  { %v10702_v18 = vpop.xlane.xlu0 %10701 }
0x5435   :  { %19316 = vrcp.f32 %v10702_v18 }
0x5438   :  { %v10706_v48 = vpop.permute.xlu0 %10705 }
0x5439   :  { %17875 = vmatpush3.msra.mxu1 %v10706_v48  ;;  %v15871_v48 = vld [vmem:[%s22048_s14 + $0x188] sm:$0xff] }
0x543a   :  { %17884 = vmatprep.subr.mxu1 %v19458_v6 }
0x543f   :  { %v19317_v9 = vpop.eup %19316 }
0x5440   :  { %v10704_v49 = vmul.f32 %v19317_v9, %v19315_v22  ;;  %v15856_v22 = vld [vmem:[%s22048_s14 + $0x110] sm:$0xff]  ;;  %v15879_v9 = vld [vmem:[%s22048_s14 + $0x1c8] sm:$0xff] }
0x5441   :  { %v18777_v18 = vpack.c.bf16 %v15864_v47, %v15856_v22  ;;  %v15888_v22 = vld [vmem:[%s22049_s19 + $0x408] sm:$0xff] }
0x5442   :  { %17877 = vmatmul.mubr.msk.f32.vlgmr.msra.gmra.mrb[124].mxu1 %vm227_vm2, %v10704_v49  ;;  %v18771_v49 = vpack.c.bf16 %v15879_v9, %v15871_v48  ;;  %v15919_v48 = vld [vmem:[%s22049_s19 + $0x500] sm:$0xff]  ;;  %v15920_v9 = vld [vmem:[%s22049_s19 + $0x508] sm:$0xff] }
0x5443   :  { %17885 = vmatpush3.xpose.msk.msra.mxu1 %vm227_vm2, %v10858_v16  ;;  %17886 = vmatprep.mubr.msk.f32.mxu1 %vm19457_vm0, %v19458_v6  ;;  %v15873_v16 = vld [vmem:[%s22048_s14 + $0x198] sm:$0xff] }
0x5444   :  { %17894 = vmatprep.subr.mxu1 %v19458_v6 }
0x5446   :  { %17887 = vmatmul.mubr.msk.f32.vlgmr.msra.gmra.mrb[126].mxu1 %vm227_vm2, %v10856_v0  ;;  %v15881_v0 = vld [vmem:[%s22048_s14 + $0x1d8] sm:$0xff] }
0x5447   :  { %17896 = vmatprep.mubr.msk.f32.mxu1 %vm19457_vm0, %v19458_v6  ;;  %17895 = vmatpush3.msra.mxu1 %v15832_v21 }
0x5515   :  { %v10777_v54 = vpop.f32.mrb[124].mxu1 }
0x5516   :  { %v17878_v55 = vpop.f32.mrb[125].mxu1  ;;  %17882 = vmatmul.mubr.msk.f32.vlgmr.msra.gmra.mrb[116].mxu0 %vm227_vm2, %v10777_v54  ;;  %v15878_v54 = vld [vmem:[%s22048_s14 + $0x1c0] sm:$0xff] }
0x5517   :  { %17891 = vmatprep.mubr.msk.f32.mxu0 %vm19457_vm0, %v19458_v6  ;;  %v18779_v55 = vpack.c.bf16 %v15881_v0, %v15873_v16  ;;  %v15905_v16 = vld [vmem:[%s22049_s19 + $0x490] sm:$0xff] }
0x5518   :  { %v15937_v0 = vld [vmem:[%s22049_s19 + $0x590] sm:$0xff] }
0x5519   :  { %v10929_v36 = vpop.f32.mrb[126].mxu1 }
0x551a   :  { %v10933_v23 = vmul.f32 0.35355338, %v10929_v36  ;;  %v17888_v56 = vpop.f32.mrb[127].mxu1  ;;  %v18773_v36 = vpack.c.bf16 %v15878_v54, %v15870_v40  ;;  %v15938_v40 = vld [vmem:[%s22049_s19 + $0x598] sm:$0xff] }
0x551b   :  { %v15880_v56 = vld [vmem:[%s22048_s14 + $0x1d0] sm:$0xff] }
0x551c   :  { %v10934_v31 = vsel %vm227_vm2, %v10933_v23, -inf }
0x551d   :  { %10935 = vmax.xlane.f32.xlu0 %v10934_v31  ;;  %v15859_v31 = vld [vmem:[%s22048_s14 + $0x128] sm:$0xff] }
0x5533   :  { %10945 = vrot.lane.b32.xlu0 %v21228_v19, %s19466_s11 }
0x55aa   :  { %v10936_v14 = vpop.xlane.xlu0 %10935 }
0x55ab   :  { %v10937_v57 = vsub.f32 %v10933_v23, %v10936_v14  ;;  %v15872_v23 = vld [vmem:[%s22048_s14 + $0x190] sm:$0xff] }
0x55ac   :  { %v18781_v14 = vpack.c.bf16 %v15880_v56, %v15872_v23  ;;  %v15890_v23 = vld [vmem:[%s22049_s19 + $0x418] sm:$0xff] }
0x55ad   :  { %v10938_v27 = vmul.f32 1.442695, %v10937_v57  ;;  %v15867_v57 = vld [vmem:[%s22048_s14 + $0x168] sm:$0xff] }
0x55ae   :  { %v10946_v15 = vpop.permute.xlu0 %10945 }
0x55af   :  { %19318 = vpow2.f32 %v10938_v27  ;;  %17890 = vmatpush3.msra.mxu0 %v10946_v15  ;;  %v15861_v27 = vld [vmem:[%s22048_s14 + $0x138] sm:$0xff] }
0x55b0   :  { %18768 = vmatprep.subr.bf16.mxu0 %v18767_v28  ;;  %v15869_v15 = vld [vmem:[%s22048_s14 + $0x178] sm:$0xff]  ;;  %v15904_v28 = vld [vmem:[%s22049_s19 + $0x488] sm:$0xff] }
0x55b9   :  { %v19319_v8 = vpop.eup %19318 }
0x55ba   :  { %v10940_v58 = vsel %vm227_vm2, %v19319_v8, 0.0 }
0x55bb   :  { %10941 = vadd.xlane.f32.xlu1 %v10940_v58  ;;  %v18791_v58 = vpack.c.bf16 %v15869_v15, %v15861_v27  ;;  %v15907_v27 = vld [vmem:[%s22049_s19 + $0x4a0] sm:$0xff]  ;;  %v15908_v15 = vld [vmem:[%s22049_s19 + $0x4a8] sm:$0xff] }
0x55e9   :  { %v10850_v59 = vpop.f32.mrb[116].mxu0 }
0x55ea   :  { %v10854_v60 = vadd.f32 %v10850_v59, %v10612_v34  ;;  %v17883_v62 = vpop.f32.mrb[117].mxu0 }
0x55eb   :  { %v11119_v62 = vrot.slane %v21208_v11, %v19886_v32  ;;  %v15885_v11 = vld [vmem:[%s22048_s14 + $0x1f8] sm:$0xff] }
0x5648   :  { %v10942_v5 = vpop.xlane.xlu1 %10941 }
0x5649   :  { %19320 = vrcp.f32 %v10942_v5 }
0x5653   :  { %v19321_v1 = vpop.eup %19320 }
0x5654   :  { %v10944_v19 = vmul.f32 %v19321_v1, %v19319_v8  ;;  %v18783_v8 = vpack.c.bf16 %v15867_v57, %v15859_v31  ;;  %v15858_v1 = vld [vmem:[%s22048_s14 + $0x120] sm:$0xff]  ;;  %v18835_v31 = vpack.c.bf16 %v15938_v40, %v15937_v0  ;;  %v15922_v57 = vld [vmem:[%s22049_s19 + $0x518] sm:$0xff]  ;;  %v15897_v0 = vld [vmem:[%s22049_s19 + $0x450] sm:$0xff] }
0x5655   :  { %v15898_v40 = vld [vmem:[%s22049_s19 + $0x458] sm:$0xff] }
0x5656   :  { %17892 = vmatmul.mubr.msk.f32.vlgmr.msra.gmra.mrb[118].mxu0 %vm227_vm2, %v10944_v19  ;;  %v15866_v19 = vld [vmem:[%s22048_s14 + $0x160] sm:$0xff] }
0x5657   :  { %11400 = vmatprep.mubr.f32.mxu0 %v19458_v6  ;;  %18770 = vmatpush1.bf16.msra.mxu0 %v18769_v45  ;;  %v15887_v45 = vld [vmem:[%s22049_s19 + $0x400] sm:$0xff] }
0x5658   :  { %18772 = vmatprep.subr.bf16.mxu0 %v18771_v49  ;;  %v15906_v49 = vld [vmem:[%s22049_s19 + $0x498] sm:$0xff]  ;;  %v18801_v54 = vpack.c.bf16 %v15888_v22, %v15887_v45  ;;  %v15927_v45 = vld [vmem:[%s22049_s19 + $0x540] sm:$0xff]  ;;  %v15928_v22 = vld [vmem:[%s22049_s19 + $0x548] sm:$0xff] }
0x5659   :  { %v18803_v56 = vpack.c.bf16 %v15906_v49, %v15905_v16  ;;  %v18849_v49 = vpack.c.bf16 %v15928_v22, %v15927_v45  ;;  %v15951_v22 = vld [vmem:[%s22049_s19 + $0x600] sm:$0xff] }
0x565b   :  { %18774 = vmatpush1.bf16.msra.mxu0 %v18773_v36  ;;  %v15889_v36 = vld [vmem:[%s22049_s19 + $0x410] sm:$0xff] }
0x565c   :  { %18784 = vmatprep.subr.bf16.mxu0 %v18783_v8  ;;  %v15939_v8 = vld [vmem:[%s22049_s19 + $0x5a0] sm:$0xff] }
0x5729   :  { %v11017_v2 = vpop.f32.mrb[118].mxu0 }
0x572a   :  { %v17893_v4 = vpop.f32.mrb[119].mxu0  ;;  %17897 = vmatmul.mubr.msk.f32.vlgmr.msra.gmra.mrb[128].mxu1 %vm227_vm2, %v11017_v2 }
0x572b   :  { %11471 = vmatprep.mubr.f32.mxu1 %v19458_v6  ;;  %v11124_v4 = vrot.slane %v21211_v53, %v19886_v32 }
0x57fd   :  { %v11090_v61 = vpop.f32.mrb[128].mxu1 }
0x57fe   :  { %v11094_v10 = vadd.f32 %v11090_v61, %v10854_v60  ;;  %v17898_v50 = vpop.f32.mrb[129].mxu1  ;;  %v15868_v61 = vld [vmem:[%s22048_s14 + $0x170] sm:$0xff] }
0x57ff   :  { %v15883_v50 = vld [vmem:[%s22048_s14 + $0x1e8] sm:$0xff] }
0x5800   :  { %v11101_v13 = vadd.f32 %v15853_v7, %v11094_v10  ;;  %v15860_v7 = vld [vmem:[%s22048_s14 + $0x130] sm:$0xff]  ;;  %v15875_v10 = vld [vmem:[%s22048_s14 + $0x1a8] sm:$0xff] }
0x5801   :  { %v18787_v53 = vpack.c.bf16 %v15883_v50, %v15875_v10  ;;  %v15942_v10 = vld [vmem:[%s22049_s19 + $0x5b8] sm:$0xff] }
0x5802   :  { %v11102_v20 = vadd.f32 %v11101_v13, %v21222_v39  ;;  %v15865_v39 = vld [vmem:[%s22048_s14 + $0x158] sm:$0xff] }
0x5803   :  { %v18775_v43 = vpack.c.bf16 %v15865_v39, %v15857_v44  ;;  %v15877_v13 = vld [vmem:[%s22048_s14 + $0x1b8] sm:$0xff]  ;;  %v15903_v44 = vld [vmem:[%s22049_s19 + $0x480] sm:$0xff] }
0x5804   :  { %v11103_v24 = vsel %vm150_vm1, %v11102_v20, 0.0  ;;  %v15935_v39 = vld [vmem:[%s22049_s19 + $0x580] sm:$0xff]  ;;  %v18799_v47 = vpack.c.bf16 %v15904_v28, %v15903_v44 }
0x5805   :  { %11104 = vadd.xlane.f32.xlu1 %v11103_v24  ;;  %18776 = vmatprep.subr.bf16.mxu1 %v18775_v43  ;;  %v18785_v24 = vpack.c.bf16 %v15866_v19, %v15858_v1  ;;  %v18797_v43 = vpack.c.bf16 %v15884_v37, %v15876_v35  ;;  %v15923_v19 = vld [vmem:[%s22049_s19 + $0x520] sm:$0xff]  ;;  %v15944_v37 = vld [vmem:[%s22049_s19 + $0x5c8] sm:$0xff] }
0x5806   :  { %18778 = vmatpush1.bf16.msra.mxu1 %v18777_v18  ;;  %v18831_v18 = vpack.c.bf16 %v15936_v41, %v15935_v39  ;;  %v15943_v35 = vld [vmem:[%s22049_s19 + $0x5c0] sm:$0xff]  ;;  %v15896_v41 = vld [vmem:[%s22049_s19 + $0x448] sm:$0xff] }
0x5807   :  { %18780 = vmatprep.subr.bf16.mxu1 %v18779_v55  ;;  %v18833_v55 = vpack.c.bf16 %v15920_v9, %v15919_v48  ;;  %v15895_v39 = vld [vmem:[%s22049_s19 + $0x440] sm:$0xff]  ;;  %v15945_v48 = vld [vmem:[%s22049_s19 + $0x5d0] sm:$0xff]  ;;  %v15946_v9 = vld [vmem:[%s22049_s19 + $0x5d8] sm:$0xff] }
0x5808   :  { %v18817_v16 = vpack.c.bf16 %v15896_v41, %v15895_v39 }
0x580a   :  { %18782 = vmatpush1.bf16.msra.mxu1 %v18781_v14  ;;  %v15921_v14 = vld [vmem:[%s22049_s19 + $0x510] sm:$0xff] }
0x580b   :  { %18792 = vmatprep.subr.bf16.mxu1 %v18791_v58  ;;  %v15940_v58 = vld [vmem:[%s22049_s19 + $0x5a8] sm:$0xff] }
0x580c   :  { %v18839_v1 = vpack.c.bf16 %v15940_v58, %v15939_v8  ;;  %v15899_v8 = vld [vmem:[%s22049_s19 + $0x460] sm:$0xff] }
0x5892   :  { %v11105_v12 = vpop.xlane.xlu1 %11104 }
0x5893   :  { %v11106_v26 = vmul.f32 0.03125, %v11105_v12  ;;  %v18793_v12 = vpack.c.bf16 %v15868_v61, %v15860_v7  ;;  %v15910_v7 = vld [vmem:[%s22049_s19 + $0x4b8] sm:$0xff]  ;;  %v15941_v61 = vld [vmem:[%s22049_s19 + $0x5b0] sm:$0xff] }
0x5895   :  { %v11107_v38 = vsub.f32 %v11102_v20, %v11106_v26  ;;  %v15874_v26 = vld [vmem:[%s22048_s14 + $0x1a0] sm:$0xff] }
0x5897   :  { %v11108_v63 = vmul.f32 %v11107_v38, %v11107_v38 }
0x5899   :  { %v11109_v34 = vsel %vm150_vm1, %v11108_v63, 0.0 }
0x589a   :  { %11110 = vadd.xlane.f32.xlu1 %v11109_v34  ;;  %v18795_v34 = vpack.c.bf16 %v15885_v11, %v15877_v13  ;;  %v15893_v11 = vld [vmem:[%s22049_s19 + $0x430] sm:$0xff] }
0x5927   :  { %v11111_v21 = vpop.xlane.xlu1 %11110 }
0x5928   :  { %v11112_v59 = vmul.f32 0.03125, %v11111_v21  ;;  %v18805_v21 = vpack.c.bf16 %v15890_v23, %v15889_v36  ;;  %v15929_v36 = vld [vmem:[%s22049_s19 + $0x550] sm:$0xff]  ;;  %v15930_v23 = vld [vmem:[%s22049_s19 + $0x558] sm:$0xff] }
0x592a   :  { %v11113_v60 = vadd.f32 1e-05, %v11112_v59  ;;  %v18837_v59 = vpack.c.bf16 %v15922_v57, %v15921_v14  ;;  %v15947_v14 = vld [vmem:[%s22049_s19 + $0x5e0] sm:$0xff]  ;;  %v15948_v57 = vld [vmem:[%s22049_s19 + $0x5e8] sm:$0xff] }
0x592c   :  { %19322 = vrsqrt.f32 %v11113_v60  ;;  %v15891_v60 = vld [vmem:[%s22049_s19 + $0x420] sm:$0xff] }
0x5936   :  { %v19323_v5 = vpop.eup %19322 }
0x5937   :  { %v11115_v2 = vmul.f32 %v19323_v5, %v11107_v38  ;;  %v15882_v38 = vld [vmem:[%s22048_s14 + $0x1e0] sm:$0xff]  ;;  %v18807_v5 = vpack.c.bf16 %v15908_v15, %v15907_v27  ;;  %v18821_v27 = vpack.c.bf16 %v15898_v40, %v15897_v0  ;;  %v18853_v15 = vpack.c.bf16 %v15930_v23, %v15929_v36  ;;  %v15984_v0 = vld [vmem:[%s22049_s19 + $0x708] sm:$0xff]  ;;  %v15969_v40 = vld [vmem:[%s22049_s19 + $0x690] sm:$0xff] }
0x5938   :  { %v18789_v42 = vpack.c.bf16 %v15882_v38, %v15874_v26  ;;  %v15925_v26 = vld [vmem:[%s22049_s19 + $0x530] sm:$0xff]  ;;  %v15926_v38 = vld [vmem:[%s22049_s19 + $0x538] sm:$0xff] }
0x5939   :  { %v11120_v20 = vmul.f32 %v11119_v62, %v11115_v2  ;;  %v15892_v62 = vld [vmem:[%s22049_s19 + $0x428] sm:$0xff]  ;;  %v18845_v28 = vpack.c.bf16 %v15926_v38, %v15925_v26  ;;  %v15967_v26 = vld [vmem:[%s22049_s19 + $0x680] sm:$0xff]  ;;  %v15970_v36 = vld [vmem:[%s22049_s19 + $0x698] sm:$0xff] }
0x593a   :  { %v15924_v2 = vld [vmem:[%s22049_s19 + $0x528] sm:$0xff]  ;;  %v18809_v50 = vpack.c.bf16 %v15892_v62, %v15891_v60  ;;  %v15931_v60 = vld [vmem:[%s22049_s19 + $0x560] sm:$0xff]  ;;  %v16001_v23 = vld [vmem:[%s22049_s19 + $0x790] sm:$0xff] }
0x593b   :  { %v21352_v63 = vadd.f32 %v11124_v4, %v11120_v20  ;;  %v15909_v4 = vld [vmem:[%s22049_s19 + $0x4b0] sm:$0xff]  ;;  %v18841_v13 = vpack.c.bf16 %v15924_v2, %v15923_v19  ;;  %v15894_v20 = vld [vmem:[%s22049_s19 + $0x438] sm:$0xff]  ;;  %v15932_v62 = vld [vmem:[%s22049_s19 + $0x568] sm:$0xff] }
0x593c   :  { %v18813_v44 = vpack.c.bf16 %v15894_v20, %v15893_v11  ;;  %v15917_v19 = vld [vmem:[%s22049_s19 + $0x4f0] sm:$0xff]  ;;  %v15918_v2 = vld [vmem:[%s22049_s19 + $0x4f8] sm:$0xff]  ;;  %v15968_v38 = vld [vmem:[%s22049_s19 + $0x688] sm:$0xff] }
0x593d   :  { %16016 = vmatmul.mubr.msk.f32.vlgmr.msra.gmra.mrb[120].mxu0 %vm150_vm1, %v21352_v63  ;;  %16017 = vmatmul.mubr.msk.f32.vlgmr.msra.gmra.mrb[130].mxu1 %vm150_vm1, %v21352_v63  ;;  %v15933_v20 = vld [vmem:[%s22049_s19 + $0x570] sm:$0xff] }
0x593e   :  { %18786 = vmatpush1.bf16.msra.mxu0 %v18785_v24  ;;  %18794 = vmatpush1.bf16.msra.mxu1 %v18793_v12  ;;  %v18811_v24 = vpack.c.bf16 %v15910_v7, %v15909_v4  ;;  %v18843_v12 = vpack.c.bf16 %v15942_v10, %v15941_v61  ;;  %v15949_v4 = vld [vmem:[%s22049_s19 + $0x5f0] sm:$0xff]  ;;  %v18827_v7 = vpack.c.bf16 %v15918_v2, %v15917_v19  ;;  %v15950_v61 = vld [vmem:[%s22049_s19 + $0x5f8] sm:$0xff] }
0x593f   :  { %18788 = vmatprep.subr.bf16.mxu0 %v18787_v53  ;;  %18796 = vmatprep.subr.bf16.mxu1 %v18795_v34  ;;  %v15911_v53 = vld [vmem:[%s22049_s19 + $0x4c0] sm:$0xff]  ;;  %v15912_v34 = vld [vmem:[%s22049_s19 + $0x4c8] sm:$0xff]  ;;  %v15901_v10 = vld [vmem:[%s22049_s19 + $0x470] sm:$0xff] }
0x5940   :  { %11542 = vmatprep.mubr.f32.mxu0 %v19458_v6  ;;  %11613 = vmatprep.mubr.f32.mxu1 %v19458_v6 }
0x5942   :  { %18790 = vmatpush1.bf16.msra.mxu0 %v18789_v42  ;;  %18798 = vmatpush1.bf16.msra.mxu1 %v18797_v43  ;;  %v18815_v42 = vpack.c.bf16 %v15912_v34, %v15911_v53  ;;  %v18847_v43 = vpack.c.bf16 %v15944_v37, %v15943_v35  ;;  %v15999_v53 = vld [vmem:[%s22049_s19 + $0x780] sm:$0xff]  ;;  %v18863_v34 = vpack.c.bf16 %v15968_v38, %v15967_v26  ;;  %v16000_v35 = vld [vmem:[%s22049_s19 + $0x788] sm:$0xff] }
0x5943   :  { %18800 = vmatprep.subr.bf16.mxu0 %v18799_v47  ;;  %18832 = vmatprep.subr.bf16.mxu1 %v18831_v18  ;;  %v15913_v47 = vld [vmem:[%s22049_s19 + $0x4d0] sm:$0xff]  ;;  %v15914_v18 = vld [vmem:[%s22049_s19 + $0x4d8] sm:$0xff]  ;;  %v18895_v37 = vpack.c.bf16 %v16000_v35, %v15999_v53  ;;  %v15988_v35 = vld [vmem:[%s22049_s19 + $0x728] sm:$0xff] }
0x5945   :  { %16018 = vmatmul.mubr.msk.f32.vlgmr.msra.gmra.mrb[122].mxu0 %vm150_vm1, %v21352_v63  ;;  %16019 = vmatmul.mubr.msk.f32.vlgmr.msra.gmra.mrb[132].mxu1 %vm150_vm1, %v21352_v63 }
0x5946   :  { %18802 = vmatpush3.bf16.msra.mxu0 %v18801_v54  ;;  %18834 = vmatpush3.bf16.msra.mxu1 %v18833_v55  ;;  %v18819_v54 = vpack.c.bf16 %v15914_v18, %v15913_v47  ;;  %v18851_v55 = vpack.c.bf16 %v15946_v9, %v15945_v48  ;;  %v15952_v47 = vld [vmem:[%s22049_s19 + $0x608] sm:$0xff] }
0x5947   :  { %18804 = vmatprep.subr.bf16.mxu0 %v18803_v56  ;;  %18836 = vmatprep.subr.bf16.mxu1 %v18835_v31  ;;  %v15915_v56 = vld [vmem:[%s22049_s19 + $0x4e0] sm:$0xff]  ;;  %v15916_v31 = vld [vmem:[%s22049_s19 + $0x4e8] sm:$0xff] }
0x5948   :  { %v18823_v58 = vpack.c.bf16 %v15916_v31, %v15915_v56  ;;  %v16002_v56 = vld [vmem:[%s22049_s19 + $0x798] sm:$0xff] }
0x594a   :  { %18806 = vmatpush3.bf16.msra.mxu0 %v18805_v21  ;;  %18838 = vmatpush3.bf16.msra.mxu1 %v18837_v59  ;;  %v18855_v21 = vpack.c.bf16 %v15948_v57, %v15947_v14  ;;  %v15900_v59 = vld [vmem:[%s22049_s19 + $0x468] sm:$0xff]  ;;  %v18865_v57 = vpack.c.bf16 %v15952_v47, %v15951_v22 }
0x594b   :  { %18808 = vmatprep.subr.bf16.mxu0 %v18807_v5  ;;  %18840 = vmatprep.subr.bf16.mxu1 %v18839_v1  ;;  %v18825_v5 = vpack.c.bf16 %v15900_v59, %v15899_v8  ;;  %v18857_v1 = vpack.c.bf16 %v15932_v62, %v15931_v60  ;;  %v15954_v8 = vld [vmem:[%s22049_s19 + $0x618] sm:$0xff]  ;;  %v18867_v59 = vpack.c.bf16 %v15970_v36, %v15969_v40  ;;  %v15985_v62 = vld [vmem:[%s22049_s19 + $0x710] sm:$0xff]  ;;  %v16007_v36 = vld [vmem:[%s22049_s19 + $0x7c0] sm:$0xff] }
0x594c   :  { %v18899_v60 = vpack.c.bf16 %v16002_v56, %v16001_v23  ;;  %v15990_v40 = vld [vmem:[%s22049_s19 + $0x738] sm:$0xff]  ;;  %v16008_v23 = vld [vmem:[%s22049_s19 + $0x7c8] sm:$0xff] }
0x594e   :  { %18810 = vmatpush3.bf16.msra.mxu0 %v18809_v50  ;;  %18842 = vmatpush3.bf16.msra.mxu1 %v18841_v13  ;;  %v15902_v50 = vld [vmem:[%s22049_s19 + $0x478] sm:$0xff]  ;;  %v18859_v13 = vpack.c.bf16 %v15950_v61, %v15949_v4  ;;  %v15972_v4 = vld [vmem:[%s22049_s19 + $0x6a8] sm:$0xff] }
0x594f   :  { %18812 = vmatprep.subr.bf16.mxu0 %v18811_v24  ;;  %18844 = vmatprep.subr.bf16.mxu1 %v18843_v12  ;;  %v18829_v11 = vpack.c.bf16 %v15902_v50, %v15901_v10  ;;  %v15934_v24 = vld [vmem:[%s22049_s19 + $0x578] sm:$0xff]  ;;  %v16004_v61 = vld [vmem:[%s22049_s19 + $0x7a8] sm:$0xff] }
0x5950   :  { %v18861_v12 = vpack.c.bf16 %v15934_v24, %v15933_v20  ;;  %v15955_v20 = vld [vmem:[%s22049_s19 + $0x620] sm:$0xff]  ;;  %v15956_v24 = vld [vmem:[%s22049_s19 + $0x628] sm:$0xff] }
0x5951   :  { %v18873_v47 = vpack.c.bf16 %v15956_v24, %v15955_v20  ;;  %v15980_v20 = vld [vmem:[%s22049_s19 + $0x6e8] sm:$0xff]  ;;  %v16011_v24 = vld [vmem:[%s22049_s19 + $0x7e0] sm:$0xff] }
0x5952   :  { %18814 = vmatpush3.bf16.msra.mxu0 %v18813_v44  ;;  %18846 = vmatpush3.bf16.msra.mxu1 %v18845_v28  ;;  %v21435_v44 = vld [vmem:[%s22050_s24 + $0x8] sm:$0xff] }
0x5953   :  { %18816 = vmatprep.subr.bf16.mxu0 %v18815_v42  ;;  %18848 = vmatprep.subr.bf16.mxu1 %v18847_v43  ;;  %v11296_v28 = vrot.slane %v21435_v44, %v19775_v17  ;;  %v11304_v39 = vrot.slane %v21435_v44, %v19880_v30  ;;  %v11300_v41 = vrot.slane %v21435_v44, %v19886_v32 }
0x5954   :  { %v11308_v42 = vrot.slane %v21435_v44, %v19889_v33  ;;  %v11316_v19 = vrot.slane %v21435_v44, %v19905_v51  ;;  %v11324_v2 = vrot.slane %v21435_v44, %v19908_v52 }
0x5956   :  { %18818 = vmatpush3.bf16.msra.mxu0 %v18817_v16  ;;  %18850 = vmatpush3.bf16.msra.mxu1 %v18849_v49  ;;  %v15983_v49 = vld [vmem:[%s22049_s19 + $0x700] sm:$0xff] }
0x5957   :  { %18820 = vmatprep.subr.bf16.mxu0 %v18819_v54  ;;  %18852 = vmatprep.subr.bf16.mxu1 %v18851_v55 }
0x595a   :  { %18822 = vmatpush3.bf16.msra.mxu0 %v18821_v27  ;;  %18854 = vmatpush3.bf16.msra.mxu1 %v18853_v15  ;;  %v18897_v27 = vpack.c.bf16 %v15984_v0, %v15983_v49  ;;  %v15953_v15 = vld [vmem:[%s22049_s19 + $0x610] sm:$0xff] }
0x595b   :  { %18824 = vmatprep.subr.bf16.mxu0 %v18823_v58  ;;  %18856 = vmatprep.subr.bf16.mxu1 %v18855_v21  ;;  %v15989_v0 = vld [vmem:[%s22049_s19 + $0x730] sm:$0xff] }
0x595e   :  { %18826 = vmatpush3.bf16.msra.mxu0 %v18825_v5  ;;  %18858 = vmatpush3.bf16.msra.mxu1 %v18857_v1  ;;  %v15986_v5 = vld [vmem:[%s22049_s19 + $0x718] sm:$0xff]  ;;  %v15971_v1 = vld [vmem:[%s22049_s19 + $0x6a0] sm:$0xff] }
0x595f   :  { %18828 = vmatprep.subr.bf16.mxu0 %v18827_v7  ;;  %18860 = vmatprep.subr.bf16.mxu1 %v18859_v13  ;;  %v16003_v7 = vld [vmem:[%s22049_s19 + $0x7a0] sm:$0xff]  ;;  %v18869_v13 = vpack.c.bf16 %v15954_v8, %v15953_v15  ;;  %v18871_v38 = vpack.c.bf16 %v15972_v4, %v15971_v1  ;;  %v18911_v15 = vpack.c.bf16 %v16008_v23, %v16007_v36 }
0x5960   :  { %v18903_v53 = vpack.c.bf16 %v16004_v61, %v16003_v7  ;;  %v15991_v8 = vld [vmem:[%s22049_s19 + $0x740] sm:$0xff]  ;;  %v15993_v61 = vld [vmem:[%s22049_s19 + $0x750] sm:$0xff] }
0x5962   :  { %18830 = vmatpush3.bf16.msra.mxu0 %v18829_v11  ;;  %18862 = vmatpush3.bf16.msra.mxu1 %v18861_v12  ;;  %v18901_v11 = vpack.c.bf16 %v15986_v5, %v15985_v62  ;;  %v16010_v62 = vld [vmem:[%s22049_s19 + $0x7d8] sm:$0xff] }
0x5963   :  { %18864 = vmatprep.subr.bf16.mxu0 %v18863_v34  ;;  %18896 = vmatprep.subr.bf16.mxu1 %v18895_v37  ;;  %v15987_v34 = vld [vmem:[%s22049_s19 + $0x720] sm:$0xff]  ;;  %v15973_v37 = vld [vmem:[%s22049_s19 + $0x6b0] sm:$0xff] }
0x5a10   :  { %v11402_v43 = vpop.f32.mrb[120].mxu0  ;;  %v11473_v45 = vpop.f32.mrb[130].mxu1 }
0x5a11   :  { %v11403_v18 = vadd.f32 %v11402_v43, %v11296_v28  ;;  %v11474_v48 = vadd.f32 %v11473_v45, %v11304_v39  ;;  %v11404_v9 = vpop.f32.mrb[121].mxu0  ;;  %v11475_v16 = vpop.f32.mrb[131].mxu1  ;;  %v16006_v43 = vld [vmem:[%s22049_s19 + $0x7b8] sm:$0xff] }
0x5a12   :  { %v11405_v54 = vadd.f32 %v11404_v9, %v11300_v41  ;;  %v11476_v55 = vadd.f32 %v11475_v16, %v11308_v42  ;;  %v15974_v41 = vld [vmem:[%s22049_s19 + $0x6b8] sm:$0xff]  ;;  %v16005_v42 = vld [vmem:[%s22049_s19 + $0x7b0] sm:$0xff] }
0x5a13   :  { %v11620_v58 = vmax.f32 %v11403_v18, 0.0  ;;  %v11622_v21 = vmax.f32 %v11474_v48, 0.0  ;;  %v18905_v18 = vpack.c.bf16 %v15988_v35, %v15987_v34  ;;  %v15957_v48 = vld [vmem:[%s22049_s19 + $0x630] sm:$0xff]  ;;  %v15958_v9 = vld [vmem:[%s22049_s19 + $0x638] sm:$0xff]  ;;  %v18875_v16 = vpack.c.bf16 %v15974_v41, %v15973_v37  ;;  %v15964_v34 = vld [vmem:[%s22049_s19 + $0x668] sm:$0xff] }
0x5a14   :  { %v11621_v31 = vmax.f32 %v11405_v54, 0.0  ;;  %v11623_v14 = vmax.f32 %v11476_v55, 0.0  ;;  %v18907_v49 = vpack.c.bf16 %v16006_v43, %v16005_v42  ;;  %v15975_v54 = vld [vmem:[%s22049_s19 + $0x6c0] sm:$0xff]  ;;  %v15976_v55 = vld [vmem:[%s22049_s19 + $0x6c8] sm:$0xff]  ;;  %v18877_v56 = vpack.c.bf16 %v15958_v9, %v15957_v48  ;;  %v15981_v41 = vld [vmem:[%s22049_s19 + $0x6f0] sm:$0xff] }
0x5a15   :  { %v15982_v42 = vld [vmem:[%s22049_s19 + $0x6f8] sm:$0xff]  ;;  %v16013_v43 = vld [vmem:[%s22049_s19 + $0x7f0] sm:$0xff]  ;;  %v11320_v9 = vrot.slane %v21435_v44, %v19967_v29 }
0x5a16   :  { %11698 = vmatprep.mubr.f32.mxu0 %v11621_v31  ;;  %11768 = vmatprep.mubr.f32.mxu1 %v11623_v14  ;;  %v18909_v31 = vpack.c.bf16 %v15990_v40, %v15989_v0  ;;  %v15959_v14 = vld [vmem:[%s22049_s19 + $0x640] sm:$0xff]  ;;  %v15965_v48 = vld [vmem:[%s22049_s19 + $0x670] sm:$0xff]  ;;  %v15966_v0 = vld [vmem:[%s22049_s19 + $0x678] sm:$0xff] }
0x5a17   :  { %11699 = vmatmul.mubr.f32.vlgmr.msra.gmra.mrb[124].mxu0 %v11620_v58  ;;  %11769 = vmatmul.mubr.f32.vlgmr.msra.gmra.mrb[134].mxu1 %v11622_v21  ;;  %v15992_v58 = vld [vmem:[%s22049_s19 + $0x748] sm:$0xff]  ;;  %v15977_v21 = vld [vmem:[%s22049_s19 + $0x6d0] sm:$0xff] }
0x5a18   :  { %v21465_v10 = vpop.f32.mrb[122].mxu0  ;;  %v21467_v50 = vpop.f32.mrb[132].mxu1  ;;  %18866 = vmatpush3.bf16.msra.mxu0 %v18865_v57  ;;  %18898 = vmatpush3.bf16.msra.mxu1 %v18897_v27  ;;  %v15960_v57 = vld [vmem:[%s22049_s19 + $0x648] sm:$0xff]  ;;  %v18879_v27 = vpack.c.bf16 %v15976_v55, %v15975_v54  ;;  %v18913_v1 = vpack.c.bf16 %v15992_v58, %v15991_v8  ;;  %v15997_v40 = vld [vmem:[%s22049_s19 + $0x770] sm:$0xff]  ;;  %v15998_v54 = vld [vmem:[%s22049_s19 + $0x778] sm:$0xff]  ;;  %v18893_v55 = vpack.c.bf16 %v15966_v0, %v15965_v48 }
0x5a19   :  { %v11546_v12 = vpop.f32.mrb[123].mxu0  ;;  %v11617_v26 = vpop.f32.mrb[133].mxu1  ;;  %18868 = vmatprep.subr.bf16.mxu0 %v18867_v59  ;;  %18900 = vmatprep.subr.bf16.mxu1 %v18899_v60  ;;  %v15978_v59 = vld [vmem:[%s22049_s19 + $0x6d8] sm:$0xff]  ;;  %v16009_v60 = vld [vmem:[%s22049_s19 + $0x7d0] sm:$0xff]  ;;  %v18881_v5 = vpack.c.bf16 %v15960_v57, %v15959_v14  ;;  %v18925_v36 = vpack.c.bf16 %v15998_v54, %v15997_v40  ;;  %v16020_v14 = vld [vmem:[%s22051_s22 + $0x1] ss:$0 sm:$0xff] }
0x5a1a   :  { %v11547_v28 = vadd.f32 %v11546_v12, %v11316_v19  ;;  %v11618_v39 = vadd.f32 %v11617_v26, %v11324_v2  ;;  %v15961_v19 = vld [vmem:[%s22049_s19 + $0x650] sm:$0xff]  ;;  %v15962_v2 = vld [vmem:[%s22049_s19 + $0x658] sm:$0xff]  ;;  %v18883_v4 = vpack.c.bf16 %v15978_v59, %v15977_v21  ;;  %v18915_v7 = vpack.c.bf16 %v16010_v62, %v16009_v60  ;;  %v16012_v12 = vld [vmem:[%s22049_s19 + $0x7e8] sm:$0xff] }
0x5a1b   :  { %v18885_v26 = vpack.c.bf16 %v15962_v2, %v15961_v19  ;;  %v18919_v37 = vpack.c.bf16 %v16012_v12, %v16011_v24 }
0x5a1c   :  { %v11625_v45 = vmax.f32 %v11547_v28, 0.0  ;;  %v11627_v22 = vmax.f32 %v11618_v39, 0.0  ;;  %18870 = vmatpush3.bf16.msra.mxu0 %v18869_v13  ;;  %18902 = vmatpush3.bf16.msra.mxu1 %v18901_v11  ;;  %v15994_v13 = vld [vmem:[%s22049_s19 + $0x758] sm:$0xff]  ;;  %v15979_v11 = vld [vmem:[%s22049_s19 + $0x6e0] sm:$0xff]  ;;  %v15996_v39 = vld [vmem:[%s22049_s19 + $0x768] sm:$0xff] }
0x5a1d   :  { %18872 = vmatprep.subr.bf16.mxu0 %v18871_v38  ;;  %18904 = vmatprep.subr.bf16.mxu1 %v18903_v53  ;;  %v18917_v38 = vpack.c.bf16 %v15994_v13, %v15993_v61  ;;  %v15963_v53 = vld [vmem:[%s22049_s19 + $0x660] sm:$0xff]  ;;  %v18887_v35 = vpack.c.bf16 %v15980_v20, %v15979_v11 }
0x5a1e   :  { %11838 = vmatprep.mubr.f32.mxu0 %v11625_v45  ;;  %11908 = vmatprep.mubr.f32.mxu1 %v11627_v22  ;;  %v15995_v28 = vld [vmem:[%s22049_s19 + $0x760] sm:$0xff]  ;;  %v16014_v45 = vld [vmem:[%s22049_s19 + $0x7f8] sm:$0xff]  ;;  %v11312_v22 = vrot.slane %v21435_v44, %v19962_v25 }
0x5a20   :  { %18874 = vmatpush3.bf16.msra.mxu0 %v18873_v47  ;;  %18906 = vmatpush3.bf16.msra.mxu1 %v18905_v18  ;;  %v18889_v47 = vpack.c.bf16 %v15964_v34, %v15963_v53  ;;  %v18921_v18 = vpack.c.bf16 %v15996_v39, %v15995_v28  ;;  %v11545_v23 = vadd.f32 %v21465_v10, %v11312_v22  ;;  %v16025_v34 = vld [vmem:[%s19541_s30 + $0x50] sm:$0xff]  ;;  %v19373_v22 = vld [vmem:[%s22045_s29 + $0x4] sm:$0x7] }
0x5a21   :  { %18876 = vmatprep.subr.bf16.mxu0 %v18875_v16  ;;  %18908 = vmatprep.subr.bf16.mxu1 %v18907_v49  ;;  %v18891_v16 = vpack.c.bf16 %v15982_v42, %v15981_v41  ;;  %v18923_v49 = vpack.c.bf16 %v16014_v45, %v16013_v43  ;;  %v19372_v41 = vld [vmem:[%s22044_s25 + $0x4] sm:$0x7] }
0x5a22   :  { %v11624_v44 = vmax.f32 %v11545_v23, 0.0  ;;  %v11931_v42 = vrot.slane %v19372_v41, %v19880_v30 }
0x5a24   :  { %18878 = vmatpush3.bf16.msra.mxu0 %v18877_v56  ;;  %18910 = vmatpush3.bf16.msra.mxu1 %v18909_v31  ;;  %v11616_v56 = vadd.f32 %v21467_v50, %v11320_v9  ;;  %v16033_v9 = vld [vmem:[%s19546_s6 + $0x2] ss:$0 sm:$0xff]  ;;  %s22053_s6 = sld [smem:[#allocation22_spill]] }
0x5a25   :  { %18880 = vmatprep.subr.bf16.mxu0 %v18879_v27  ;;  %18912 = vmatprep.subr.bf16.mxu1 %v18911_v15 }
0x5a26   :  { %v11626_v31 = vmax.f32 %v11616_v56, 0.0 }
0x5a28   :  { %18882 = vmatpush3.bf16.msra.mxu0 %v18881_v5  ;;  %18914 = vmatpush3.bf16.msra.mxu1 %v18913_v1 }
0x5a29   :  { %18884 = vmatprep.subr.bf16.mxu0 %v18883_v4  ;;  %18916 = vmatprep.subr.bf16.mxu1 %v18915_v7 }
0x5a2c   :  { %18886 = vmatpush3.bf16.msra.mxu0 %v18885_v26  ;;  %18918 = vmatpush3.bf16.msra.mxu1 %v18917_v38  ;;  %v16023_v26 = vld [vmem:[%s19541_s30 + $0x40] sm:$0xff]  ;;  %v16024_v38 = vld [vmem:[%s19541_s30 + $0x48] sm:$0xff] }
0x5a2d   :  { %18888 = vmatprep.subr.bf16.mxu0 %v18887_v35  ;;  %18920 = vmatprep.subr.bf16.mxu1 %v18919_v37  ;;  %v18928_v53 = vpack.c.bf16 %v16024_v38, %v16023_v26 }
0x5a30   :  { %18890 = vmatpush3.bf16.msra.mxu0 %v18889_v47  ;;  %18922 = vmatpush3.bf16.msra.mxu1 %v18921_v18  ;;  %v11936_v47 = vrot.slane %v19373_v22, %v19880_v30 }
0x5a31   :  { %18892 = vmatprep.subr.bf16.mxu0 %v18891_v16  ;;  %18924 = vmatprep.subr.bf16.mxu1 %v18923_v49 }
0x5a34   :  { %18894 = vmatpush3.bf16.msra.mxu0 %v18893_v55  ;;  %18926 = vmatpush3.bf16.msra.mxu1 %v18925_v36 }
0x5a35   :  { %18927 = vmatprep.subr.bf16.mxu0 %v19456_v3  ;;  %17910 = vmatprep.subr.mxu1 %v19458_v6 }
0x5a37   :  { %11839 = vmatmul.mubr.f32.vlgmr.msra.gmra.mrb[126].mxu0 %v11624_v44  ;;  %11909 = vmatmul.mubr.f32.vlgmr.msra.gmra.mrb[136].mxu1 %v11626_v31 }
0x5a38   :  { %17907 = vmatprep.mubr.msk.f32.mxu0 %vm19457_vm0, %v19458_v6  ;;  %17912 = vmatprep.mubr.msk.f32.mxu1 %vm19457_vm0, %v19458_v6 }
0x5a39   :  { %18929 = vmatpush3.bf16.msra.mxu0 %v18928_v53 }
0x5a3a   :  { %18930 = vmatprep.subr.bf16.mxu0 %v19456_v3 }
0x5aea   :  { %v17060_v10 = vpop.f32.mrb[124].mxu0  ;;  %v17095_v50 = vpop.f32.mrb[134].mxu1 }
0x5aeb   :  { %v17061_v57 = vpop.f32.mrb[125].mxu0  ;;  %v17096_v27 = vpop.f32.mrb[135].mxu1 }
0x5aec   :  { %v17062_v15 = vadd.f32 %v17061_v57, %v17060_v10  ;;  %v17097_v8 = vadd.f32 %v17096_v27, %v17095_v50 }
0x5aee   :  { %v11701_v58 = vadd.f32 %v17062_v15, %v16020_v14 }
0x5af0   :  { %v11771_v21 = vadd.f32 %v17097_v8, %v11701_v58 }
0x5b0a   :  { %v17130_v59 = vpop.f32.mrb[126].mxu0  ;;  %v17165_v60 = vpop.f32.mrb[136].mxu1 }
0x5b0b   :  { %v17131_v62 = vpop.f32.mrb[127].mxu0  ;;  %v17166_v5 = vpop.f32.mrb[137].mxu1 }
0x5b0c   :  { %v17132_v1 = vadd.f32 %v17131_v62, %v17130_v59  ;;  %v17167_v19 = vadd.f32 %v17166_v5, %v17165_v60 }
0x5b0e   :  { %v11841_v2 = vadd.f32 %v17132_v1, %v11771_v21  ;;  %v16029_v1 = vld [vmem:[%s22040_s9 + $0x48] sm:$0xff] }
0x5b10   :  { %v11911_v4 = vadd.f32 %v17167_v19, %v11841_v2 }
0x5b12   :  { %v11914_v7 = vadd.f32 %v11911_v4, %v21352_v63  ;;  %v16026_v63 = vld [vmem:[%s19541_s30 + $0x58] sm:$0xff]  ;;  %s22052_s30 = sld [smem:[#allocation20_spill]] }
0x5b13   :  { %v18931_v35 = vpack.c.bf16 %v16026_v63, %v16025_v34 }
0x5b14   :  { %v11915_v61 = vsel %vm150_vm1, %v11914_v7, 0.0 }
0x5b15   :  { %11916 = vadd.xlane.f32.xlu1 %v11915_v61  ;;  %18932 = vmatpush3.bf16.msra.mxu0 %v18931_v35 }
0x5b16   :  { %17920 = vmatprep.subr.mxu0 %v19458_v6 }
0x5ba2   :  { %v11917_v13 = vpop.xlane.xlu1 %11916 }
0x5ba3   :  { %v11918_v11 = vmul.f32 0.03125, %v11917_v13 }
0x5ba5   :  { %v11919_v20 = vsub.f32 %v11914_v7, %v11918_v11 }
0x5ba7   :  { %v11920_v24 = vmul.f32 %v11919_v20, %v11919_v20 }
0x5ba9   :  { %v11921_v12 = vsel %vm150_vm1, %v11920_v24, 0.0  ;;  %v16028_v24 = vld [vmem:[%s22040_s9 + $0x40] sm:$0xff] }
0x5baa   :  { %11922 = vadd.xlane.f32.xlu1 %v11921_v12 }
0x5c37   :  { %v11923_v37 = vpop.xlane.xlu1 %11922 }
0x5c38   :  { %v11924_v28 = vmul.f32 0.03125, %v11923_v37 }
0x5c3a   :  { %v11925_v39 = vadd.f32 1e-05, %v11924_v28 }
0x5c3c   :  { %19324 = vrsqrt.f32 %v11925_v39 }
0x5c46   :  { %v19325_v43 = vpop.eup %19324 }
0x5c47   :  { %v11927_v45 = vmul.f32 %v19325_v43, %v11919_v20 }
0x5c49   :  { %v11932_v18 = vmul.f32 %v11931_v42, %v11927_v45 }
0x5c4b   :  { %v21539_v48 = vadd.f32 %v11936_v47, %v11932_v18 }
0x5c4d   :  { %17908 = vmatmul.mubr.msk.f32.vlgmr.msra.gmra.mrb[128].mxu0 %vm150_vm1, %v21539_v48 }
0x5c4e   :  { %17922 = vmatprep.mubr.msk.f32.mxu0 %vm19457_vm0, %v19458_v6 }
0x5d20   :  { %v12031_v16 = vpop.f32.mrb[128].mxu0 }
0x5d21   :  { %v21546_v49 = vadd.f32 %v16033_v9, %v12031_v16  ;;  %v17909_v0 = vpop.f32.mrb[129].mxu0 }
0x5d23   :  { %12202 = vrot.lane.b32.xlu0 %v21546_v49, %s19461_s28  ;;  %12036 = vrot.lane.b32.xlu1 %v21546_v49, %s19460_s5 }
0x5d27   :  { %12200 = vrot.lane.b32.xlu0 %v21546_v49, %s19459_s0 }
0x5d95   :  { %v12203_v40 = vpop.permute.xlu0 %12202  ;;  %v12037_v54 = vpop.permute.xlu1 %12036 }
0x5d96   :  { %17911 = vmatpush3.xpose.msk.msra.mxu1 %vm227_vm2, %v12037_v54  ;;  %17921 = vmatpush3.xpose.msk.msra.mxu0 %vm227_vm2, %v12203_v40 }
0x5d97   :  { %17915 = vmatprep.subr.mxu1 %v19458_v6  ;;  %17930 = vmatprep.subr.mxu0 %v19458_v6 }
0x5d99   :  { %v12201_v55 = vpop.permute.xlu0 %12200  ;;  %17913 = vmatmul.mubr.msk.f32.vlgmr.msra.gmra.mrb[138].mxu1 %vm227_vm2, %v21546_v49 }
0x5d9a   :  { %17923 = vmatmul.mubr.msk.f32.vlgmr.msra.gmra.mrb[130].mxu0 %vm227_vm2, %v12201_v55  ;;  %17917 = vmatprep.mubr.msk.f32.mxu1 %vm19457_vm0, %v19458_v6 }
0x5d9b   :  { %17932 = vmatprep.mubr.msk.f32.mxu0 %vm19457_vm0, %v19458_v6  ;;  %17931 = vmatpush3.msra.mxu0 %v16029_v1 }
0x5d9c   :  { %17940 = vmatprep.subr.mxu0 %v19458_v6 }
0x5e6c   :  { %v12108_v36 = vpop.f32.mrb[138].mxu1 }
0x5e6d   :  { %v12112_v23 = vmul.f32 0.35355338, %v12108_v36  ;;  %v17914_v56 = vpop.f32.mrb[139].mxu1  ;;  %v12274_v44 = vpop.f32.mrb[130].mxu0 }
0x5e6e   :  { %v12278_v31 = vmul.f32 0.35355338, %v12274_v44  ;;  %v17924_v10 = vpop.f32.mrb[131].mxu0  ;;  %v16030_v44 = vld [vmem:[%s22040_s9 + $0x50] sm:$0xff] }
0x5e6f   :  { %v12113_v50 = vsel %vm227_vm2, %v12112_v23, -inf }
0x5e70   :  { %12114 = vmax.xlane.f32.xlu0 %v12113_v50  ;;  %v12279_v14 = vsel %vm227_vm2, %v12278_v31, -inf }
0x5e71   :  { %12280 = vmax.xlane.f32.xlu1 %v12279_v14 }
0x5e82   :  { %12290 = vrot.lane.b32.xlu1 %v21546_v49, %s19462_s1 }
0x5e86   :  { %12512 = vrot.lane.b32.xlu1 %v21546_v49, %s19465_s10 }
0x5efd   :  { %v12115_v57 = vpop.xlane.xlu0 %12114 }
0x5efe   :  { %v12116_v27 = vsub.f32 %v12112_v23, %v12115_v57  ;;  %v12281_v15 = vpop.xlane.xlu1 %12280 }
0x5eff   :  { %v12282_v8 = vsub.f32 %v12278_v31, %v12281_v15 }
0x5f00   :  { %v12117_v58 = vmul.f32 1.442695, %v12116_v27 }
0x5f01   :  { %v12283_v21 = vmul.f32 1.442695, %v12282_v8 }
0x5f02   :  { %19326 = vpow2.f32 %v12117_v58  ;;  %v12291_v13 = vpop.permute.xlu1 %12290 }
0x5f03   :  { %19328 = vpow2.f32 %v12283_v21 }
0x5f06   :  { %v12513_v63 = vpop.permute.xlu1 %12512 }
0x5f0c   :  { %v19327_v59 = vpop.eup %19326 }
0x5f0d   :  { %v12119_v60 = vsel %vm227_vm2, %v19327_v59, 0.0  ;;  %v19329_v62 = vpop.eup %19328 }
0x5f0e   :  { %12120 = vadd.xlane.f32.xlu0 %v12119_v60  ;;  %v12285_v5 = vsel %vm227_vm2, %v19329_v62, 0.0  ;;  %v16031_v60 = vld [vmem:[%s22040_s9 + $0x58] sm:$0xff] }
0x5f12   :  { %12286 = vadd.xlane.f32.xlu0 %v12285_v5 }
0x5f28   :  { %12124 = vrot.lane.b32.xlu0 %v21546_v49, %s19463_s2 }
0x5f2c   :  { %12514 = vrot.lane.b32.xlu0 %v21546_v49, %s19464_s7 }
0x5f9b   :  { %v12121_v19 = vpop.xlane.xlu0 %12120 }
0x5f9c   :  { %19330 = vrcp.f32 %v12121_v19 }
0x5f9f   :  { %v12287_v2 = vpop.xlane.xlu0 %12286 }
0x5fa0   :  { %19332 = vrcp.f32 %v12287_v2 }
0x5fa3   :  { %v12125_v4 = vpop.permute.xlu0 %12124 }
0x5fa4   :  { %17916 = vmatpush3.msra.mxu1 %v12125_v4 }
0x5fa5   :  { %17925 = vmatprep.subr.mxu1 %v19458_v6 }
0x5fa6   :  { %v19331_v7 = vpop.eup %19330 }
0x5fa7   :  { %v12123_v61 = vmul.f32 %v19331_v7, %v19327_v59  ;;  %v12515_v53 = vpop.permute.xlu0 %12514 }
0x5fa9   :  { %17918 = vmatmul.mubr.msk.f32.vlgmr.msra.gmra.mrb[140].mxu1 %vm227_vm2, %v12123_v61 }
0x5faa   :  { %v19333_v11 = vpop.eup %19332  ;;  %17926 = vmatpush3.msra.mxu1 %v12291_v13  ;;  %17927 = vmatprep.mubr.msk.f32.mxu1 %vm19457_vm0, %v19458_v6  ;;  %v16051_v13 = vld [vmem:[%s22041_s13 + $0x2] ss:$0 sm:$0xff] }
0x5fab   :  { %v12289_v20 = vmul.f32 %v19333_v11, %v19329_v62  ;;  %17935 = vmatprep.subr.mxu1 %v19458_v6 }
0x5fad   :  { %17928 = vmatmul.mubr.msk.f32.vlgmr.msra.gmra.mrb[142].mxu1 %vm227_vm2, %v12289_v20 }
0x5fae   :  { %17937 = vmatprep.mubr.msk.f32.mxu1 %vm19457_vm0, %v19458_v6  ;;  %17936 = vmatpush3.msra.mxu1 %v16028_v24 }
0x5faf   :  { %17945 = vmatprep.subr.mxu1 %v19458_v6 }
0x607c   :  { %v12196_v12 = vpop.f32.mrb[140].mxu1 }
0x607d   :  { %v17919_v26 = vpop.f32.mrb[141].mxu1  ;;  %17938 = vmatmul.mubr.msk.f32.vlgmr.msra.gmra.mrb[144].mxu1 %vm227_vm2, %v12196_v12 }
0x607e   :  { %17947 = vmatprep.mubr.msk.f32.mxu1 %vm19457_vm0, %v19458_v6 }
0x6080   :  { %v12362_v38 = vpop.f32.mrb[142].mxu1 }
0x6081   :  { %v17929_v34 = vpop.f32.mrb[143].mxu1  ;;  %17933 = vmatmul.mubr.msk.f32.vlgmr.msra.gmra.mrb[132].mxu0 %vm227_vm2, %v12362_v38 }
0x6082   :  { %17941 = vmatpush3.xpose.msk.msra.mxu0 %vm227_vm2, %v12515_v53  ;;  %17942 = vmatprep.mubr.msk.f32.mxu0 %vm19457_vm0, %v19458_v6  ;;  %v16054_v53 = vld [vmem:[%s22042_s17 + $0x50] sm:$0xff]  ;;  %v16055_v34 = vld [vmem:[%s22042_s17 + $0x58] sm:$0xff] }
0x6083   :  { %17950 = vmatprep.subr.mxu0 %v19458_v6 }
0x6085   :  { %17943 = vmatmul.mubr.msk.f32.vlgmr.msra.gmra.mrb[134].mxu0 %vm227_vm2, %v12513_v63  ;;  %v19185_v63 = vpack.i.bf16 %v16055_v34, %v16054_v53 }
0x6086   :  { %17952 = vmatprep.mubr.msk.f32.mxu0 %vm19457_vm0, %v19458_v6  ;;  %17951 = vmatpush3.msra.mxu0 %v16030_v44 }
0x6087   :  { %17960 = vmatprep.subr.mxu0 %v19458_v6 }
0x6150   :  { %v12508_v35 = vpop.f32.mrb[144].mxu1 }
0x6151   :  { %v17939_v37 = vpop.f32.mrb[145].mxu1 }
0x6154   :  { %v12435_v28 = vpop.f32.mrb[132].mxu0 }
0x6155   :  { %v12509_v39 = vadd.f32 %v12508_v35, %v12435_v28  ;;  %v17934_v41 = vpop.f32.mrb[133].mxu0 }
0x6158   :  { %v12586_v42 = vpop.f32.mrb[134].mxu0 }
0x6159   :  { %v12590_v43 = vmul.f32 0.35355338, %v12586_v42  ;;  %v17944_v45 = vpop.f32.mrb[135].mxu0  ;;  %v16052_v42 = vld [vmem:[%s22042_s17 + $0x40] sm:$0xff] }
0x615b   :  { %v12591_v22 = vsel %vm227_vm2, %v12590_v43, -inf }
0x615c   :  { %12592 = vmax.xlane.f32.xlu0 %v12591_v22  ;;  %v18937_v22 = vpack.c.bf16 %v16055_v34, %v16054_v53 }
0x6172   :  { %12602 = vrot.lane.b32.xlu0 %v21546_v49, %s19468_s16 }
0x6176   :  { %12752 = vrot.lane.b32.xlu0 %v21546_v49, %s19467_s15 }
0x61e9   :  { %v12593_v47 = vpop.xlane.xlu0 %12592 }
0x61ea   :  { %v12594_v18 = vsub.f32 %v12590_v43, %v12593_v47  ;;  %v16053_v43 = vld [vmem:[%s22042_s17 + $0x48] sm:$0xff]  ;;  %v16062_v47 = vld [vmem:[%s22043_s21 + $0x2] ss:$0 sm:$0xff] }
0x61eb   :  { %v19180_v45 = vpack.i.bf16 %v16053_v43, %v16052_v42 }
0x61ec   :  { %v12595_v9 = vmul.f32 1.442695, %v12594_v18 }
0x61ed   :  { %v12603_v16 = vpop.permute.xlu0 %12602 }
0x61ee   :  { %19334 = vpow2.f32 %v12595_v9  ;;  %17946 = vmatpush3.msra.mxu1 %v12603_v16 }
0x61ef   :  { %17955 = vmatprep.subr.mxu1 %v19458_v6 }
0x61f1   :  { %v12753_v56 = vpop.permute.xlu0 %12752 }
0x61f8   :  { %v19335_v0 = vpop.eup %19334 }
0x61f9   :  { %v12597_v40 = vsel %vm227_vm2, %v19335_v0, 0.0 }
0x61fa   :  { %12598 = vadd.xlane.f32.xlu1 %v12597_v40 }
0x620b   :  { %12754 = vrot.lane.b32.xlu1 %v21546_v49, %s19466_s11 }
0x6287   :  { %v12599_v54 = vpop.xlane.xlu1 %12598 }
0x6288   :  { %19336 = vrcp.f32 %v12599_v54 }
0x628b   :  { %v12755_v23 = vpop.permute.xlu1 %12754 }
0x6292   :  { %v19337_v55 = vpop.eup %19336 }
0x6293   :  { %v12601_v36 = vmul.f32 %v19337_v55, %v19335_v0 }
0x6295   :  { %17948 = vmatmul.mubr.msk.f32.vlgmr.msra.gmra.mrb[146].mxu1 %vm227_vm2, %v12601_v36 }
0x6296   :  { %17956 = vmatpush3.xpose.msk.msra.mxu1 %vm227_vm2, %v12755_v23  ;;  %17957 = vmatprep.mubr.msk.f32.mxu1 %vm19457_vm0, %v19458_v6 }
0x6297   :  { %17965 = vmatprep.subr.mxu1 %v19458_v6 }
0x6299   :  { %17958 = vmatmul.mubr.msk.f32.vlgmr.msra.gmra.mrb[148].mxu1 %vm227_vm2, %v12753_v56 }
0x629a   :  { %17967 = vmatprep.mubr.msk.f32.mxu1 %vm19457_vm0, %v19458_v6  ;;  %17966 = vmatpush3.msra.mxu1 %v16031_v60 }
0x629b   :  { %18939 = vmatprep.subr.bf16.mxu1 %v19456_v3 }
0x6368   :  { %v12674_v31 = vpop.f32.mrb[146].mxu1 }
0x6369   :  { %v17949_v10 = vpop.f32.mrb[147].mxu1  ;;  %17953 = vmatmul.mubr.msk.f32.vlgmr.msra.gmra.mrb[136].mxu0 %vm227_vm2, %v12674_v31  ;;  %v21651_v31 = vld [vmem:[%s22044_s25 + $0x8] sm:$0x7] }
0x636a   :  { %17962 = vmatprep.mubr.msk.f32.mxu0 %vm19457_vm0, %v19458_v6  ;;  %v21654_v10 = vld [vmem:[%s22045_s29 + $0x8] sm:$0x7] }
0x636c   :  { %v12826_v50 = vpop.f32.mrb[148].mxu1 }
0x636d   :  { %v12830_v14 = vmul.f32 0.35355338, %v12826_v50  ;;  %v17959_v57 = vpop.f32.mrb[149].mxu1  ;;  %v13016_v50 = vrot.slane %v21651_v31, %v19775_v17 }
0x636f   :  { %v12831_v27 = vsel %vm227_vm2, %v12830_v14, -inf }
0x6370   :  { %12832 = vmax.xlane.f32.xlu1 %v12831_v27  ;;  %v13021_v27 = vrot.slane %v21654_v10, %v19775_v17 }
0x63fd   :  { %v12833_v15 = vpop.xlane.xlu1 %12832 }
0x63fe   :  { %v12834_v8 = vsub.f32 %v12830_v14, %v12833_v15 }
0x6400   :  { %v12835_v58 = vmul.f32 1.442695, %v12834_v8 }
0x6402   :  { %19338 = vpow2.f32 %v12835_v58 }
0x640c   :  { %v19339_v21 = vpop.eup %19338 }
0x640d   :  { %v12837_v59 = vsel %vm227_vm2, %v19339_v21, 0.0 }
0x640e   :  { %12838 = vadd.xlane.f32.xlu0 %v12837_v59 }
0x6424   :  { %12842 = vrot.lane.b32.xlu0 %v21546_v49, %s19469_s18 }
0x6428   :  { %19186 = vrot.lane.b32.xlu0 %v19185_v63, %s19460_s5 }
0x642c   :  { %13132 = vrot.lane.b32.xlu0 %v16062_v47, %s19460_s5 }
0x643c   :  { %v12747_v62 = vpop.f32.mrb[136].mxu0 }
0x643d   :  { %v12751_v5 = vadd.f32 %v12747_v62, %v12509_v39  ;;  %v17954_v1 = vpop.f32.mrb[137].mxu0 }
0x649b   :  { %v12839_v19 = vpop.xlane.xlu0 %12838 }
0x649c   :  { %19340 = vrcp.f32 %v12839_v19 }
0x649f   :  { %v12843_v2 = vpop.permute.xlu0 %12842 }
0x64a0   :  { %17961 = vmatpush3.msra.mxu0 %v12843_v2 }
0x64a1   :  { %18933 = vmatprep.subr.bf16.mxu0 %v19456_v3 }
0x64a3   :  { %v19187_v16 = vpop.permute.xlu0 %19186 }
0x64a4   :  { %v19189_v54 = vunpack.i.h.bf16 %v19187_v16  ;;  %v19188_v23 = vunpack.i.l.bf16 %v19187_v16  ;;  %v16057_v16 = vld [vmem:[%s22046_s3 + $0x40] sm:$0xff] }
0x64a6   :  { %v19341_v4 = vpop.eup %19340  ;;  %v18943_v44 = vpack.c.bf16 %v19189_v54, %v19188_v23 }
0x64a7   :  { %v12841_v7 = vmul.f32 %v19341_v4, %v19339_v21  ;;  %v13133_v58 = vpop.permute.xlu0 %13132 }
0x64a9   :  { %17963 = vmatmul.mubr.msk.f32.vlgmr.msra.gmra.mrb[138].mxu0 %vm227_vm2, %v12841_v7 }
0x64aa   :  { %17978 = vmatprep.mubr.msk.f32.mxu0 %vm19457_vm0, %v19458_v6 }
0x657c   :  { %v12914_v49 = vpop.f32.mrb[138].mxu0 }
0x657d   :  { %v17964_v61 = vpop.f32.mrb[139].mxu0  ;;  %17968 = vmatmul.mubr.msk.f32.vlgmr.msra.gmra.mrb[150].mxu1 %vm227_vm2, %v12914_v49 }
0x657e   :  { %17989 = vmatprep.mubr.msk.f32.mxu1 %vm19457_vm0, %v19458_v6 }
0x6650   :  { %v12987_v11 = vpop.f32.mrb[150].mxu1 }
0x6651   :  { %v12991_v20 = vadd.f32 %v12987_v11, %v12751_v5  ;;  %v17969_v24 = vpop.f32.mrb[151].mxu1 }
0x6653   :  { %v12998_v12 = vadd.f32 %v16051_v13, %v12991_v20 }
0x6655   :  { %v12999_v26 = vadd.f32 %v12998_v12, %v21539_v48  ;;  %v18934_v48 = vpack.c.bf16 %v16053_v43, %v16052_v42 }
0x6657   :  { %v13000_v38 = vsel %vm150_vm1, %v12999_v26, 0.0  ;;  %18935 = vmatpush3.bf16.msra.mxu0 %v18934_v48  ;;  %v16058_v48 = vld [vmem:[%s22046_s3 + $0x48] sm:$0xff] }
0x6658   :  { %13001 = vadd.xlane.f32.xlu1 %v13000_v38  ;;  %18936 = vmatprep.subr.bf16.mxu0 %v19456_v3 }
0x665b   :  { %18938 = vmatpush3.bf16.msra.mxu0 %v18937_v22 }
0x665c   :  { %17992 = vmatprep.subr.mxu0 %v19458_v6 }
0x66e5   :  { %v13002_v35 = vpop.xlane.xlu1 %13001 }
0x66e6   :  { %v13003_v37 = vmul.f32 0.03125, %v13002_v35 }
0x66e8   :  { %v13004_v28 = vsub.f32 %v12999_v26, %v13003_v37 }
0x66ea   :  { %v13005_v39 = vmul.f32 %v13004_v28, %v13004_v28 }
0x66ec   :  { %v13006_v41 = vsel %vm150_vm1, %v13005_v39, 0.0 }
0x66ed   :  { %13007 = vadd.xlane.f32.xlu1 %v13006_v41 }
0x66fe   :  { %19181 = vrot.lane.b32.xlu1 %v19180_v45, %s19460_s5 }
0x677a   :  { %v13008_v18 = vpop.xlane.xlu1 %13007 }
0x677b   :  { %v13009_v9 = vmul.f32 0.03125, %v13008_v18 }
0x677d   :  { %v13010_v0 = vadd.f32 1e-05, %v13009_v9 }
0x677e   :  { %v19182_v40 = vpop.permute.xlu1 %19181 }
0x677f   :  { %19342 = vrsqrt.f32 %v13010_v0  ;;  %v19184_v55 = vunpack.i.h.bf16 %v19182_v40  ;;  %v19183_v36 = vunpack.i.l.bf16 %v19182_v40 }
0x6781   :  { %v18940_v56 = vpack.c.bf16 %v19184_v55, %v19183_v36 }
0x6783   :  { %18941 = vmatpush3.bf16.msra.mxu1 %v18940_v56 }
0x6784   :  { %18942 = vmatprep.subr.bf16.mxu1 %v19456_v3 }
0x6787   :  { %18944 = vmatpush3.bf16.msra.mxu1 %v18943_v44 }
0x6788   :  { %17997 = vmatprep.subr.mxu1 %v19458_v6 }
0x6789   :  { %v19343_v14 = vpop.eup %19342 }
0x678a   :  { %v13012_v57 = vmul.f32 %v19343_v14, %v13004_v28  ;;  %17990 = vmatmul.mubr.msk.f32.vlgmr.msra.gmra.mrb[152].mxu1 %vm150_vm1, %v20756_v46 }
0x678b   :  { %17999 = vmatprep.mubr.msk.f32.mxu1 %vm19457_vm0, %v19458_v6 }
0x678c   :  { %v13017_v15 = vmul.f32 %v13016_v50, %v13012_v57 }
0x678e   :  { %v21665_v8 = vadd.f32 %v13021_v27, %v13017_v15 }
0x6790   :  { %17979 = vmatmul.mubr.msk.f32.vlgmr.msra.gmra.mrb[140].mxu0 %vm150_vm1, %v21665_v8 }
0x6791   :  { %17994 = vmatprep.mubr.msk.f32.mxu0 %vm19457_vm0, %v19458_v6 }
0x685d   :  { %v13201_v21 = vpop.f32.mrb[152].mxu1 }
0x685e   :  { %v21671_v59 = vadd.f32 %v13201_v21, %v13133_v58  ;;  %v17991_v60 = vpop.f32.mrb[153].mxu1 }
0x6860   :  { %13371 = vrot.lane.b32.xlu1 %v21671_v59, %s19459_s0  ;;  %17993 = vmatpush3.xpose.msk.msra.mxu0 %vm227_vm2, %v21671_v59 }
0x6861   :  { %18002 = vmatprep.subr.mxu0 %v19458_v6 }
0x6863   :  { %v13112_v62 = vpop.f32.mrb[140].mxu0 }
0x6864   :  { %v21678_v5 = vadd.f32 %v16062_v47, %v13112_v62  ;;  %v17980_v1 = vpop.f32.mrb[141].mxu0 }
0x6866   :  { %13369 = vrot.lane.b32.xlu0 %v21678_v5, %s19459_s0  ;;  %17995 = vmatmul.mubr.msk.f32.vlgmr.msra.gmra.mrb[142].mxu0 %vm227_vm2, %v21678_v5  ;;  %s19472_s0 = smov [#allocation4]  }
0x6867   :  { %18004 = vmatprep.mubr.msk.f32.mxu0 %vm19457_vm0, %v19458_v6 }
0x68d2   :  { %v13372_v19 = vpop.permute.xlu1 %13371 }
0x68d3   :  { %18003 = vmatpush3.xpose.msk.msra.mxu0 %vm227_vm2, %v13372_v19 }
0x68d4   :  { %18012 = vmatprep.subr.mxu0 %v19458_v6 }
0x68d8   :  { %v13370_v2 = vpop.permute.xlu0 %13369 }
0x68d9   :  { %18005 = vmatmul.mubr.msk.f32.vlgmr.msra.gmra.mrb[144].mxu0 %vm227_vm2, %v13370_v2 }
0x68da   :  { %18014 = vmatprep.mubr.msk.f32.mxu0 %vm19457_vm0, %v19458_v6  ;;  %18013 = vmatpush3.msra.mxu0 %v16058_v48 }
0x68db   :  { %18022 = vmatprep.subr.mxu0 %v19458_v6 }
0x6939   :  { %v13277_v4 = vpop.f32.mrb[142].mxu0 }
0x693a   :  { %v13281_v7 = vmul.f32 0.35355338, %v13277_v4  ;;  %v17996_v49 = vpop.f32.mrb[143].mxu0 }
0x693c   :  { %v13282_v61 = vsel %vm227_vm2, %v13281_v7, -inf }
0x693d   :  { %13283 = vmax.xlane.f32.xlu1 %v13282_v61 }
0x69ac   :  { %v13443_v13 = vpop.f32.mrb[144].mxu0 }
0x69ad   :  { %v13447_v11 = vmul.f32 0.35355338, %v13443_v13  ;;  %v18006_v20 = vpop.f32.mrb[145].mxu0 }
0x69af   :  { %v13448_v24 = vsel %vm227_vm2, %v13447_v11, -inf }
0x69b0   :  { %13449 = vmax.xlane.f32.xlu0 %v13448_v24 }
0x69ca   :  { %v13284_v12 = vpop.xlane.xlu1 %13283 }
0x69cb   :  { %v13285_v26 = vsub.f32 %v13281_v7, %v13284_v12 }
0x69cd   :  { %v13286_v38 = vmul.f32 1.442695, %v13285_v26 }
0x69cf   :  { %19344 = vpow2.f32 %v13286_v38 }
0x69d9   :  { %v19345_v53 = vpop.eup %19344 }
0x69da   :  { %v13288_v34 = vsel %vm227_vm2, %v19345_v53, 0.0 }
0x69db   :  { %13289 = vadd.xlane.f32.xlu0 %v13288_v34 }
0x69f1   :  { %13293 = vrot.lane.b32.xlu0 %v21671_v59, %s19460_s5  ;;  %s15277_s5 = sshll.u32 %s19472_s0, 4  ;;  %s15278_s5 = int_to_ptr.vmem [resolvable:$true] %s15277_s5 }
0x69f5   :  { %13681 = vrot.lane.b32.xlu0 %v21678_v5, %s19465_s10 }
0x6a3d   :  { %v13450_v63 = vpop.xlane.xlu0 %13449 }
0x6a3e   :  { %v13451_v35 = vsub.f32 %v13447_v11, %v13450_v63  ;;  %v16059_v11 = vld [vmem:[%s22046_s3 + $0x50] sm:$0xff] }
0x6a40   :  { %v13452_v37 = vmul.f32 1.442695, %v13451_v35 }
0x6a42   :  { %19346 = vpow2.f32 %v13452_v37 }
0x6a4c   :  { %v19347_v28 = vpop.eup %19346 }
0x6a4d   :  { %v13454_v39 = vsel %vm227_vm2, %v19347_v28, 0.0 }
0x6a4e   :  { %13455 = vadd.xlane.f32.xlu1 %v13454_v39 }
0x6a5f   :  { %13459 = vrot.lane.b32.xlu1 %v21671_v59, %s19461_s28 }
0x6a63   :  { %13683 = vrot.lane.b32.xlu1 %v21671_v59, %s19465_s10 }
0x6a68   :  { %v13290_v41 = vpop.xlane.xlu0 %13289 }
0x6a69   :  { %19348 = vrcp.f32 %v13290_v41  ;;  %v16060_v41 = vld [vmem:[%s22046_s3 + $0x58] sm:$0xff] }
0x6a6c   :  { %v13294_v42 = vpop.permute.xlu0 %13293 }
0x6a6d   :  { %17998 = vmatpush3.msra.mxu1 %v13294_v42 }
0x6a6e   :  { %18007 = vmatprep.subr.mxu1 %v19458_v6 }
0x6a70   :  { %v13682_v23 = vpop.permute.xlu0 %13681 }
0x6a73   :  { %v19349_v43 = vpop.eup %19348 }
0x6a74   :  { %v13292_v45 = vmul.f32 %v19349_v43, %v19345_v53 }
0x6a76   :  { %18000 = vmatmul.mubr.msk.f32.vlgmr.msra.gmra.mrb[154].mxu1 %vm227_vm2, %v13292_v45 }
0x6a77   :  { %18009 = vmatprep.mubr.msk.f32.mxu1 %vm19457_vm0, %v19458_v6 }
0x6adb   :  { %v13456_v22 = vpop.xlane.xlu1 %13455 }
0x6adc   :  { %19350 = vrcp.f32 %v13456_v22 }
0x6adf   :  { %v13460_v47 = vpop.permute.xlu1 %13459 }
0x6ae0   :  { %18008 = vmatpush3.msra.mxu1 %v13460_v47 }
0x6ae1   :  { %18017 = vmatprep.subr.mxu1 %v19458_v6 }
0x6ae3   :  { %v13684_v55 = vpop.permute.xlu1 %13683 }
0x6ae6   :  { %v19351_v18 = vpop.eup %19350 }
0x6ae7   :  { %v13458_v9 = vmul.f32 %v19351_v18, %v19347_v28 }
0x6ae9   :  { %18010 = vmatmul.mubr.msk.f32.vlgmr.msra.gmra.mrb[156].mxu1 %vm227_vm2, %v13458_v9  ;;  %v16081_v9 = vld [vmem:[%s22047_s8 + $0x2] ss:$0 sm:$0xff] }
0x6aea   :  { %18018 = vmatpush3.msra.mxu1 %v16057_v16  ;;  %18019 = vmatprep.mubr.msk.f32.mxu1 %vm19457_vm0, %v19458_v6 }
0x6aeb   :  { %18027 = vmatprep.subr.mxu1 %v19458_v6 }
0x6b49   :  { %v13365_v0 = vpop.f32.mrb[154].mxu1 }
0x6b4a   :  { %v18001_v40 = vpop.f32.mrb[155].mxu1  ;;  %18020 = vmatmul.mubr.msk.f32.vlgmr.msra.gmra.mrb[158].mxu1 %vm227_vm2, %v13365_v0 }
0x6b4b   :  { %18029 = vmatprep.mubr.msk.f32.mxu1 %vm19457_vm0, %v19458_v6 }
0x6bbc   :  { %v13531_v54 = vpop.f32.mrb[156].mxu1 }
0x6bbd   :  { %v18011_v36 = vpop.f32.mrb[157].mxu1  ;;  %18015 = vmatmul.mubr.msk.f32.vlgmr.msra.gmra.mrb[146].mxu0 %vm227_vm2, %v13531_v54 }
0x6bbe   :  { %18023 = vmatpush3.xpose.msk.msra.mxu0 %vm227_vm2, %v13684_v55  ;;  %18024 = vmatprep.mubr.msk.f32.mxu0 %vm19457_vm0, %v19458_v6 }
0x6bbf   :  { %18032 = vmatprep.subr.mxu0 %v19458_v6 }
0x6bc1   :  { %18025 = vmatmul.mubr.msk.f32.vlgmr.msra.gmra.mrb[148].mxu0 %vm227_vm2, %v13682_v23 }
0x6bc2   :  { %18034 = vmatprep.mubr.msk.f32.mxu0 %vm19457_vm0, %v19458_v6  ;;  %18033 = vmatpush3.msra.mxu0 %v16059_v11  ;;  %v16098_v11 = vld [vmem:[%s22048_s14 + $0x280] sm:$0xff] }
0x6bc3   :  { %18042 = vmatprep.subr.mxu0 %v19458_v6 }
0x6c1d   :  { %v13677_v56 = vpop.f32.mrb[158].mxu1 }
0x6c1e   :  { %v18021_v44 = vpop.f32.mrb[159].mxu1 }
0x6c90   :  { %v13604_v50 = vpop.f32.mrb[146].mxu0 }
0x6c91   :  { %v13678_v14 = vadd.f32 %v13677_v56, %v13604_v50  ;;  %v18016_v57 = vpop.f32.mrb[147].mxu0 }
0x6c92   :  { %v16083_v57 = vld [vmem:[%s22048_s14 + $0x208] sm:$0xff] }
0x6c94   :  { %v13755_v27 = vpop.f32.mrb[148].mxu0 }
0x6c95   :  { %v13759_v15 = vmul.f32 0.35355338, %v13755_v27  ;;  %v18026_v58 = vpop.f32.mrb[149].mxu0  ;;  %v16091_v27 = vld [vmem:[%s22048_s14 + $0x248] sm:$0xff] }
0x6c96   :  { %v18945_v58 = vpack.c.bf16 %v16091_v27, %v16083_v57  ;;  %v16104_v57 = vld [vmem:[%s22048_s14 + $0x2b0] sm:$0xff] }
0x6c97   :  { %v13760_v21 = vsel %vm227_vm2, %v13759_v15, -inf  ;;  %v16112_v27 = vld [vmem:[%s22048_s14 + $0x2f0] sm:$0xff] }
0x6c98   :  { %13761 = vmax.xlane.f32.xlu1 %v13760_v21  ;;  %v16082_v21 = vld [vmem:[%s22048_s14 + $0x200] sm:$0xff] }
0x6ca9   :  { %13923 = vrot.lane.b32.xlu1 %v21671_v59, %s19467_s15 }
0x6cad   :  { %13921 = vrot.lane.b32.xlu1 %v21678_v5, %s19467_s15 }
0x6d25   :  { %v13762_v60 = vpop.xlane.xlu1 %13761 }
0x6d26   :  { %v13763_v62 = vsub.f32 %v13759_v15, %v13762_v60  ;;  %v16085_v15 = vld [vmem:[%s22048_s14 + $0x218] sm:$0xff]  ;;  %v16090_v60 = vld [vmem:[%s22048_s14 + $0x240] sm:$0xff] }
0x6d28   :  { %v13764_v1 = vmul.f32 1.442695, %v13763_v62 }
0x6d29   :  { %v13924_v5 = vpop.permute.xlu1 %13923 }
0x6d2a   :  { %19352 = vpow2.f32 %v13764_v1  ;;  %v18947_v1 = vpack.c.bf16 %v16090_v60, %v16082_v21  ;;  %v16164_v21 = vld [vmem:[%s22049_s19 + $0x988] sm:$0xff] }
0x6d2d   :  { %v13922_v13 = vpop.permute.xlu1 %13921 }
0x6d34   :  { %v19353_v19 = vpop.eup %19352 }
0x6d35   :  { %v13766_v2 = vsel %vm227_vm2, %v19353_v19, 0.0 }
0x6d36   :  { %13767 = vadd.xlane.f32.xlu0 %v13766_v2  ;;  %v16092_v2 = vld [vmem:[%s22048_s14 + $0x250] sm:$0xff] }
0x6d4c   :  { %13771 = vrot.lane.b32.xlu0 %v21671_v59, %s19464_s7 }
0x6dc3   :  { %v13768_v4 = vpop.xlane.xlu0 %13767 }
0x6dc4   :  { %19354 = vrcp.f32 %v13768_v4 }
0x6dc7   :  { %v13772_v7 = vpop.permute.xlu0 %13771 }
0x6dc8   :  { %18028 = vmatpush3.msra.mxu1 %v13772_v7  ;;  %v16099_v7 = vld [vmem:[%s22048_s14 + $0x288] sm:$0xff] }
0x6dc9   :  { %18037 = vmatprep.subr.mxu1 %v19458_v6 }
0x6dce   :  { %v19355_v49 = vpop.eup %19354 }
0x6dcf   :  { %v13770_v61 = vmul.f32 %v19355_v49, %v19353_v19  ;;  %v16084_v19 = vld [vmem:[%s22048_s14 + $0x210] sm:$0xff]  ;;  %v16107_v49 = vld [vmem:[%s22048_s14 + $0x2c8] sm:$0xff] }
0x6dd0   :  { %v18955_v4 = vpack.c.bf16 %v16092_v2, %v16084_v19  ;;  %v16116_v19 = vld [vmem:[%s22049_s19 + $0x808] sm:$0xff] }
0x6dd1   :  { %18030 = vmatmul.mubr.msk.f32.vlgmr.msra.gmra.mrb[160].mxu1 %vm227_vm2, %v13770_v61  ;;  %v18949_v61 = vpack.c.bf16 %v16107_v49, %v16099_v7  ;;  %v16147_v7 = vld [vmem:[%s22049_s19 + $0x900] sm:$0xff]  ;;  %v16148_v49 = vld [vmem:[%s22049_s19 + $0x908] sm:$0xff] }
0x6dd2   :  { %18038 = vmatpush3.xpose.msk.msra.mxu1 %vm227_vm2, %v13924_v5  ;;  %18039 = vmatprep.mubr.msk.f32.mxu1 %vm19457_vm0, %v19458_v6  ;;  %v16101_v5 = vld [vmem:[%s22048_s14 + $0x298] sm:$0xff] }
0x6dd3   :  { %18047 = vmatprep.subr.mxu1 %v19458_v6 }
0x6dd5   :  { %18040 = vmatmul.mubr.msk.f32.vlgmr.msra.gmra.mrb[162].mxu1 %vm227_vm2, %v13922_v13  ;;  %v16109_v13 = vld [vmem:[%s22048_s14 + $0x2d8] sm:$0xff] }
0x6dd6   :  { %18049 = vmatprep.mubr.msk.f32.mxu1 %vm19457_vm0, %v19458_v6  ;;  %18048 = vmatpush3.msra.mxu1 %v16060_v41 }
0x6ea4   :  { %v13843_v20 = vpop.f32.mrb[160].mxu1 }
0x6ea5   :  { %v18031_v24 = vpop.f32.mrb[161].mxu1  ;;  %18035 = vmatmul.mubr.msk.f32.vlgmr.msra.gmra.mrb[150].mxu0 %vm227_vm2, %v13843_v20  ;;  %v16106_v20 = vld [vmem:[%s22048_s14 + $0x2c0] sm:$0xff] }
0x6ea6   :  { %18044 = vmatprep.mubr.msk.f32.mxu0 %vm19457_vm0, %v19458_v6  ;;  %v18957_v24 = vpack.c.bf16 %v16109_v13, %v16101_v5  ;;  %v16133_v5 = vld [vmem:[%s22049_s19 + $0x890] sm:$0xff] }
0x6ea7   :  { %v16165_v13 = vld [vmem:[%s22049_s19 + $0x990] sm:$0xff] }
0x6ea8   :  { %v13995_v12 = vpop.f32.mrb[162].mxu1 }
0x6ea9   :  { %v13999_v26 = vmul.f32 0.35355338, %v13995_v12  ;;  %v18041_v38 = vpop.f32.mrb[163].mxu1  ;;  %v18951_v12 = vpack.c.bf16 %v16106_v20, %v16098_v11  ;;  %v16166_v11 = vld [vmem:[%s22049_s19 + $0x998] sm:$0xff] }
0x6eaa   :  { %v16108_v38 = vld [vmem:[%s22048_s14 + $0x2d0] sm:$0xff] }
0x6eab   :  { %v14000_v53 = vsel %vm227_vm2, %v13999_v26, -inf }
0x6eac   :  { %14001 = vmax.xlane.f32.xlu0 %v14000_v53  ;;  %v16087_v53 = vld [vmem:[%s22048_s14 + $0x228] sm:$0xff] }
0x6ec2   :  { %14011 = vrot.lane.b32.xlu0 %v21671_v59, %s19466_s11 }
0x6f39   :  { %v14002_v34 = vpop.xlane.xlu0 %14001 }
0x6f3a   :  { %v14003_v63 = vsub.f32 %v13999_v26, %v14002_v34  ;;  %v16100_v26 = vld [vmem:[%s22048_s14 + $0x290] sm:$0xff] }
0x6f3b   :  { %v18959_v34 = vpack.c.bf16 %v16108_v38, %v16100_v26  ;;  %v16118_v26 = vld [vmem:[%s22049_s19 + $0x818] sm:$0xff] }
0x6f3c   :  { %v14004_v35 = vmul.f32 1.442695, %v14003_v63  ;;  %v16095_v63 = vld [vmem:[%s22048_s14 + $0x268] sm:$0xff] }
0x6f3d   :  { %v14012_v37 = vpop.permute.xlu0 %14011 }
0x6f3e   :  { %19356 = vpow2.f32 %v14004_v35  ;;  %18043 = vmatpush3.msra.mxu0 %v14012_v37  ;;  %v16089_v35 = vld [vmem:[%s22048_s14 + $0x238] sm:$0xff] }
0x6f3f   :  { %18946 = vmatprep.subr.bf16.mxu0 %v18945_v58  ;;  %v16097_v37 = vld [vmem:[%s22048_s14 + $0x278] sm:$0xff]  ;;  %v16132_v58 = vld [vmem:[%s22049_s19 + $0x888] sm:$0xff] }
0x6f48   :  { %v19357_v28 = vpop.eup %19356 }
0x6f49   :  { %v14006_v39 = vsel %vm227_vm2, %v19357_v28, 0.0 }
0x6f4a   :  { %14007 = vadd.xlane.f32.xlu1 %v14006_v39  ;;  %v18969_v39 = vpack.c.bf16 %v16097_v37, %v16089_v35  ;;  %v16135_v35 = vld [vmem:[%s22049_s19 + $0x8a0] sm:$0xff]  ;;  %v16136_v37 = vld [vmem:[%s22049_s19 + $0x8a8] sm:$0xff] }
0x6f78   :  { %v13916_v42 = vpop.f32.mrb[150].mxu0 }
0x6f79   :  { %v13920_v43 = vadd.f32 %v13916_v42, %v13678_v14  ;;  %v18036_v45 = vpop.f32.mrb[151].mxu0 }
0x6f7a   :  { %v14185_v45 = vrot.slane %v21651_v31, %v19886_v32  ;;  %v16113_v31 = vld [vmem:[%s22048_s14 + $0x2f8] sm:$0xff] }
0x6fd7   :  { %v14008_v48 = vpop.xlane.xlu1 %14007 }
0x6fd8   :  { %19358 = vrcp.f32 %v14008_v48 }
0x6fe2   :  { %v19359_v22 = vpop.eup %19358 }
0x6fe3   :  { %v14010_v59 = vmul.f32 %v19359_v22, %v19357_v28  ;;  %v18961_v28 = vpack.c.bf16 %v16095_v63, %v16087_v53  ;;  %v16086_v22 = vld [vmem:[%s22048_s14 + $0x220] sm:$0xff]  ;;  %v19013_v53 = vpack.c.bf16 %v16166_v11, %v16165_v13  ;;  %v16150_v63 = vld [vmem:[%s22049_s19 + $0x918] sm:$0xff]  ;;  %v16125_v13 = vld [vmem:[%s22049_s19 + $0x850] sm:$0xff] }
0x6fe4   :  { %v16126_v11 = vld [vmem:[%s22049_s19 + $0x858] sm:$0xff] }
0x6fe5   :  { %18045 = vmatmul.mubr.msk.f32.vlgmr.msra.gmra.mrb[152].mxu0 %vm227_vm2, %v14010_v59  ;;  %v16094_v59 = vld [vmem:[%s22048_s14 + $0x260] sm:$0xff] }
0x6fe6   :  { %14466 = vmatprep.mubr.f32.mxu0 %v19458_v6  ;;  %18948 = vmatpush1.bf16.msra.mxu0 %v18947_v1  ;;  %v16115_v1 = vld [vmem:[%s22049_s19 + $0x800] sm:$0xff] }
0x6fe7   :  { %18950 = vmatprep.subr.bf16.mxu0 %v18949_v61  ;;  %v16134_v61 = vld [vmem:[%s22049_s19 + $0x898] sm:$0xff]  ;;  %v18979_v20 = vpack.c.bf16 %v16116_v19, %v16115_v1  ;;  %v16155_v1 = vld [vmem:[%s22049_s19 + $0x940] sm:$0xff]  ;;  %v16156_v19 = vld [vmem:[%s22049_s19 + $0x948] sm:$0xff] }
0x6fe8   :  { %v18981_v38 = vpack.c.bf16 %v16134_v61, %v16133_v5  ;;  %v19027_v61 = vpack.c.bf16 %v16156_v19, %v16155_v1  ;;  %v16179_v19 = vld [vmem:[%s22049_s19 + $0xa00] sm:$0xff] }
0x6fea   :  { %18952 = vmatpush1.bf16.msra.mxu0 %v18951_v12  ;;  %v16117_v12 = vld [vmem:[%s22049_s19 + $0x810] sm:$0xff] }
0x6feb   :  { %18962 = vmatprep.subr.bf16.mxu0 %v18961_v28  ;;  %v16167_v28 = vld [vmem:[%s22049_s19 + $0x9a0] sm:$0xff] }
0x70b8   :  { %v14083_v47 = vpop.f32.mrb[152].mxu0 }
0x70b9   :  { %v18046_v18 = vpop.f32.mrb[153].mxu0  ;;  %18050 = vmatmul.mubr.msk.f32.vlgmr.msra.gmra.mrb[164].mxu1 %vm227_vm2, %v14083_v47 }
0x70ba   :  { %14537 = vmatprep.mubr.f32.mxu1 %v19458_v6  ;;  %v14190_v18 = vrot.slane %v21654_v10, %v19886_v32 }
0x718c   :  { %v14156_v16 = vpop.f32.mrb[164].mxu1 }
0x718d   :  { %v14160_v0 = vadd.f32 %v14156_v16, %v13920_v43  ;;  %v18051_v40 = vpop.f32.mrb[165].mxu1  ;;  %v16096_v16 = vld [vmem:[%s22048_s14 + $0x270] sm:$0xff] }
0x718e   :  { %v16111_v40 = vld [vmem:[%s22048_s14 + $0x2e8] sm:$0xff] }
0x718f   :  { %v14167_v54 = vadd.f32 %v16081_v9, %v14160_v0  ;;  %v16088_v9 = vld [vmem:[%s22048_s14 + $0x230] sm:$0xff]  ;;  %v16103_v0 = vld [vmem:[%s22048_s14 + $0x2a8] sm:$0xff] }
0x7190   :  { %v18965_v10 = vpack.c.bf16 %v16111_v40, %v16103_v0  ;;  %v16170_v0 = vld [vmem:[%s22049_s19 + $0x9b8] sm:$0xff] }
0x7191   :  { %v14168_v55 = vadd.f32 %v14167_v54, %v21665_v8  ;;  %v16093_v8 = vld [vmem:[%s22048_s14 + $0x258] sm:$0xff] }
0x7192   :  { %v18953_v62 = vpack.c.bf16 %v16093_v8, %v16085_v15  ;;  %v16105_v54 = vld [vmem:[%s22048_s14 + $0x2b8] sm:$0xff]  ;;  %v16131_v15 = vld [vmem:[%s22049_s19 + $0x880] sm:$0xff] }
0x7193   :  { %v14169_v36 = vsel %vm150_vm1, %v14168_v55, 0.0  ;;  %v16163_v8 = vld [vmem:[%s22049_s19 + $0x980] sm:$0xff]  ;;  %v18977_v2 = vpack.c.bf16 %v16132_v58, %v16131_v15 }
0x7194   :  { %14170 = vadd.xlane.f32.xlu1 %v14169_v36  ;;  %18954 = vmatprep.subr.bf16.mxu1 %v18953_v62  ;;  %v18963_v36 = vpack.c.bf16 %v16094_v59, %v16086_v22  ;;  %v18975_v62 = vpack.c.bf16 %v16112_v27, %v16104_v57  ;;  %v16151_v59 = vld [vmem:[%s22049_s19 + $0x920] sm:$0xff]  ;;  %v16172_v27 = vld [vmem:[%s22049_s19 + $0x9c8] sm:$0xff] }
0x7195   :  { %18956 = vmatpush1.bf16.msra.mxu1 %v18955_v4  ;;  %v19009_v4 = vpack.c.bf16 %v16164_v21, %v16163_v8  ;;  %v16171_v57 = vld [vmem:[%s22049_s19 + $0x9c0] sm:$0xff]  ;;  %v16124_v21 = vld [vmem:[%s22049_s19 + $0x848] sm:$0xff] }
0x7196   :  { %18958 = vmatprep.subr.bf16.mxu1 %v18957_v24  ;;  %v19011_v24 = vpack.c.bf16 %v16148_v49, %v16147_v7  ;;  %v16123_v8 = vld [vmem:[%s22049_s19 + $0x840] sm:$0xff]  ;;  %v16173_v7 = vld [vmem:[%s22049_s19 + $0x9d0] sm:$0xff]  ;;  %v16174_v49 = vld [vmem:[%s22049_s19 + $0x9d8] sm:$0xff] }
0x7197   :  { %v18995_v5 = vpack.c.bf16 %v16124_v21, %v16123_v8 }
0x7199   :  { %18960 = vmatpush1.bf16.msra.mxu1 %v18959_v34  ;;  %v16149_v34 = vld [vmem:[%s22049_s19 + $0x910] sm:$0xff] }
0x719a   :  { %18970 = vmatprep.subr.bf16.mxu1 %v18969_v39  ;;  %v16168_v39 = vld [vmem:[%s22049_s19 + $0x9a8] sm:$0xff] }
0x719b   :  { %v19017_v22 = vpack.c.bf16 %v16168_v39, %v16167_v28  ;;  %v16127_v28 = vld [vmem:[%s22049_s19 + $0x860] sm:$0xff] }
0x7221   :  { %v14171_v23 = vpop.xlane.xlu1 %14170 }
0x7222   :  { %v14172_v56 = vmul.f32 0.03125, %v14171_v23  ;;  %v18971_v23 = vpack.c.bf16 %v16096_v16, %v16088_v9  ;;  %v16138_v9 = vld [vmem:[%s22049_s19 + $0x8b8] sm:$0xff]  ;;  %v16169_v16 = vld [vmem:[%s22049_s19 + $0x9b0] sm:$0xff] }
0x7224   :  { %v14173_v44 = vsub.f32 %v14168_v55, %v14172_v56  ;;  %v16102_v56 = vld [vmem:[%s22048_s14 + $0x2a0] sm:$0xff] }
0x7226   :  { %v14174_v50 = vmul.f32 %v14173_v44, %v14173_v44 }
0x7228   :  { %v14175_v14 = vsel %vm150_vm1, %v14174_v50, 0.0 }
0x7229   :  { %14176 = vadd.xlane.f32.xlu1 %v14175_v14  ;;  %v18973_v14 = vpack.c.bf16 %v16113_v31, %v16105_v54  ;;  %v16121_v31 = vld [vmem:[%s22049_s19 + $0x830] sm:$0xff] }
0x72b6   :  { %v14177_v41 = vpop.xlane.xlu1 %14176 }
0x72b7   :  { %v14178_v42 = vmul.f32 0.03125, %v14177_v41  ;;  %v18983_v41 = vpack.c.bf16 %v16118_v26, %v16117_v12  ;;  %v16157_v12 = vld [vmem:[%s22049_s19 + $0x950] sm:$0xff]  ;;  %v16158_v26 = vld [vmem:[%s22049_s19 + $0x958] sm:$0xff] }
0x72b9   :  { %v14179_v43 = vadd.f32 1e-05, %v14178_v42  ;;  %v19015_v42 = vpack.c.bf16 %v16150_v63, %v16149_v34  ;;  %v16175_v34 = vld [vmem:[%s22049_s19 + $0x9e0] sm:$0xff]  ;;  %v16176_v63 = vld [vmem:[%s22049_s19 + $0x9e8] sm:$0xff] }
0x72bb   :  { %19360 = vrsqrt.f32 %v14179_v43  ;;  %v16119_v43 = vld [vmem:[%s22049_s19 + $0x820] sm:$0xff] }
0x72c5   :  { %v19361_v48 = vpop.eup %19360 }
0x72c6   :  { %v14181_v47 = vmul.f32 %v19361_v48, %v14173_v44  ;;  %v16110_v44 = vld [vmem:[%s22048_s14 + $0x2e0] sm:$0xff]  ;;  %v18985_v48 = vpack.c.bf16 %v16136_v37, %v16135_v35  ;;  %v18999_v35 = vpack.c.bf16 %v16126_v11, %v16125_v13  ;;  %v19031_v37 = vpack.c.bf16 %v16158_v26, %v16157_v12  ;;  %v16212_v13 = vld [vmem:[%s22049_s19 + $0xb08] sm:$0xff]  ;;  %v16197_v11 = vld [vmem:[%s22049_s19 + $0xa90] sm:$0xff] }
0x72c7   :  { %v18967_v60 = vpack.c.bf16 %v16110_v44, %v16102_v56  ;;  %v16153_v56 = vld [vmem:[%s22049_s19 + $0x930] sm:$0xff]  ;;  %v16154_v44 = vld [vmem:[%s22049_s19 + $0x938] sm:$0xff] }
0x72c8   :  { %v14186_v55 = vmul.f32 %v14185_v45, %v14181_v47  ;;  %v16120_v45 = vld [vmem:[%s22049_s19 + $0x828] sm:$0xff]  ;;  %v19023_v58 = vpack.c.bf16 %v16154_v44, %v16153_v56  ;;  %v16195_v56 = vld [vmem:[%s22049_s19 + $0xa80] sm:$0xff]  ;;  %v16230_v12 = vld [vmem:[%s22049_s19 + $0xb98] sm:$0xff] }
0x72c9   :  { %v16152_v47 = vld [vmem:[%s22049_s19 + $0x928] sm:$0xff]  ;;  %v18987_v40 = vpack.c.bf16 %v16120_v45, %v16119_v43  ;;  %v16159_v43 = vld [vmem:[%s22049_s19 + $0x960] sm:$0xff] }
0x72ca   :  { %v21795_v50 = vadd.f32 %v14190_v18, %v14186_v55  ;;  %v16137_v18 = vld [vmem:[%s22049_s19 + $0x8b0] sm:$0xff]  ;;  %v19019_v54 = vpack.c.bf16 %v16152_v47, %v16151_v59  ;;  %v16122_v55 = vld [vmem:[%s22049_s19 + $0x838] sm:$0xff]  ;;  %v16160_v45 = vld [vmem:[%s22049_s19 + $0x968] sm:$0xff] }
0x72cb   :  { %v18991_v15 = vpack.c.bf16 %v16122_v55, %v16121_v31  ;;  %v16145_v59 = vld [vmem:[%s22049_s19 + $0x8f0] sm:$0xff]  ;;  %v16146_v47 = vld [vmem:[%s22049_s19 + $0x8f8] sm:$0xff]  ;;  %v16196_v44 = vld [vmem:[%s22049_s19 + $0xa88] sm:$0xff] }
0x72cc   :  { %16244 = vmatmul.mubr.msk.f32.vlgmr.msra.gmra.mrb[154].mxu0 %vm150_vm1, %v21795_v50  ;;  %16245 = vmatmul.mubr.msk.f32.vlgmr.msra.gmra.mrb[166].mxu1 %vm150_vm1, %v21795_v50  ;;  %v16161_v55 = vld [vmem:[%s22049_s19 + $0x970] sm:$0xff] }
0x72cd   :  { %18964 = vmatpush1.bf16.msra.mxu0 %v18963_v36  ;;  %18972 = vmatpush1.bf16.msra.mxu1 %v18971_v23  ;;  %v18989_v36 = vpack.c.bf16 %v16138_v9, %v16137_v18  ;;  %v19021_v23 = vpack.c.bf16 %v16170_v0, %v16169_v16  ;;  %v16177_v18 = vld [vmem:[%s22049_s19 + $0x9f0] sm:$0xff]  ;;  %v19005_v9 = vpack.c.bf16 %v16146_v47, %v16145_v59  ;;  %v16178_v16 = vld [vmem:[%s22049_s19 + $0x9f8] sm:$0xff]  ;;  %v16200_v59 = vld [vmem:[%s22049_s19 + $0xaa8] sm:$0xff] }
0x72ce   :  { %18966 = vmatprep.subr.bf16.mxu0 %v18965_v10  ;;  %18974 = vmatprep.subr.bf16.mxu1 %v18973_v14  ;;  %v16139_v10 = vld [vmem:[%s22049_s19 + $0x8c0] sm:$0xff]  ;;  %v16140_v14 = vld [vmem:[%s22049_s19 + $0x8c8] sm:$0xff]  ;;  %v16129_v0 = vld [vmem:[%s22049_s19 + $0x870] sm:$0xff] }
0x72cf   :  { %14608 = vmatprep.mubr.f32.mxu0 %v19458_v6  ;;  %14679 = vmatprep.mubr.f32.mxu1 %v19458_v6  ;;  %v16231_v47 = vld [vmem:[%s22049_s19 + $0xba0] sm:$0xff] }
0x72d1   :  { %18968 = vmatpush1.bf16.msra.mxu0 %v18967_v60  ;;  %18976 = vmatpush1.bf16.msra.mxu1 %v18975_v62  ;;  %v18993_v60 = vpack.c.bf16 %v16140_v14, %v16139_v10  ;;  %v19025_v62 = vpack.c.bf16 %v16172_v27, %v16171_v57  ;;  %v16227_v10 = vld [vmem:[%s22049_s19 + $0xb80] sm:$0xff]  ;;  %v19041_v14 = vpack.c.bf16 %v16196_v44, %v16195_v56  ;;  %v16228_v57 = vld [vmem:[%s22049_s19 + $0xb88] sm:$0xff]  ;;  %v16201_v44 = vld [vmem:[%s22049_s19 + $0xab0] sm:$0xff] }
0x72d2   :  { %18978 = vmatprep.subr.bf16.mxu0 %v18977_v2  ;;  %19010 = vmatprep.subr.bf16.mxu1 %v19009_v4  ;;  %v16141_v2 = vld [vmem:[%s22049_s19 + $0x8d0] sm:$0xff]  ;;  %v16142_v4 = vld [vmem:[%s22049_s19 + $0x8d8] sm:$0xff]  ;;  %v19073_v27 = vpack.c.bf16 %v16228_v57, %v16227_v10  ;;  %v16216_v56 = vld [vmem:[%s22049_s19 + $0xb28] sm:$0xff] }
0x72d3   :  { %v16202_v57 = vld [vmem:[%s22049_s19 + $0xab8] sm:$0xff] }
0x72d4   :  { %16246 = vmatmul.mubr.msk.f32.vlgmr.msra.gmra.mrb[156].mxu0 %vm150_vm1, %v21795_v50  ;;  %16247 = vmatmul.mubr.msk.f32.vlgmr.msra.gmra.mrb[168].mxu1 %vm150_vm1, %v21795_v50 }
0x72d5   :  { %18980 = vmatpush3.bf16.msra.mxu0 %v18979_v20  ;;  %19012 = vmatpush3.bf16.msra.mxu1 %v19011_v24  ;;  %v18997_v20 = vpack.c.bf16 %v16142_v4, %v16141_v2  ;;  %v19029_v24 = vpack.c.bf16 %v16174_v49, %v16173_v7  ;;  %v16180_v2 = vld [vmem:[%s22049_s19 + $0xa08] sm:$0xff] }
0x72d6   :  { %18982 = vmatprep.subr.bf16.mxu0 %v18981_v38  ;;  %19014 = vmatprep.subr.bf16.mxu1 %v19013_v53  ;;  %v16143_v38 = vld [vmem:[%s22049_s19 + $0x8e0] sm:$0xff]  ;;  %v16144_v53 = vld [vmem:[%s22049_s19 + $0x8e8] sm:$0xff] }
0x72d7   :  { %v19001_v39 = vpack.c.bf16 %v16144_v53, %v16143_v38  ;;  %v19043_v53 = vpack.c.bf16 %v16180_v2, %v16179_v19  ;;  %v16186_v19 = vld [vmem:[%s22049_s19 + $0xa38] sm:$0xff]  ;;  %v19053_v2 = vpack.c.bf16 %v16202_v57, %v16201_v44 }
0x72d8   :  { %v16210_v44 = vld [vmem:[%s22049_s19 + $0xaf8] sm:$0xff] }
0x72d9   :  { %18984 = vmatpush3.bf16.msra.mxu0 %v18983_v41  ;;  %19016 = vmatpush3.bf16.msra.mxu1 %v19015_v42  ;;  %v19033_v41 = vpack.c.bf16 %v16176_v63, %v16175_v34  ;;  %v16128_v42 = vld [vmem:[%s22049_s19 + $0x868] sm:$0xff]  ;;  %v16181_v63 = vld [vmem:[%s22049_s19 + $0xa10] sm:$0xff] }
0x72da   :  { %18986 = vmatprep.subr.bf16.mxu0 %v18985_v48  ;;  %19018 = vmatprep.subr.bf16.mxu1 %v19017_v22  ;;  %v19003_v48 = vpack.c.bf16 %v16128_v42, %v16127_v28  ;;  %v19035_v22 = vpack.c.bf16 %v16160_v45, %v16159_v43  ;;  %v16213_v42 = vld [vmem:[%s22049_s19 + $0xb10] sm:$0xff]  ;;  %v16214_v43 = vld [vmem:[%s22049_s19 + $0xb18] sm:$0xff]  ;;  %v16199_v45 = vld [vmem:[%s22049_s19 + $0xaa0] sm:$0xff] }
0x72dd   :  { %18988 = vmatpush3.bf16.msra.mxu0 %v18987_v40  ;;  %19020 = vmatpush3.bf16.msra.mxu1 %v19019_v54  ;;  %v16130_v40 = vld [vmem:[%s22049_s19 + $0x878] sm:$0xff]  ;;  %v19037_v54 = vpack.c.bf16 %v16178_v16, %v16177_v18  ;;  %v16232_v18 = vld [vmem:[%s22049_s19 + $0xba8] sm:$0xff] }
0x72de   :  { %18990 = vmatprep.subr.bf16.mxu0 %v18989_v36  ;;  %19022 = vmatprep.subr.bf16.mxu1 %v19021_v23  ;;  %v19007_v31 = vpack.c.bf16 %v16130_v40, %v16129_v0  ;;  %v16162_v36 = vld [vmem:[%s22049_s19 + $0x978] sm:$0xff]  ;;  %v16184_v40 = vld [vmem:[%s22049_s19 + $0xa28] sm:$0xff] }
0x72df   :  { %v19039_v23 = vpack.c.bf16 %v16162_v36, %v16161_v55  ;;  %v19049_v55 = vpack.c.bf16 %v16200_v59, %v16199_v45  ;;  %v19081_v36 = vpack.c.bf16 %v16232_v18, %v16231_v47  ;;  %v16207_v59 = vld [vmem:[%s22049_s19 + $0xae0] sm:$0xff]  ;;  %v16208_v47 = vld [vmem:[%s22049_s19 + $0xae8] sm:$0xff] }
0x72e0   :  { %v16239_v18 = vld [vmem:[%s22049_s19 + $0xbe0] sm:$0xff] }
0x72e1   :  { %18992 = vmatpush3.bf16.msra.mxu0 %v18991_v15  ;;  %19024 = vmatpush3.bf16.msra.mxu1 %v19023_v58  ;;  %v21878_v15 = vld [vmem:[%s22050_s24 + $0x10] sm:$0xff] }
0x72e2   :  { %18994 = vmatprep.subr.bf16.mxu0 %v18993_v60  ;;  %19026 = vmatprep.subr.bf16.mxu1 %v19025_v62  ;;  %v14362_v58 = vrot.slane %v21878_v15, %v19775_v17  ;;  %v14370_v8 = vrot.slane %v21878_v15, %v19880_v30  ;;  %v14366_v21 = vrot.slane %v21878_v15, %v19886_v32 }
0x72e3   :  { %v14374_v60 = vrot.slane %v21878_v15, %v19889_v33  ;;  %v16198_v33 = vld [vmem:[%s22049_s19 + $0xa98] sm:$0xff]  ;;  %v14378_v57 = vrot.slane %v21878_v15, %v19962_v25 }
0x72e5   :  { %18996 = vmatpush3.bf16.msra.mxu0 %v18995_v5  ;;  %19028 = vmatpush3.bf16.msra.mxu1 %v19027_v61  ;;  %v16211_v61 = vld [vmem:[%s22049_s19 + $0xb00] sm:$0xff] }
0x72e6   :  { %18998 = vmatprep.subr.bf16.mxu0 %v18997_v20  ;;  %19030 = vmatprep.subr.bf16.mxu1 %v19029_v24  ;;  %v16229_v24 = vld [vmem:[%s22049_s19 + $0xb90] sm:$0xff]  ;;  %v19075_v34 = vpack.c.bf16 %v16212_v13, %v16211_v61  ;;  %v16204_v61 = vld [vmem:[%s22049_s19 + $0xac8] sm:$0xff]  ;;  %v16235_v13 = vld [vmem:[%s22049_s19 + $0xbc0] sm:$0xff] }
0x72e9   :  { %19000 = vmatpush3.bf16.msra.mxu0 %v18999_v35  ;;  %19032 = vmatpush3.bf16.msra.mxu1 %v19031_v37  ;;  %v16182_v35 = vld [vmem:[%s22049_s19 + $0xa18] sm:$0xff] }
0x72ea   :  { %19002 = vmatprep.subr.bf16.mxu0 %v19001_v39  ;;  %19034 = vmatprep.subr.bf16.mxu1 %v19033_v41  ;;  %v19045_v39 = vpack.c.bf16 %v16198_v33, %v16197_v11  ;;  %v19077_v41 = vpack.c.bf16 %v16230_v12, %v16229_v24  ;;  %v19047_v0 = vpack.c.bf16 %v16182_v35, %v16181_v63  ;;  %v16236_v11 = vld [vmem:[%s22049_s19 + $0xbc8] sm:$0xff]  ;;  %v16187_v33 = vld [vmem:[%s22049_s19 + $0xa40] sm:$0xff]  ;;  %v16206_v63 = vld [vmem:[%s22049_s19 + $0xad8] sm:$0xff] }
0x72eb   :  { %v16188_v24 = vld [vmem:[%s22049_s19 + $0xa48] sm:$0xff]  ;;  %v16237_v35 = vld [vmem:[%s22049_s19 + $0xbd0] sm:$0xff] }
0x72ed   :  { %19004 = vmatpush3.bf16.msra.mxu0 %v19003_v48  ;;  %19036 = vmatpush3.bf16.msra.mxu1 %v19035_v22  ;;  %v14382_v48 = vrot.slane %v21878_v15, %v19905_v51  ;;  %v14390_v22 = vrot.slane %v21878_v15, %v19908_v52  ;;  %v19079_v51 = vpack.c.bf16 %v16214_v43, %v16213_v42  ;;  %v16183_v52 = vld [vmem:[%s22049_s19 + $0xa20] sm:$0xff]  ;;  %v16190_v42 = vld [vmem:[%s22049_s19 + $0xa58] sm:$0xff] }
0x72ee   :  { %19006 = vmatprep.subr.bf16.mxu0 %v19005_v9  ;;  %19038 = vmatprep.subr.bf16.mxu1 %v19037_v54 }
0x72f1   :  { %19008 = vmatpush3.bf16.msra.mxu0 %v19007_v31  ;;  %19040 = vmatpush3.bf16.msra.mxu1 %v19039_v23  ;;  %v16215_v23 = vld [vmem:[%s22049_s19 + $0xb20] sm:$0xff] }
0x72f2   :  { %19042 = vmatprep.subr.bf16.mxu0 %v19041_v14  ;;  %19074 = vmatprep.subr.bf16.mxu1 %v19073_v27  ;;  %v16233_v27 = vld [vmem:[%s22049_s19 + $0xbb0] sm:$0xff] }
0x739f   :  { %v14468_v62 = vpop.f32.mrb[154].mxu0  ;;  %v14539_v1 = vpop.f32.mrb[166].mxu1 }
0x73a0   :  { %v14469_v4 = vadd.f32 %v14468_v62, %v14362_v58  ;;  %v14540_v7 = vadd.f32 %v14539_v1, %v14370_v8  ;;  %v14470_v49 = vpop.f32.mrb[155].mxu0  ;;  %v14541_v5 = vpop.f32.mrb[167].mxu1  ;;  %v16234_v58 = vld [vmem:[%s22049_s19 + $0xbb8] sm:$0xff]  ;;  %v19083_v62 = vpack.c.bf16 %v16216_v56, %v16215_v23  ;;  %v16185_v1 = vld [vmem:[%s22049_s19 + $0xa30] sm:$0xff]  ;;  %v16224_v23 = vld [vmem:[%s22049_s19 + $0xb68] sm:$0xff] }
0x73a1   :  { %v14471_v32 = vadd.f32 %v14470_v49, %v14366_v21  ;;  %v14542_v20 = vadd.f32 %v14541_v5, %v14374_v60  ;;  %v19051_v60 = vpack.c.bf16 %v16184_v40, %v16183_v52  ;;  %v16218_v49 = vld [vmem:[%s22049_s19 + $0xb38] sm:$0xff]  ;;  %v16203_v5 = vld [vmem:[%s22049_s19 + $0xac0] sm:$0xff]  ;;  %v16209_v56 = vld [vmem:[%s22049_s19 + $0xaf0] sm:$0xff] }
0x73a2   :  { %v14686_v37 = vmax.f32 %v14469_v4, 0.0  ;;  %v14688_v28 = vmax.f32 %v14540_v7, 0.0  ;;  %v19085_v4 = vpack.c.bf16 %v16234_v58, %v16233_v27  ;;  %v16217_v7 = vld [vmem:[%s22049_s19 + $0xb30] sm:$0xff]  ;;  %v19057_v12 = vpack.c.bf16 %v16204_v61, %v16203_v5  ;;  %v16191_v40 = vld [vmem:[%s22049_s19 + $0xa60] sm:$0xff] }
0x73a3   :  { %v14687_v26 = vmax.f32 %v14471_v32, 0.0  ;;  %v14689_v38 = vmax.f32 %v14542_v20, 0.0  ;;  %v19055_v32 = vpack.c.bf16 %v16186_v19, %v16185_v1  ;;  %v19087_v20 = vpack.c.bf16 %v16218_v49, %v16217_v7  ;;  %v16194_v1 = vld [vmem:[%s22049_s19 + $0xa78] sm:$0xff]  ;;  %v16225_v19 = vld [vmem:[%s22049_s19 + $0xb70] sm:$0xff] }
0x73a5   :  { %14764 = vmatprep.mubr.f32.mxu0 %v14687_v26  ;;  %14834 = vmatprep.mubr.f32.mxu1 %v14689_v38  ;;  %v19089_v26 = vpack.c.bf16 %v16236_v11, %v16235_v13  ;;  %v16219_v38 = vld [vmem:[%s22049_s19 + $0xb40] sm:$0xff]  ;;  %v15008_v11 = vld [vmem:[%s22052_s30 + $0x10] sm:$0xff] }
0x73a6   :  { %14765 = vmatmul.mubr.f32.vlgmr.msra.gmra.mrb[158].mxu0 %v14686_v37  ;;  %14835 = vmatmul.mubr.f32.vlgmr.msra.gmra.mrb[170].mxu1 %v14688_v28  ;;  %v16238_v37 = vld [vmem:[%s22049_s19 + $0xbd8] sm:$0xff]  ;;  %v19059_v28 = vpack.c.bf16 %v16188_v24, %v16187_v33 }
0x73a7   :  { %v21908_v9 = vpop.f32.mrb[156].mxu0  ;;  %v21910_v16 = vpop.f32.mrb[168].mxu1  ;;  %19044 = vmatpush3.bf16.msra.mxu0 %v19043_v53  ;;  %19076 = vmatpush3.bf16.msra.mxu1 %v19075_v34  ;;  %v16220_v53 = vld [vmem:[%s22049_s19 + $0xb48] sm:$0xff]  ;;  %v16205_v34 = vld [vmem:[%s22049_s19 + $0xad0] sm:$0xff]  ;;  %v19093_v45 = vpack.c.bf16 %v16238_v37, %v16237_v35 }
0x73a8   :  { %v14612_v54 = vpop.f32.mrb[157].mxu0  ;;  %v14683_v31 = vpop.f32.mrb[169].mxu1  ;;  %19046 = vmatprep.subr.bf16.mxu0 %v19045_v39  ;;  %19078 = vmatprep.subr.bf16.mxu1 %v19077_v41  ;;  %v19091_v39 = vpack.c.bf16 %v16220_v53, %v16219_v38  ;;  %v16189_v41 = vld [vmem:[%s22049_s19 + $0xa50] sm:$0xff]  ;;  %v19061_v43 = vpack.c.bf16 %v16206_v63, %v16205_v34  ;;  %v14611_v7 = vadd.f32 %v21908_v9, %v14378_v57 }
0x73a9   :  { %v14613_v10 = vadd.f32 %v14612_v54, %v14382_v48  ;;  %v14684_v14 = vadd.f32 %v14683_v31, %v14390_v22  ;;  %v16221_v48 = vld [vmem:[%s22049_s19 + $0xb50] sm:$0xff]  ;;  %v16222_v22 = vld [vmem:[%s22049_s19 + $0xb58] sm:$0xff]  ;;  %v16192_v54 = vld [vmem:[%s22049_s19 + $0xa68] sm:$0xff]  ;;  %v19065_v31 = vpack.c.bf16 %v16208_v47, %v16207_v59 }
0x73aa   :  { %v19095_v52 = vpack.c.bf16 %v16222_v22, %v16221_v48  ;;  %v19067_v27 = vpack.c.bf16 %v16192_v54, %v16191_v40  ;;  %v14690_v61 = vmax.f32 %v14611_v7, 0.0  ;;  %v16249_v48 = vld [vmem:[%s22054_s23] ss:$0 sm:$0xff] }
0x73ab   :  { %v14691_v8 = vmax.f32 %v14613_v10, 0.0  ;;  %v14693_v21 = vmax.f32 %v14684_v14, 0.0  ;;  %19048 = vmatpush3.bf16.msra.mxu0 %v19047_v0  ;;  %19080 = vmatpush3.bf16.msra.mxu1 %v19079_v51  ;;  %v16240_v0 = vld [vmem:[%s22049_s19 + $0xbe8] sm:$0xff]  ;;  %v19063_v51 = vpack.c.bf16 %v16190_v42, %v16189_v41  ;;  %v16241_v10 = vld [vmem:[%s22049_s19 + $0xbf0] sm:$0xff]  ;;  %v16242_v14 = vld [vmem:[%s22049_s19 + $0xbf8] sm:$0xff] }
0x73ac   :  { %19050 = vmatprep.subr.bf16.mxu0 %v19049_v55  ;;  %19082 = vmatprep.subr.bf16.mxu1 %v19081_v36  ;;  %v19097_v55 = vpack.c.bf16 %v16240_v0, %v16239_v18  ;;  %v16223_v36 = vld [vmem:[%s22049_s19 + $0xb60] sm:$0xff] }
0x73ad   :  { %14904 = vmatprep.mubr.f32.mxu0 %v14691_v8  ;;  %14974 = vmatprep.mubr.f32.mxu1 %v14693_v21  ;;  %v19099_v58 = vpack.c.bf16 %v16224_v23, %v16223_v36  ;;  %v16193_v8 = vld [vmem:[%s22049_s19 + $0xa70] sm:$0xff]  ;;  %v14386_v21 = vrot.slane %v21878_v15, %v19967_v29  ;;  %v15006_v29 = vld [vmem:[%s22052_s30] sm:$0xff]  ;;  %v15007_v15 = vld [vmem:[%s22052_s30 + $0x8] sm:$0xff]  ;;  %v15163_v23 = vmul.f32 %v20756_v46, %v20756_v46 }
0x73ae   :  { %v19071_v25 = vpack.c.bf16 %v16194_v1, %v16193_v8  ;;  %v19106_v5 = vpack.c.bf16 %v15007_v15, %v15006_v29  ;;  %v19374_v1 = vld [vmem:[%s22044_s25 + $0x8] sm:$0x7] }
0x73af   :  { %19052 = vmatpush3.bf16.msra.mxu0 %v19051_v60  ;;  %19084 = vmatpush3.bf16.msra.mxu1 %v19083_v62  ;;  %v19069_v60 = vpack.c.bf16 %v16210_v44, %v16209_v56  ;;  %v19101_v62 = vpack.c.bf16 %v16242_v14, %v16241_v10  ;;  %v14682_v49 = vadd.f32 %v21910_v16, %v14386_v21  ;;  %v15089_v16 = vld [vmem:[%s22053_s6] sm:$0xf] }
0x73b0   :  { %19054 = vmatprep.subr.bf16.mxu0 %v19053_v2  ;;  %19086 = vmatprep.subr.bf16.mxu1 %v19085_v4  ;;  %v16226_v2 = vld [vmem:[%s22049_s19 + $0xb78] sm:$0xff] }
0x73b1   :  { %v19103_v4 = vpack.c.bf16 %v16226_v2, %v16225_v19  ;;  %v14692_v13 = vmax.f32 %v14682_v49, 0.0  ;;  %v14997_v19 = vrot.slane %v19374_v1, %v19880_v30 }
0x73b3   :  { %19056 = vmatpush3.bf16.msra.mxu0 %v19055_v32  ;;  %19088 = vmatpush3.bf16.msra.mxu1 %v19087_v20  ;;  %v15009_v32 = vld [vmem:[%s22052_s30 + $0x18] sm:$0xff]  ;;  %v15167_v20 = vmul.f32 %v15089_v16, %v15089_v16 }
0x73b4   :  { %19058 = vmatprep.subr.bf16.mxu0 %v19057_v12  ;;  %19090 = vmatprep.subr.bf16.mxu1 %v19089_v26  ;;  %v19109_v9 = vpack.c.bf16 %v15009_v32, %v15008_v11  ;;  %v16248_v12 = vld [vmem:[%s22051_s22 + $0x2] ss:$0 sm:$0xff] }
0x73b7   :  { %19060 = vmatpush3.bf16.msra.mxu0 %v19059_v28  ;;  %19092 = vmatpush3.bf16.msra.mxu1 %v19091_v39 }
0x73b8   :  { %19062 = vmatprep.subr.bf16.mxu0 %v19061_v43  ;;  %19094 = vmatprep.subr.bf16.mxu1 %v19093_v45 }
0x73bb   :  { %19064 = vmatpush3.bf16.msra.mxu0 %v19063_v51  ;;  %19096 = vmatpush3.bf16.msra.mxu1 %v19095_v52 }
0x73bc   :  { %19066 = vmatprep.subr.bf16.mxu0 %v19065_v31  ;;  %19098 = vmatprep.subr.bf16.mxu1 %v19097_v55 }
0x73bf   :  { %19068 = vmatpush3.bf16.msra.mxu0 %v19067_v27  ;;  %19100 = vmatpush3.bf16.msra.mxu1 %v19099_v58 }
0x73c0   :  { %19070 = vmatprep.subr.bf16.mxu0 %v19069_v60  ;;  %19102 = vmatprep.subr.bf16.mxu1 %v19101_v62 }
0x73c3   :  { %19072 = vmatpush3.bf16.msra.mxu0 %v19071_v25  ;;  %19104 = vmatpush3.bf16.msra.mxu1 %v19103_v4  ;;  %v19375_v4 = vld [vmem:[%s22045_s29 + $0x8] sm:$0x7] }
0x73c4   :  { %19105 = vmatprep.subr.bf16.mxu0 %v19456_v3  ;;  %18063 = vmatprep.subr.mxu1 %v19458_v6  ;;  %v15002_v7 = vrot.slane %v19375_v4, %v19880_v30 }
0x73c6   :  { %14905 = vmatmul.mubr.f32.vlgmr.msra.gmra.mrb[160].mxu0 %v14690_v61  ;;  %14975 = vmatmul.mubr.f32.vlgmr.msra.gmra.mrb[172].mxu1 %v14692_v13 }
0x73c7   :  { %19107 = vmatpush3.bf16.msra.mxu0 %v19106_v5  ;;  %18060 = vmatprep.mubr.msk.f32.mxu0 %vm19457_vm0, %v19458_v6 }
0x73c8   :  { %19108 = vmatprep.subr.bf16.mxu0 %v19456_v3  ;;  %18065 = vmatprep.mubr.msk.f32.mxu1 %vm19457_vm0, %v19458_v6  ;;  %v19470_v3 = vmov 1.0  }
0x73cb   :  { %19110 = vmatpush3.bf16.msra.mxu0 %v19109_v9 }
0x73cc   :  { %18064 = vmatpush3.xpose.msk.msra.mxu1 %vm150_vm1, %v15089_v16 }
0x73cd   :  { %18068 = vmatprep.subr.mxu1 %v19458_v6 }
0x73ce   :  { %18061 = vmatmul.mubr.msk.f32.vlgmr.msra.gmra.mrb[162].mxu0 %vm150_vm1, %v20756_v46 }
0x73cf   :  { %18066 = vmatmul.mubr.msk.f32.vlgmr.msra.gmra.mrb[174].mxu1 %vm150_vm1, %v20756_v46 }
0x73d0   :  { %18069 = vmatpush3.xpose.msk.msra.mxu1 %vm150_vm1, %v15167_v20  ;;  %18070 = vmatprep.mubr.msk.f32.mxu1 %vm19457_vm0, %v19458_v6 }
0x73d3   :  { %18071 = vmatmul.mubr.msk.f32.vlgmr.msra.gmra.mrb[176].mxu1 %vm150_vm1, %v19470_v3 }
0x7479   :  { %v17263_v33 = vpop.f32.mrb[158].mxu0  ;;  %v17298_v24 = vpop.f32.mrb[170].mxu1 }
0x747a   :  { %v17264_v26 = vpop.f32.mrb[159].mxu0  ;;  %v17299_v38 = vpop.f32.mrb[171].mxu1 }
0x747b   :  { %v17265_v53 = vadd.f32 %v17264_v26, %v17263_v33  ;;  %v17300_v34 = vadd.f32 %v17299_v38, %v17298_v24 }
0x747d   :  { %v14767_v63 = vadd.f32 %v17265_v53, %v16248_v12 }
0x747f   :  { %v14837_v35 = vadd.f32 %v17300_v34, %v14767_v63 }
0x7499   :  { %v17333_v37 = vpop.f32.mrb[160].mxu0  ;;  %v17368_v28 = vpop.f32.mrb[172].mxu1 }
0x749a   :  { %v17334_v39 = vpop.f32.mrb[161].mxu0  ;;  %v17369_v41 = vpop.f32.mrb[173].mxu1 }
0x749b   :  { %v17335_v42 = vadd.f32 %v17334_v39, %v17333_v37  ;;  %v17370_v6 = vadd.f32 %v17369_v41, %v17368_v28 }
0x749d   :  { %v14907_v43 = vadd.f32 %v17335_v42, %v14837_v35 }
0x749f   :  { %v14977_v45 = vadd.f32 %v17370_v6, %v14907_v43 }
0x74a1   :  { %v15083_v22 = vpop.f32.mrb[162].mxu0  ;;  %v14980_v59 = vadd.f32 %v14977_v45, %v21795_v50  ;;  %v15164_v50 = vsel %vm150_vm1, %v15163_v23, 0.0 }
0x74a2   :  { %v15084_v47 = vadd.f32 %v16249_v48, %v15083_v22  ;;  %v18062_v18 = vpop.f32.mrb[163].mxu0  ;;  %v15159_v0 = vpop.f32.mrb[174].mxu1 }
0x74a3   :  { %v18067_v51 = vpop.f32.mrb[175].mxu1  ;;  %v14981_v52 = vsel %vm150_vm1, %v14980_v59, 0.0  ;;  %v15249_v8 = vmul.f32 2.0, %v15159_v0 }
0x74a4   :  { %15088 = vst.msk [vmem:[%s19636_s20] sm:$0xff] %vm15087_vm3, %v15084_v47  ;;  %14982 = vadd.xlane.f32.xlu1 %v14981_v52  ;;  %s19471_s20 = smov [#allocation2]  }
0x74a5   :  { %s15267_s26 = sshll.u32 %s19471_s20, 4  ;;  %s15268_s26 = int_to_ptr.vmem [resolvable:$true] %s15267_s26 }
0x74a6   :  { %v15240_v56 = vpop.f32.mrb[176].mxu1  ;;  %s19376_s28 = scalar_lea.vmem %s15268_s26, 128  ;;  %p19381_p1 = scmp.lt.s32.totalorder %s15268_s26, %s15268_s26 }
0x74a7   :  { %v18072_v44 = vpop.f32.mrb[177].mxu1  ;;  %v15247_v57 = vrot.slane %v15240_v56, %v19775_v17  ;;  %p19377_p0 = scmp.ne.s32.totalorder %s15268_s26, %s19376_s28  ;;  %p19382_p2 = scmp.lt.s32.totalorder %s19376_s28, %s19376_s28 }
0x74a9   :  { %p19383_p3 = por %p19382_p2, %p19381_p1 }
0x74ab   :  { %p19384_p4 = pnand %p19383_p3, %p19377_p0 }
0x7531   :  { %v14983_v40 = vpop.xlane.xlu1 %14982 }
0x7532   :  { %v14984_v54 = vmul.f32 0.03125, %v14983_v40 }
0x7534   :  { %v14985_v31 = vsub.f32 %v14980_v59, %v14984_v54 }
0x7536   :  { %v14986_v55 = vmul.f32 %v14985_v31, %v14985_v31 }
0x7538   :  { %v14987_v36 = vsel %vm150_vm1, %v14986_v55, 0.0 }
0x7539   :  { %14988 = vadd.xlane.f32.xlu1 %v14987_v36 }
0x753d   :  { %15165 = vadd.xlane.f32.xlu1 %v15164_v50 }
0x75c6   :  { %v14989_v10 = vpop.xlane.xlu1 %14988 }
0x75c7   :  { %v14990_v14 = vmul.f32 0.03125, %v14989_v10 }
0x75c9   :  { %v14991_v27 = vadd.f32 1e-05, %v14990_v14 }
0x75ca   :  { %v15166_v58 = vpop.xlane.xlu1 %15165 }
0x75cb   :  { %19362 = vrsqrt.f32 %v14991_v27  ;;  %v15248_v21 = vadd.f32 %v15247_v57, %v15166_v58 }
0x75cd   :  { %v15250_v60 = vsub.f32 %v15248_v21, %v15249_v8 }
0x75cf   :  { %v15251_v62 = vmax.f32 %v15250_v60, 0.0 }
0x75d1   :  { %v15252_v46 = vadd.f32 1.0, %v15251_v62 }
0x75d3   :  { %19364 = vrcp.f32 %v15252_v46 }
0x75d5   :  { %v19363_v2 = vpop.eup %19362 }
0x75d6   :  { %v14993_v25 = vmul.f32 %v19363_v2, %v14985_v31 }
0x75d8   :  { %v14998_v49 = vmul.f32 %v14997_v19, %v14993_v25 }
0x75da   :  { %v15003_v29 = vadd.f32 %v15002_v7, %v14998_v49 }
0x75dc   :  { %15004 = vst.msk [vmem:[#allocation2] sm:$0xff] %vm150_vm1, %v15003_v29 }
0x75dd   :  { %v19365_v17 = vpop.eup %19364 }
0x75de   :  { %v15255_v15 = vsel %vm15087_vm3, %v19365_v17, 0.0 }
0x75df   :  { %15256 = vadd.xlane.f32.xlu0 %v15255_v15 }
0x75e0   :  { %19387 = shalt.err (!%p19384_p4)
}
0x75e1   :  { %s19388_s1 = scalar_lea.hbm %s19626_s4, 128 }
0x75e2   :  { %p19389_p5 = scmp.ne.s32.totalorder %s19626_s4, %s19388_s1  ;;  %p19392_p6 = scmp.lt.u32.totalorder %s19388_s1, %s19626_s4 }
0x75e4   :  { %p19394_p7 = pnand %p19392_p6, %p19389_p5 }
0x75e6   :  { %19397 = shalt.err (!%p19394_p7)
}
0x75e7   :  { %15270 = dma.vmem_to_hbm [thread:$0]  %s15268_s26, 128, %s19626_s4, [#allocation3]  }
0x75e8   :  { %s19398_s2 = scalar_lea.vmem %s15278_s5, 128  ;;  %p19403_p9 = scmp.lt.s32.totalorder %s15278_s5, %s15278_s5 }
0x75e9   :  { %p19399_p8 = scmp.ne.s32.totalorder %s15278_s5, %s19398_s2  ;;  %p19404_p10 = scmp.lt.s32.totalorder %s19398_s2, %s19398_s2 }
0x75eb   :  { %p19405_p11 = por %p19404_p10, %p19403_p9 }
0x75ed   :  { %p19406_p12 = pnand %p19405_p11, %p19399_p8 }
0x75ef   :  { %19409 = shalt.err (!%p19406_p12)
}
0x75f0   :  { %s19410_s7 = scalar_lea.hbm %s19631_s12, 128 }
0x75f1   :  { %p19411_p13 = scmp.ne.s32.totalorder %s19631_s12, %s19410_s7  ;;  %p19414_p0 = scmp.lt.u32.totalorder %s19410_s7, %s19631_s12 }
0x75f3   :  { %p19416_p1 = pnand %p19414_p0, %p19411_p13 }
0x75f5   :  { %19419 = shalt.err (!%p19416_p1)
}
0x75f6   :  { %15280 = dma.vmem_to_hbm [thread:$0]  %s15278_s5, 128, %s19631_s12, [#allocation5]  }
0x766c   :  { %v15257_v30 = vpop.xlane.xlu0 %15256 }
0x766d   :  { %19366 = vrcp.f32 %v15257_v30 }
0x7677   :  { %v19367_v5 = vpop.eup %19366 }
0x7678   :  { %v15259_v61 = vmul.f32 %v19367_v5, %v19365_v17 }
0x767a   :  { %15260 = vst.msk [vmem:[%s19641_s27] sm:$0xff] %vm15087_vm3, %v15259_v61 }
0x767b   :  { %19420 = dma.done.wait [#allocation3], 128  }
0x767c   :  { %19421 = vsyncadd [#allocation3], 4294967168 }
0x767d   :  { %19422 = dma.done.wait [#allocation5], 128  }
0x767e   :  { %19423 = vsyncadd [#allocation5], 4294967168 }
0x767f   :  { %15295 = vsyncpa [#allocation3], 1 }
0x7680   :  { %15296 = vsyncpa [#allocation5], 1 }

</bundles_post_ra>
